<compile_context>
chip_gen: v6e
topology: v6e:2x2x1
jax: 0.10.0
libtpu: 0.0.40
codegen_flags: <defaults>
</compile_context>

<pallas_src>
import functools

import jax
import jax.numpy as jnp
import numpy as np
from jax import lax
from jax.experimental import pallas as pl
from jax.experimental.pallas import tpu as pltpu

REPR_DIM = 2048   # hardcoded in Online_Encoder: MLPHead(2048, output_dim, hidden_dim)
BN_EPS = 1e-5


def _round_up(v, m):
    return ((v + m - 1) // m) * m


def _pick_hidden_tile(hidden_dim):
    # Bigger tiles amortize per-step overhead and widen each streamed w1 DMA.
    # Cap at 1024 so a double-buffered bf16 w1 tile (2 * 2048 * tn * 2 B = 8 MiB)
    # stays inside every generation's scoped-VMEM budget (raised explicitly below).
    for t in (1024, 512, 256, 128):
        if hidden_dim % t == 0:
            return t
    return hidden_dim  # fallback: untiled (full dim)


# ----------------------------------------------------------------------------
# Fused MLPHead kernel: one hidden-dim chunk per grid step.
#   grid = (num_splits, hidden_chunks_per_split)
#   axis 0 ("parallel")  : split across TensorCores (v7x), partial proj slabs
#   axis 1 ("arbitrary") : hidden-dim reduction for the projection
# ----------------------------------------------------------------------------
def _mlp_head_kernel(rep_ref, w1_ref, b1_ref, gamma_ref, beta_ref, w2_ref,
                     proj_ref, *, b_real):
    k = pl.program_id(1)

    @pl.when(k == 0)
    def _init():
        proj_ref[...] = jnp.zeros_like(proj_ref)

    # Linear1 for this hidden chunk: (B_pad, 2048)bf16 @ (2048, TN)bf16 -> f32.
    h = jnp.dot(rep_ref[...], w1_ref[...],
                preferred_element_type=jnp.float32) + b1_ref[...]

    # BatchNorm1d, training mode: biased batch statistics (per-feature => exact
    # under hidden-dim tiling).  Padded batch rows are excluded from the stats.
    b_pad = h.shape[0]
    if b_pad == b_real:
        mean = jnp.mean(h, axis=0, keepdims=True)
        centered = h - mean
        var = jnp.mean(centered * centered, axis=0, keepdims=True)
    else:
        inv_n = 1.0 / b_real
        mask = (lax.broadcasted_iota(jnp.int32, (b_pad, 1), 0) < b_real
                ).astype(jnp.float32)
        mean = jnp.sum(h * mask, axis=0, keepdims=True) * inv_n
        centered = h - mean
        dm = centered * mask
        var = jnp.sum(dm * dm, axis=0, keepdims=True) * inv_n
    h = centered * lax.rsqrt(var + BN_EPS)
    h = h * gamma_ref[...] + beta_ref[...]
    h = jnp.maximum(h, 0.0)                                      # ReLU

    # Linear2 partial sum for this chunk, accumulated directly into the
    # VMEM-resident output block (constant block index along axis 1).
    proj_ref[...] += jnp.dot(h.astype(w2_ref.dtype), w2_ref[...],
                             preferred_element_type=jnp.float32)


# ----------------------------------------------------------------------------
# Online_Encoder forward: returns (projection, representation)
# ----------------------------------------------------------------------------
def online_encoder_forward(x_nchw, params):
    conv_w, conv_b = params["conv_w"], params["conv_b"]
    w1_blk, b1 = params["w1_blk"], params["b1"]
    gamma, beta = params["gamma"], params["beta"]
    w2_pad, b2 = params["w2_pad"], params["b2"]

    n_k, repr_dim, tn = w1_blk.shape
    assert repr_dim == REPR_DIM
    hidden_dim = n_k * tn
    out_pad = w2_pad.shape[1]
    out_dim = b2.shape[1]

    b_real = x_nchw.shape[0]

    # ---- backbone layer[-2] hook (synthetic stand-in, evaluated by XLA) -------
    # TODO(synk): real model injects an arbitrary backbone; this pool + 1x1 conv
    # only mimics the "flattened 2048-wide" hook contract.
    pooled = jnp.mean(x_nchw, axis=(2, 3))                                  # (B, C)
    rep = jnp.dot(pooled.astype(jnp.bfloat16), conv_w,
                  preferred_element_type=jnp.float32) + conv_b              # (B, 2048) f32

    # ---- fused MLPHead kernel --------------------------------------------------
    b_pad = max(_round_up(b_real, 16), 16)        # bf16 sublane packing / MXU rows
    rep_bf16 = rep.astype(jnp.bfloat16)           # cast ONCE, not per grid step
    if b_pad != b_real:
        rep_bf16 = jnp.pad(rep_bf16, ((0, b_pad - b_real), (0, 0)))

    num_splits = 2 if (n_k >= 2 and n_k % 2 == 0) else 1   # v7x: one half per TensorCore
    nkps = n_k // num_splits

    # Explicit VMEM budget: double-buffered w1/w2 tiles + resident rep/out blocks.
    vmem_need = 2 * (REPR_DIM * tn * 2 + tn * out_pad * 2
                     + b_pad * REPR_DIM * 2 + b_pad * out_pad * 4 + 4 * tn * 4)
    vmem_limit = int(min(max(int(vmem_need * 1.5) + (2 << 20), 16 << 20), 64 << 20))

    cost = pl.CostEstimate(
        flops=int(2 * b_pad * (REPR_DIM * hidden_dim + hidden_dim * out_pad)),
        transcendentals=int(hidden_dim),
        bytes_accessed=int(rep_bf16.size * 2 + w1_blk.size * 2 + w2_pad.size * 2
                           + (b1.size + gamma.size + beta.size) * 4
                           + num_splits * b_pad * out_pad * 4))

    partials = pl.pallas_call(
        functools.partial(_mlp_head_kernel, b_real=b_real),
        out_shape=jax.ShapeDtypeStruct((num_splits, b_pad, out_pad), jnp.float32),
        grid_spec=pltpu.PrefetchScalarGridSpec(
            num_scalar_prefetch=0,
            grid=(num_splits, nkps),
            in_specs=[
                pl.BlockSpec((b_pad, REPR_DIM), lambda c, k: (0, 0)),          # rep (resident, bf16)
                pl.BlockSpec((None, REPR_DIM, tn),
                             lambda c, k: (c * nkps + k, 0, 0)),               # w1 tile (contiguous, bf16)
                pl.BlockSpec((1, tn), lambda c, k: (0, c * nkps + k)),         # b1 tile
                pl.BlockSpec((1, tn), lambda c, k: (0, c * nkps + k)),         # gamma tile
                pl.BlockSpec((1, tn), lambda c, k: (0, c * nkps + k)),         # beta tile
                pl.BlockSpec((tn, out_pad), lambda c, k: (c * nkps + k, 0)),   # w2 tile (contiguous rows, bf16)
            ],
            out_specs=pl.BlockSpec((None, b_pad, out_pad), lambda c, k: (c, 0, 0)),
        ),
        compiler_params=pltpu.CompilerParams(
            dimension_semantics=("parallel", "arbitrary"),
            vmem_limit_bytes=vmem_limit),
        cost_estimate=cost,
    )(rep_bf16, w1_blk, b1, gamma, beta, w2_pad)

    projection = jnp.sum(partials, axis=0)[:b_real, :out_dim] + b2
    return projection, rep


# ----------------------------------------------------------------------------
# Params: weights stored bf16, w1 pre-blocked into contiguous tiles, w2 pre-padded
# to a lane-dense (multiple-of-128) output width.
# ----------------------------------------------------------------------------
def init_params(key, in_channels, hidden_dim, output_dim):
    k = jax.random.split(key, 6)
    tn = _pick_hidden_tile(hidden_dim)
    n_k = hidden_dim // tn
    out_pad = _round_up(output_dim, 128)

    s_conv = 1.0 / np.sqrt(in_channels)
    s1 = 1.0 / np.sqrt(REPR_DIM)
    s2 = 1.0 / np.sqrt(hidden_dim)

    w1 = (jax.random.normal(k[2], (REPR_DIM, hidden_dim), jnp.float32) * s1
          ).astype(jnp.bfloat16)
    w2 = (jax.random.normal(k[4], (hidden_dim, output_dim), jnp.float32) * s2
          ).astype(jnp.bfloat16)

    return {
        # synthetic backbone: 1x1 conv C -> 2048 (bf16 weights, f32 accumulation)
        "conv_w": (jax.random.normal(k[0], (in_channels, REPR_DIM), jnp.float32)
                   * s_conv).astype(jnp.bfloat16),
        "conv_b": jax.random.normal(k[1], (1, REPR_DIM), jnp.float32) * 0.01,
        # MLPHead — w1 pre-blocked: tile k == w1[:, k*tn:(k+1)*tn], contiguous per tile.
        "w1_blk": jnp.transpose(w1.reshape(REPR_DIM, n_k, tn), (1, 0, 2)),
        "b1": jax.random.normal(k[3], (1, hidden_dim), jnp.float32) * 0.01,
        "gamma": jnp.ones((1, hidden_dim), jnp.float32),
        "beta": jnp.zeros((1, hidden_dim), jnp.float32),
        "w2_pad": jnp.pad(w2, ((0, 0), (0, out_pad - output_dim))),
        "b2": jax.random.normal(k[5], (1, output_dim), jnp.float32) * 0.01,
    }


def online_encoder_reference(x_nchw, params):
    """Pure-JAX reference with the same bf16-weight / f32-accumulate numerics."""
    pooled = jnp.mean(x_nchw, axis=(2, 3))                                  # (B, C)
    rep = jnp.dot(pooled.astype(jnp.bfloat16), params["conv_w"],
                  preferred_element_type=jnp.float32) + params["conv_b"]
    n_k, _, tn = params["w1_blk"].shape
    w1 = jnp.transpose(params["w1_blk"], (1, 0, 2)).reshape(REPR_DIM, n_k * tn)
    out_dim = params["b2"].shape[1]
    w2 = params["w2_pad"][:, :out_dim]
    h = jnp.dot(rep.astype(jnp.bfloat16), w1,
                preferred_element_type=jnp.float32) + params["b1"]
    mean = jnp.mean(h, axis=0, keepdims=True)
    var = jnp.mean((h - mean) ** 2, axis=0, keepdims=True)
    h = (h - mean) * lax.rsqrt(var + BN_EPS)
    h = h * params["gamma"] + params["beta"]
    h = jnp.maximum(h, 0.0)
    proj = jnp.dot(h.astype(jnp.bfloat16), w2,
                   preferred_element_type=jnp.float32) + params["b2"]
    return proj, rep


if __name__ == "__main__":
    # Small shapes consistent with the module's forward.  B=8 exercises the
    # pad-to-16 + masked-BatchNorm path; hidden_dim=2048 exercises the tiled grid
    # (tn=1024, 2 chunks) and the two-way TensorCore split with partial outputs.
    B, C, H, W = 8, 4, 16, 16
    hidden_dim, output_dim = 2048, 32

    key = jax.random.PRNGKey(0)
    k_x, k_p = jax.random.split(key)
    x = jax.random.normal(k_x, (B, C, H, W), jnp.float32)   # NCHW, like PyTorch
    params = init_params(k_p, C, hidden_dim, output_dim)

    projection, representation = jax.jit(online_encoder_forward)(x, params)
    jax.block_until_ready((projection, representation))

    assert projection.shape == (B, output_dim)
    assert representation.shape == (B, REPR_DIM)

    proj_ref, rep_ref = jax.jit(online_encoder_reference)(x, params)
    np.testing.assert_allclose(np.asarray(representation), np.asarray(rep_ref),
                               rtol=1e-2, atol=1e-2)
    np.testing.assert_allclose(np.asarray(projection), np.asarray(proj_ref),
                               rtol=1e-2, atol=1e-2)
    print("KERNEL_OK")
</pallas_src>

<mosaic_0001>
module attributes {stable_mosaic.version = 11 : i64} {
  func.func @_mlp_head_kernel(%arg0: i32, %arg1: i32, %arg2: memref<16x2048xbf16, #tpu.memory_space<vmem>>, %arg3: memref<1x2048x1024xbf16, #tpu.memory_space<vmem>>, %arg4: memref<1x1024xf32, #tpu.memory_space<vmem>>, %arg5: memref<1x1024xf32, #tpu.memory_space<vmem>>, %arg6: memref<1x1024xf32, #tpu.memory_space<vmem>>, %arg7: memref<1024x128xbf16, #tpu.memory_space<vmem>>, %arg8: memref<1x16x128xf32, #tpu.memory_space<vmem>>) attributes {dimension_semantics = [#tpu.dimension_semantics<parallel>, #tpu.dimension_semantics<arbitrary>], iteration_bounds = array<i64: 2, 1>, scalar_prefetch = 0 : i64, scratch_operands = 0 : i64, tpu.core_type = #tpu.core_type<tc>, window_params = [{pipeline_mode = #tpu.pipeline_mode<synchronous>, transform_indices = @transform_0, window_bounds = array<i64: 16, 2048>}, {transform_indices = @transform_1, window_bounds = array<i64: 1, 2048, 1024>}, {transform_indices = @transform_2, window_bounds = array<i64: 1, 1024>}, {transform_indices = @transform_3, window_bounds = array<i64: 1, 1024>}, {transform_indices = @transform_4, window_bounds = array<i64: 1, 1024>}, {transform_indices = @transform_5, window_bounds = array<i64: 1024, 128>}, {transform_indices = @transform_6, window_bounds = array<i64: 1, 16, 128>}]} {
    %c0_i32 = arith.constant 0 : i32
    %0 = arith.cmpi eq, %arg1, %c0_i32 : i32
    %1 = arith.extui %0 : i1 to i32
    %c0_i32_0 = arith.constant 0 : i32
    %2 = arith.cmpi ne, %1, %c0_i32_0 : i32
    scf.if %2 {
      %cst_26 = arith.constant 0.000000e+00 : f32
      %52 = vector.broadcast %cst_26 : f32 to vector<16x128xf32>
      %c0_27 = arith.constant 0 : index
      %c0_28 = arith.constant 0 : index
      %c0_29 = arith.constant 0 : index
      %53 = vector.load %arg8[%c0_27, %c0_28, %c0_29] : memref<1x16x128xf32, #tpu.memory_space<vmem>>, vector<1x16x128xf32>
      %54 = vector.shape_cast %53 : vector<1x16x128xf32> to vector<16x128xf32>
      %55 = vector.shape_cast %52 : vector<16x128xf32> to vector<1x16x128xf32>
      tpu.vector_store %arg8[%c0_27, %c0_28, %c0_29], %55 {strides = array<i32>} : memref<1x16x128xf32, #tpu.memory_space<vmem>>, vector<1x16x128xf32>,
    } else {
    }
    %c0 = arith.constant 0 : index
    %c0_1 = arith.constant 0 : index
    %3 = vector.load %arg2[%c0, %c0_1] : memref<16x2048xbf16, #tpu.memory_space<vmem>>, vector<16x2048xbf16>
    %c0_2 = arith.constant 0 : index
    %c0_3 = arith.constant 0 : index
    %c0_4 = arith.constant 0 : index
    %4 = vector.load %arg3[%c0_2, %c0_3, %c0_4] : memref<1x2048x1024xbf16, #tpu.memory_space<vmem>>, vector<1x2048x1024xbf16>
    %5 = vector.shape_cast %4 : vector<1x2048x1024xbf16> to vector<2048x1024xbf16>
    %cst = arith.constant dense<0.000000e+00> : vector<16x1024xf32>
    %6 = tpu.matmul %3, %5, %cst {dimension_numbers = #tpu.dot_dimension_numbers<[1], [0], [0], [1], [0, 0, 1, 1], [], []>} : vector<16x2048xbf16>, vector<2048x1024xbf16>, vector<16x1024xf32> -> vector<16x1024xf32>
    %c0_5 = arith.constant 0 : index
    %c0_6 = arith.constant 0 : index
    %7 = vector.load %arg4[%c0_5, %c0_6] : memref<1x1024xf32, #tpu.memory_space<vmem>>, vector<1x1024xf32>
    %8 = vector.broadcast %7 : vector<1x1024xf32> to vector<16x1024xf32>
    %9 = arith.addf %6, %8 : vector<16x1024xf32>
    %10 = tpu.iota {dimensions = array<i32: 0>} : vector<16x1xi32>
    %c8_i32 = arith.constant 8 : i32
    %11 = vector.broadcast %c8_i32 : i32 to vector<16x1xi32>
    %12 = arith.cmpi slt, %10, %11 : vector<16x1xi32>
    %13 = arith.extui %12 : vector<16x1xi1> to vector<16x1xi32>
    %14 = arith.sitofp %13 : vector<16x1xi32> to vector<16x1xf32>
    %15 = vector.broadcast %14 : vector<16x1xf32> to vector<16x1024xf32>
    %16 = arith.mulf %9, %15 : vector<16x1024xf32>
    %cst_7 = arith.constant dense<0.000000e+00> : vector<1024xf32>
    %17 = vector.multi_reduction <add>, %16, %cst_7 [0] : vector<16x1024xf32> to vector<1024xf32>
    %18 = vector.shape_cast %17 : vector<1024xf32> to vector<1x1024xf32>
    %cst_8 = arith.constant 1.250000e-01 : f32
    %19 = vector.broadcast %cst_8 : f32 to vector<1x1024xf32>
    %20 = arith.mulf %18, %19 : vector<1x1024xf32>
    %21 = vector.broadcast %20 : vector<1x1024xf32> to vector<16x1024xf32>
    %22 = arith.subf %9, %21 : vector<16x1024xf32>
    %23 = vector.broadcast %14 : vector<16x1xf32> to vector<16x1024xf32>
    %24 = arith.mulf %22, %23 : vector<16x1024xf32>
    %25 = arith.mulf %24, %24 : vector<16x1024xf32>
    %cst_9 = arith.constant dense<0.000000e+00> : vector<1024xf32>
    %26 = vector.multi_reduction <add>, %25, %cst_9 [0] : vector<16x1024xf32> to vector<1024xf32>
    %27 = vector.shape_cast %26 : vector<1024xf32> to vector<1x1024xf32>
    %cst_10 = arith.constant 1.250000e-01 : f32
    %28 = vector.broadcast %cst_10 : f32 to vector<1x1024xf32>
    %29 = arith.mulf %27, %28 : vector<1x1024xf32>
    %cst_11 = arith.constant 9.99999974E-6 : f32
    %30 = vector.broadcast %cst_11 : f32 to vector<1x1024xf32>
    %31 = arith.addf %29, %30 : vector<1x1024xf32>
    %32 = math.rsqrt %31 : vector<1x1024xf32>
    %33 = vector.broadcast %32 : vector<1x1024xf32> to vector<16x1024xf32>
    %34 = arith.mulf %22, %33 : vector<16x1024xf32>
    %c0_12 = arith.constant 0 : index
    %c0_13 = arith.constant 0 : index
    %35 = vector.load %arg5[%c0_12, %c0_13] : memref<1x1024xf32, #tpu.memory_space<vmem>>, vector<1x1024xf32>
    %36 = vector.broadcast %35 : vector<1x1024xf32> to vector<16x1024xf32>
    %37 = arith.mulf %34, %36 : vector<16x1024xf32>
    %c0_14 = arith.constant 0 : index
    %c0_15 = arith.constant 0 : index
    %38 = vector.load %arg6[%c0_14, %c0_15] : memref<1x1024xf32, #tpu.memory_space<vmem>>, vector<1x1024xf32>
    %39 = vector.broadcast %38 : vector<1x1024xf32> to vector<16x1024xf32>
    %40 = arith.addf %37, %39 : vector<16x1024xf32>
    %cst_16 = arith.constant 0.000000e+00 : f32
    %41 = vector.broadcast %cst_16 : f32 to vector<16x1024xf32>
    %42 = arith.maximumf %40, %41 : vector<16x1024xf32>
    %c0_17 = arith.constant 0 : index
    %c0_18 = arith.constant 0 : index
    %c0_19 = arith.constant 0 : index
    %43 = vector.load %arg8[%c0_17, %c0_18, %c0_19] : memref<1x16x128xf32, #tpu.memory_space<vmem>>, vector<1x16x128xf32>
    %44 = vector.shape_cast %43 : vector<1x16x128xf32> to vector<16x128xf32>
    %45 = arith.truncf %42 : vector<16x1024xf32> to vector<16x1024xbf16>
    %c0_20 = arith.constant 0 : index
    %c0_21 = arith.constant 0 : index
    %46 = vector.load %arg7[%c0_20, %c0_21] : memref<1024x128xbf16, #tpu.memory_space<vmem>>, vector<1024x128xbf16>
    %cst_22 = arith.constant dense<0.000000e+00> : vector<16x128xf32>
    %47 = tpu.matmul %45, %46, %cst_22 {dimension_numbers = #tpu.dot_dimension_numbers<[1], [0], [0], [1], [0, 0, 1, 1], [], []>} : vector<16x1024xbf16>, vector<1024x128xbf16>, vector<16x128xf32> -> vector<16x128xf32>
    %48 = arith.addf %44, %47 : vector<16x128xf32>
    %c0_23 = arith.constant 0 : index
    %c0_24 = arith.constant 0 : index
    %c0_25 = arith.constant 0 : index
    %49 = vector.load %arg8[%c0_23, %c0_24, %c0_25] : memref<1x16x128xf32, #tpu.memory_space<vmem>>, vector<1x16x128xf32>
    %50 = vector.shape_cast %49 : vector<1x16x128xf32> to vector<16x128xf32>
    %51 = vector.shape_cast %48 : vector<16x128xf32> to vector<1x16x128xf32>
    tpu.vector_store %arg8[%c0_23, %c0_24, %c0_25], %51 {strides = array<i32>} : memref<1x16x128xf32, #tpu.memory_space<vmem>>, vector<1x16x128xf32>,
    return
  }
  func.func @transform_0(%arg0: i32, %arg1: i32) -> (i32, i32) {
    %c0_i32 = arith.constant 0 : i32
    %c0_i32_0 = arith.constant 0 : i32
    %c0_i32_1 = arith.constant 0 : i32
    return %c0_i32, %c0_i32_0 : i32, i32
  }
  func.func @transform_1(%arg0: i32, %arg1: i32) -> (i32, i32, i32) {
    %c1_i32 = arith.constant 1 : i32
    %0 = arith.muli %arg0, %c1_i32 : i32
    %1 = arith.addi %0, %arg1 : i32
    %c0_i32 = arith.constant 0 : i32
    %c0_i32_0 = arith.constant 0 : i32
    %c0_i32_1 = arith.constant 0 : i32
    return %1, %c0_i32, %c0_i32_0 : i32, i32, i32
  }
  func.func @transform_2(%arg0: i32, %arg1: i32) -> (i32, i32) {
    %c1_i32 = arith.constant 1 : i32
    %0 = arith.muli %arg0, %c1_i32 : i32
    %1 = arith.addi %0, %arg1 : i32
    %c0_i32 = arith.constant 0 : i32
    %c0_i32_0 = arith.constant 0 : i32
    return %c0_i32, %1 : i32, i32
  }
  func.func @transform_3(%arg0: i32, %arg1: i32) -> (i32, i32) {
    %c1_i32 = arith.constant 1 : i32
    %0 = arith.muli %arg0, %c1_i32 : i32
    %1 = arith.addi %0, %arg1 : i32
    %c0_i32 = arith.constant 0 : i32
    %c0_i32_0 = arith.constant 0 : i32
    return %c0_i32, %1 : i32, i32
  }
  func.func @transform_4(%arg0: i32, %arg1: i32) -> (i32, i32) {
    %c1_i32 = arith.constant 1 : i32
    %0 = arith.muli %arg0, %c1_i32 : i32
    %1 = arith.addi %0, %arg1 : i32
    %c0_i32 = arith.constant 0 : i32
    %c0_i32_0 = arith.constant 0 : i32
    return %c0_i32, %1 : i32, i32
  }
  func.func @transform_5(%arg0: i32, %arg1: i32) -> (i32, i32) {
    %c1_i32 = arith.constant 1 : i32
    %0 = arith.muli %arg0, %c1_i32 : i32
    %1 = arith.addi %0, %arg1 : i32
    %c0_i32 = arith.constant 0 : i32
    %c0_i32_0 = arith.constant 0 : i32
    return %1, %c0_i32 : i32, i32
  }
  func.func @transform_6(%arg0: i32, %arg1: i32) -> (i32, i32, i32) {
    %c0_i32 = arith.constant 0 : i32
    %c0_i32_0 = arith.constant 0 : i32
    %c0_i32_1 = arith.constant 0 : i32
    return %arg0, %c0_i32, %c0_i32_0 : i32, i32, i32
  }
}

</mosaic_0001>

<bundles_post_ra>
// kernel: online_encoder_forward.1
= control target key start
LH: loop header
LB: loop body
LE: loop exit
PB: predicated region body
PF: predicated region fallthrough
CT: control target
= control target key end

     0   :  { %s12894_s0 = inlined_call_operand.vmem [shape: bf16[16,2048], index: 0, kind: input, shape index: {}]   ;;  %s12895_s1 = inlined_call_operand.hbm [shape: bf16[2,2048,1024], index: 1, kind: input, shape index: {}]   ;;  %s12896_s2 = inlined_call_operand.hbm [shape: f32[1,2048], index: 2, kind: input, shape index: {}]   ;;  %s12897_s3 = inlined_call_operand.hbm [shape: f32[1,2048], index: 3, kind: input, shape index: {}]   ;;  %s12898_s4 = inlined_call_operand.hbm [shape: f32[1,2048], index: 4, kind: input, shape index: {}]   ;;  %s12899_s5 = inlined_call_operand.hbm [shape: bf16[2048,128], index: 5, kind: input, shape index: {}]   ;;  %s12900_s6 = inlined_call_operand.vmem [shape: f32[2,16,128], index: 6, kind: output, shape index: {}]  }
   0x1   :  { %12914 = sst [smem:[#allocation28_spill]] %s12895_s1 }
   0x2   :  { %12915 = sst [smem:[#allocation29_spill]] %s12896_s2 }
   0x3   :  { %12916 = sst [smem:[#allocation30_spill]] %s12898_s4 }
   0x4   :  { %12917 = sst [smem:[#allocation31_spill]] %s12900_s6 }
   0x5   :  { %11 = vsyncpa [#allocation3], 0 }
   0x6   :  { %13 = vsyncpa [#allocation3 + $0x1], 0 }
   0x7   :  { %14 = vsyncpa [#allocation5], 0 }
   0x8   :  { %16 = vsyncpa [#allocation5 + $0x1], 0 }
   0x9   :  { %17 = vsyncpa [#allocation8], 0 }
   0xa   :  { %19 = vsyncpa [#allocation8 + $0x1], 0  ;;  %s10977_s21 = smov 0   ;;  %s10979_s22 = smov 0  }
   0xb   :  { %s10981_s23 = smov 0   ;;  %s10983_s24 = smov 0  }
   0xc   :  { %s10985_s25 = smov 0   ;;  %s10987_s26 = smov 0  }
   0xd LB: > { %12918 = sst [smem:[#allocation13_spill]] %s10919_s23  ;;  %s12901_s27 = sadd.s32 4294967295, %s10931_s26   ;;  %s10931_s26 = sphi %s10987_s26, %s25_s26   ;;  %s10927_s25 = sphi %s10985_s25, %s12960_s25   ;;  %s10923_s24 = sphi %s10983_s24, %s12959_s24   ;;  %s10919_s23 = sphi %s10981_s23, %s12955_s23   ;;  %s10915_s22 = sphi %s10979_s22, %s12958_s22   ;;  %s10911_s21 = sphi %s10977_s21, %s12957_s21  }
   0xe   : > { %s37_s28 = sadd.s32 1, %s10927_s25  ;;  %s67_s29 = sadd.s32 1, %s10919_s23 }
   0xf   : > { %p39_p0 = scmp.ge.s32.totalorder %s37_s28, 2  ;;  %p74_p1 = scmp.ne.s32.totalorder %s10919_s23, %s10915_s22 }
  0x10   : > { %p75_p2 = scmp.eq.s32.totalorder %s10931_s26, 0  ;;  %p80_p4 = scmp.ne.s32.totalorder %s10915_s22, %s10911_s21 }
  0x11   : > { %s12962_s28 = smov (%p39_p0, %s37_s28), 0  ;;  %p81_p5 = scmp.eq.s32.totalorder %s12901_s27, 0 }
  0x12   : > { %12919 = sst [smem:[#allocation14_spill]] %s12962_s28  ;;  %p76_p3 = por %p75_p2, %p74_p1 }
  0x13   : > { %s64_s30 = ssub.s32 %s10927_s25, %s12962_s28  ;;  %p11018_p7 = por %p81_p5, %p80_p4 }
  0x14   : > { %p65_p6 = scmp.eq.s32.totalorder %s64_s30, 0  ;;  %p10595_p8 = scmp.lt.s32.totalorder %s10931_s26, 2 }
  0x15   : > { %s11027_s9 = sand.u32 1, %s10919_s23   ;;  %s267_s11 = sand.u32 1, %s10931_s26  }
  0x16   : > { %s11024_s8 = scalar_select %p65_p6, %s10919_s23, %s67_s29  }
  0x17   : > { %p11029_p9 = pnand %p10595_p8, %p76_p3  ;;  %s11035_s12 = sshll.u32 %s11027_s9, 3 }
  0x18   : > { %12921 = sst [smem:[#allocation15_spill]] %s11024_s8  ;;  %s11038_s13 = sshll.u32 %s10927_s25, 7 }
  0x19   : > { %s12923_s2 = sld [smem:[#allocation29_spill]]  ;;  %s271_s17 = scalar_lea.vmem [#allocation4], %s11035_s12 }
  0x1a   : > { %s280_s18 = sshll.u32 %s271_s17, 4  ;;  %p9361_p10 = scmp.ge.s32.totalorder %s10931_s26, 1  ;;  %s281_s18 = int_to_ptr.vmem [resolvable:$true] %s280_s18 }
  0x1b   : > { %s11048_s19 = scalar_lea.sflag [#allocation5], %s267_s11  ;;  %p11052_p11 = pneg %p11029_p9 }
  0x1c   : > { %s10746_s21 = scalar_lea.vmem %s281_s18, 128  ;;  %s10933_s29 = smov [#allocation4]  }
  0x1d   : > { %p10747_p12 = scmp.ne.s32.totalorder %s281_s18, %s10746_s21  ;;  %s10751_s30 = sshll.u32 %s10933_s29, 4  ;;  %s10752_s30 = int_to_ptr.vmem [resolvable:$false] %s10751_s30 }
  0x1e   : > { %s10753_s14 = scalar_lea.vmem %s10752_s30, 256  ;;  %p10754_p1 = scmp.lt.s32.totalorder %s281_s18, %s10752_s30 }
  0x1f   : > { %s278_s16 = scalar_lea.hbm %s12923_s2, %s11038_s13  ;;  %p10749_p13 = pnand %p10747_p12, %p11052_p11 }
  0x20   : > { %p10755_p2 = scmp.lt.s32.totalorder %s10753_s14, %s10746_s21 }
  0x21   : > { %p10750_p0 = pneg %p10749_p13 }
  0x22   : > { %p10756_p3 = por %p10755_p2, %p10754_p1 }
  0x24   : > { %p10757_p4 = pnand %p10756_p3, %p10750_p0 }
  0x26   : > { %10760 = shalt.err (!%p10757_p4)
}
  0x27   : > { %10585 = dma.hbm_to_vmem [thread:$0]  (!%p11029_p9), %s278_s16, 128, %s281_s18, %s11048_s19  }
  0x28   : > { %p347_p5 = scmp.lt.s32.totalorder %s10931_s26, 3  ;;  %s12925_s4 = sld [smem:[#allocation30_spill]] }
  0x29   : > { %s311_s30 = scalar_lea.vmem [#allocation7], %s11035_s12  ;;  %s11075_s27 = scalar_lea.sflag [#allocation8], %s267_s11 }
  0x2a   : > { %p11068_p6 = pnand %p9361_p10, %p347_p5  ;;  %s320_s14 = sshll.u32 %s311_s30, 4  ;;  %s321_s14 = int_to_ptr.vmem [resolvable:$true] %s320_s14 }
  0x2b   : > { %s10774_s2 = scalar_lea.vmem %s321_s14, 128  ;;  %s10934_s16 = smov [#allocation7]  }
  0x2c   : > { %p10775_p8 = scmp.ne.s32.totalorder %s321_s14, %s10774_s2  ;;  %s10779_s18 = sshll.u32 %s10934_s16, 4  ;;  %s10780_s18 = int_to_ptr.vmem [resolvable:$false] %s10779_s18 }
  0x2d   : > { %s10781_s15 = scalar_lea.vmem %s10780_s18, 256  ;;  %p10782_p0 = scmp.lt.s32.totalorder %s321_s14, %s10780_s18 }
  0x2e   : > { %s318_s29 = scalar_lea.hbm %s12925_s4, %s11038_s13  ;;  %p10777_p12 = pnand %p10775_p8, %p11052_p11 }
  0x2f   : > { %p10783_p10 = scmp.lt.s32.totalorder %s10781_s15, %s10774_s2 }
  0x30   : > { %p10778_p13 = pneg %p10777_p12 }
  0x31   : > { %p10784_p1 = por %p10783_p10, %p10782_p0 }
  0x33   : > { %p10785_p2 = pnand %p10784_p1, %p10778_p13 }
  0x35   : > { %10788 = shalt.err (!%p10785_p2)
}
  0x36   : > { %10591 = dma.hbm_to_vmem [thread:$0]  (!%p11029_p9), %s318_s29, 128, %s321_s14, %s11075_s27  }
  0x37   : > { %s9346_s11 = sshll.u32 %s11027_s9, 13  ;;  %s10475_s17 = sshll.u32 %s10927_s25, 17 }
  0x38   : > { %s12927_s1 = sld [smem:[#allocation28_spill]]  ;;  %s249_s28 = scalar_lea.vmem [#allocation2], %s9346_s11 }
  0x39   : > { %s257_s18 = sshll.u32 %s249_s28, 4  ;;  %s246_s2 = scalar_lea.sflag [#allocation3], %s11027_s9  ;;  %s258_s18 = int_to_ptr.vmem [resolvable:$true] %s257_s18 }
  0x3a   : > { %s10802_s15 = scalar_lea.vmem %s258_s18, 131072  ;;  %s10935_s8 = smov [#allocation2]  }
  0x3b   : > { %p10803_p3 = scmp.ne.s32.totalorder %s258_s18, %s10802_s15  ;;  %s10807_s23 = sshll.u32 %s10935_s8, 4  ;;  %s10808_s23 = int_to_ptr.vmem [resolvable:$false] %s10807_s23 }
  0x3c   : > { %s10809_s6 = scalar_lea.vmem %s10808_s23, 262144  ;;  %p10810_p8 = scmp.lt.s32.totalorder %s258_s18, %s10808_s23 }
  0x3d   : > { %p10805_p4 = pnand %p10803_p3, %p11052_p11  ;;  %p10811_p12 = scmp.lt.s32.totalorder %s10809_s6, %s10802_s15 }
  0x3e   : > { %s256_s16 = scalar_lea.hbm %s12927_s1, %s10475_s17 }
  0x3f   : > { %p10806_p5 = pneg %p10805_p4  ;;  %p10812_p13 = por %p10811_p12, %p10810_p8 }
  0x41   : > { %p10813_p0 = pnand %p10812_p13, %p10806_p5 }
  0x43   : > { %10816 = shalt.err (!%p10813_p0)
}
  0x44   : > { %s10936_s4 = smov 512   ;;  %s10937_s28 = smov 32  }
  0x45   : > { %10582 = dma.hbm_to_vmem [thread:$0]  (!%p11029_p9), %s256_s16, 131072, %s258_s18, %s246_s2, %s10936_s4, %s10936_s4, %s10937_s28  }
  0x46   : > { %s298_s8 = scalar_lea.hbm %s12897_s3, %s11038_s13  ;;  %s291_s11 = scalar_lea.vmem [#allocation6], %s11035_s12 }
  0x47   : > { %s300_s17 = sshll.u32 %s291_s11, 4  ;;  %s9358_s23 = sshll.u32 %s11027_s9, 9  ;;  %s301_s17 = int_to_ptr.vmem [resolvable:$true] %s300_s17 }
  0x48   : > { %s10830_s6 = scalar_lea.vmem %s301_s17, 128  ;;  %s10938_s30 = smov [#allocation6]  }
  0x49   : > { %p10831_p10 = scmp.ne.s32.totalorder %s301_s17, %s10830_s6  ;;  %s10835_s15 = sshll.u32 %s10938_s30, 4  ;;  %s10836_s15 = int_to_ptr.vmem [resolvable:$false] %s10835_s15 }
  0x4a   : > { %s10837_s1 = scalar_lea.vmem %s10836_s15, 256  ;;  %p10838_p3 = scmp.lt.s32.totalorder %s301_s17, %s10836_s15 }
  0x4b   : > { %p10833_p1 = pnand %p10831_p10, %p11052_p11  ;;  %p10839_p4 = scmp.lt.s32.totalorder %s10837_s1, %s10830_s6 }
  0x4d   : > { %p10834_p2 = pneg %p10833_p1  ;;  %p10840_p5 = por %p10839_p4, %p10838_p3 }
  0x4f   : > { %p10841_p8 = pnand %p10840_p5, %p10834_p2 }
  0x51   : > { %10844 = shalt.err (!%p10841_p8)
}
  0x52   : > { %10588 = dma.hbm_to_vmem [thread:$0]  (!%p11029_p9), %s298_s8, 128, %s301_s17, %s11048_s19  }
  0x53   : > { %s10479_s9 = sshll.u32 %s10927_s25, 13  ;;  %s331_s12 = scalar_lea.vmem [#allocation9], %s9358_s23 }
  0x54   : > { %s339_s13 = sshll.u32 %s331_s12, 4  ;;  %s338_s2 = scalar_lea.hbm %s12899_s5, %s10479_s9  ;;  %s340_s13 = int_to_ptr.vmem [resolvable:$true] %s339_s13 }
  0x55   : > { %s10858_s4 = scalar_lea.vmem %s340_s13, 8192  ;;  %s10939_s1 = smov [#allocation9]  }
  0x56   : > { %p10859_p12 = scmp.ne.s32.totalorder %s340_s13, %s10858_s4  ;;  %s10863_s28 = sshll.u32 %s10939_s1, 4  ;;  %s10864_s28 = int_to_ptr.vmem [resolvable:$false] %s10863_s28 }
  0x57   : > { %s10865_s29 = scalar_lea.vmem %s10864_s28, 16384  ;;  %p10866_p10 = scmp.lt.s32.totalorder %s340_s13, %s10864_s28 }
  0x58   : > { %p10861_p13 = pnand %p10859_p12, %p11052_p11  ;;  %p10867_p1 = scmp.lt.s32.totalorder %s10865_s29, %s10858_s4 }
  0x5a   : > { %p10862_p0 = pneg %p10861_p13  ;;  %p10868_p2 = por %p10867_p1, %p10866_p10 }
  0x5c   : > { %p10869_p3 = pnand %p10868_p2, %p10862_p0 }
  0x5e   : > { %10872 = shalt.err (!%p10869_p3)
}
  0x5f   : > { %s10940_s19 = smov 64   ;;  %s10941_s14 = smov 4  }
  0x60   : > { %10594 = dma.hbm_to_vmem [thread:$0]  (!%p11029_p9), %s338_s2, 8192, %s340_s13, %s11075_s27, %s10940_s19, %s10940_s19, %s10941_s14  }
  0x61   : > { %351 = sbr.rel (%p11068_p6) target bundleno = 1619 (0x653), region = 44 }
  0x66   : > { %s11115_s20 = sand.u32 1, %s10915_s22  }
  0x67   : > { %s9362_s8 = sshll.u32 %s11115_s20, 13  ;;  %s354_s11 = scalar_lea.sflag [#allocation3], %s11115_s20 }
  0x68   : > { %s11119_s17 = scalar_lea.vmem [#allocation2], %s9362_s8 }
  0x69   : > { %10898 = dma.done.wait (%p11018_p7), %s354_s11, 131072  }
  0x6a   : > { %10900 = vsyncadd (%p11018_p7), %s354_s11, 4294836224  ;;  %s12928_s27 = sadd.s32 4294967295, %s10931_s26   ;;  %s11128_s21 = sshll.u32 %s11115_s20, 3 }
  0x6b   : > { %s362_s10 = sand.u32 1, %s12928_s27   ;;  %s11131_s6 = scalar_lea.vmem [#allocation4], %s11128_s21 }
  0x6c   : > { %s363_s23 = scalar_lea.sflag [#allocation5], %s362_s10 }
  0x6d   : > { %10902 = dma.done.wait (%p11018_p7), %s363_s23, 256  }
  0x6e   : > { %10904 = vsyncadd (%p11018_p7), %s363_s23, 4294967040  ;;  %s375_s30 = scalar_lea.vmem [#allocation6], %s11128_s21  ;;  %s381_s15 = scalar_lea.sflag [#allocation8], %s362_s10 }
  0x6f   : > { %s384_s9 = scalar_lea.vmem [#allocation7], %s11128_s21 }
  0x70   : > { %10906 = dma.done.wait (%p11018_p7), %s381_s15, 8320  }
  0x71   : > { %10908 = vsyncadd (%p11018_p7), %s381_s15, 4294958976  ;;  %v535_v0 = vld [vmem:[%s11119_s17 + $0x1c0] sm:$0xff]  ;;  %v11190_v59 = vld [vmem:[%s12894_s0 + $0x8] sm:$0xff]  ;;  %s9366_s27 = sshll.u32 %s11115_s20, 9  ;;  %p451_p7 = scmp.lt.s32.totalorder %s10923_s24, 1 }
  0x72   : > { %v539_v1 = vld [vmem:[%s11119_s17 + $0x1e0] sm:$0xff]  ;;  %v11195_v60 = vld [vmem:[%s12894_s0 + $0x48] sm:$0xff]  ;;  %s12418_s10 = scalar_lea.vmem [#allocation9], %s9366_s27 }
  0x73   : > { %v663_v2 = vld [vmem:[%s11119_s17 + $0x5c0] sm:$0xff]  ;;  %v9442_v3 = vcombine.high %v535_v0, %v539_v1  ;;  %v9441_v5 = vcombine.low %v535_v0, %v539_v1  ;;  %v11201_v63 = vcombine.high %v11190_v59, %v11195_v60  ;;  %s12964_s24 = smov (!%p451_p7, %s10923_s24), 1 }
  0x74   : > { %v667_v4 = vld [vmem:[%s11119_s17 + $0x5e0] sm:$0xff]  ;;  %s10480_s20 = sshll.u32 %s12964_s24, 4 }
  0x75   : > { %v527_v6 = vld [vmem:[%s11119_s17 + $0x180] sm:$0xff]  ;;  %v9570_v8 = vcombine.high %v663_v2, %v667_v4  ;;  %v9569_v9 = vcombine.low %v663_v2, %v667_v4  ;;  %6745 = vmatprep.subr.bf16.mxu0 %v9442_v3  ;;  %6820 = vmatprep.mubr.bf16.mxu1 %v11201_v63 }
  0x76   : > { %v531_v7 = vld [vmem:[%s11119_s17 + $0x1a0] sm:$0xff]  ;;  %6746 = vmatpush1.bf16.msra.mxu0 %v9441_v5 }
  0x77   : > { %v9434_v10 = vcombine.high %v527_v6, %v531_v7  ;;  %v655_v11 = vld [vmem:[%s11119_s17 + $0x580] sm:$0xff]  ;;  %6788 = vmatprep.subr.bf16.mxu1 %v9570_v8  ;;  %v9433_v18 = vcombine.low %v527_v6, %v531_v7 }
  0x78   : > { %v659_v12 = vld [vmem:[%s11119_s17 + $0x5a0] sm:$0xff]  ;;  %6789 = vmatpush1.bf16.msra.mxu1 %v9569_v9 }
  0x79   : > { %v519_v13 = vld [vmem:[%s11119_s17 + $0x140] sm:$0xff]  ;;  %v9562_v14 = vcombine.high %v655_v11, %v659_v12  ;;  %6747 = vmatprep.subr.bf16.mxu0 %v9434_v10  ;;  %v9561_v19 = vcombine.low %v655_v11, %v659_v12 }
  0x7a   : > { %v523_v15 = vld [vmem:[%s11119_s17 + $0x160] sm:$0xff]  ;;  %6748 = vmatpush1.bf16.msra.mxu0 %v9433_v18 }
  0x7b   : > { %v647_v16 = vld [vmem:[%s11119_s17 + $0x540] sm:$0xff]  ;;  %v9426_v20 = vcombine.high %v519_v13, %v523_v15  ;;  %6790 = vmatprep.subr.bf16.mxu1 %v9562_v14  ;;  %v9425_v26 = vcombine.low %v519_v13, %v523_v15 }
  0x7c   : > { %v651_v17 = vld [vmem:[%s11119_s17 + $0x560] sm:$0xff]  ;;  %6791 = vmatpush1.bf16.msra.mxu1 %v9561_v19 }
  0x7d   : > { %v9554_v21 = vcombine.high %v647_v16, %v651_v17  ;;  %v511_v22 = vld [vmem:[%s11119_s17 + $0x100] sm:$0xff]  ;;  %6749 = vmatprep.subr.bf16.mxu0 %v9426_v20  ;;  %v9553_v27 = vcombine.low %v647_v16, %v651_v17 }
  0x7e   : > { %v515_v23 = vld [vmem:[%s11119_s17 + $0x120] sm:$0xff]  ;;  %6750 = vmatpush1.bf16.msra.mxu0 %v9425_v26 }
  0x7f   : > { %v639_v24 = vld [vmem:[%s11119_s17 + $0x500] sm:$0xff]  ;;  %v9418_v28 = vcombine.high %v511_v22, %v515_v23  ;;  %6792 = vmatprep.subr.bf16.mxu1 %v9554_v21  ;;  %v9417_v34 = vcombine.low %v511_v22, %v515_v23 }
  0x80   : > { %v643_v25 = vld [vmem:[%s11119_s17 + $0x520] sm:$0xff]  ;;  %6793 = vmatpush1.bf16.msra.mxu1 %v9553_v27 }
  0x81   : > { %v9546_v29 = vcombine.high %v639_v24, %v643_v25  ;;  %v503_v30 = vld [vmem:[%s11119_s17 + $0xc0] sm:$0xff]  ;;  %6751 = vmatprep.subr.bf16.mxu0 %v9418_v28  ;;  %v9545_v35 = vcombine.low %v639_v24, %v643_v25 }
  0x82   : > { %v507_v31 = vld [vmem:[%s11119_s17 + $0xe0] sm:$0xff]  ;;  %6752 = vmatpush1.bf16.msra.mxu0 %v9417_v34 }
  0x83   : > { %v631_v32 = vld [vmem:[%s11119_s17 + $0x4c0] sm:$0xff]  ;;  %v9410_v36 = vcombine.high %v503_v30, %v507_v31  ;;  %6794 = vmatprep.subr.bf16.mxu1 %v9546_v29  ;;  %v9409_v42 = vcombine.low %v503_v30, %v507_v31 }
  0x84   : > { %v635_v33 = vld [vmem:[%s11119_s17 + $0x4e0] sm:$0xff]  ;;  %6795 = vmatpush1.bf16.msra.mxu1 %v9545_v35 }
  0x85   : > { %v9538_v37 = vcombine.high %v631_v32, %v635_v33  ;;  %v495_v38 = vld [vmem:[%s11119_s17 + $0x80] sm:$0xff]  ;;  %6753 = vmatprep.subr.bf16.mxu0 %v9410_v36  ;;  %v9537_v43 = vcombine.low %v631_v32, %v635_v33 }
  0x86   : > { %v499_v39 = vld [vmem:[%s11119_s17 + $0xa0] sm:$0xff]  ;;  %6754 = vmatpush1.bf16.msra.mxu0 %v9409_v42 }
  0x87   : > { %v623_v40 = vld [vmem:[%s11119_s17 + $0x480] sm:$0xff]  ;;  %v9402_v44 = vcombine.high %v495_v38, %v499_v39  ;;  %6796 = vmatprep.subr.bf16.mxu1 %v9538_v37  ;;  %v9401_v50 = vcombine.low %v495_v38, %v499_v39 }
  0x88   : > { %v627_v41 = vld [vmem:[%s11119_s17 + $0x4a0] sm:$0xff]  ;;  %6797 = vmatpush1.bf16.msra.mxu1 %v9537_v43 }
  0x89   : > { %v9530_v45 = vcombine.high %v623_v40, %v627_v41  ;;  %v487_v46 = vld [vmem:[%s11119_s17 + $0x40] sm:$0xff]  ;;  %6755 = vmatprep.subr.bf16.mxu0 %v9402_v44  ;;  %v9529_v51 = vcombine.low %v623_v40, %v627_v41 }
  0x8a   : > { %v491_v47 = vld [vmem:[%s11119_s17 + $0x60] sm:$0xff]  ;;  %6756 = vmatpush1.bf16.msra.mxu0 %v9401_v50 }
  0x8b   : > { %v615_v48 = vld [vmem:[%s11119_s17 + $0x440] sm:$0xff]  ;;  %v9394_v52 = vcombine.high %v487_v46, %v491_v47  ;;  %6798 = vmatprep.subr.bf16.mxu1 %v9530_v45  ;;  %v9393_v0 = vcombine.low %v487_v46, %v491_v47 }
  0x8c   : > { %v619_v49 = vld [vmem:[%s11119_s17 + $0x460] sm:$0xff]  ;;  %6799 = vmatpush1.bf16.msra.mxu1 %v9529_v51 }
  0x8d   : > { %v479_v53 = vld [vmem:[%s11119_s17] sm:$0xff]  ;;  %v9522_v56 = vcombine.high %v615_v48, %v619_v49  ;;  %6757 = vmatprep.subr.bf16.mxu0 %v9394_v52  ;;  %v9521_v1 = vcombine.low %v615_v48, %v619_v49 }
  0x8e   : > { %v11175_v54 = vld [vmem:[%s12894_s0] sm:$0xff]  ;;  %6758 = vmatpush1.bf16.msra.mxu0 %v9393_v0 }
  0x8f   : > { %v11180_v55 = vld [vmem:[%s12894_s0 + $0x40] sm:$0xff]  ;;  %6800 = vmatprep.subr.bf16.mxu1 %v9522_v56 }
  0x90   : > { %v483_v57 = vld [vmem:[%s11119_s17 + $0x20] sm:$0xff]  ;;  %v11185_v58 = vcombine.high %v11175_v54, %v11180_v55  ;;  %6801 = vmatpush1.bf16.msra.mxu1 %v9521_v1 }
  0x91   : > { %v607_v61 = vld [vmem:[%s11119_s17 + $0x400] sm:$0xff]  ;;  %v9386_v2 = vcombine.high %v479_v53, %v483_v57  ;;  %v9385_v8 = vcombine.low %v479_v53, %v483_v57 }
  0x92   : > { %v611_v62 = vld [vmem:[%s11119_s17 + $0x420] sm:$0xff]  ;;  %6777 = vmatprep.mubr.bf16.mxu0 %v11185_v58 }
  0x93   : > { %v9514_v3 = vcombine.high %v607_v61, %v611_v62  ;;  %v599_v4 = vld [vmem:[%s11119_s17 + $0x3c0] sm:$0xff]  ;;  %6759 = vmatprep.subr.bf16.mxu0 %v9386_v2  ;;  %v9513_v9 = vcombine.low %v607_v61, %v611_v62 }
  0x94   : > { %v603_v5 = vld [vmem:[%s11119_s17 + $0x3e0] sm:$0xff]  ;;  %6760 = vmatpush1.bf16.msra.mxu0 %v9385_v8 }
  0x95   : > { %v727_v6 = vld [vmem:[%s11119_s17 + $0x7c0] sm:$0xff]  ;;  %v9506_v10 = vcombine.high %v599_v4, %v603_v5  ;;  %6802 = vmatprep.subr.bf16.mxu1 %v9514_v3  ;;  %v9505_v16 = vcombine.low %v599_v4, %v603_v5 }
  0x96   : > { %v731_v7 = vld [vmem:[%s11119_s17 + $0x7e0] sm:$0xff]  ;;  %6803 = vmatpush1.bf16.msra.mxu1 %v9513_v9 }
  0x97   : > { %v9634_v11 = vcombine.high %v727_v6, %v731_v7  ;;  %v591_v12 = vld [vmem:[%s11119_s17 + $0x380] sm:$0xff]  ;;  %6761 = vmatprep.subr.bf16.mxu0 %v9506_v10  ;;  %v9633_v17 = vcombine.low %v727_v6, %v731_v7 }
  0x98   : > { %v595_v13 = vld [vmem:[%s11119_s17 + $0x3a0] sm:$0xff]  ;;  %6762 = vmatpush2.bf16.msra.mxu0 %v9505_v16 }
  0x99   : > { %v719_v14 = vld [vmem:[%s11119_s17 + $0x780] sm:$0xff]  ;;  %v9498_v18 = vcombine.high %v591_v12, %v595_v13  ;;  %6804 = vmatprep.subr.bf16.mxu1 %v9634_v11  ;;  %v9497_v24 = vcombine.low %v591_v12, %v595_v13 }
  0x9a   : > { %v723_v15 = vld [vmem:[%s11119_s17 + $0x7a0] sm:$0xff]  ;;  %6805 = vmatpush2.bf16.msra.mxu1 %v9633_v17 }
  0x9b   : > { %v9626_v19 = vcombine.high %v719_v14, %v723_v15  ;;  %v583_v20 = vld [vmem:[%s11119_s17 + $0x340] sm:$0xff]  ;;  %6763 = vmatprep.subr.bf16.mxu0 %v9498_v18  ;;  %v9625_v25 = vcombine.low %v719_v14, %v723_v15 }
  0x9c   : > { %v587_v21 = vld [vmem:[%s11119_s17 + $0x360] sm:$0xff]  ;;  %6764 = vmatpush2.bf16.msra.mxu0 %v9497_v24  ;;  %v11257_v24 = vld [vmem:[%s12894_s0 + $0x50] sm:$0xff] }
  0x9d   : > { %v711_v22 = vld [vmem:[%s11119_s17 + $0x740] sm:$0xff]  ;;  %v9490_v26 = vcombine.high %v583_v20, %v587_v21  ;;  %6806 = vmatprep.subr.bf16.mxu1 %v9626_v19  ;;  %v9489_v32 = vcombine.low %v583_v20, %v587_v21  ;;  %v11246_v21 = vcombine.low %v11175_v54, %v11180_v55  ;;  %v11266_v55 = vld [vmem:[%s12894_s0 + $0x18] sm:$0xff] }
  0x9e   : > { %v715_v23 = vld [vmem:[%s11119_s17 + $0x760] sm:$0xff]  ;;  %6807 = vmatpush2.bf16.msra.mxu1 %v9625_v25  ;;  %v11261_v25 = vcombine.low %v11190_v59, %v11195_v60 }
  0x9f   : > { %v9618_v27 = vcombine.high %v711_v22, %v715_v23  ;;  %v575_v28 = vld [vmem:[%s11119_s17 + $0x300] sm:$0xff]  ;;  %6765 = vmatprep.subr.bf16.mxu0 %v9490_v26  ;;  %v9617_v33 = vcombine.low %v711_v22, %v715_v23  ;;  %v11252_v23 = vld [vmem:[%s12894_s0 + $0x10] sm:$0xff]  ;;  %v11271_v26 = vld [vmem:[%s12894_s0 + $0x58] sm:$0xff] }
  0xa0   : > { %v579_v29 = vld [vmem:[%s11119_s17 + $0x320] sm:$0xff]  ;;  %6766 = vmatpush2.bf16.msra.mxu0 %v9489_v32  ;;  %v11277_v60 = vcombine.high %v11252_v23, %v11257_v24 }
  0xa1   : > { %v703_v30 = vld [vmem:[%s11119_s17 + $0x700] sm:$0xff]  ;;  %v9482_v34 = vcombine.high %v575_v28, %v579_v29  ;;  %6808 = vmatprep.subr.bf16.mxu1 %v9618_v27  ;;  %v9481_v40 = vcombine.low %v575_v28, %v579_v29 }
  0xa2   : > { %v707_v31 = vld [vmem:[%s11119_s17 + $0x720] sm:$0xff]  ;;  %6809 = vmatpush2.bf16.msra.mxu1 %v9617_v33  ;;  %v11284_v33 = vcombine.high %v11266_v55, %v11271_v26 }
  0xa3   : > { %v9610_v35 = vcombine.high %v703_v30, %v707_v31  ;;  %v567_v36 = vld [vmem:[%s11119_s17 + $0x2c0] sm:$0xff]  ;;  %6767 = vmatprep.subr.bf16.mxu0 %v9482_v34  ;;  %v9609_v41 = vcombine.low %v703_v30, %v707_v31 }
  0xa4   : > { %v571_v37 = vld [vmem:[%s11119_s17 + $0x2e0] sm:$0xff]  ;;  %6768 = vmatpush2.bf16.msra.mxu0 %v9481_v40 }
  0xa5   : > { %v695_v38 = vld [vmem:[%s11119_s17 + $0x6c0] sm:$0xff]  ;;  %v9474_v42 = vcombine.high %v567_v36, %v571_v37  ;;  %6810 = vmatprep.subr.bf16.mxu1 %v9610_v35  ;;  %v9473_v48 = vcombine.low %v567_v36, %v571_v37 }
  0xa6   : > { %v699_v39 = vld [vmem:[%s11119_s17 + $0x6e0] sm:$0xff]  ;;  %6811 = vmatpush2.bf16.msra.mxu1 %v9609_v41 }
  0xa7   : > { %v9602_v43 = vcombine.high %v695_v38, %v699_v39  ;;  %v559_v44 = vld [vmem:[%s11119_s17 + $0x280] sm:$0xff]  ;;  %6769 = vmatprep.subr.bf16.mxu0 %v9474_v42  ;;  %v9601_v49 = vcombine.low %v695_v38, %v699_v39 }
  0xa8   : > { %v563_v45 = vld [vmem:[%s11119_s17 + $0x2a0] sm:$0xff]  ;;  %6770 = vmatpush2.bf16.msra.mxu0 %v9473_v48 }
  0xa9   : > { %v687_v46 = vld [vmem:[%s11119_s17 + $0x680] sm:$0xff]  ;;  %v9466_v50 = vcombine.high %v559_v44, %v563_v45  ;;  %6812 = vmatprep.subr.bf16.mxu1 %v9602_v43  ;;  %v9465_v61 = vcombine.low %v559_v44, %v563_v45 }
  0xaa   : > { %v691_v47 = vld [vmem:[%s11119_s17 + $0x6a0] sm:$0xff]  ;;  %6813 = vmatpush2.bf16.msra.mxu1 %v9601_v49 }
  0xab   : > { %v9594_v51 = vcombine.high %v687_v46, %v691_v47  ;;  %v551_v52 = vld [vmem:[%s11119_s17 + $0x240] sm:$0xff]  ;;  %6771 = vmatprep.subr.bf16.mxu0 %v9466_v50  ;;  %v9593_v62 = vcombine.low %v687_v46, %v691_v47 }
  0xac   : > { %v555_v53 = vld [vmem:[%s11119_s17 + $0x260] sm:$0xff]  ;;  %6772 = vmatpush2.bf16.msra.mxu0 %v9465_v61 }
  0xad   : > { %v679_v56 = vld [vmem:[%s11119_s17 + $0x640] sm:$0xff]  ;;  %v9458_v0 = vcombine.high %v551_v52, %v555_v53  ;;  %6814 = vmatprep.subr.bf16.mxu1 %v9594_v51  ;;  %v9457_v6 = vcombine.low %v551_v52, %v555_v53 }
  0xae   : > { %v683_v57 = vld [vmem:[%s11119_s17 + $0x660] sm:$0xff]  ;;  %6815 = vmatpush2.bf16.msra.mxu1 %v9593_v62 }
  0xaf   : > { %v9586_v1 = vcombine.high %v679_v56, %v683_v57  ;;  %v543_v2 = vld [vmem:[%s11119_s17 + $0x200] sm:$0xff]  ;;  %6773 = vmatprep.subr.bf16.mxu0 %v9458_v0  ;;  %v9585_v7 = vcombine.low %v679_v56, %v683_v57 }
  0xb0   : > { %v547_v3 = vld [vmem:[%s11119_s17 + $0x220] sm:$0xff]  ;;  %6774 = vmatpush2.bf16.msra.mxu0 %v9457_v6 }
  0xb1   : > { %v671_v4 = vld [vmem:[%s11119_s17 + $0x600] sm:$0xff]  ;;  %v9450_v8 = vcombine.high %v543_v2, %v547_v3  ;;  %6816 = vmatprep.subr.bf16.mxu1 %v9586_v1  ;;  %v9449_v14 = vcombine.low %v543_v2, %v547_v3 }
  0xb2   : > { %v675_v5 = vld [vmem:[%s11119_s17 + $0x620] sm:$0xff]  ;;  %6817 = vmatpush2.bf16.msra.mxu1 %v9585_v7 }
  0xb3   : > { %v9578_v9 = vcombine.high %v671_v4, %v675_v5  ;;  %v791_v10 = vld [vmem:[%s11119_s17 + $0x9c0] sm:$0xff]  ;;  %6775 = vmatprep.subr.bf16.mxu0 %v9450_v8  ;;  %v9577_v15 = vcombine.low %v671_v4, %v675_v5 }
  0xb4   : > { %v795_v11 = vld [vmem:[%s11119_s17 + $0x9e0] sm:$0xff]  ;;  %6776 = vmatpush2.bf16.msra.mxu0 %v9449_v14 }
  0xb5   : > { %v919_v12 = vld [vmem:[%s11119_s17 + $0xdc0] sm:$0xff]  ;;  %v9698_v16 = vcombine.high %v791_v10, %v795_v11  ;;  %6818 = vmatprep.subr.bf16.mxu1 %v9578_v9  ;;  %v9697_v54 = vcombine.low %v791_v10, %v795_v11 }
  0xb6   : > { %v923_v13 = vld [vmem:[%s11119_s17 + $0xde0] sm:$0xff]  ;;  %6819 = vmatpush2.bf16.msra.mxu1 %v9577_v15 }
  0xb7   : > { %v9826_v17 = vcombine.high %v919_v12, %v923_v13  ;;  %v783_v18 = vld [vmem:[%s11119_s17 + $0x980] sm:$0xff]  ;;  %6831 = vmatprep.subr.bf16.mxu0 %v9698_v16  ;;  %v9825_v27 = vcombine.low %v919_v12, %v923_v13  ;;  %6778 = vmatmul.mubr.bf16.vlgmr.msra.gmra.mxu0 %v11246_v21 }
  0xb8   : > { %v787_v19 = vld [vmem:[%s11119_s17 + $0x9a0] sm:$0xff]  ;;  %6832 = vmatpush1.bf16.msra.mxu0 %v9697_v54  ;;  %6863 = vmatprep.mubr.bf16.mxu0 %v11277_v60 }
  0xb9   : > { %v911_v20 = vld [vmem:[%s11119_s17 + $0xd80] sm:$0xff]  ;;  %v9690_v28 = vcombine.high %v783_v18, %v787_v19  ;;  %6874 = vmatprep.subr.bf16.mxu1 %v9826_v17  ;;  %6821 = vmatmul.mubr.bf16.vlgmr.msra.gmra.mxu1 %v11261_v25  ;;  %v9689_v34 = vcombine.low %v783_v18, %v787_v19 }
  0xba   : > { %v915_v22 = vld [vmem:[%s11119_s17 + $0xda0] sm:$0xff]  ;;  %6875 = vmatpush1.bf16.msra.mxu1 %v9825_v27  ;;  %6906 = vmatprep.mubr.bf16.mxu1 %v11284_v33 }
  0xbb   : > { %v9818_v29 = vcombine.high %v911_v20, %v915_v22  ;;  %v775_v30 = vld [vmem:[%s11119_s17 + $0x940] sm:$0xff]  ;;  %6833 = vmatprep.subr.bf16.mxu0 %v9690_v28  ;;  %v9817_v35 = vcombine.low %v911_v20, %v915_v22 }
  0xbc   : > { %v779_v59 = vld [vmem:[%s11119_s17 + $0x960] sm:$0xff]  ;;  %6834 = vmatpush1.bf16.msra.mxu0 %v9689_v34 }
  0xbd   : > { %v903_v31 = vld [vmem:[%s11119_s17 + $0xd40] sm:$0xff]  ;;  %v9682_v36 = vcombine.high %v775_v30, %v779_v59  ;;  %6876 = vmatprep.subr.bf16.mxu1 %v9818_v29  ;;  %v9681_v42 = vcombine.low %v775_v30, %v779_v59 }
  0xbe   : > { %v907_v32 = vld [vmem:[%s11119_s17 + $0xd60] sm:$0xff]  ;;  %6877 = vmatpush1.bf16.msra.mxu1 %v9817_v35 }
  0xbf   : > { %v9810_v37 = vcombine.high %v903_v31, %v907_v32  ;;  %v767_v38 = vld [vmem:[%s11119_s17 + $0x900] sm:$0xff]  ;;  %6835 = vmatprep.subr.bf16.mxu0 %v9682_v36  ;;  %v9809_v43 = vcombine.low %v903_v31, %v907_v32 }
  0xc0   : > { %v771_v39 = vld [vmem:[%s11119_s17 + $0x920] sm:$0xff]  ;;  %6836 = vmatpush1.bf16.msra.mxu0 %v9681_v42 }
  0xc1   : > { %v895_v40 = vld [vmem:[%s11119_s17 + $0xd00] sm:$0xff]  ;;  %v9674_v44 = vcombine.high %v767_v38, %v771_v39  ;;  %6878 = vmatprep.subr.bf16.mxu1 %v9810_v37  ;;  %v9673_v50 = vcombine.low %v767_v38, %v771_v39 }
  0xc2   : > { %v899_v41 = vld [vmem:[%s11119_s17 + $0xd20] sm:$0xff]  ;;  %6879 = vmatpush1.bf16.msra.mxu1 %v9809_v43 }
  0xc3   : > { %v9802_v45 = vcombine.high %v895_v40, %v899_v41  ;;  %v759_v46 = vld [vmem:[%s11119_s17 + $0x8c0] sm:$0xff]  ;;  %6837 = vmatprep.subr.bf16.mxu0 %v9674_v44  ;;  %v9801_v51 = vcombine.low %v895_v40, %v899_v41 }
  0xc4   : > { %v763_v47 = vld [vmem:[%s11119_s17 + $0x8e0] sm:$0xff]  ;;  %6838 = vmatpush1.bf16.msra.mxu0 %v9673_v50 }
  0xc5   : > { %v887_v48 = vld [vmem:[%s11119_s17 + $0xcc0] sm:$0xff]  ;;  %v9666_v52 = vcombine.high %v759_v46, %v763_v47  ;;  %6880 = vmatprep.subr.bf16.mxu1 %v9802_v45  ;;  %v9665_v0 = vcombine.low %v759_v46, %v763_v47 }
  0xc6   : > { %v891_v49 = vld [vmem:[%s11119_s17 + $0xce0] sm:$0xff]  ;;  %6881 = vmatpush1.bf16.msra.mxu1 %v9801_v51 }
  0xc7   : > { %v9794_v53 = vcombine.high %v887_v48, %v891_v49  ;;  %v751_v56 = vld [vmem:[%s11119_s17 + $0x880] sm:$0xff]  ;;  %6839 = vmatprep.subr.bf16.mxu0 %v9666_v52  ;;  %v9793_v1 = vcombine.low %v887_v48, %v891_v49 }
  0xc8   : > { %v755_v57 = vld [vmem:[%s11119_s17 + $0x8a0] sm:$0xff]  ;;  %6840 = vmatpush1.bf16.msra.mxu0 %v9665_v0 }
  0xc9   : > { %v879_v61 = vld [vmem:[%s11119_s17 + $0xc80] sm:$0xff]  ;;  %v9658_v2 = vcombine.high %v751_v56, %v755_v57  ;;  %6882 = vmatprep.subr.bf16.mxu1 %v9794_v53  ;;  %v9657_v8 = vcombine.low %v751_v56, %v755_v57 }
  0xca   : > { %v883_v62 = vld [vmem:[%s11119_s17 + $0xca0] sm:$0xff]  ;;  %6883 = vmatpush1.bf16.msra.mxu1 %v9793_v1 }
  0xcb   : > { %v9786_v3 = vcombine.high %v879_v61, %v883_v62  ;;  %v743_v4 = vld [vmem:[%s11119_s17 + $0x840] sm:$0xff]  ;;  %6841 = vmatprep.subr.bf16.mxu0 %v9658_v2  ;;  %v9785_v9 = vcombine.low %v879_v61, %v883_v62 }
  0xcc   : > { %v747_v5 = vld [vmem:[%s11119_s17 + $0x860] sm:$0xff]  ;;  %6842 = vmatpush1.bf16.msra.mxu0 %v9657_v8 }
  0xcd   : > { %v871_v6 = vld [vmem:[%s11119_s17 + $0xc40] sm:$0xff]  ;;  %v9650_v10 = vcombine.high %v743_v4, %v747_v5  ;;  %6884 = vmatprep.subr.bf16.mxu1 %v9786_v3  ;;  %v9649_v16 = vcombine.low %v743_v4, %v747_v5 }
  0xce   : > { %v875_v7 = vld [vmem:[%s11119_s17 + $0xc60] sm:$0xff]  ;;  %6885 = vmatpush1.bf16.msra.mxu1 %v9785_v9 }
  0xcf   : > { %v9778_v11 = vcombine.high %v871_v6, %v875_v7  ;;  %v735_v12 = vld [vmem:[%s11119_s17 + $0x800] sm:$0xff]  ;;  %6843 = vmatprep.subr.bf16.mxu0 %v9650_v10  ;;  %v9777_v17 = vcombine.low %v871_v6, %v875_v7 }
  0xd0   : > { %v739_v13 = vld [vmem:[%s11119_s17 + $0x820] sm:$0xff]  ;;  %6844 = vmatpush1.bf16.msra.mxu0 %v9649_v16 }
  0xd1   : > { %v863_v14 = vld [vmem:[%s11119_s17 + $0xc00] sm:$0xff]  ;;  %v9642_v18 = vcombine.high %v735_v12, %v739_v13  ;;  %6886 = vmatprep.subr.bf16.mxu1 %v9778_v11  ;;  %v9641_v28 = vcombine.low %v735_v12, %v739_v13 }
  0xd2   : > { %v867_v15 = vld [vmem:[%s11119_s17 + $0xc20] sm:$0xff]  ;;  %6887 = vmatpush1.bf16.msra.mxu1 %v9777_v17 }
  0xd3   : > { %v9770_v19 = vcombine.high %v863_v14, %v867_v15  ;;  %v855_v20 = vld [vmem:[%s11119_s17 + $0xbc0] sm:$0xff]  ;;  %6845 = vmatprep.subr.bf16.mxu0 %v9642_v18  ;;  %v9769_v29 = vcombine.low %v863_v14, %v867_v15 }
  0xd4   : > { %v859_v22 = vld [vmem:[%s11119_s17 + $0xbe0] sm:$0xff]  ;;  %6846 = vmatpush1.bf16.msra.mxu0 %v9641_v28 }
  0xd5   : > { %v983_v54 = vld [vmem:[%s11119_s17 + $0xfc0] sm:$0xff]  ;;  %v9762_v30 = vcombine.high %v855_v20, %v859_v22  ;;  %6888 = vmatprep.subr.bf16.mxu1 %v9770_v19  ;;  %v9761_v36 = vcombine.low %v855_v20, %v859_v22 }
  0xd6   : > { %v987_v27 = vld [vmem:[%s11119_s17 + $0xfe0] sm:$0xff]  ;;  %6889 = vmatpush1.bf16.msra.mxu1 %v9769_v29 }
  0xd7   : > { %v9890_v59 = vcombine.high %v983_v54, %v987_v27  ;;  %v847_v31 = vld [vmem:[%s11119_s17 + $0xb80] sm:$0xff]  ;;  %6847 = vmatprep.subr.bf16.mxu0 %v9762_v30  ;;  %v9889_v37 = vcombine.low %v983_v54, %v987_v27 }
  0xd8   : > { %v851_v32 = vld [vmem:[%s11119_s17 + $0xba0] sm:$0xff]  ;;  %6848 = vmatpush2.bf16.msra.mxu0 %v9761_v36 }
  0xd9   : > { %v975_v34 = vld [vmem:[%s11119_s17 + $0xf80] sm:$0xff]  ;;  %v9754_v38 = vcombine.high %v847_v31, %v851_v32  ;;  %6890 = vmatprep.subr.bf16.mxu1 %v9890_v59  ;;  %v9753_v44 = vcombine.low %v847_v31, %v851_v32 }
  0xda   : > { %v979_v35 = vld [vmem:[%s11119_s17 + $0xfa0] sm:$0xff]  ;;  %6891 = vmatpush2.bf16.msra.mxu1 %v9889_v37 }
  0xdb   : > { %v9882_v39 = vcombine.high %v975_v34, %v979_v35  ;;  %v839_v40 = vld [vmem:[%s11119_s17 + $0xb40] sm:$0xff]  ;;  %6849 = vmatprep.subr.bf16.mxu0 %v9754_v38  ;;  %v9881_v45 = vcombine.low %v975_v34, %v979_v35 }
  0xdc   : > { %v843_v41 = vld [vmem:[%s11119_s17 + $0xb60] sm:$0xff]  ;;  %6850 = vmatpush2.bf16.msra.mxu0 %v9753_v44 }
  0xdd   : > { %v967_v42 = vld [vmem:[%s11119_s17 + $0xf40] sm:$0xff]  ;;  %v9746_v46 = vcombine.high %v839_v40, %v843_v41  ;;  %6892 = vmatprep.subr.bf16.mxu1 %v9882_v39  ;;  %v9745_v52 = vcombine.low %v839_v40, %v843_v41 }
  0xde   : > { %v971_v43 = vld [vmem:[%s11119_s17 + $0xf60] sm:$0xff]  ;;  %6893 = vmatpush2.bf16.msra.mxu1 %v9881_v45  ;;  %v11350_v45 = vcombine.low %v11252_v23, %v11257_v24  ;;  %v11370_v24 = vld [vmem:[%s12894_s0 + $0x28] sm:$0xff] }
  0xdf   : > { %v9874_v47 = vcombine.high %v967_v42, %v971_v43  ;;  %v831_v48 = vld [vmem:[%s11119_s17 + $0xb00] sm:$0xff]  ;;  %6851 = vmatprep.subr.bf16.mxu0 %v9746_v46  ;;  %v9873_v53 = vcombine.low %v967_v42, %v971_v43 }
  0xe0   : > { %v835_v49 = vld [vmem:[%s11119_s17 + $0xb20] sm:$0xff]  ;;  %6852 = vmatpush2.bf16.msra.mxu0 %v9745_v52 }
  0xe1   : > { %v959_v50 = vld [vmem:[%s11119_s17 + $0xf00] sm:$0xff]  ;;  %v9738_v56 = vcombine.high %v831_v48, %v835_v49  ;;  %6894 = vmatprep.subr.bf16.mxu1 %v9874_v47  ;;  %v9737_v2 = vcombine.low %v831_v48, %v835_v49  ;;  %v11365_v49 = vcombine.low %v11266_v55, %v11271_v26 }
  0xe2   : > { %v963_v51 = vld [vmem:[%s11119_s17 + $0xf20] sm:$0xff]  ;;  %6895 = vmatpush2.bf16.msra.mxu1 %v9873_v53 }
  0xe3   : > { %v9866_v57 = vcombine.high %v959_v50, %v963_v51  ;;  %v823_v61 = vld [vmem:[%s11119_s17 + $0xac0] sm:$0xff]  ;;  %6853 = vmatprep.subr.bf16.mxu0 %v9738_v56  ;;  %v9865_v3 = vcombine.low %v959_v50, %v963_v51  ;;  %v11375_v50 = vld [vmem:[%s12894_s0 + $0x68] sm:$0xff] }
  0xe4   : > { %v827_v62 = vld [vmem:[%s11119_s17 + $0xae0] sm:$0xff]  ;;  %6854 = vmatpush2.bf16.msra.mxu0 %v9737_v2 }
  0xe5   : > { %v951_v0 = vld [vmem:[%s11119_s17 + $0xec0] sm:$0xff]  ;;  %v9730_v4 = vcombine.high %v823_v61, %v827_v62  ;;  %6896 = vmatprep.subr.bf16.mxu1 %v9866_v57  ;;  %v9729_v10 = vcombine.low %v823_v61, %v827_v62  ;;  %v11388_v62 = vcombine.high %v11370_v24, %v11375_v50 }
  0xe6   : > { %v955_v1 = vld [vmem:[%s11119_s17 + $0xee0] sm:$0xff]  ;;  %6897 = vmatpush2.bf16.msra.mxu1 %v9865_v3 }
  0xe7   : > { %v9858_v5 = vcombine.high %v951_v0, %v955_v1  ;;  %v815_v6 = vld [vmem:[%s11119_s17 + $0xa80] sm:$0xff]  ;;  %6855 = vmatprep.subr.bf16.mxu0 %v9730_v4  ;;  %v9857_v11 = vcombine.low %v951_v0, %v955_v1 }
  0xe8   : > { %v819_v7 = vld [vmem:[%s11119_s17 + $0xaa0] sm:$0xff]  ;;  %6856 = vmatpush2.bf16.msra.mxu0 %v9729_v10 }
  0xe9   : > { %v943_v8 = vld [vmem:[%s11119_s17 + $0xe80] sm:$0xff]  ;;  %v9722_v12 = vcombine.high %v815_v6, %v819_v7  ;;  %6898 = vmatprep.subr.bf16.mxu1 %v9858_v5  ;;  %v9721_v18 = vcombine.low %v815_v6, %v819_v7 }
  0xea   : > { %v947_v9 = vld [vmem:[%s11119_s17 + $0xea0] sm:$0xff]  ;;  %6899 = vmatpush2.bf16.msra.mxu1 %v9857_v11 }
  0xeb   : > { %v9850_v13 = vcombine.high %v943_v8, %v947_v9  ;;  %v807_v14 = vld [vmem:[%s11119_s17 + $0xa40] sm:$0xff]  ;;  %6857 = vmatprep.subr.bf16.mxu0 %v9722_v12  ;;  %v9849_v19 = vcombine.low %v943_v8, %v947_v9 }
  0xec   : > { %v811_v15 = vld [vmem:[%s11119_s17 + $0xa60] sm:$0xff]  ;;  %6858 = vmatpush2.bf16.msra.mxu0 %v9721_v18 }
  0xed   : > { %v935_v16 = vld [vmem:[%s11119_s17 + $0xe40] sm:$0xff]  ;;  %v9714_v20 = vcombine.high %v807_v14, %v811_v15  ;;  %6900 = vmatprep.subr.bf16.mxu1 %v9850_v13  ;;  %v9713_v30 = vcombine.low %v807_v14, %v811_v15 }
  0xee   : > { %v939_v17 = vld [vmem:[%s11119_s17 + $0xe60] sm:$0xff]  ;;  %6901 = vmatpush2.bf16.msra.mxu1 %v9849_v19 }
  0xef   : > { %v9842_v22 = vcombine.high %v935_v16, %v939_v17  ;;  %v799_v54 = vld [vmem:[%s11119_s17 + $0xa00] sm:$0xff]  ;;  %6859 = vmatprep.subr.bf16.mxu0 %v9714_v20  ;;  %v9841_v59 = vcombine.low %v935_v16, %v939_v17 }
  0xf0   : > { %v803_v27 = vld [vmem:[%s11119_s17 + $0xa20] sm:$0xff]  ;;  %6860 = vmatpush2.bf16.msra.mxu0 %v9713_v30 }
  0xf1   : > { %v927_v28 = vld [vmem:[%s11119_s17 + $0xe00] sm:$0xff]  ;;  %v9706_v31 = vcombine.high %v799_v54, %v803_v27  ;;  %6902 = vmatprep.subr.bf16.mxu1 %v9842_v22  ;;  %v9705_v38 = vcombine.low %v799_v54, %v803_v27 }
  0xf2   : > { %v931_v29 = vld [vmem:[%s11119_s17 + $0xe20] sm:$0xff]  ;;  %6903 = vmatpush2.bf16.msra.mxu1 %v9841_v59 }
  0xf3   : > { %v9834_v32 = vcombine.high %v927_v28, %v931_v29  ;;  %v1047_v34 = vld [vmem:[%s11119_s17 + $0x11c0] sm:$0xff]  ;;  %6861 = vmatprep.subr.bf16.mxu0 %v9706_v31  ;;  %v9833_v39 = vcombine.low %v927_v28, %v931_v29 }
  0xf4   : > { %v1051_v35 = vld [vmem:[%s11119_s17 + $0x11e0] sm:$0xff]  ;;  %6862 = vmatpush2.bf16.msra.mxu0 %v9705_v38 }
  0xf5   : > { %v1175_v36 = vld [vmem:[%s11119_s17 + $0x15c0] sm:$0xff]  ;;  %v9954_v40 = vcombine.high %v1047_v34, %v1051_v35  ;;  %6904 = vmatprep.subr.bf16.mxu1 %v9834_v32  ;;  %v9953_v23 = vcombine.low %v1047_v34, %v1051_v35 }
  0xf6   : > { %v1179_v37 = vld [vmem:[%s11119_s17 + $0x15e0] sm:$0xff]  ;;  %6905 = vmatpush2.bf16.msra.mxu1 %v9833_v39 }
  0xf7   : > { %v10082_v41 = vcombine.high %v1175_v36, %v1179_v37  ;;  %v1039_v42 = vld [vmem:[%s11119_s17 + $0x1180] sm:$0xff]  ;;  %6917 = vmatprep.subr.bf16.mxu0 %v9954_v40  ;;  %v10081_v51 = vcombine.low %v1175_v36, %v1179_v37  ;;  %6864 = vmatmul.mubr.bf16.vlgmr.msra.gmra.mxu0 %v11350_v45 }
  0xf8   : > { %v1043_v43 = vld [vmem:[%s11119_s17 + $0x11a0] sm:$0xff]  ;;  %6918 = vmatpush1.bf16.msra.mxu0 %v9953_v23 }
  0xf9   : > { %v1167_v44 = vld [vmem:[%s11119_s17 + $0x1580] sm:$0xff]  ;;  %v9946_v52 = vcombine.high %v1039_v42, %v1043_v43  ;;  %6960 = vmatprep.subr.bf16.mxu1 %v10082_v41  ;;  %6907 = vmatmul.mubr.bf16.vlgmr.msra.gmra.mxu1 %v11365_v49  ;;  %v9945_v0 = vcombine.low %v1039_v42, %v1043_v43 }
  0xfa   : > { %v1171_v46 = vld [vmem:[%s11119_s17 + $0x15a0] sm:$0xff]  ;;  %6961 = vmatpush1.bf16.msra.mxu1 %v10081_v51  ;;  %6992 = vmatprep.mubr.bf16.mxu1 %v11388_v62 }
  0xfb   : > { %v11356_v47 = vld [vmem:[%s12894_s0 + $0x20] sm:$0xff]  ;;  %v10074_v53 = vcombine.high %v1167_v44, %v1171_v46  ;;  %6919 = vmatprep.subr.bf16.mxu0 %v9946_v52  ;;  %v10073_v1 = vcombine.low %v1167_v44, %v1171_v46 }
  0xfc   : > { %v11361_v48 = vld [vmem:[%s12894_s0 + $0x60] sm:$0xff]  ;;  %6920 = vmatpush1.bf16.msra.mxu0 %v9945_v0 }
  0xfd   : > { %v1031_v56 = vld [vmem:[%s11119_s17 + $0x1140] sm:$0xff]  ;;  %v11381_v26 = vcombine.high %v11356_v47, %v11361_v48  ;;  %6962 = vmatprep.subr.bf16.mxu1 %v10074_v53 }
  0xfe   : > { %v1035_v55 = vld [vmem:[%s11119_s17 + $0x1160] sm:$0xff]  ;;  %6963 = vmatpush1.bf16.msra.mxu1 %v10073_v1 }
  0xff   : > { %v1159_v57 = vld [vmem:[%s11119_s17 + $0x1540] sm:$0xff]  ;;  %v9938_v2 = vcombine.high %v1031_v56, %v1035_v55  ;;  %6949 = vmatprep.mubr.bf16.mxu0 %v11381_v26  ;;  %v9937_v8 = vcombine.low %v1031_v56, %v1035_v55 }
 0x100   : > { %v1163_v61 = vld [vmem:[%s11119_s17 + $0x1560] sm:$0xff] }
 0x101   : > { %v10066_v3 = vcombine.high %v1159_v57, %v1163_v61  ;;  %v1023_v4 = vld [vmem:[%s11119_s17 + $0x1100] sm:$0xff]  ;;  %6921 = vmatprep.subr.bf16.mxu0 %v9938_v2  ;;  %v10065_v9 = vcombine.low %v1159_v57, %v1163_v61 }
 0x102   : > { %v1027_v5 = vld [vmem:[%s11119_s17 + $0x1120] sm:$0xff]  ;;  %6922 = vmatpush1.bf16.msra.mxu0 %v9937_v8 }
 0x103   : > { %v1151_v6 = vld [vmem:[%s11119_s17 + $0x1500] sm:$0xff]  ;;  %v9930_v10 = vcombine.high %v1023_v4, %v1027_v5  ;;  %6964 = vmatprep.subr.bf16.mxu1 %v10066_v3  ;;  %v9929_v16 = vcombine.low %v1023_v4, %v1027_v5 }
 0x104   : > { %v1155_v7 = vld [vmem:[%s11119_s17 + $0x1520] sm:$0xff]  ;;  %6965 = vmatpush1.bf16.msra.mxu1 %v10065_v9 }
 0x105   : > { %v10058_v11 = vcombine.high %v1151_v6, %v1155_v7  ;;  %v1015_v12 = vld [vmem:[%s11119_s17 + $0x10c0] sm:$0xff]  ;;  %6923 = vmatprep.subr.bf16.mxu0 %v9930_v10  ;;  %v10057_v17 = vcombine.low %v1151_v6, %v1155_v7 }
 0x106   : > { %v1019_v13 = vld [vmem:[%s11119_s17 + $0x10e0] sm:$0xff]  ;;  %6924 = vmatpush1.bf16.msra.mxu0 %v9929_v16 }
 0x107   : > { %v1143_v14 = vld [vmem:[%s11119_s17 + $0x14c0] sm:$0xff]  ;;  %v9922_v18 = vcombine.high %v1015_v12, %v1019_v13  ;;  %6966 = vmatprep.subr.bf16.mxu1 %v10058_v11  ;;  %v9921_v28 = vcombine.low %v1015_v12, %v1019_v13 }
 0x108   : > { %v1147_v15 = vld [vmem:[%s11119_s17 + $0x14e0] sm:$0xff]  ;;  %6967 = vmatpush1.bf16.msra.mxu1 %v10057_v17 }
 0x109   : > { %v10050_v19 = vcombine.high %v1143_v14, %v1147_v15  ;;  %v1007_v20 = vld [vmem:[%s11119_s17 + $0x1080] sm:$0xff]  ;;  %6925 = vmatprep.subr.bf16.mxu0 %v9922_v18  ;;  %v10049_v29 = vcombine.low %v1143_v14, %v1147_v15 }
 0x10a   : > { %v1011_v22 = vld [vmem:[%s11119_s17 + $0x10a0] sm:$0xff]  ;;  %6926 = vmatpush1.bf16.msra.mxu0 %v9921_v28 }
 0x10b   : > { %v1135_v54 = vld [vmem:[%s11119_s17 + $0x1480] sm:$0xff]  ;;  %v9914_v30 = vcombine.high %v1007_v20, %v1011_v22  ;;  %6968 = vmatprep.subr.bf16.mxu1 %v10050_v19  ;;  %v9913_v36 = vcombine.low %v1007_v20, %v1011_v22 }
 0x10c   : > { %v1139_v27 = vld [vmem:[%s11119_s17 + $0x14a0] sm:$0xff]  ;;  %6969 = vmatpush1.bf16.msra.mxu1 %v10049_v29 }
 0x10d   : > { %v10042_v59 = vcombine.high %v1135_v54, %v1139_v27  ;;  %v999_v31 = vld [vmem:[%s11119_s17 + $0x1040] sm:$0xff]  ;;  %6927 = vmatprep.subr.bf16.mxu0 %v9914_v30  ;;  %v10041_v37 = vcombine.low %v1135_v54, %v1139_v27 }
 0x10e   : > { %v1003_v32 = vld [vmem:[%s11119_s17 + $0x1060] sm:$0xff]  ;;  %6928 = vmatpush1.bf16.msra.mxu0 %v9913_v36 }
 0x10f   : > { %v1127_v34 = vld [vmem:[%s11119_s17 + $0x1440] sm:$0xff]  ;;  %v9906_v38 = vcombine.high %v999_v31, %v1003_v32  ;;  %6970 = vmatprep.subr.bf16.mxu1 %v10042_v59  ;;  %v9905_v44 = vcombine.low %v999_v31, %v1003_v32 }
 0x110   : > { %v1131_v35 = vld [vmem:[%s11119_s17 + $0x1460] sm:$0xff]  ;;  %6971 = vmatpush1.bf16.msra.mxu1 %v10041_v37 }
 0x111   : > { %v10034_v39 = vcombine.high %v1127_v34, %v1131_v35  ;;  %v991_v40 = vld [vmem:[%s11119_s17 + $0x1000] sm:$0xff]  ;;  %6929 = vmatprep.subr.bf16.mxu0 %v9906_v38  ;;  %v10033_v46 = vcombine.low %v1127_v34, %v1131_v35 }
 0x112   : > { %v995_v41 = vld [vmem:[%s11119_s17 + $0x1020] sm:$0xff]  ;;  %6930 = vmatpush1.bf16.msra.mxu0 %v9905_v44 }
 0x113   : > { %v1119_v42 = vld [vmem:[%s11119_s17 + $0x1400] sm:$0xff]  ;;  %v9898_v23 = vcombine.high %v991_v40, %v995_v41  ;;  %6972 = vmatprep.subr.bf16.mxu1 %v10034_v39  ;;  %v9897_v57 = vcombine.low %v991_v40, %v995_v41 }
 0x114   : > { %v1123_v43 = vld [vmem:[%s11119_s17 + $0x1420] sm:$0xff]  ;;  %6973 = vmatpush1.bf16.msra.mxu1 %v10033_v46 }
 0x115   : > { %v10026_v51 = vcombine.high %v1119_v42, %v1123_v43  ;;  %v1111_v52 = vld [vmem:[%s11119_s17 + $0x13c0] sm:$0xff]  ;;  %6931 = vmatprep.subr.bf16.mxu0 %v9898_v23  ;;  %v10025_v61 = vcombine.low %v1119_v42, %v1123_v43 }
 0x116   : > { %v1115_v53 = vld [vmem:[%s11119_s17 + $0x13e0] sm:$0xff]  ;;  %6932 = vmatpush1.bf16.msra.mxu0 %v9897_v57 }
 0x117   : > { %v1239_v56 = vld [vmem:[%s11119_s17 + $0x17c0] sm:$0xff]  ;;  %v10018_v0 = vcombine.high %v1111_v52, %v1115_v53  ;;  %6974 = vmatprep.subr.bf16.mxu1 %v10026_v51  ;;  %v10017_v6 = vcombine.low %v1111_v52, %v1115_v53 }
 0x118   : > { %v1243_v55 = vld [vmem:[%s11119_s17 + $0x17e0] sm:$0xff]  ;;  %6975 = vmatpush1.bf16.msra.mxu1 %v10025_v61 }
 0x119   : > { %v10146_v1 = vcombine.high %v1239_v56, %v1243_v55  ;;  %v1103_v2 = vld [vmem:[%s11119_s17 + $0x1380] sm:$0xff]  ;;  %6933 = vmatprep.subr.bf16.mxu0 %v10018_v0  ;;  %v10145_v7 = vcombine.low %v1239_v56, %v1243_v55 }
 0x11a   : > { %v1107_v3 = vld [vmem:[%s11119_s17 + $0x13a0] sm:$0xff]  ;;  %6934 = vmatpush2.bf16.msra.mxu0 %v10017_v6 }
 0x11b   : > { %v1231_v4 = vld [vmem:[%s11119_s17 + $0x1780] sm:$0xff]  ;;  %v10010_v8 = vcombine.high %v1103_v2, %v1107_v3  ;;  %6976 = vmatprep.subr.bf16.mxu1 %v10146_v1  ;;  %v10009_v14 = vcombine.low %v1103_v2, %v1107_v3 }
 0x11c   : > { %v1235_v5 = vld [vmem:[%s11119_s17 + $0x17a0] sm:$0xff]  ;;  %6977 = vmatpush2.bf16.msra.mxu1 %v10145_v7 }
 0x11d   : > { %v10138_v9 = vcombine.high %v1231_v4, %v1235_v5  ;;  %v1095_v10 = vld [vmem:[%s11119_s17 + $0x1340] sm:$0xff]  ;;  %6935 = vmatprep.subr.bf16.mxu0 %v10010_v8  ;;  %v10137_v15 = vcombine.low %v1231_v4, %v1235_v5 }
 0x11e   : > { %v1099_v11 = vld [vmem:[%s11119_s17 + $0x1360] sm:$0xff]  ;;  %6936 = vmatpush2.bf16.msra.mxu0 %v10009_v14 }
 0x11f   : > { %v1223_v12 = vld [vmem:[%s11119_s17 + $0x1740] sm:$0xff]  ;;  %v10002_v16 = vcombine.high %v1095_v10, %v1099_v11  ;;  %6978 = vmatprep.subr.bf16.mxu1 %v10138_v9  ;;  %v10001_v54 = vcombine.low %v1095_v10, %v1099_v11 }
 0x120   : > { %v1227_v13 = vld [vmem:[%s11119_s17 + $0x1760] sm:$0xff]  ;;  %6979 = vmatpush2.bf16.msra.mxu1 %v10137_v15 }
 0x121   : > { %v10130_v17 = vcombine.high %v1223_v12, %v1227_v13  ;;  %v1087_v18 = vld [vmem:[%s11119_s17 + $0x1300] sm:$0xff]  ;;  %6937 = vmatprep.subr.bf16.mxu0 %v10002_v16  ;;  %v10129_v27 = vcombine.low %v1223_v12, %v1227_v13 }
 0x122   : > { %v1091_v19 = vld [vmem:[%s11119_s17 + $0x1320] sm:$0xff]  ;;  %6938 = vmatpush2.bf16.msra.mxu0 %v10001_v54  ;;  %v11465_v54 = vld [vmem:[%s12894_s0 + $0x70] sm:$0xff] }
 0x123   : > { %v1215_v20 = vld [vmem:[%s11119_s17 + $0x1700] sm:$0xff]  ;;  %v9994_v28 = vcombine.high %v1087_v18, %v1091_v19  ;;  %6980 = vmatprep.subr.bf16.mxu1 %v10130_v17  ;;  %v9993_v34 = vcombine.low %v1087_v18, %v1091_v19  ;;  %v11454_v19 = vcombine.low %v11356_v47, %v11361_v48  ;;  %v11474_v48 = vld [vmem:[%s12894_s0 + $0x38] sm:$0xff] }
 0x124   : > { %v1219_v22 = vld [vmem:[%s11119_s17 + $0x1720] sm:$0xff]  ;;  %6981 = vmatpush2.bf16.msra.mxu1 %v10129_v27  ;;  %v11469_v27 = vcombine.low %v11370_v24, %v11375_v50 }
 0x125   : > { %v10122_v29 = vcombine.high %v1215_v20, %v1219_v22  ;;  %v1079_v30 = vld [vmem:[%s11119_s17 + $0x12c0] sm:$0xff]  ;;  %6939 = vmatprep.subr.bf16.mxu0 %v9994_v28  ;;  %v10121_v35 = vcombine.low %v1215_v20, %v1219_v22  ;;  %12929 = vst [vmem:[#allocation16_spill] sm:$0xff] %v11454_v19  ;;  %v11460_v22 = vld [vmem:[%s12894_s0 + $0x30] sm:$0xff]  ;;  %v11479_v28 = vld [vmem:[%s12894_s0 + $0x78] sm:$0xff] }
 0x126   : > { %v1083_v59 = vld [vmem:[%s11119_s17 + $0x12e0] sm:$0xff]  ;;  %6940 = vmatpush2.bf16.msra.mxu0 %v9993_v34  ;;  %12930 = vst [vmem:[#allocation17_spill] sm:$0xff] %v11469_v27  ;;  %v11485_v50 = vcombine.high %v11460_v22, %v11465_v54 }
 0x127   : > { %v1207_v31 = vld [vmem:[%s11119_s17 + $0x16c0] sm:$0xff]  ;;  %v9986_v36 = vcombine.high %v1079_v30, %v1083_v59  ;;  %6982 = vmatprep.subr.bf16.mxu1 %v10122_v29  ;;  %v9985_v42 = vcombine.low %v1079_v30, %v1083_v59 }
 0x128   : > { %v1211_v32 = vld [vmem:[%s11119_s17 + $0x16e0] sm:$0xff]  ;;  %6983 = vmatpush2.bf16.msra.mxu1 %v10121_v35  ;;  %12931 = vst [vmem:[#allocation18_spill] sm:$0xff] %v11485_v50  ;;  %v11492_v35 = vcombine.high %v11474_v48, %v11479_v28 }
 0x129   : > { %v10114_v37 = vcombine.high %v1207_v31, %v1211_v32  ;;  %v1071_v38 = vld [vmem:[%s11119_s17 + $0x1280] sm:$0xff]  ;;  %6941 = vmatprep.subr.bf16.mxu0 %v9986_v36  ;;  %v10113_v43 = vcombine.low %v1207_v31, %v1211_v32 }
 0x12a   : > { %v1075_v39 = vld [vmem:[%s11119_s17 + $0x12a0] sm:$0xff]  ;;  %6942 = vmatpush2.bf16.msra.mxu0 %v9985_v42  ;;  %12932 = vst [vmem:[#allocation19_spill] sm:$0xff] %v11492_v35 }
 0x12b   : > { %v1199_v40 = vld [vmem:[%s11119_s17 + $0x1680] sm:$0xff]  ;;  %v9978_v44 = vcombine.high %v1071_v38, %v1075_v39  ;;  %6984 = vmatprep.subr.bf16.mxu1 %v10114_v37  ;;  %v9977_v56 = vcombine.low %v1071_v38, %v1075_v39 }
 0x12c   : > { %v1203_v41 = vld [vmem:[%s11119_s17 + $0x16a0] sm:$0xff]  ;;  %6985 = vmatpush2.bf16.msra.mxu1 %v10113_v43 }
 0x12d   : > { %v10106_v46 = vcombine.high %v1199_v40, %v1203_v41  ;;  %v1063_v23 = vld [vmem:[%s11119_s17 + $0x1240] sm:$0xff]  ;;  %6943 = vmatprep.subr.bf16.mxu0 %v9978_v44  ;;  %v10105_v55 = vcombine.low %v1199_v40, %v1203_v41 }
 0x12e   : > { %v1067_v51 = vld [vmem:[%s11119_s17 + $0x1260] sm:$0xff]  ;;  %6944 = vmatpush2.bf16.msra.mxu0 %v9977_v56 }
 0x12f   : > { %v1191_v52 = vld [vmem:[%s11119_s17 + $0x1640] sm:$0xff]  ;;  %v9970_v57 = vcombine.high %v1063_v23, %v1067_v51  ;;  %6986 = vmatprep.subr.bf16.mxu1 %v10106_v46  ;;  %v9969_v4 = vcombine.low %v1063_v23, %v1067_v51 }
 0x130   : > { %v1195_v53 = vld [vmem:[%s11119_s17 + $0x1660] sm:$0xff]  ;;  %6987 = vmatpush2.bf16.msra.mxu1 %v10105_v55 }
 0x131   : > { %v10098_v61 = vcombine.high %v1191_v52, %v1195_v53  ;;  %v1055_v0 = vld [vmem:[%s11119_s17 + $0x1200] sm:$0xff]  ;;  %6945 = vmatprep.subr.bf16.mxu0 %v9970_v57  ;;  %v10097_v5 = vcombine.low %v1191_v52, %v1195_v53 }
 0x132   : > { %v1059_v1 = vld [vmem:[%s11119_s17 + $0x1220] sm:$0xff]  ;;  %6946 = vmatpush2.bf16.msra.mxu0 %v9969_v4 }
 0x133   : > { %v1183_v2 = vld [vmem:[%s11119_s17 + $0x1600] sm:$0xff]  ;;  %v9962_v6 = vcombine.high %v1055_v0, %v1059_v1  ;;  %6988 = vmatprep.subr.bf16.mxu1 %v10098_v61  ;;  %v9961_v12 = vcombine.low %v1055_v0, %v1059_v1 }
 0x134   : > { %v1187_v3 = vld [vmem:[%s11119_s17 + $0x1620] sm:$0xff]  ;;  %6989 = vmatpush2.bf16.msra.mxu1 %v10097_v5 }
 0x135   : > { %v10090_v7 = vcombine.high %v1183_v2, %v1187_v3  ;;  %v1303_v8 = vld [vmem:[%s11119_s17 + $0x19c0] sm:$0xff]  ;;  %6947 = vmatprep.subr.bf16.mxu0 %v9962_v6  ;;  %v10089_v13 = vcombine.low %v1183_v2, %v1187_v3 }
 0x136   : > { %v1307_v9 = vld [vmem:[%s11119_s17 + $0x19e0] sm:$0xff]  ;;  %6948 = vmatpush2.bf16.msra.mxu0 %v9961_v12 }
 0x137   : > { %v1431_v10 = vld [vmem:[%s11119_s17 + $0x1dc0] sm:$0xff]  ;;  %v10210_v14 = vcombine.high %v1303_v8, %v1307_v9  ;;  %6990 = vmatprep.subr.bf16.mxu1 %v10090_v7  ;;  %v10209_v47 = vcombine.low %v1303_v8, %v1307_v9 }
 0x138   : > { %v1435_v11 = vld [vmem:[%s11119_s17 + $0x1de0] sm:$0xff]  ;;  %6991 = vmatpush2.bf16.msra.mxu1 %v10089_v13 }
 0x139   : > { %v10338_v15 = vcombine.high %v1431_v10, %v1435_v11  ;;  %v1295_v16 = vld [vmem:[%s11119_s17 + $0x1980] sm:$0xff]  ;;  %7003 = vmatprep.subr.bf16.mxu0 %v10210_v14  ;;  %v10337_v29 = vcombine.low %v1431_v10, %v1435_v11  ;;  %6950 = vmatmul.mubr.bf16.vlgmr.msra.gmra.mxu0 %v11454_v19 }
 0x13a   : > { %v1299_v17 = vld [vmem:[%s11119_s17 + $0x19a0] sm:$0xff]  ;;  %7004 = vmatpush1.bf16.msra.mxu0 %v10209_v47  ;;  %7035 = vmatprep.mubr.bf16.mxu0 %v11485_v50 }
 0x13b   : > { %v1423_v18 = vld [vmem:[%s11119_s17 + $0x1d80] sm:$0xff]  ;;  %v10202_v30 = vcombine.high %v1295_v16, %v1299_v17  ;;  %7046 = vmatprep.subr.bf16.mxu1 %v10338_v15  ;;  %6993 = vmatmul.mubr.bf16.vlgmr.msra.gmra.mxu1 %v11469_v27  ;;  %v10201_v36 = vcombine.low %v1295_v16, %v1299_v17 }
 0x13c   : > { %v1427_v20 = vld [vmem:[%s11119_s17 + $0x1da0] sm:$0xff]  ;;  %7047 = vmatpush1.bf16.msra.mxu1 %v10337_v29  ;;  %7078 = vmatprep.mubr.bf16.mxu1 %v11492_v35 }
 0x13d   : > { %v10330_v59 = vcombine.high %v1423_v18, %v1427_v20  ;;  %v1287_v31 = vld [vmem:[%s11119_s17 + $0x1940] sm:$0xff]  ;;  %7005 = vmatprep.subr.bf16.mxu0 %v10202_v30  ;;  %v10329_v37 = vcombine.low %v1423_v18, %v1427_v20 }
 0x13e   : > { %v1291_v24 = vld [vmem:[%s11119_s17 + $0x1960] sm:$0xff]  ;;  %7006 = vmatpush1.bf16.msra.mxu0 %v10201_v36 }
 0x13f   : > { %v1415_v32 = vld [vmem:[%s11119_s17 + $0x1d40] sm:$0xff]  ;;  %v10194_v38 = vcombine.high %v1287_v31, %v1291_v24  ;;  %7048 = vmatprep.subr.bf16.mxu1 %v10330_v59  ;;  %v10193_v44 = vcombine.low %v1287_v31, %v1291_v24 }
 0x140   : > { %v1419_v34 = vld [vmem:[%s11119_s17 + $0x1d60] sm:$0xff]  ;;  %7049 = vmatpush1.bf16.msra.mxu1 %v10329_v37 }
 0x141   : > { %v10322_v39 = vcombine.high %v1415_v32, %v1419_v34  ;;  %v1279_v40 = vld [vmem:[%s11119_s17 + $0x1900] sm:$0xff]  ;;  %7007 = vmatprep.subr.bf16.mxu0 %v10194_v38  ;;  %v10321_v46 = vcombine.low %v1415_v32, %v1419_v34 }
 0x142   : > { %v1283_v41 = vld [vmem:[%s11119_s17 + $0x1920] sm:$0xff]  ;;  %7008 = vmatpush1.bf16.msra.mxu0 %v10193_v44 }
 0x143   : > { %v1407_v42 = vld [vmem:[%s11119_s17 + $0x1d00] sm:$0xff]  ;;  %v10186_v23 = vcombine.high %v1279_v40, %v1283_v41  ;;  %7050 = vmatprep.subr.bf16.mxu1 %v10322_v39  ;;  %v10185_v57 = vcombine.low %v1279_v40, %v1283_v41 }
 0x144   : > { %v1411_v43 = vld [vmem:[%s11119_s17 + $0x1d20] sm:$0xff]  ;;  %7051 = vmatpush1.bf16.msra.mxu1 %v10321_v46 }
 0x145   : > { %v10314_v51 = vcombine.high %v1407_v42, %v1411_v43  ;;  %v1271_v52 = vld [vmem:[%s11119_s17 + $0x18c0] sm:$0xff]  ;;  %7009 = vmatprep.subr.bf16.mxu0 %v10186_v23  ;;  %v10313_v61 = vcombine.low %v1407_v42, %v1411_v43 }
 0x146   : > { %v1275_v53 = vld [vmem:[%s11119_s17 + $0x18e0] sm:$0xff]  ;;  %7010 = vmatpush1.bf16.msra.mxu0 %v10185_v57 }
 0x147   : > { %v1399_v56 = vld [vmem:[%s11119_s17 + $0x1cc0] sm:$0xff]  ;;  %v10178_v0 = vcombine.high %v1271_v52, %v1275_v53  ;;  %7052 = vmatprep.subr.bf16.mxu1 %v10314_v51  ;;  %v10177_v6 = vcombine.low %v1271_v52, %v1275_v53 }
 0x148   : > { %v1403_v55 = vld [vmem:[%s11119_s17 + $0x1ce0] sm:$0xff]  ;;  %7053 = vmatpush1.bf16.msra.mxu1 %v10313_v61 }
 0x149   : > { %v10306_v1 = vcombine.high %v1399_v56, %v1403_v55  ;;  %v1263_v2 = vld [vmem:[%s11119_s17 + $0x1880] sm:$0xff]  ;;  %7011 = vmatprep.subr.bf16.mxu0 %v10178_v0  ;;  %v10305_v7 = vcombine.low %v1399_v56, %v1403_v55 }
 0x14a   : > { %v1267_v3 = vld [vmem:[%s11119_s17 + $0x18a0] sm:$0xff]  ;;  %7012 = vmatpush1.bf16.msra.mxu0 %v10177_v6 }
 0x14b   : > { %v1391_v4 = vld [vmem:[%s11119_s17 + $0x1c80] sm:$0xff]  ;;  %v10170_v8 = vcombine.high %v1263_v2, %v1267_v3  ;;  %7054 = vmatprep.subr.bf16.mxu1 %v10306_v1  ;;  %v10169_v14 = vcombine.low %v1263_v2, %v1267_v3 }
 0x14c   : > { %v1395_v5 = vld [vmem:[%s11119_s17 + $0x1ca0] sm:$0xff]  ;;  %7055 = vmatpush1.bf16.msra.mxu1 %v10305_v7 }
 0x14d   : > { %v10298_v9 = vcombine.high %v1391_v4, %v1395_v5  ;;  %v1255_v10 = vld [vmem:[%s11119_s17 + $0x1840] sm:$0xff]  ;;  %7013 = vmatprep.subr.bf16.mxu0 %v10170_v8  ;;  %v10297_v15 = vcombine.low %v1391_v4, %v1395_v5 }
 0x14e   : > { %v1259_v11 = vld [vmem:[%s11119_s17 + $0x1860] sm:$0xff]  ;;  %7014 = vmatpush1.bf16.msra.mxu0 %v10169_v14 }
 0x14f   : > { %v1383_v12 = vld [vmem:[%s11119_s17 + $0x1c40] sm:$0xff]  ;;  %v10162_v16 = vcombine.high %v1255_v10, %v1259_v11  ;;  %7056 = vmatprep.subr.bf16.mxu1 %v10298_v9  ;;  %v10161_v30 = vcombine.low %v1255_v10, %v1259_v11 }
 0x150   : > { %v1387_v13 = vld [vmem:[%s11119_s17 + $0x1c60] sm:$0xff]  ;;  %7057 = vmatpush1.bf16.msra.mxu1 %v10297_v15 }
 0x151   : > { %v10290_v17 = vcombine.high %v1383_v12, %v1387_v13  ;;  %v1247_v18 = vld [vmem:[%s11119_s17 + $0x1800] sm:$0xff]  ;;  %7015 = vmatprep.subr.bf16.mxu0 %v10162_v16  ;;  %v10289_v59 = vcombine.low %v1383_v12, %v1387_v13 }
 0x152   : > { %v1251_v20 = vld [vmem:[%s11119_s17 + $0x1820] sm:$0xff]  ;;  %7016 = vmatpush1.bf16.msra.mxu0 %v10161_v30 }
 0x153   : > { %v1375_v47 = vld [vmem:[%s11119_s17 + $0x1c00] sm:$0xff]  ;;  %v10154_v31 = vcombine.high %v1247_v18, %v1251_v20  ;;  %7058 = vmatprep.subr.bf16.mxu1 %v10290_v17  ;;  %v10153_v38 = vcombine.low %v1247_v18, %v1251_v20 }
 0x154   : > { %v1379_v29 = vld [vmem:[%s11119_s17 + $0x1c20] sm:$0xff]  ;;  %7059 = vmatpush1.bf16.msra.mxu1 %v10289_v59 }
 0x155   : > { %v10282_v24 = vcombine.high %v1375_v47, %v1379_v29  ;;  %v1367_v32 = vld [vmem:[%s11119_s17 + $0x1bc0] sm:$0xff]  ;;  %7017 = vmatprep.subr.bf16.mxu0 %v10154_v31  ;;  %v10281_v39 = vcombine.low %v1375_v47, %v1379_v29 }
 0x156   : > { %v1371_v34 = vld [vmem:[%s11119_s17 + $0x1be0] sm:$0xff]  ;;  %7018 = vmatpush1.bf16.msra.mxu0 %v10153_v38 }
 0x157   : > { %v1495_v36 = vld [vmem:[%s11119_s17 + $0x1fc0] sm:$0xff]  ;;  %v10274_v40 = vcombine.high %v1367_v32, %v1371_v34  ;;  %7060 = vmatprep.subr.bf16.mxu1 %v10282_v24  ;;  %v10273_v23 = vcombine.low %v1367_v32, %v1371_v34 }
 0x158   : > { %v1499_v37 = vld [vmem:[%s11119_s17 + $0x1fe0] sm:$0xff]  ;;  %7061 = vmatpush1.bf16.msra.mxu1 %v10281_v39 }
 0x159   : > { %v10402_v41 = vcombine.high %v1495_v36, %v1499_v37  ;;  %v1359_v42 = vld [vmem:[%s11119_s17 + $0x1b80] sm:$0xff]  ;;  %7019 = vmatprep.subr.bf16.mxu0 %v10274_v40  ;;  %v10401_v51 = vcombine.low %v1495_v36, %v1499_v37 }
 0x15a   : > { %v1363_v43 = vld [vmem:[%s11119_s17 + $0x1ba0] sm:$0xff]  ;;  %7020 = vmatpush2.bf16.msra.mxu0 %v10273_v23 }
 0x15b   : > { %v1487_v44 = vld [vmem:[%s11119_s17 + $0x1f80] sm:$0xff]  ;;  %v10266_v52 = vcombine.high %v1359_v42, %v1363_v43  ;;  %7062 = vmatprep.subr.bf16.mxu1 %v10402_v41  ;;  %v10265_v0 = vcombine.low %v1359_v42, %v1363_v43  ;;  %v1505_v41 = vlaneseq }
 0x15c   : > { %v1491_v46 = vld [vmem:[%s11119_s17 + $0x1fa0] sm:$0xff]  ;;  %7063 = vmatpush2.bf16.msra.mxu1 %v10401_v51 }
 0x15d   : > { %v10394_v53 = vcombine.high %v1487_v44, %v1491_v46  ;;  %v1351_v56 = vld [vmem:[%s11119_s17 + $0x1b40] sm:$0xff]  ;;  %7021 = vmatprep.subr.bf16.mxu0 %v10266_v52  ;;  %v10393_v1 = vcombine.low %v1487_v44, %v1491_v46 }
 0x15e   : > { %v1355_v55 = vld [vmem:[%s11119_s17 + $0x1b60] sm:$0xff]  ;;  %7022 = vmatpush2.bf16.msra.mxu0 %v10265_v0  ;;  %v536_v0 = vld [vmem:[%s11119_s17 + $0x1c8] sm:$0xff] }
 0x15f   : > { %v1479_v57 = vld [vmem:[%s11119_s17 + $0x1f40] sm:$0xff]  ;;  %v10258_v2 = vcombine.high %v1351_v56, %v1355_v55  ;;  %7064 = vmatprep.subr.bf16.mxu1 %v10394_v53  ;;  %v10257_v8 = vcombine.low %v1351_v56, %v1355_v55  ;;  %v11549_v56 = vshrl.u32 %v1505_v41, 7 }
 0x160   : > { %v1483_v61 = vld [vmem:[%s11119_s17 + $0x1f60] sm:$0xff]  ;;  %7065 = vmatpush2.bf16.msra.mxu1 %v10393_v1  ;;  %v540_v1 = vld [vmem:[%s11119_s17 + $0x1e8] sm:$0xff] }
 0x161   : > { %v10386_v3 = vcombine.high %v1479_v57, %v1483_v61  ;;  %v1343_v4 = vld [vmem:[%s11119_s17 + $0x1b00] sm:$0xff]  ;;  %7023 = vmatprep.subr.bf16.mxu0 %v10258_v2  ;;  %v10385_v9 = vcombine.low %v1479_v57, %v1483_v61  ;;  %v664_v2 = vld [vmem:[%s11119_s17 + $0x5c8] sm:$0xff] }
 0x162   : > { %v1347_v5 = vld [vmem:[%s11119_s17 + $0x1b20] sm:$0xff]  ;;  %7024 = vmatpush2.bf16.msra.mxu0 %v10257_v8  ;;  %v9444_v8 = vcombine.high %v536_v0, %v540_v1 }
 0x163   : > { %v1471_v6 = vld [vmem:[%s11119_s17 + $0x1f00] sm:$0xff]  ;;  %v10250_v10 = vcombine.high %v1343_v4, %v1347_v5  ;;  %7066 = vmatprep.subr.bf16.mxu1 %v10386_v3  ;;  %v10249_v16 = vcombine.low %v1343_v4, %v1347_v5  ;;  %v668_v3 = vld [vmem:[%s11119_s17 + $0x5e8] sm:$0xff]  ;;  %v11556_v5 = vsub.s32 0, %v11549_v56 }
 0x164   : > { %v1475_v7 = vld [vmem:[%s11119_s17 + $0x1f20] sm:$0xff]  ;;  %7067 = vmatpush2.bf16.msra.mxu1 %v10385_v9  ;;  %v9572_v9 = vcombine.high %v664_v2, %v668_v3 }
 0x165   : > { %v10378_v11 = vcombine.high %v1471_v6, %v1475_v7  ;;  %v1335_v12 = vld [vmem:[%s11119_s17 + $0x1ac0] sm:$0xff]  ;;  %7025 = vmatprep.subr.bf16.mxu0 %v10250_v10  ;;  %v10377_v17 = vcombine.low %v1471_v6, %v1475_v7  ;;  %v528_v10 = vld [vmem:[%s11119_s17 + $0x188] sm:$0xff] }
 0x166   : > { %v1339_v13 = vld [vmem:[%s11119_s17 + $0x1ae0] sm:$0xff]  ;;  %7026 = vmatpush2.bf16.msra.mxu0 %v10249_v16  ;;  %v11570_v16 = vcombine.low %v11474_v48, %v11479_v28 }
 0x167   : > { %v1463_v14 = vld [vmem:[%s11119_s17 + $0x1ec0] sm:$0xff]  ;;  %v10242_v18 = vcombine.high %v1335_v12, %v1339_v13  ;;  %7068 = vmatprep.subr.bf16.mxu1 %v10378_v11  ;;  %v10241_v31 = vcombine.low %v1335_v12, %v1339_v13  ;;  %v532_v11 = vld [vmem:[%s11119_s17 + $0x1a8] sm:$0xff]  ;;  %v11563_v12 = vcombine.low %v11460_v22, %v11465_v54 }
 0x168   : > { %v1467_v15 = vld [vmem:[%s11119_s17 + $0x1ee0] sm:$0xff]  ;;  %7069 = vmatpush2.bf16.msra.mxu1 %v10377_v17  ;;  %v656_v13 = vld [vmem:[%s11119_s17 + $0x588] sm:$0xff]  ;;  %12934 = vst [vmem:[#allocation21_spill] sm:$0xff] %v11570_v16  ;;  %v9443_v17 = vcombine.low %v536_v0, %v540_v1  ;;  %v9435_v48 = vcombine.low %v528_v10, %v532_v11 }
 0x169   : > { %v10370_v20 = vcombine.high %v1463_v14, %v1467_v15  ;;  %v1327_v47 = vld [vmem:[%s11119_s17 + $0x1a80] sm:$0xff]  ;;  %7027 = vmatprep.subr.bf16.mxu0 %v10242_v18  ;;  %v10369_v24 = vcombine.low %v1463_v14, %v1467_v15  ;;  %12933 = vst [vmem:[#allocation20_spill] sm:$0xff] %v11563_v12  ;;  %v660_v14 = vld [vmem:[%s11119_s17 + $0x5a8] sm:$0xff]  ;;  %v9571_v18 = vcombine.low %v664_v2, %v668_v3 }
 0x16a   : > { %v1331_v29 = vld [vmem:[%s11119_s17 + $0x1aa0] sm:$0xff]  ;;  %7028 = vmatpush2.bf16.msra.mxu0 %v10241_v31  ;;  %v520_v22 = vld [vmem:[%s11119_s17 + $0x148] sm:$0xff] }
 0x16b   : > { %v1455_v30 = vld [vmem:[%s11119_s17 + $0x1e80] sm:$0xff]  ;;  %v10234_v32 = vcombine.high %v1327_v47, %v1331_v29  ;;  %7070 = vmatprep.subr.bf16.mxu1 %v10370_v20  ;;  %v10233_v40 = vcombine.low %v1327_v47, %v1331_v29  ;;  %v9436_v20 = vcombine.high %v528_v10, %v532_v11  ;;  %v9564_v47 = vcombine.high %v656_v13, %v660_v14  ;;  %v524_v54 = vld [vmem:[%s11119_s17 + $0x168] sm:$0xff] }
 0x16c   : > { %v1459_v59 = vld [vmem:[%s11119_s17 + $0x1ea0] sm:$0xff]  ;;  %7071 = vmatpush2.bf16.msra.mxu1 %v10369_v24  ;;  %v632_v0 = vld [vmem:[%s11119_s17 + $0x4c8] sm:$0xff] }
 0x16d   : > { %v10362_v34 = vcombine.high %v1455_v30, %v1459_v59  ;;  %v1319_v36 = vld [vmem:[%s11119_s17 + $0x1a40] sm:$0xff]  ;;  %7029 = vmatprep.subr.bf16.mxu0 %v10234_v32  ;;  %v10361_v42 = vcombine.low %v1455_v30, %v1459_v59  ;;  %v648_v30 = vld [vmem:[%s11119_s17 + $0x548] sm:$0xff]  ;;  %v9563_v32 = vcombine.low %v656_v13, %v660_v14 }
 0x16e   : > { %v1323_v37 = vld [vmem:[%s11119_s17 + $0x1a60] sm:$0xff]  ;;  %7030 = vmatpush2.bf16.msra.mxu0 %v10233_v40  ;;  %v652_v59 = vld [vmem:[%s11119_s17 + $0x568] sm:$0xff] }
 0x16f   : > { %v1447_v38 = vld [vmem:[%s11119_s17 + $0x1e40] sm:$0xff]  ;;  %v10226_v43 = vcombine.high %v1319_v36, %v1323_v37  ;;  %7072 = vmatprep.subr.bf16.mxu1 %v10362_v34  ;;  %v10225_v53 = vcombine.low %v1319_v36, %v1323_v37  ;;  %v9428_v34 = vcombine.high %v520_v22, %v524_v54  ;;  %v516_v40 = vld [vmem:[%s11119_s17 + $0x128] sm:$0xff] }
 0x170   : > { %v1451_v39 = vld [vmem:[%s11119_s17 + $0x1e60] sm:$0xff]  ;;  %7073 = vmatpush2.bf16.msra.mxu1 %v10361_v42  ;;  %v640_v42 = vld [vmem:[%s11119_s17 + $0x508] sm:$0xff] }
 0x171   : > { %v10354_v44 = vcombine.high %v1447_v38, %v1451_v39  ;;  %v1311_v46 = vld [vmem:[%s11119_s17 + $0x1a00] sm:$0xff]  ;;  %7031 = vmatprep.subr.bf16.mxu0 %v10226_v43  ;;  %v10353_v55 = vcombine.low %v1447_v38, %v1451_v39  ;;  %v9556_v38 = vcombine.high %v648_v30, %v652_v59  ;;  %v512_v39 = vld [vmem:[%s11119_s17 + $0x108] sm:$0xff] }
 0x172   : > { %v1315_v23 = vld [vmem:[%s11119_s17 + $0x1a20] sm:$0xff]  ;;  %7032 = vmatpush2.bf16.msra.mxu0 %v10225_v53  ;;  %v644_v43 = vld [vmem:[%s11119_s17 + $0x528] sm:$0xff]  ;;  %v9419_v2 = vcombine.low %v512_v39, %v516_v40 }
 0x173   : > { %v1439_v51 = vld [vmem:[%s11119_s17 + $0x1e00] sm:$0xff]  ;;  %v10218_v57 = vcombine.high %v1311_v46, %v1315_v23  ;;  %7074 = vmatprep.subr.bf16.mxu1 %v10354_v44  ;;  %v10217_v4 = vcombine.low %v1311_v46, %v1315_v23  ;;  %v9427_v46 = vcombine.low %v520_v22, %v524_v54  ;;  %v636_v1 = vld [vmem:[%s11119_s17 + $0x4e8] sm:$0xff]  ;;  %v9547_v3 = vcombine.low %v640_v42, %v644_v43 }
 0x174   : > { %v1443_v52 = vld [vmem:[%s11119_s17 + $0x1e20] sm:$0xff]  ;;  %7075 = vmatpush2.bf16.msra.mxu1 %v10353_v55  ;;  %v9548_v55 = vcombine.high %v640_v42, %v644_v43  ;;  %v628_v10 = vld [vmem:[%s11119_s17 + $0x4a8] sm:$0xff]  ;;  %v9539_v13 = vcombine.low %v632_v0, %v636_v1 }
 0x175   : > { %v10346_v61 = vcombine.high %v1439_v51, %v1443_v52  ;;  %7033 = vmatprep.subr.bf16.mxu0 %v10218_v57  ;;  %v10345_v6 = vcombine.low %v1439_v51, %v1443_v52  ;;  %v1503_v7 = vld [vmem:[%s11131_s6] sm:$0xff]  ;;  %v9555_v51 = vcombine.low %v648_v30, %v652_v59  ;;  %v9420_v52 = vcombine.high %v512_v39, %v516_v40 }
 0x176   : > { %7034 = vmatpush2.bf16.msra.mxu0 %v10217_v4  ;;  %v1508_v15 = vrot.slane %v1503_v7, %v11556_v5  ;;  %v504_v57 = vld [vmem:[%s11119_s17 + $0xc8] sm:$0xff] }
 0x177   : > { %7076 = vmatprep.subr.bf16.mxu1 %v10346_v61  ;;  %7089 = vmatprep.subr.bf16.mxu0 %v9444_v8  ;;  %v6779_v29 = vpop.f32.mrf.mxu0  ;;  %v508_v61 = vld [vmem:[%s11119_s17 + $0xe8] sm:$0xff] }
 0x178   : > { %7077 = vmatpush2.bf16.msra.mxu1 %v10345_v6  ;;  %v6780_v31 = vadd.f32 %v6779_v29, %v1508_v15  ;;  %v9412_v4 = vcombine.high %v504_v57, %v508_v61  ;;  %v9540_v6 = vcombine.high %v632_v0, %v636_v1  ;;  %v496_v7 = vld [vmem:[%s11119_s17 + $0x88] sm:$0xff]  ;;  %v9411_v11 = vcombine.low %v504_v57, %v508_v61 }
 0x179   : > { %7132 = vmatprep.subr.bf16.mxu1 %v9572_v9  ;;  %7036 = vmatmul.mubr.bf16.vlgmr.msra.gmra.mxu0 %v11563_v12  ;;  %v6822_v24 = vpop.f32.mrf.mxu1  ;;  %v11578_v28 = vpop.f32.mrf.mxu0  ;;  %v500_v8 = vld [vmem:[%s11119_s17 + $0xa8] sm:$0xff] }
 0x17a   : > { %7090 = vmatpush1.bf16.msra.mxu0 %v9443_v17  ;;  %v11580_v36 = vadd.f32 %v6822_v24, %v6780_v31  ;;  %7121 = vmatprep.mubr.bf16.mxu0 %v11185_v58  ;;  %v624_v9 = vld [vmem:[%s11119_s17 + $0x488] sm:$0xff]  ;;  %v9404_v14 = vcombine.high %v496_v7, %v500_v8  ;;  %v9403_v22 = vcombine.low %v496_v7, %v500_v8 }
 0x17b   : > { %7079 = vmatmul.mubr.bf16.vlgmr.msra.gmra.mxu1 %v11570_v16  ;;  %7091 = vmatprep.subr.bf16.mxu0 %v9436_v20  ;;  %v11582_v37 = vpop.f32.mrf.mxu1  ;;  %v6783_v41 = vpop.f32.mrf.mxu0  ;;  %v488_v17 = vld [vmem:[%s11119_s17 + $0x48] sm:$0xff]  ;;  %v9531_v54 = vcombine.low %v624_v9, %v628_v10 }
 0x17c   : > { %7133 = vmatpush1.bf16.msra.mxu1 %v9571_v18  ;;  %7164 = vmatprep.mubr.bf16.mxu1 %v11201_v63  ;;  %v6784_v44 = vadd.f32 %v6783_v41, %v1508_v15  ;;  %v9532_v15 = vcombine.high %v624_v9, %v628_v10  ;;  %v492_v18 = vld [vmem:[%s11119_s17 + $0x68] sm:$0xff] }
 0x17d   : > { %7134 = vmatprep.subr.bf16.mxu1 %v9564_v47  ;;  %v6826_v23 = vpop.f32.mrf.mxu1  ;;  %v616_v20 = vld [vmem:[%s11119_s17 + $0x448] sm:$0xff]  ;;  %v9396_v29 = vcombine.high %v488_v17, %v492_v18 }
 0x17e   : > { %7092 = vmatpush1.bf16.msra.mxu0 %v9435_v48  ;;  %v11590_v53 = vadd.f32 %v6826_v23, %v6784_v44  ;;  %v620_v47 = vld [vmem:[%s11119_s17 + $0x468] sm:$0xff] }
 0x17f   : > { %7093 = vmatprep.subr.bf16.mxu0 %v9428_v34  ;;  %v9524_v30 = vcombine.high %v616_v20, %v620_v47  ;;  %v480_v59 = vld [vmem:[%s11119_s17 + $0x8] sm:$0xff]  ;;  %v9523_v34 = vcombine.low %v616_v20, %v620_v47 }
 0x180   : > { %7135 = vmatpush1.bf16.msra.mxu1 %v9563_v32  ;;  %v484_v31 = vld [vmem:[%s11119_s17 + $0x28] sm:$0xff]  ;;  %v9395_v32 = vcombine.low %v488_v17, %v492_v18 }
 0x181   : > { %7136 = vmatprep.subr.bf16.mxu1 %v9556_v38  ;;  %v608_v24 = vld [vmem:[%s11119_s17 + $0x408] sm:$0xff]  ;;  %v9388_v38 = vcombine.high %v480_v59, %v484_v31  ;;  %v9387_v44 = vcombine.low %v480_v59, %v484_v31 }
 0x182   : > { %7094 = vmatpush1.bf16.msra.mxu0 %v9427_v46  ;;  %v612_v48 = vld [vmem:[%s11119_s17 + $0x428] sm:$0xff] }
 0x183   : > { %7095 = vmatprep.subr.bf16.mxu0 %v9420_v52  ;;  %v9516_v39 = vcombine.high %v608_v24, %v612_v48  ;;  %v600_v40 = vld [vmem:[%s11119_s17 + $0x3c8] sm:$0xff]  ;;  %v9515_v46 = vcombine.low %v608_v24, %v612_v48 }
 0x184   : > { %7137 = vmatpush1.bf16.msra.mxu1 %v9555_v51  ;;  %v604_v41 = vld [vmem:[%s11119_s17 + $0x3e8] sm:$0xff] }
 0x185   : > { %7138 = vmatprep.subr.bf16.mxu1 %v9548_v55  ;;  %v728_v42 = vld [vmem:[%s11119_s17 + $0x7c8] sm:$0xff]  ;;  %v9508_v23 = vcombine.high %v600_v40, %v604_v41  ;;  %v9507_v0 = vcombine.low %v600_v40, %v604_v41 }
 0x186   : > { %7096 = vmatpush1.bf16.msra.mxu0 %v9419_v2  ;;  %v732_v43 = vld [vmem:[%s11119_s17 + $0x7e8] sm:$0xff] }
 0x187   : > { %7097 = vmatprep.subr.bf16.mxu0 %v9412_v4  ;;  %v9636_v51 = vcombine.high %v728_v42, %v732_v43  ;;  %v592_v52 = vld [vmem:[%s11119_s17 + $0x388] sm:$0xff]  ;;  %v9635_v1 = vcombine.low %v728_v42, %v732_v43 }
 0x188   : > { %7139 = vmatpush1.bf16.msra.mxu1 %v9547_v3  ;;  %v596_v55 = vld [vmem:[%s11119_s17 + $0x3a8] sm:$0xff] }
 0x189   : > { %7140 = vmatprep.subr.bf16.mxu1 %v9540_v6  ;;  %v720_v57 = vld [vmem:[%s11119_s17 + $0x788] sm:$0xff]  ;;  %v9500_v2 = vcombine.high %v592_v52, %v596_v55  ;;  %v9499_v9 = vcombine.low %v592_v52, %v596_v55 }
 0x18a   : > { %7098 = vmatpush1.bf16.msra.mxu0 %v9411_v11  ;;  %v724_v61 = vld [vmem:[%s11119_s17 + $0x7a8] sm:$0xff] }
 0x18b   : > { %7099 = vmatprep.subr.bf16.mxu0 %v9404_v14  ;;  %v9628_v3 = vcombine.high %v720_v57, %v724_v61  ;;  %v584_v4 = vld [vmem:[%s11119_s17 + $0x348] sm:$0xff]  ;;  %v9627_v10 = vcombine.low %v720_v57, %v724_v61 }
 0x18c   : > { %7141 = vmatpush1.bf16.msra.mxu1 %v9539_v13  ;;  %v588_v6 = vld [vmem:[%s11119_s17 + $0x368] sm:$0xff] }
 0x18d   : > { %7142 = vmatprep.subr.bf16.mxu1 %v9532_v15  ;;  %v712_v7 = vld [vmem:[%s11119_s17 + $0x748] sm:$0xff]  ;;  %v9492_v11 = vcombine.high %v584_v4, %v588_v6  ;;  %v9491_v20 = vcombine.low %v584_v4, %v588_v6 }
 0x18e   : > { %7100 = vmatpush1.bf16.msra.mxu0 %v9403_v22  ;;  %v716_v8 = vld [vmem:[%s11119_s17 + $0x768] sm:$0xff] }
 0x18f   : > { %7101 = vmatprep.subr.bf16.mxu0 %v9396_v29  ;;  %v9620_v13 = vcombine.high %v712_v7, %v716_v8  ;;  %v576_v14 = vld [vmem:[%s11119_s17 + $0x308] sm:$0xff]  ;;  %v9619_v47 = vcombine.low %v712_v7, %v716_v8 }
 0x190   : > { %7143 = vmatpush1.bf16.msra.mxu1 %v9531_v54  ;;  %v580_v15 = vld [vmem:[%s11119_s17 + $0x328] sm:$0xff] }
 0x191   : > { %7144 = vmatprep.subr.bf16.mxu1 %v9524_v30  ;;  %v704_v17 = vld [vmem:[%s11119_s17 + $0x708] sm:$0xff]  ;;  %v9484_v22 = vcombine.high %v576_v14, %v580_v15  ;;  %v9483_v24 = vcombine.low %v576_v14, %v580_v15 }
 0x192   : > { %7102 = vmatpush1.bf16.msra.mxu0 %v9395_v32  ;;  %v708_v18 = vld [vmem:[%s11119_s17 + $0x728] sm:$0xff] }
 0x193   : > { %7103 = vmatprep.subr.bf16.mxu0 %v9388_v38  ;;  %v9612_v54 = vcombine.high %v704_v17, %v708_v18  ;;  %v568_v29 = vld [vmem:[%s11119_s17 + $0x2c8] sm:$0xff]  ;;  %v9611_v48 = vcombine.low %v704_v17, %v708_v18 }
 0x194   : > { %7145 = vmatpush1.bf16.msra.mxu1 %v9523_v34  ;;  %v572_v30 = vld [vmem:[%s11119_s17 + $0x2e8] sm:$0xff] }
 0x195   : > { %7146 = vmatprep.subr.bf16.mxu1 %v9516_v39  ;;  %v696_v59 = vld [vmem:[%s11119_s17 + $0x6c8] sm:$0xff]  ;;  %v9476_v32 = vcombine.high %v568_v29, %v572_v30  ;;  %v9475_v42 = vcombine.low %v568_v29, %v572_v30 }
 0x196   : > { %7104 = vmatpush1.bf16.msra.mxu0 %v9387_v44  ;;  %v700_v31 = vld [vmem:[%s11119_s17 + $0x6e8] sm:$0xff] }
 0x197   : > { %7105 = vmatprep.subr.bf16.mxu0 %v9508_v23  ;;  %v9604_v34 = vcombine.high %v696_v59, %v700_v31  ;;  %v560_v38 = vld [vmem:[%s11119_s17 + $0x288] sm:$0xff]  ;;  %v9603_v43 = vcombine.low %v696_v59, %v700_v31  ;;  %v11648_v31 = vpop.f32.mrf.mxu0 }
 0x198   : > { %7147 = vmatpush1.bf16.msra.mxu1 %v9515_v46  ;;  %v564_v39 = vld [vmem:[%s11119_s17 + $0x2a8] sm:$0xff] }
 0x199   : > { %7148 = vmatprep.subr.bf16.mxu1 %v9636_v51  ;;  %v688_v40 = vld [vmem:[%s11119_s17 + $0x688] sm:$0xff]  ;;  %v9468_v44 = vcombine.high %v560_v38, %v564_v39  ;;  %v9467_v57 = vcombine.low %v560_v38, %v564_v39 }
 0x19a   : > { %7106 = vmatpush2.bf16.msra.mxu0 %v9507_v0  ;;  %v692_v41 = vld [vmem:[%s11119_s17 + $0x6a8] sm:$0xff] }
 0x19b   : > { %7107 = vmatprep.subr.bf16.mxu0 %v9500_v2  ;;  %v9596_v46 = vcombine.high %v688_v40, %v692_v41  ;;  %v552_v23 = vld [vmem:[%s11119_s17 + $0x248] sm:$0xff]  ;;  %v9595_v61 = vcombine.low %v688_v40, %v692_v41 }
 0x19c   : > { %7149 = vmatpush2.bf16.msra.mxu1 %v9635_v1  ;;  %v556_v51 = vld [vmem:[%s11119_s17 + $0x268] sm:$0xff] }
 0x19d   : > { %7150 = vmatprep.subr.bf16.mxu1 %v9628_v3  ;;  %v680_v52 = vld [vmem:[%s11119_s17 + $0x648] sm:$0xff]  ;;  %v9460_v0 = vcombine.high %v552_v23, %v556_v51  ;;  %v9459_v7 = vcombine.low %v552_v23, %v556_v51 }
 0x19e   : > { %7108 = vmatpush2.bf16.msra.mxu0 %v9499_v9  ;;  %v684_v55 = vld [vmem:[%s11119_s17 + $0x668] sm:$0xff] }
 0x19f   : > { %7109 = vmatprep.subr.bf16.mxu0 %v9492_v11  ;;  %v9588_v1 = vcombine.high %v680_v52, %v684_v55  ;;  %v544_v2 = vld [vmem:[%s11119_s17 + $0x208] sm:$0xff]  ;;  %v9587_v8 = vcombine.low %v680_v52, %v684_v55 }
 0x1a0   : > { %7151 = vmatpush2.bf16.msra.mxu1 %v9627_v10  ;;  %v548_v3 = vld [vmem:[%s11119_s17 + $0x228] sm:$0xff] }
 0x1a1   : > { %7152 = vmatprep.subr.bf16.mxu1 %v9620_v13  ;;  %v672_v4 = vld [vmem:[%s11119_s17 + $0x608] sm:$0xff]  ;;  %v9452_v9 = vcombine.high %v544_v2, %v548_v3  ;;  %v9451_v17 = vcombine.low %v544_v2, %v548_v3 }
 0x1a2   : > { %7110 = vmatpush2.bf16.msra.mxu0 %v9491_v20  ;;  %v676_v6 = vld [vmem:[%s11119_s17 + $0x628] sm:$0xff] }
 0x1a3   : > { %7111 = vmatprep.subr.bf16.mxu0 %v9484_v22  ;;  %v9580_v10 = vcombine.high %v672_v4, %v676_v6  ;;  %v792_v11 = vld [vmem:[%s11119_s17 + $0x9c8] sm:$0xff]  ;;  %v9579_v18 = vcombine.low %v672_v4, %v676_v6 }
 0x1a4   : > { %7153 = vmatpush2.bf16.msra.mxu1 %v9619_v47  ;;  %v796_v13 = vld [vmem:[%s11119_s17 + $0x9e8] sm:$0xff] }
 0x1a5   : > { %7154 = vmatprep.subr.bf16.mxu1 %v9612_v54  ;;  %v920_v14 = vld [vmem:[%s11119_s17 + $0xdc8] sm:$0xff]  ;;  %v9700_v20 = vcombine.high %v792_v11, %v796_v13  ;;  %v9699_v59 = vcombine.low %v792_v11, %v796_v13 }
 0x1a6   : > { %7112 = vmatpush2.bf16.msra.mxu0 %v9483_v24  ;;  %v924_v15 = vld [vmem:[%s11119_s17 + $0xde8] sm:$0xff] }
 0x1a7   : > { %7113 = vmatprep.subr.bf16.mxu0 %v9476_v32  ;;  %v9828_v47 = vcombine.high %v920_v14, %v924_v15  ;;  %v784_v22 = vld [vmem:[%s11119_s17 + $0x988] sm:$0xff]  ;;  %v9827_v24 = vcombine.low %v920_v14, %v924_v15  ;;  %v11650_v32 = vpop.f32.mrf.mxu1 }
 0x1a8   : > { %7155 = vmatpush2.bf16.msra.mxu1 %v9611_v48  ;;  %v788_v54 = vld [vmem:[%s11119_s17 + $0x9a8] sm:$0xff] }
 0x1a9   : > { %7156 = vmatprep.subr.bf16.mxu1 %v9604_v34  ;;  %v912_v29 = vld [vmem:[%s11119_s17 + $0xd88] sm:$0xff]  ;;  %v9692_v48 = vcombine.high %v784_v22, %v788_v54 }
 0x1aa   : > { %7114 = vmatpush2.bf16.msra.mxu0 %v9475_v42  ;;  %v916_v30 = vld [vmem:[%s11119_s17 + $0xda8] sm:$0xff] }
 0x1ab   : > { %7115 = vmatprep.subr.bf16.mxu0 %v9468_v44  ;;  %v9820_v34 = vcombine.high %v912_v29, %v916_v30  ;;  %v776_v38 = vld [vmem:[%s11119_s17 + $0x948] sm:$0xff]  ;;  %v9819_v51 = vcombine.low %v912_v29, %v916_v30 }
 0x1ac   : > { %7157 = vmatpush2.bf16.msra.mxu1 %v9603_v43  ;;  %v780_v39 = vld [vmem:[%s11119_s17 + $0x968] sm:$0xff] }
 0x1ad   : > { %7158 = vmatprep.subr.bf16.mxu1 %v9596_v46  ;;  %v904_v41 = vld [vmem:[%s11119_s17 + $0xd48] sm:$0xff]  ;;  %v9691_v46 = vcombine.low %v784_v22, %v788_v54  ;;  %v9684_v52 = vcombine.high %v776_v38, %v780_v39  ;;  %v9683_v6 = vcombine.low %v776_v38, %v780_v39 }
 0x1ae   : > { %7116 = vmatpush2.bf16.msra.mxu0 %v9467_v57  ;;  %v908_v42 = vld [vmem:[%s11119_s17 + $0xd68] sm:$0xff] }
 0x1af   : > { %7117 = vmatprep.subr.bf16.mxu0 %v9460_v0  ;;  %v772_v0 = vld [vmem:[%s11119_s17 + $0x928] sm:$0xff] }
 0x1b0   : > { %7159 = vmatpush2.bf16.msra.mxu1 %v9595_v61  ;;  %v9812_v61 = vcombine.high %v904_v41, %v908_v42  ;;  %v896_v2 = vld [vmem:[%s11119_s17 + $0xd08] sm:$0xff] }
 0x1b1   : > { %7160 = vmatprep.subr.bf16.mxu1 %v9588_v1  ;;  %v900_v3 = vld [vmem:[%s11119_s17 + $0xd28] sm:$0xff] }
 0x1b2   : > { %7118 = vmatpush2.bf16.msra.mxu0 %v9459_v7  ;;  %v9804_v11 = vcombine.high %v896_v2, %v900_v3  ;;  %v760_v13 = vld [vmem:[%s11119_s17 + $0x8c8] sm:$0xff] }
 0x1b3   : > { %7119 = vmatprep.subr.bf16.mxu0 %v9452_v9  ;;  %v764_v14 = vld [vmem:[%s11119_s17 + $0x8e8] sm:$0xff] }
 0x1b4   : > { %7161 = vmatpush2.bf16.msra.mxu1 %v9587_v8  ;;  %v9811_v8 = vcombine.low %v904_v41, %v908_v42  ;;  %v888_v15 = vld [vmem:[%s11119_s17 + $0xcc8] sm:$0xff] }
 0x1b5   : > { %7162 = vmatprep.subr.bf16.mxu1 %v9580_v10  ;;  %v752_v22 = vld [vmem:[%s11119_s17 + $0x888] sm:$0xff] }
 0x1b6   : > { %7120 = vmatpush2.bf16.msra.mxu0 %v9451_v17  ;;  %v892_v17 = vld [vmem:[%s11119_s17 + $0xce8] sm:$0xff] }
 0x1b7   : > { %7175 = vmatprep.subr.bf16.mxu0 %v9700_v20  ;;  %v6865_v40 = vpop.f32.mrf.mxu0  ;;  %v9668_v20 = vcombine.high %v760_v13, %v764_v14  ;;  %v756_v54 = vld [vmem:[%s11119_s17 + $0x8a8] sm:$0xff] }
 0x1b8   : > { %7163 = vmatpush2.bf16.msra.mxu1 %v9579_v18  ;;  %v6866_v43 = vadd.f32 %v6865_v40, %v11580_v36  ;;  %v768_v36 = vld [vmem:[%s11119_s17 + $0x908] sm:$0xff]  ;;  %v9803_v18 = vcombine.low %v896_v2, %v900_v3  ;;  %v9659_v42 = vcombine.low %v752_v22, %v756_v54 }
 0x1b9   : > { %7218 = vmatprep.subr.bf16.mxu1 %v9828_v47  ;;  %7122 = vmatmul.mubr.bf16.vlgmr.msra.gmra.mxu0 %v11246_v21  ;;  %v6908_v44 = vpop.f32.mrf.mxu1  ;;  %v11659_v23 = vpop.f32.mrf.mxu0  ;;  %v9676_v9 = vcombine.high %v768_v36, %v772_v0  ;;  %v9796_v47 = vcombine.high %v888_v15, %v892_v17  ;;  %v880_v29 = vld [vmem:[%s11119_s17 + $0xc88] sm:$0xff] }
 0x1ba   : > { %7176 = vmatpush1.bf16.msra.mxu0 %v9699_v59  ;;  %v11661_v55 = vadd.f32 %v6908_v44, %v6866_v43  ;;  %7207 = vmatprep.mubr.bf16.mxu0 %v11277_v60  ;;  %v884_v30 = vld [vmem:[%s11119_s17 + $0xca8] sm:$0xff]  ;;  %v9667_v59 = vcombine.low %v760_v13, %v764_v14 }
 0x1bb   : > { %7165 = vmatmul.mubr.bf16.vlgmr.msra.gmra.mxu1 %v11261_v25  ;;  %7177 = vmatprep.subr.bf16.mxu0 %v9692_v48  ;;  %v11663_v57 = vpop.f32.mrf.mxu1  ;;  %v6869_v1 = vpop.f32.mrf.mxu0  ;;  %v9660_v48 = vcombine.high %v752_v22, %v756_v54  ;;  %v744_v38 = vld [vmem:[%s11119_s17 + $0x848] sm:$0xff]  ;;  %v9787_v43 = vcombine.low %v880_v29, %v884_v30 }
 0x1bc   : > { %7219 = vmatpush1.bf16.msra.mxu1 %v9827_v24  ;;  %7250 = vmatprep.mubr.bf16.mxu1 %v11284_v33  ;;  %v6870_v4 = vadd.f32 %v6869_v1, %v11590_v53  ;;  %v9675_v53 = vcombine.low %v768_v36, %v772_v0  ;;  %v9795_v24 = vcombine.low %v888_v15, %v892_v17  ;;  %v748_v39 = vld [vmem:[%s11119_s17 + $0x868] sm:$0xff] }
 0x1bd   : > { %7220 = vmatprep.subr.bf16.mxu1 %v9820_v34  ;;  %v6912_v7 = vpop.f32.mrf.mxu1  ;;  %v9788_v34 = vcombine.high %v880_v29, %v884_v30  ;;  %v872_v40 = vld [vmem:[%s11119_s17 + $0xc48] sm:$0xff]  ;;  %v9652_v44 = vcombine.high %v744_v38, %v748_v39  ;;  %v9651_v0 = vcombine.low %v744_v38, %v748_v39 }
 0x1be   : > { %7178 = vmatpush1.bf16.msra.mxu0 %v9691_v46  ;;  %v11672_v10 = vadd.f32 %v6912_v7, %v6870_v4  ;;  %v876_v41 = vld [vmem:[%s11119_s17 + $0xc68] sm:$0xff] }
 0x1bf   : > { %7179 = vmatprep.subr.bf16.mxu0 %v9684_v52  ;;  %v9780_v46 = vcombine.high %v872_v40, %v876_v41  ;;  %v740_v52 = vld [vmem:[%s11119_s17 + $0x828] sm:$0xff]  ;;  %v9779_v1 = vcombine.low %v872_v40, %v876_v41 }
 0x1c0   : > { %7221 = vmatpush1.bf16.msra.mxu1 %v9819_v51  ;;  %v736_v51 = vld [vmem:[%s11119_s17 + $0x808] sm:$0xff] }
 0x1c1   : > { %7222 = vmatprep.subr.bf16.mxu1 %v9812_v61  ;;  %v864_v61 = vld [vmem:[%s11119_s17 + $0xc08] sm:$0xff]  ;;  %v9644_v2 = vcombine.high %v736_v51, %v740_v52 }
 0x1c2   : > { %7180 = vmatpush1.bf16.msra.mxu0 %v9683_v6  ;;  %v868_v36 = vld [vmem:[%s11119_s17 + $0xc28] sm:$0xff] }
 0x1c3   : > { %7181 = vmatprep.subr.bf16.mxu0 %v9676_v9  ;;  %v9772_v3 = vcombine.high %v864_v61, %v868_v36  ;;  %v856_v4 = vld [vmem:[%s11119_s17 + $0xbc8] sm:$0xff]  ;;  %v9643_v9 = vcombine.low %v736_v51, %v740_v52 }
 0x1c4   : > { %7223 = vmatpush1.bf16.msra.mxu1 %v9811_v8  ;;  %v860_v6 = vld [vmem:[%s11119_s17 + $0xbe8] sm:$0xff] }
 0x1c5   : > { %7224 = vmatprep.subr.bf16.mxu1 %v9804_v11  ;;  %v984_v7 = vld [vmem:[%s11119_s17 + $0xfc8] sm:$0xff]  ;;  %v9771_v11 = vcombine.low %v864_v61, %v868_v36  ;;  %v9764_v13 = vcombine.high %v856_v4, %v860_v6 }
 0x1c6   : > { %7182 = vmatpush1.bf16.msra.mxu0 %v9675_v53  ;;  %v988_v8 = vld [vmem:[%s11119_s17 + $0xfe8] sm:$0xff] }
 0x1c7   : > { %7183 = vmatprep.subr.bf16.mxu0 %v9668_v20  ;;  %v9892_v14 = vcombine.high %v984_v7, %v988_v8  ;;  %v848_v15 = vld [vmem:[%s11119_s17 + $0xb88] sm:$0xff]  ;;  %v9763_v20 = vcombine.low %v856_v4, %v860_v6 }
 0x1c8   : > { %7225 = vmatpush1.bf16.msra.mxu1 %v9803_v18  ;;  %v852_v17 = vld [vmem:[%s11119_s17 + $0xba8] sm:$0xff] }
 0x1c9   : > { %7226 = vmatprep.subr.bf16.mxu1 %v9796_v47  ;;  %v976_v53 = vld [vmem:[%s11119_s17 + $0xf88] sm:$0xff]  ;;  %v9891_v47 = vcombine.low %v984_v7, %v988_v8  ;;  %v9756_v22 = vcombine.high %v848_v15, %v852_v17 }
 0x1ca   : > { %7184 = vmatpush1.bf16.msra.mxu0 %v9667_v59  ;;  %v980_v18 = vld [vmem:[%s11119_s17 + $0xfa8] sm:$0xff] }
 0x1cb   : > { %7185 = vmatprep.subr.bf16.mxu0 %v9660_v48  ;;  %v9884_v54 = vcombine.high %v976_v53, %v980_v18  ;;  %v840_v29 = vld [vmem:[%s11119_s17 + $0xb48] sm:$0xff]  ;;  %v9755_v48 = vcombine.low %v848_v15, %v852_v17 }
 0x1cc   : > { %7227 = vmatpush1.bf16.msra.mxu1 %v9795_v24  ;;  %v844_v30 = vld [vmem:[%s11119_s17 + $0xb68] sm:$0xff] }
 0x1cd   : > { %7228 = vmatprep.subr.bf16.mxu1 %v9788_v34  ;;  %v968_v59 = vld [vmem:[%s11119_s17 + $0xf48] sm:$0xff]  ;;  %v9883_v34 = vcombine.low %v976_v53, %v980_v18  ;;  %v9748_v38 = vcombine.high %v840_v29, %v844_v30 }
 0x1ce   : > { %7186 = vmatpush1.bf16.msra.mxu0 %v9659_v42  ;;  %v972_v24 = vld [vmem:[%s11119_s17 + $0xf68] sm:$0xff] }
 0x1cf   : > { %7187 = vmatprep.subr.bf16.mxu0 %v9652_v44  ;;  %v9876_v39 = vcombine.high %v968_v59, %v972_v24  ;;  %v832_v40 = vld [vmem:[%s11119_s17 + $0xb08] sm:$0xff]  ;;  %v9747_v44 = vcombine.low %v840_v29, %v844_v30 }
 0x1d0   : > { %7229 = vmatpush1.bf16.msra.mxu1 %v9787_v43  ;;  %v836_v41 = vld [vmem:[%s11119_s17 + $0xb28] sm:$0xff] }
 0x1d1   : > { %7230 = vmatprep.subr.bf16.mxu1 %v9780_v46  ;;  %v960_v42 = vld [vmem:[%s11119_s17 + $0xf08] sm:$0xff]  ;;  %v9875_v46 = vcombine.low %v968_v59, %v972_v24  ;;  %v9740_v51 = vcombine.high %v832_v40, %v836_v41 }
 0x1d2   : > { %7188 = vmatpush1.bf16.msra.mxu0 %v9651_v0  ;;  %v964_v43 = vld [vmem:[%s11119_s17 + $0xf28] sm:$0xff] }
 0x1d3   : > { %7189 = vmatprep.subr.bf16.mxu0 %v9644_v2  ;;  %v9868_v52 = vcombine.high %v960_v42, %v964_v43  ;;  %v824_v61 = vld [vmem:[%s11119_s17 + $0xac8] sm:$0xff]  ;;  %v9739_v2 = vcombine.low %v832_v40, %v836_v41 }
 0x1d4   : > { %7231 = vmatpush1.bf16.msra.mxu1 %v9779_v1  ;;  %v828_v36 = vld [vmem:[%s11119_s17 + $0xae8] sm:$0xff] }
 0x1d5   : > { %7232 = vmatprep.subr.bf16.mxu1 %v9772_v3  ;;  %v952_v0 = vld [vmem:[%s11119_s17 + $0xec8] sm:$0xff]  ;;  %v9867_v3 = vcombine.low %v960_v42, %v964_v43  ;;  %v9732_v4 = vcombine.high %v824_v61, %v828_v36 }
 0x1d6   : > { %7190 = vmatpush1.bf16.msra.mxu0 %v9643_v9  ;;  %v956_v1 = vld [vmem:[%s11119_s17 + $0xee8] sm:$0xff] }
 0x1d7   : > { %7191 = vmatprep.subr.bf16.mxu0 %v9764_v13  ;;  %v9860_v6 = vcombine.high %v952_v0, %v956_v1  ;;  %v816_v7 = vld [vmem:[%s11119_s17 + $0xa88] sm:$0xff]  ;;  %v9731_v13 = vcombine.low %v824_v61, %v828_v36 }
 0x1d8   : > { %7233 = vmatpush1.bf16.msra.mxu1 %v9771_v11  ;;  %v820_v8 = vld [vmem:[%s11119_s17 + $0xaa8] sm:$0xff] }
 0x1d9   : > { %7234 = vmatprep.subr.bf16.mxu1 %v9892_v14  ;;  %v944_v9 = vld [vmem:[%s11119_s17 + $0xe88] sm:$0xff]  ;;  %v9859_v14 = vcombine.low %v952_v0, %v956_v1  ;;  %v9724_v15 = vcombine.high %v816_v7, %v820_v8 }
 0x1da   : > { %7192 = vmatpush2.bf16.msra.mxu0 %v9763_v20  ;;  %v948_v11 = vld [vmem:[%s11119_s17 + $0xea8] sm:$0xff] }
 0x1db   : > { %7193 = vmatprep.subr.bf16.mxu0 %v9756_v22  ;;  %v9852_v17 = vcombine.high %v944_v9, %v948_v11  ;;  %v808_v53 = vld [vmem:[%s11119_s17 + $0xa48] sm:$0xff]  ;;  %v9723_v22 = vcombine.low %v816_v7, %v820_v8 }
 0x1dc   : > { %7235 = vmatpush2.bf16.msra.mxu1 %v9891_v47  ;;  %v812_v18 = vld [vmem:[%s11119_s17 + $0xa68] sm:$0xff] }
 0x1dd   : > { %7236 = vmatprep.subr.bf16.mxu1 %v9884_v54  ;;  %v936_v20 = vld [vmem:[%s11119_s17 + $0xe48] sm:$0xff]  ;;  %v9851_v54 = vcombine.low %v944_v9, %v948_v11  ;;  %v9716_v29 = vcombine.high %v808_v53, %v812_v18  ;;  %v11732_v9 = vpop.f32.mrf.mxu1 }
 0x1de   : > { %7194 = vmatpush2.bf16.msra.mxu0 %v9755_v48  ;;  %v940_v47 = vld [vmem:[%s11119_s17 + $0xe68] sm:$0xff] }
 0x1df   : > { %7195 = vmatprep.subr.bf16.mxu0 %v9748_v38  ;;  %v9844_v30 = vcombine.high %v936_v20, %v940_v47  ;;  %v800_v59 = vld [vmem:[%s11119_s17 + $0xa08] sm:$0xff]  ;;  %v9715_v38 = vcombine.low %v808_v53, %v812_v18 }
 0x1e0   : > { %7237 = vmatpush2.bf16.msra.mxu1 %v9883_v34  ;;  %v804_v24 = vld [vmem:[%s11119_s17 + $0xa28] sm:$0xff] }
 0x1e1   : > { %7238 = vmatprep.subr.bf16.mxu1 %v9876_v39  ;;  %v928_v48 = vld [vmem:[%s11119_s17 + $0xe08] sm:$0xff]  ;;  %v9843_v39 = vcombine.low %v936_v20, %v940_v47  ;;  %v9708_v40 = vcombine.high %v800_v59, %v804_v24 }
 0x1e2   : > { %7196 = vmatpush2.bf16.msra.mxu0 %v9747_v44  ;;  %v932_v34 = vld [vmem:[%s11119_s17 + $0xe28] sm:$0xff] }
 0x1e3   : > { %7197 = vmatprep.subr.bf16.mxu0 %v9740_v51  ;;  %v9836_v41 = vcombine.high %v928_v48, %v932_v34  ;;  %v1048_v42 = vld [vmem:[%s11119_s17 + $0x11c8] sm:$0xff]  ;;  %v9707_v51 = vcombine.low %v800_v59, %v804_v24 }
 0x1e4   : > { %7239 = vmatpush2.bf16.msra.mxu1 %v9875_v46  ;;  %v1052_v43 = vld [vmem:[%s11119_s17 + $0x11e8] sm:$0xff] }
 0x1e5   : > { %7240 = vmatprep.subr.bf16.mxu1 %v9868_v52  ;;  %v1176_v44 = vld [vmem:[%s11119_s17 + $0x15c8] sm:$0xff]  ;;  %v9835_v52 = vcombine.low %v928_v48, %v932_v34  ;;  %v9956_v61 = vcombine.high %v1048_v42, %v1052_v43 }
 0x1e6   : > { %7198 = vmatpush2.bf16.msra.mxu0 %v9739_v2  ;;  %v1180_v46 = vld [vmem:[%s11119_s17 + $0x15e8] sm:$0xff] }
 0x1e7   : > { %7199 = vmatprep.subr.bf16.mxu0 %v9732_v4  ;;  %v10084_v36 = vcombine.high %v1176_v44, %v1180_v46  ;;  %v1040_v0 = vld [vmem:[%s11119_s17 + $0x1188] sm:$0xff]  ;;  %v9955_v4 = vcombine.low %v1048_v42, %v1052_v43  ;;  %v10083_v7 = vcombine.low %v1176_v44, %v1180_v46 }
 0x1e8   : > { %7241 = vmatpush2.bf16.msra.mxu1 %v9867_v3  ;;  %v1044_v1 = vld [vmem:[%s11119_s17 + $0x11a8] sm:$0xff] }
 0x1e9   : > { %7242 = vmatprep.subr.bf16.mxu1 %v9860_v6  ;;  %v1168_v2 = vld [vmem:[%s11119_s17 + $0x1588] sm:$0xff]  ;;  %v11730_v6 = vpop.f32.mrf.mxu0  ;;  %v9948_v8 = vcombine.high %v1040_v0, %v1044_v1  ;;  %v9947_v47 = vcombine.low %v1040_v0, %v1044_v1 }
 0x1ea   : > { %7200 = vmatpush2.bf16.msra.mxu0 %v9731_v13  ;;  %v1172_v3 = vld [vmem:[%s11119_s17 + $0x15a8] sm:$0xff] }
 0x1eb   : > { %7201 = vmatprep.subr.bf16.mxu0 %v9724_v15  ;;  %v10076_v11 = vcombine.high %v1168_v2, %v1172_v3  ;;  %v1032_v13 = vld [vmem:[%s11119_s17 + $0x1148] sm:$0xff] }
 0x1ec   : > { %7243 = vmatpush2.bf16.msra.mxu1 %v9859_v14  ;;  %v1036_v14 = vld [vmem:[%s11119_s17 + $0x1168] sm:$0xff] }
 0x1ed   : > { %7244 = vmatprep.subr.bf16.mxu1 %v9852_v17  ;;  %v1160_v17 = vld [vmem:[%s11119_s17 + $0x1548] sm:$0xff] }
 0x1ee   : > { %7202 = vmatpush2.bf16.msra.mxu0 %v9723_v22  ;;  %v1164_v53 = vld [vmem:[%s11119_s17 + $0x1568] sm:$0xff] }
 0x1ef   : > { %7203 = vmatprep.subr.bf16.mxu0 %v9716_v29  ;;  %v9940_v29 = vcombine.high %v1032_v13, %v1036_v14  ;;  %v10068_v24 = vcombine.high %v1160_v17, %v1164_v53  ;;  %v1028_v48 = vld [vmem:[%s11119_s17 + $0x1128] sm:$0xff]  ;;  %v10067_v43 = vcombine.low %v1160_v17, %v1164_v53 }
 0x1f0   : > { %7245 = vmatpush2.bf16.msra.mxu1 %v9851_v54  ;;  %v10075_v54 = vcombine.low %v1168_v2, %v1172_v3  ;;  %v1148_v0 = vld [vmem:[%s11119_s17 + $0x14e8] sm:$0xff] }
 0x1f1   : > { %7246 = vmatprep.subr.bf16.mxu1 %v9844_v30  ;;  %v1000_v53 = vld [vmem:[%s11119_s17 + $0x1048] sm:$0xff] }
 0x1f2   : > { %7204 = vmatpush2.bf16.msra.mxu0 %v9715_v38  ;;  %v1152_v38 = vld [vmem:[%s11119_s17 + $0x1508] sm:$0xff] }
 0x1f3   : > { %7205 = vmatprep.subr.bf16.mxu0 %v9708_v40 }
 0x1f4   : > { %7247 = vmatpush2.bf16.msra.mxu1 %v9843_v39  ;;  %v1156_v39 = vld [vmem:[%s11119_s17 + $0x1528] sm:$0xff] }
 0x1f5   : > { %7248 = vmatprep.subr.bf16.mxu1 %v9836_v41  ;;  %v9939_v41 = vcombine.low %v1032_v13, %v1036_v14  ;;  %v10059_v1 = vcombine.low %v1152_v38, %v1156_v39 }
 0x1f6   : > { %7206 = vmatpush2.bf16.msra.mxu0 %v9707_v51  ;;  %v10060_v51 = vcombine.high %v1152_v38, %v1156_v39  ;;  %v1120_v38 = vld [vmem:[%s11119_s17 + $0x1408] sm:$0xff] }
 0x1f7   : > { %7261 = vmatprep.subr.bf16.mxu0 %v9956_v61  ;;  %v1020_v61 = vld [vmem:[%s11119_s17 + $0x10e8] sm:$0xff] }
 0x1f8   : > { %7249 = vmatpush2.bf16.msra.mxu1 %v9835_v52  ;;  %v1016_v52 = vld [vmem:[%s11119_s17 + $0x10c8] sm:$0xff] }
 0x1f9   : > { %7304 = vmatprep.subr.bf16.mxu1 %v10084_v36  ;;  %v6951_v15 = vpop.f32.mrf.mxu0  ;;  %7208 = vmatmul.mubr.bf16.vlgmr.msra.gmra.mxu0 %v11350_v45  ;;  %v1144_v36 = vld [vmem:[%s11119_s17 + $0x14c8] sm:$0xff]  ;;  %v9924_v2 = vcombine.high %v1016_v52, %v1020_v61  ;;  %v9923_v13 = vcombine.low %v1016_v52, %v1020_v61 }
 0x1fa   : > { %v6952_v18 = vadd.f32 %v6951_v15, %v11661_v55  ;;  %7262 = vmatpush1.bf16.msra.mxu0 %v9955_v4  ;;  %v1024_v55 = vld [vmem:[%s11119_s17 + $0x1108] sm:$0xff]  ;;  %7293 = vmatprep.mubr.bf16.mxu0 %v11381_v26  ;;  %v10052_v3 = vcombine.high %v1144_v36, %v1148_v0  ;;  %v10051_v14 = vcombine.low %v1144_v36, %v1148_v0 }
 0x1fb   : > { %v6994_v20 = vpop.f32.mrf.mxu1  ;;  %7251 = vmatmul.mubr.bf16.vlgmr.msra.gmra.mxu1 %v11365_v49  ;;  %v11741_v22 = vpop.f32.mrf.mxu0  ;;  %7263 = vmatprep.subr.bf16.mxu0 %v9948_v8  ;;  %v9932_v44 = vcombine.high %v1024_v55, %v1028_v48  ;;  %v1008_v4 = vld [vmem:[%s11119_s17 + $0x1088] sm:$0xff] }
 0x1fc   : > { %7305 = vmatpush1.bf16.msra.mxu1 %v10083_v7  ;;  %v11743_v30 = vadd.f32 %v6994_v20, %v6952_v18  ;;  %7336 = vmatprep.mubr.bf16.mxu1 %v11388_v62  ;;  %v1012_v7 = vld [vmem:[%s11119_s17 + $0x10a8] sm:$0xff] }
 0x1fd   : > { %v11745_v59 = vpop.f32.mrf.mxu1  ;;  %7306 = vmatprep.subr.bf16.mxu1 %v10076_v11  ;;  %v6955_v34 = vpop.f32.mrf.mxu0  ;;  %v1136_v8 = vld [vmem:[%s11119_s17 + $0x1488] sm:$0xff]  ;;  %v9916_v15 = vcombine.high %v1008_v4, %v1012_v7 }
 0x1fe   : > { %v6956_v40 = vadd.f32 %v6955_v34, %v11672_v10  ;;  %7264 = vmatpush1.bf16.msra.mxu0 %v9947_v47  ;;  %v9931_v10 = vcombine.low %v1024_v55, %v1028_v48  ;;  %v1140_v11 = vld [vmem:[%s11119_s17 + $0x14a8] sm:$0xff] }
 0x1ff   : > { %v6998_v42 = vpop.f32.mrf.mxu1  ;;  %7265 = vmatprep.subr.bf16.mxu0 %v9940_v29  ;;  %v10044_v17 = vcombine.high %v1136_v8, %v1140_v11  ;;  %v1004_v18 = vld [vmem:[%s11119_s17 + $0x1068] sm:$0xff]  ;;  %v10043_v29 = vcombine.low %v1136_v8, %v1140_v11 }
 0x200   : > { %7307 = vmatpush1.bf16.msra.mxu1 %v10075_v54  ;;  %v11754_v46 = vadd.f32 %v6998_v42, %v6956_v40  ;;  %v1128_v20 = vld [vmem:[%s11119_s17 + $0x1448] sm:$0xff]  ;;  %v9915_v54 = vcombine.low %v1008_v4, %v1012_v7  ;;  %v9907_v40 = vcombine.low %v1000_v53, %v1004_v18 }
 0x201   : > { %7308 = vmatprep.subr.bf16.mxu1 %v10068_v24  ;;  %v1132_v47 = vld [vmem:[%s11119_s17 + $0x1468] sm:$0xff]  ;;  %v9908_v24 = vcombine.high %v1000_v53, %v1004_v18 }
 0x202   : > { %7266 = vmatpush1.bf16.msra.mxu0 %v9939_v41  ;;  %v10036_v55 = vcombine.high %v1128_v20, %v1132_v47  ;;  %v992_v48 = vld [vmem:[%s11119_s17 + $0x1008] sm:$0xff]  ;;  %v10035_v41 = vcombine.low %v1128_v20, %v1132_v47 }
 0x203   : > { %7267 = vmatprep.subr.bf16.mxu0 %v9932_v44  ;;  %v996_v34 = vld [vmem:[%s11119_s17 + $0x1028] sm:$0xff] }
 0x204   : > { %7309 = vmatpush1.bf16.msra.mxu1 %v10067_v43  ;;  %v1124_v39 = vld [vmem:[%s11119_s17 + $0x1428] sm:$0xff]  ;;  %v9900_v42 = vcombine.high %v992_v48, %v996_v34  ;;  %v9899_v36 = vcombine.low %v992_v48, %v996_v34 }
 0x205   : > { %7310 = vmatprep.subr.bf16.mxu1 %v10060_v51  ;;  %v10028_v43 = vcombine.high %v1120_v38, %v1124_v39  ;;  %v1112_v44 = vld [vmem:[%s11119_s17 + $0x13c8] sm:$0xff]  ;;  %v10027_v0 = vcombine.low %v1120_v38, %v1124_v39 }
 0x206   : > { %7268 = vmatpush1.bf16.msra.mxu0 %v9931_v10  ;;  %v1116_v51 = vld [vmem:[%s11119_s17 + $0x13e8] sm:$0xff] }
 0x207   : > { %7269 = vmatprep.subr.bf16.mxu0 %v9924_v2  ;;  %v1240_v52 = vld [vmem:[%s11119_s17 + $0x17c8] sm:$0xff]  ;;  %v10020_v10 = vcombine.high %v1112_v44, %v1116_v51  ;;  %v10019_v8 = vcombine.low %v1112_v44, %v1116_v51 }
 0x208   : > { %7311 = vmatpush1.bf16.msra.mxu1 %v10059_v1  ;;  %v1244_v61 = vld [vmem:[%s11119_s17 + $0x17e8] sm:$0xff] }
 0x209   : > { %7312 = vmatprep.subr.bf16.mxu1 %v10052_v3  ;;  %v10148_v1 = vcombine.high %v1240_v52, %v1244_v61  ;;  %v1104_v2 = vld [vmem:[%s11119_s17 + $0x1388] sm:$0xff]  ;;  %v10147_v11 = vcombine.low %v1240_v52, %v1244_v61 }
 0x20a   : > { %7270 = vmatpush1.bf16.msra.mxu0 %v9923_v13  ;;  %v1108_v3 = vld [vmem:[%s11119_s17 + $0x13a8] sm:$0xff] }
 0x20b   : > { %7271 = vmatprep.subr.bf16.mxu0 %v9916_v15  ;;  %v1232_v4 = vld [vmem:[%s11119_s17 + $0x1788] sm:$0xff]  ;;  %v10012_v13 = vcombine.high %v1104_v2, %v1108_v3  ;;  %v10011_v20 = vcombine.low %v1104_v2, %v1108_v3 }
 0x20c   : > { %7313 = vmatpush1.bf16.msra.mxu1 %v10051_v14  ;;  %v1236_v7 = vld [vmem:[%s11119_s17 + $0x17a8] sm:$0xff] }
 0x20d   : > { %7314 = vmatprep.subr.bf16.mxu1 %v10044_v17  ;;  %v10140_v14 = vcombine.high %v1232_v4, %v1236_v7  ;;  %v1096_v15 = vld [vmem:[%s11119_s17 + $0x1348] sm:$0xff]  ;;  %v10139_v47 = vcombine.low %v1232_v4, %v1236_v7 }
 0x20e   : > { %7272 = vmatpush1.bf16.msra.mxu0 %v9915_v54  ;;  %v1100_v17 = vld [vmem:[%s11119_s17 + $0x1368] sm:$0xff] }
 0x20f   : > { %7273 = vmatprep.subr.bf16.mxu0 %v9908_v24  ;;  %v1224_v53 = vld [vmem:[%s11119_s17 + $0x1748] sm:$0xff]  ;;  %v10004_v54 = vcombine.high %v1096_v15, %v1100_v17  ;;  %v10003_v38 = vcombine.low %v1096_v15, %v1100_v17 }
 0x210   : > { %7315 = vmatpush1.bf16.msra.mxu1 %v10043_v29  ;;  %v1228_v18 = vld [vmem:[%s11119_s17 + $0x1768] sm:$0xff] }
 0x211   : > { %7316 = vmatprep.subr.bf16.mxu1 %v10036_v55  ;;  %v10132_v29 = vcombine.high %v1224_v53, %v1228_v18  ;;  %v1088_v24 = vld [vmem:[%s11119_s17 + $0x1308] sm:$0xff]  ;;  %v10131_v39 = vcombine.low %v1224_v53, %v1228_v18 }
 0x212   : > { %7274 = vmatpush1.bf16.msra.mxu0 %v9907_v40  ;;  %v1092_v55 = vld [vmem:[%s11119_s17 + $0x1328] sm:$0xff] }
 0x213   : > { %7275 = vmatprep.subr.bf16.mxu0 %v9900_v42  ;;  %v1216_v48 = vld [vmem:[%s11119_s17 + $0x1708] sm:$0xff]  ;;  %v9996_v40 = vcombine.high %v1088_v24, %v1092_v55  ;;  %v9995_v52 = vcombine.low %v1088_v24, %v1092_v55 }
 0x214   : > { %7317 = vmatpush1.bf16.msra.mxu1 %v10035_v41  ;;  %v1220_v34 = vld [vmem:[%s11119_s17 + $0x1728] sm:$0xff] }
 0x215   : > { %7318 = vmatprep.subr.bf16.mxu1 %v10028_v43  ;;  %v10124_v41 = vcombine.high %v1216_v48, %v1220_v34  ;;  %v1080_v42 = vld [vmem:[%s11119_s17 + $0x12c8] sm:$0xff]  ;;  %v10123_v61 = vcombine.low %v1216_v48, %v1220_v34 }
 0x216   : > { %7276 = vmatpush1.bf16.msra.mxu0 %v9899_v36  ;;  %v1084_v43 = vld [vmem:[%s11119_s17 + $0x12e8] sm:$0xff] }
 0x217   : > { %7277 = vmatprep.subr.bf16.mxu0 %v10020_v10  ;;  %v1208_v44 = vld [vmem:[%s11119_s17 + $0x16c8] sm:$0xff]  ;;  %v9988_v36 = vcombine.high %v1080_v42, %v1084_v43  ;;  %v9987_v4 = vcombine.low %v1080_v42, %v1084_v43 }
 0x218   : > { %7319 = vmatpush1.bf16.msra.mxu1 %v10027_v0  ;;  %v1212_v51 = vld [vmem:[%s11119_s17 + $0x16e8] sm:$0xff] }
 0x219   : > { %7320 = vmatprep.subr.bf16.mxu1 %v10148_v1  ;;  %v10116_v0 = vcombine.high %v1208_v44, %v1212_v51  ;;  %v1072_v10 = vld [vmem:[%s11119_s17 + $0x1288] sm:$0xff]  ;;  %v10115_v7 = vcombine.low %v1208_v44, %v1212_v51 }
 0x21a   : > { %7278 = vmatpush2.bf16.msra.mxu0 %v10019_v8  ;;  %v1076_v1 = vld [vmem:[%s11119_s17 + $0x12a8] sm:$0xff] }
 0x21b   : > { %7279 = vmatprep.subr.bf16.mxu0 %v10012_v13  ;;  %v1200_v2 = vld [vmem:[%s11119_s17 + $0x1688] sm:$0xff]  ;;  %v9980_v8 = vcombine.high %v1072_v10, %v1076_v1  ;;  %v9979_v53 = vcombine.low %v1072_v10, %v1076_v1 }
 0x21c   : > { %7321 = vmatpush2.bf16.msra.mxu1 %v10147_v11  ;;  %v1204_v3 = vld [vmem:[%s11119_s17 + $0x16a8] sm:$0xff] }
 0x21d   : > { %7322 = vmatprep.subr.bf16.mxu1 %v10140_v14  ;;  %v10108_v11 = vcombine.high %v1200_v2, %v1204_v3  ;;  %v1064_v13 = vld [vmem:[%s11119_s17 + $0x1248] sm:$0xff]  ;;  %v10107_v18 = vcombine.low %v1200_v2, %v1204_v3  ;;  %v11812_v3 = vpop.f32.mrf.mxu0 }
 0x21e   : > { %7280 = vmatpush2.bf16.msra.mxu0 %v10011_v20  ;;  %v1068_v14 = vld [vmem:[%s11119_s17 + $0x1268] sm:$0xff] }
 0x21f   : > { %7281 = vmatprep.subr.bf16.mxu0 %v10004_v54  ;;  %v1192_v15 = vld [vmem:[%s11119_s17 + $0x1648] sm:$0xff]  ;;  %v9972_v20 = vcombine.high %v1064_v13, %v1068_v14  ;;  %v9971_v48 = vcombine.low %v1064_v13, %v1068_v14 }
 0x220   : > { %7323 = vmatpush2.bf16.msra.mxu1 %v10139_v47  ;;  %v1196_v17 = vld [vmem:[%s11119_s17 + $0x1668] sm:$0xff] }
 0x221   : > { %7324 = vmatprep.subr.bf16.mxu1 %v10132_v29  ;;  %v10100_v47 = vcombine.high %v1192_v15, %v1196_v17  ;;  %v1056_v54 = vld [vmem:[%s11119_s17 + $0x1208] sm:$0xff]  ;;  %v10099_v34 = vcombine.low %v1192_v15, %v1196_v17 }
 0x222   : > { %7282 = vmatpush2.bf16.msra.mxu0 %v10003_v38  ;;  %v1060_v29 = vld [vmem:[%s11119_s17 + $0x1228] sm:$0xff] }
 0x223   : > { %7283 = vmatprep.subr.bf16.mxu0 %v9996_v40  ;;  %v1184_v24 = vld [vmem:[%s11119_s17 + $0x1608] sm:$0xff]  ;;  %v9964_v38 = vcombine.high %v1056_v54, %v1060_v29  ;;  %v9963_v44 = vcombine.low %v1056_v54, %v1060_v29 }
 0x224   : > { %7325 = vmatpush2.bf16.msra.mxu1 %v10131_v39  ;;  %v1188_v55 = vld [vmem:[%s11119_s17 + $0x1628] sm:$0xff] }
 0x225   : > { %7326 = vmatprep.subr.bf16.mxu1 %v10124_v41  ;;  %v10092_v39 = vcombine.high %v1184_v24, %v1188_v55  ;;  %v1304_v40 = vld [vmem:[%s11119_s17 + $0x19c8] sm:$0xff]  ;;  %v10091_v51 = vcombine.low %v1184_v24, %v1188_v55 }
 0x226   : > { %7284 = vmatpush2.bf16.msra.mxu0 %v9995_v52  ;;  %v1308_v41 = vld [vmem:[%s11119_s17 + $0x19e8] sm:$0xff] }
 0x227   : > { %7285 = vmatprep.subr.bf16.mxu0 %v9988_v36  ;;  %v1432_v42 = vld [vmem:[%s11119_s17 + $0x1dc8] sm:$0xff]  ;;  %v10212_v52 = vcombine.high %v1304_v40, %v1308_v41  ;;  %v10211_v2 = vcombine.low %v1304_v40, %v1308_v41 }
 0x228   : > { %7327 = vmatpush2.bf16.msra.mxu1 %v10123_v61  ;;  %v1436_v43 = vld [vmem:[%s11119_s17 + $0x1de8] sm:$0xff] }
 0x229   : > { %7328 = vmatprep.subr.bf16.mxu1 %v10116_v0  ;;  %v10340_v61 = vcombine.high %v1432_v42, %v1436_v43  ;;  %v1296_v36 = vld [vmem:[%s11119_s17 + $0x1988] sm:$0xff] }
 0x22a   : > { %7286 = vmatpush2.bf16.msra.mxu0 %v9987_v4  ;;  %v1300_v0 = vld [vmem:[%s11119_s17 + $0x19a8] sm:$0xff]  ;;  %v10339_v4 = vcombine.low %v1432_v42, %v1436_v43 }
 0x22b   : > { %7287 = vmatprep.subr.bf16.mxu0 %v9980_v8  ;;  %v1424_v10 = vld [vmem:[%s11119_s17 + $0x1d88] sm:$0xff]  ;;  %v11814_v8 = vpop.f32.mrf.mxu1 }
 0x22c   : > { %7329 = vmatpush2.bf16.msra.mxu1 %v10115_v7  ;;  %v1428_v1 = vld [vmem:[%s11119_s17 + $0x1da8] sm:$0xff]  ;;  %v10204_v7 = vcombine.high %v1296_v36, %v1300_v0 }
 0x22d   : > { %7330 = vmatprep.subr.bf16.mxu1 %v10108_v11  ;;  %v10332_v11 = vcombine.high %v1424_v10, %v1428_v1  ;;  %v1288_v13 = vld [vmem:[%s11119_s17 + $0x1948] sm:$0xff]  ;;  %v10331_v29 = vcombine.low %v1424_v10, %v1428_v1 }
 0x22e   : > { %7288 = vmatpush2.bf16.msra.mxu0 %v9979_v53  ;;  %v1292_v14 = vld [vmem:[%s11119_s17 + $0x1968] sm:$0xff] }
 0x22f   : > { %7289 = vmatprep.subr.bf16.mxu0 %v9972_v20  ;;  %v1416_v17 = vld [vmem:[%s11119_s17 + $0x1d48] sm:$0xff]  ;;  %v10196_v24 = vcombine.high %v1288_v13, %v1292_v14  ;;  %v10195_v43 = vcombine.low %v1288_v13, %v1292_v14 }
 0x230   : > { %7331 = vmatpush2.bf16.msra.mxu1 %v10107_v18  ;;  %v1420_v53 = vld [vmem:[%s11119_s17 + $0x1d68] sm:$0xff] }
 0x231   : > { %7332 = vmatprep.subr.bf16.mxu1 %v10100_v47  ;;  %v10203_v47 = vcombine.low %v1296_v36, %v1300_v0  ;;  %v1408_v40 = vld [vmem:[%s11119_s17 + $0x1d08] sm:$0xff] }
 0x232   : > { %7290 = vmatpush2.bf16.msra.mxu0 %v9971_v48  ;;  %v1412_v41 = vld [vmem:[%s11119_s17 + $0x1d28] sm:$0xff] }
 0x233   : > { %7291 = vmatprep.subr.bf16.mxu0 %v9964_v38  ;;  %v1284_v38 = vld [vmem:[%s11119_s17 + $0x1928] sm:$0xff]  ;;  %v10316_v36 = vcombine.high %v1408_v40, %v1412_v41 }
 0x234   : > { %7333 = vmatpush2.bf16.msra.mxu1 %v10099_v34  ;;  %v10324_v34 = vcombine.high %v1416_v17, %v1420_v53  ;;  %v1272_v0 = vld [vmem:[%s11119_s17 + $0x18c8] sm:$0xff] }
 0x235   : > { %7334 = vmatprep.subr.bf16.mxu1 %v10092_v39  ;;  %v1276_v10 = vld [vmem:[%s11119_s17 + $0x18e8] sm:$0xff] }
 0x236   : > { %7292 = vmatpush2.bf16.msra.mxu0 %v9963_v44  ;;  %v1400_v1 = vld [vmem:[%s11119_s17 + $0x1cc8] sm:$0xff] }
 0x237   : > { %7347 = vmatprep.subr.bf16.mxu0 %v10212_v52 }
 0x238   : > { %7335 = vmatpush2.bf16.msra.mxu1 %v10091_v51  ;;  %v10323_v51 = vcombine.low %v1416_v17, %v1420_v53  ;;  %v1268_v17 = vld [vmem:[%s11119_s17 + $0x18a8] sm:$0xff] }
 0x239   : > { %7390 = vmatprep.subr.bf16.mxu1 %v10340_v61  ;;  %v7037_v15 = vpop.f32.mrf.mxu0  ;;  %7294 = vmatmul.mubr.bf16.vlgmr.msra.gmra.mxu0 %v11454_v19  ;;  %v1392_v53 = vld [vmem:[%s11119_s17 + $0x1c88] sm:$0xff] }
 0x23a   : > { %v7038_v18 = vadd.f32 %v7037_v15, %v11743_v30  ;;  %7348 = vmatpush1.bf16.msra.mxu0 %v10211_v2  ;;  %v1280_v30 = vld [vmem:[%s11119_s17 + $0x1908] sm:$0xff]  ;;  %7379 = vmatprep.mubr.bf16.mxu0 %v11485_v50 }
 0x23b   : > { %v7080_v20 = vpop.f32.mrf.mxu1  ;;  %7337 = vmatmul.mubr.bf16.vlgmr.msra.gmra.mxu1 %v11469_v27  ;;  %v11823_v54 = vpop.f32.mrf.mxu0  ;;  %7349 = vmatprep.subr.bf16.mxu0 %v10204_v7  ;;  %v10188_v52 = vcombine.high %v1280_v30, %v1284_v38  ;;  %v1404_v2 = vld [vmem:[%s11119_s17 + $0x1ce8] sm:$0xff]  ;;  %v10315_v7 = vcombine.low %v1408_v40, %v1412_v41 }
 0x23c   : > { %7391 = vmatpush1.bf16.msra.mxu1 %v10339_v4  ;;  %v11825_v55 = vadd.f32 %v7080_v20, %v7038_v18  ;;  %7422 = vmatprep.mubr.bf16.mxu1 %v11492_v35  ;;  %v10187_v4 = vcombine.low %v1280_v30, %v1284_v38  ;;  %v10308_v14 = vcombine.high %v1400_v1, %v1404_v2  ;;  %v1264_v15 = vld [vmem:[%s11119_s17 + $0x1888] sm:$0xff] }
 0x23d   : > { %v11827_v48 = vpop.f32.mrf.mxu1  ;;  %7392 = vmatprep.subr.bf16.mxu1 %v10332_v11  ;;  %v7041_v39 = vpop.f32.mrf.mxu0  ;;  %v10180_v11 = vcombine.high %v1272_v0, %v1276_v10  ;;  %v1396_v18 = vld [vmem:[%s11119_s17 + $0x1ca8] sm:$0xff] }
 0x23e   : > { %v7042_v42 = vadd.f32 %v7041_v39, %v11754_v46  ;;  %7350 = vmatpush1.bf16.msra.mxu0 %v10203_v47  ;;  %v10179_v47 = vcombine.low %v1272_v0, %v1276_v10  ;;  %v10300_v30 = vcombine.high %v1392_v53, %v1396_v18  ;;  %v1256_v38 = vld [vmem:[%s11119_s17 + $0x1848] sm:$0xff] }
 0x23f   : > { %v7084_v44 = vpop.f32.mrf.mxu1  ;;  %7351 = vmatprep.subr.bf16.mxu0 %v10196_v24  ;;  %v10172_v24 = vcombine.high %v1264_v15, %v1268_v17  ;;  %v1260_v39 = vld [vmem:[%s11119_s17 + $0x1868] sm:$0xff] }
 0x240   : > { %7393 = vmatpush1.bf16.msra.mxu1 %v10331_v29  ;;  %v11836_v61 = vadd.f32 %v7084_v44, %v7042_v42  ;;  %v10307_v29 = vcombine.low %v1400_v1, %v1404_v2  ;;  %v1384_v40 = vld [vmem:[%s11119_s17 + $0x1c48] sm:$0xff]  ;;  %v10299_v44 = vcombine.low %v1392_v53, %v1396_v18 }
 0x241   : > { %7394 = vmatprep.subr.bf16.mxu1 %v10324_v34  ;;  %v1388_v41 = vld [vmem:[%s11119_s17 + $0x1c68] sm:$0xff] }
 0x242   : > { %v8138_v46 = vmul.f32 0.0, %v11836_v61  ;;  %7352 = vmatpush1.bf16.msra.mxu0 %v10195_v43  ;;  %v10171_v43 = vcombine.low %v1264_v15, %v1268_v17  ;;  %v1248_v0 = vld [vmem:[%s11119_s17 + $0x1808] sm:$0xff] }
 0x243   : > { %7353 = vmatprep.subr.bf16.mxu0 %v10188_v52  ;;  %v1252_v10 = vld [vmem:[%s11119_s17 + $0x1828] sm:$0xff] }
 0x244   : > { %7395 = vmatpush1.bf16.msra.mxu1 %v10323_v51  ;;  %v8146_v13 = vadd.f32 %v8138_v46, %v11825_v55  ;;  %v10164_v51 = vcombine.high %v1256_v38, %v1260_v39  ;;  %v1376_v1 = vld [vmem:[%s11119_s17 + $0x1c08] sm:$0xff] }
 0x245   : > { %7396 = vmatprep.subr.bf16.mxu1 %v10316_v36  ;;  %v10292_v36 = vcombine.high %v1384_v40, %v1388_v41  ;;  %v1380_v2 = vld [vmem:[%s11119_s17 + $0x1c28] sm:$0xff] }
 0x246   : > { %v8147_v20 = vrot.slane %v8146_v13, 4  ;;  %7354 = vmatpush1.bf16.msra.mxu0 %v10187_v4  ;;  %v10163_v4 = vcombine.low %v1256_v38, %v1260_v39  ;;  %v1368_v15 = vld [vmem:[%s11119_s17 + $0x1bc8] sm:$0xff] }
 0x247   : > { %7355 = vmatprep.subr.bf16.mxu0 %v10180_v11  ;;  %v10156_v11 = vcombine.high %v1248_v0, %v1252_v10  ;;  %v1372_v17 = vld [vmem:[%s11119_s17 + $0x1be8] sm:$0xff] }
 0x248   : > { %7397 = vmatpush1.bf16.msra.mxu1 %v10315_v7  ;;  %v8148_v34 = vadd.f32 %v8147_v20, %v8146_v13  ;;  %v10291_v7 = vcombine.low %v1384_v40, %v1388_v41  ;;  %v1496_v53 = vld [vmem:[%s11119_s17 + $0x1fc8] sm:$0xff] }
 0x249   : > { %7398 = vmatprep.subr.bf16.mxu1 %v10308_v14  ;;  %v10284_v14 = vcombine.high %v1376_v1, %v1380_v2  ;;  %v1500_v18 = vld [vmem:[%s11119_s17 + $0x1fe8] sm:$0xff] }
 0x24a   : > { %v8149_v42 = vrot.slane %v8148_v34, 2  ;;  %7356 = vmatpush1.bf16.msra.mxu0 %v10179_v47  ;;  %v10155_v47 = vcombine.low %v1248_v0, %v1252_v10  ;;  %v10404_v38 = vcombine.high %v1496_v53, %v1500_v18  ;;  %v1360_v39 = vld [vmem:[%s11119_s17 + $0x1b88] sm:$0xff] }
 0x24b   : > { %7357 = vmatprep.subr.bf16.mxu0 %v10172_v24  ;;  %v10276_v24 = vcombine.high %v1368_v15, %v1372_v17  ;;  %v1364_v40 = vld [vmem:[%s11119_s17 + $0x1ba8] sm:$0xff] }
 0x24c   : > { %7399 = vmatpush1.bf16.msra.mxu1 %v10307_v29  ;;  %v8150_v52 = vadd.f32 %v8149_v42, %v8148_v34  ;;  %v10283_v29 = vcombine.low %v1376_v1, %v1380_v2  ;;  %v1488_v41 = vld [vmem:[%s11119_s17 + $0x1f88] sm:$0xff] }
 0x24d   : > { %7400 = vmatprep.subr.bf16.mxu1 %v10300_v30  ;;  %v1492_v42 = vld [vmem:[%s11119_s17 + $0x1fa8] sm:$0xff] }
 0x24e   : > { %v8151_v46 = vrot.slane %v8150_v52, 1  ;;  %7358 = vmatpush1.bf16.msra.mxu0 %v10171_v43  ;;  %v1352_v0 = vld [vmem:[%s11119_s17 + $0x1b48] sm:$0xff] }
 0x24f   : > { %7359 = vmatprep.subr.bf16.mxu0 %v10164_v51  ;;  %v10268_v51 = vcombine.high %v1360_v39, %v1364_v40  ;;  %v1356_v10 = vld [vmem:[%s11119_s17 + $0x1b68] sm:$0xff] }
 0x250   : > { %7401 = vmatpush1.bf16.msra.mxu1 %v10299_v44  ;;  %v8152_v13 = vadd.f32 %v8151_v46, %v8150_v52  ;;  %v10275_v44 = vcombine.low %v1368_v15, %v1372_v17  ;;  %v1480_v1 = vld [vmem:[%s11119_s17 + $0x1f48] sm:$0xff] }
 0x251   : > { %7402 = vmatprep.subr.bf16.mxu1 %v10292_v36  ;;  %v10396_v36 = vcombine.high %v1488_v41, %v1492_v42  ;;  %v1484_v2 = vld [vmem:[%s11119_s17 + $0x1f68] sm:$0xff] }
 0x252   : > { %v8202_v20 = vmul.f32 0.125, %v8152_v13  ;;  %7360 = vmatpush1.bf16.msra.mxu0 %v10163_v4  ;;  %v10267_v4 = vcombine.low %v1360_v39, %v1364_v40  ;;  %v1344_v15 = vld [vmem:[%s11119_s17 + $0x1b08] sm:$0xff] }
 0x253   : > { %7361 = vmatprep.subr.bf16.mxu0 %v10156_v11  ;;  %v10260_v11 = vcombine.high %v1352_v0, %v1356_v10  ;;  %v1348_v17 = vld [vmem:[%s11119_s17 + $0x1b28] sm:$0xff] }
 0x254   : > { %7403 = vmatpush1.bf16.msra.mxu1 %v10291_v7  ;;  %v11861_v34 = vsub.f32 %v11825_v55, %v8202_v20  ;;  %v11864_v30 = vsub.f32 %v11836_v61, %v8202_v20  ;;  %v10403_v55 = vcombine.low %v1496_v53, %v1500_v18  ;;  %v10395_v7 = vcombine.low %v1488_v41, %v1492_v42  ;;  %v1472_v53 = vld [vmem:[%s11119_s17 + $0x1f08] sm:$0xff] }
 0x255   : > { %7404 = vmatprep.subr.bf16.mxu1 %v10284_v14  ;;  %v10388_v14 = vcombine.high %v1480_v1, %v1484_v2  ;;  %v1476_v18 = vld [vmem:[%s11119_s17 + $0x1f28] sm:$0xff] }
 0x256   : > { %v8234_v43 = vmul.f32 0.0, %v11864_v30  ;;  %7362 = vmatpush1.bf16.msra.mxu0 %v10155_v47  ;;  %v8242_v61 = vmul.f32 %v11861_v34, %v11861_v34  ;;  %v10259_v47 = vcombine.low %v1352_v0, %v1356_v10  ;;  %v10380_v39 = vcombine.high %v1472_v53, %v1476_v18  ;;  %v1336_v40 = vld [vmem:[%s11119_s17 + $0x1ac8] sm:$0xff] }
 0x257   : > { %7363 = vmatprep.subr.bf16.mxu0 %v10276_v24  ;;  %v10252_v24 = vcombine.high %v1344_v15, %v1348_v17  ;;  %v1340_v41 = vld [vmem:[%s11119_s17 + $0x1ae8] sm:$0xff] }
 0x258   : > { %7405 = vmatpush1.bf16.msra.mxu1 %v10283_v29  ;;  %v8250_v52 = vmul.f32 %v8234_v43, %v8234_v43  ;;  %v10387_v29 = vcombine.low %v1480_v1, %v1484_v2  ;;  %v1464_v42 = vld [vmem:[%s11119_s17 + $0x1ec8] sm:$0xff] }
 0x259   : > { %7406 = vmatprep.subr.bf16.mxu1 %v10404_v38  ;;  %v1468_v43 = vld [vmem:[%s11119_s17 + $0x1ee8] sm:$0xff] }
 0x25a   : > { %v8258_v46 = vadd.f32 %v8250_v52, %v8242_v61  ;;  %7364 = vmatpush2.bf16.msra.mxu0 %v10275_v44  ;;  %v10244_v61 = vcombine.high %v1336_v40, %v1340_v41  ;;  %v1328_v0 = vld [vmem:[%s11119_s17 + $0x1a88] sm:$0xff] }
 0x25b   : > { %7365 = vmatprep.subr.bf16.mxu0 %v10268_v51  ;;  %v10379_v51 = vcombine.low %v1472_v53, %v1476_v18  ;;  %v1332_v10 = vld [vmem:[%s11119_s17 + $0x1aa8] sm:$0xff] }
 0x25c   : > { %7407 = vmatpush2.bf16.msra.mxu1 %v10403_v55  ;;  %v8259_v13 = vrot.slane %v8258_v46, 4  ;;  %v10251_v55 = vcombine.low %v1344_v15, %v1348_v17  ;;  %v1456_v1 = vld [vmem:[%s11119_s17 + $0x1e88] sm:$0xff] }
 0x25d   : > { %7408 = vmatprep.subr.bf16.mxu1 %v10396_v36  ;;  %v10372_v36 = vcombine.high %v1464_v42, %v1468_v43  ;;  %v1460_v2 = vld [vmem:[%s11119_s17 + $0x1ea8] sm:$0xff] }
 0x25e   : > { %v8260_v20 = vadd.f32 %v8259_v13, %v8258_v46  ;;  %7366 = vmatpush2.bf16.msra.mxu0 %v10267_v4  ;;  %v10243_v4 = vcombine.low %v1336_v40, %v1340_v41  ;;  %v1320_v15 = vld [vmem:[%s11119_s17 + $0x1a48] sm:$0xff] }
 0x25f   : > { %7367 = vmatprep.subr.bf16.mxu0 %v10260_v11  ;;  %v10236_v11 = vcombine.high %v1328_v0, %v1332_v10  ;;  %v1324_v17 = vld [vmem:[%s11119_s17 + $0x1a68] sm:$0xff] }
 0x260   : > { %7409 = vmatpush2.bf16.msra.mxu1 %v10395_v7  ;;  %v8261_v38 = vrot.slane %v8260_v20, 2  ;;  %v10371_v7 = vcombine.low %v1464_v42, %v1468_v43  ;;  %v1448_v53 = vld [vmem:[%s11119_s17 + $0x1e48] sm:$0xff]  ;;  %v10227_v43 = vcombine.low %v1320_v15, %v1324_v17 }
 0x261   : > { %7410 = vmatprep.subr.bf16.mxu1 %v10388_v14  ;;  %v10364_v14 = vcombine.high %v1456_v1, %v1460_v2  ;;  %v1452_v18 = vld [vmem:[%s11119_s17 + $0x1e68] sm:$0xff] }
 0x262   : > { %v8262_v44 = vadd.f32 %v8261_v38, %v8260_v20  ;;  %7368 = vmatpush2.bf16.msra.mxu0 %v10259_v47  ;;  %v10235_v47 = vcombine.low %v1328_v0, %v1332_v10  ;;  %v10356_v38 = vcombine.high %v1448_v53, %v1452_v18  ;;  %v1316_v40 = vld [vmem:[%s11119_s17 + $0x1a28] sm:$0xff]  ;;  %v669_v0 = vld [vmem:[%s11119_s17 + $0x5f0] sm:$0xff] }
 0x263   : > { %7369 = vmatprep.subr.bf16.mxu0 %v10252_v24  ;;  %v10228_v24 = vcombine.high %v1320_v15, %v1324_v17  ;;  %v1440_v41 = vld [vmem:[%s11119_s17 + $0x1e08] sm:$0xff] }
 0x264   : > { %7411 = vmatpush2.bf16.msra.mxu1 %v10387_v29  ;;  %v8263_v52 = vrot.slane %v8262_v44, 1  ;;  %v10363_v29 = vcombine.low %v1456_v1, %v1460_v2  ;;  %v1444_v42 = vld [vmem:[%s11119_s17 + $0x1e28] sm:$0xff] }
 0x265   : > { %7412 = vmatprep.subr.bf16.mxu1 %v10380_v39  ;;  %v1312_v39 = vld [vmem:[%s11119_s17 + $0x1a08] sm:$0xff]  ;;  %v10347_v1 = vcombine.low %v1440_v41, %v1444_v42 }
 0x266   : > { %v8264_v46 = vadd.f32 %v8263_v52, %v8262_v44  ;;  %7370 = vmatpush2.bf16.msra.mxu0 %v10251_v55  ;;  %v10355_v44 = vcombine.low %v1448_v53, %v1452_v18  ;;  %v10220_v55 = vcombine.high %v1312_v39, %v1316_v40  ;;  %v541_v52 = vld [vmem:[%s11119_s17 + $0x1f0] sm:$0xff]  ;;  %v10219_v10 = vcombine.low %v1312_v39, %v1316_v40  ;;  %v8412_v15 = vld [vmem:[%s384_s9] sm:$0xff] }
 0x267   : > { %7371 = vmatprep.subr.bf16.mxu0 %v10244_v61  ;;  %v537_v61 = vld [vmem:[%s11119_s17 + $0x1d0] sm:$0xff]  ;;  %v8417_v39 = vrot.slane %v8412_v15, %v11556_v5 }
 0x268   : > { %7413 = vmatpush2.bf16.msra.mxu1 %v10379_v51  ;;  %v8314_v13 = vmul.f32 0.125, %v8264_v46  ;;  %v10348_v51 = vcombine.high %v1440_v41, %v1444_v42  ;;  %v9446_v2 = vcombine.high %v537_v61, %v541_v52  ;;  %v9445_v17 = vcombine.low %v537_v61, %v541_v52  ;;  %v649_v40 = vld [vmem:[%s11119_s17 + $0x550] sm:$0xff] }
 0x269   : > { %7414 = vmatprep.subr.bf16.mxu1 %v10372_v36  ;;  %v665_v36 = vld [vmem:[%s11119_s17 + $0x5d0] sm:$0xff] }
 0x26a   : > { %v8322_v20 = vadd.f32 1e-05, %v8314_v13  ;;  %7372 = vmatpush2.bf16.msra.mxu0 %v10243_v4  ;;  %v9574_v46 = vcombine.high %v665_v36, %v669_v0  ;;  %v529_v4 = vld [vmem:[%s11119_s17 + $0x190] sm:$0xff]  ;;  %v9573_v53 = vcombine.low %v665_v36, %v669_v0 }
 0x26b   : > { %7373 = vmatprep.subr.bf16.mxu0 %v10236_v11  ;;  %v8354_v11 = vld [vmem:[%s375_s30] sm:$0xff] }
 0x26c   : > { %7415 = vmatpush2.bf16.msra.mxu1 %v10371_v7  ;;  %10713 = vrsqrt.f32 %v8322_v20  ;;  %v533_v7 = vld [vmem:[%s11119_s17 + $0x1b0] sm:$0xff]  ;;  %v8359_v20 = vrot.slane %v8354_v11, %v11556_v5 }
 0x26d   : > { %7416 = vmatprep.subr.bf16.mxu1 %v10364_v14  ;;  %v657_v13 = vld [vmem:[%s11119_s17 + $0x590] sm:$0xff]  ;;  %v9438_v18 = vcombine.high %v529_v4, %v533_v7 }
 0x26e   : > { %7374 = vmatpush2.bf16.msra.mxu0 %v10235_v47  ;;  %v661_v14 = vld [vmem:[%s11119_s17 + $0x5b0] sm:$0xff] }
 0x26f   : > { %7375 = vmatprep.subr.bf16.mxu0 %v10228_v24  ;;  %v9566_v47 = vcombine.high %v657_v13, %v661_v14  ;;  %v525_v24 = vld [vmem:[%s11119_s17 + $0x170] sm:$0xff] }
 0x270   : > { %7417 = vmatpush2.bf16.msra.mxu1 %v10363_v29  ;;  %v521_v29 = vld [vmem:[%s11119_s17 + $0x150] sm:$0xff] }
 0x271   : > { %7418 = vmatprep.subr.bf16.mxu1 %v10356_v38  ;;  %v653_v41 = vld [vmem:[%s11119_s17 + $0x570] sm:$0xff]  ;;  %v9430_v5 = vcombine.high %v521_v29, %v525_v24 }
 0x272   : > { %7376 = vmatpush2.bf16.msra.mxu0 %v10227_v43  ;;  %v9558_v61 = vcombine.high %v649_v40, %v653_v41  ;;  %v513_v52 = vld [vmem:[%s11119_s17 + $0x110] sm:$0xff] }
 0x273   : > { %7377 = vmatprep.subr.bf16.mxu0 %v10220_v55  ;;  %v9565_v55 = vcombine.low %v657_v13, %v661_v14  ;;  %v517_v36 = vld [vmem:[%s11119_s17 + $0x130] sm:$0xff] }
 0x274   : > { %7419 = vmatpush2.bf16.msra.mxu1 %v10355_v44  ;;  %v9437_v44 = vcombine.low %v529_v4, %v533_v7  ;;  %v641_v0 = vld [vmem:[%s11119_s17 + $0x510] sm:$0xff] }
 0x275   : > { %7420 = vmatprep.subr.bf16.mxu1 %v10348_v51  ;;  %v505_v7 = vld [vmem:[%s11119_s17 + $0xd0] sm:$0xff] }
 0x276   : > { %7378 = vmatpush2.bf16.msra.mxu0 %v10219_v10  ;;  %v509_v11 = vld [vmem:[%s11119_s17 + $0xf0] sm:$0xff] }
 0x277   : > { %7433 = vmatprep.subr.bf16.mxu0 %v9446_v2  ;;  %v9557_v2 = vcombine.low %v649_v40, %v653_v41  ;;  %v633_v13 = vld [vmem:[%s11119_s17 + $0x4d0] sm:$0xff] }
 0x278   : > { %7421 = vmatpush2.bf16.msra.mxu1 %v10347_v1  ;;  %v9429_v1 = vcombine.low %v521_v29, %v525_v24  ;;  %v637_v14 = vld [vmem:[%s11119_s17 + $0x4f0] sm:$0xff] }
 0x279   : > { %7476 = vmatprep.subr.bf16.mxu1 %v9574_v46  ;;  %v10714_v38 = vpop.eup %10713  ;;  %7380 = vmatmul.mubr.bf16.vlgmr.msra.gmra.mxu0 %v11563_v12  ;;  %v9422_v46 = vcombine.high %v513_v52, %v517_v36  ;;  %v497_v29 = vld [vmem:[%s11119_s17 + $0x90] sm:$0xff] }
 0x27a   : > { %v8338_v42 = vmul.f32 %v10714_v38, %v11861_v34  ;;  %v8346_v43 = vmul.f32 %v10714_v38, %v11864_v30  ;;  %7434 = vmatpush1.bf16.msra.mxu0 %v9445_v17  ;;  %v645_v34 = vld [vmem:[%s11119_s17 + $0x530] sm:$0xff]  ;;  %7465 = vmatprep.mubr.bf16.mxu0 %v11185_v58  ;;  %v9421_v17 = vcombine.low %v513_v52, %v517_v36 }
 0x27b   : > { %7423 = vmatmul.mubr.bf16.vlgmr.msra.gmra.mxu1 %v11570_v16  ;;  %7435 = vmatprep.subr.bf16.mxu0 %v9438_v18  ;;  %v9550_v4 = vcombine.high %v641_v0, %v645_v34  ;;  %v9549_v18 = vcombine.low %v641_v0, %v645_v34  ;;  %v501_v24 = vld [vmem:[%s11119_s17 + $0xb0] sm:$0xff] }
 0x27c   : > { %7477 = vmatpush1.bf16.msra.mxu1 %v9573_v53  ;;  %v8404_v51 = vmul.f32 %v8359_v20, %v8346_v43  ;;  %7508 = vmatprep.mubr.bf16.mxu1 %v11201_v63  ;;  %v8396_v30 = vmul.f32 %v8359_v20, %v8338_v42  ;;  %v9414_v20 = vcombine.high %v505_v7, %v509_v11  ;;  %v625_v40 = vld [vmem:[%s11119_s17 + $0x490] sm:$0xff] }
 0x27d   : > { %7478 = vmatprep.subr.bf16.mxu1 %v9566_v47  ;;  %v9542_v47 = vcombine.high %v633_v13, %v637_v14  ;;  %v629_v41 = vld [vmem:[%s11119_s17 + $0x4b0] sm:$0xff]  ;;  %v9413_v42 = vcombine.low %v505_v7, %v509_v11  ;;  %v9405_v36 = vcombine.low %v497_v29, %v501_v24 }
 0x27e   : > { %v8462_v10 = vadd.f32 %v8417_v39, %v8404_v51  ;;  %7436 = vmatpush1.bf16.msra.mxu0 %v9437_v44  ;;  %v8454_v53 = vadd.f32 %v8417_v39, %v8396_v30  ;;  %v9541_v39 = vcombine.low %v633_v13, %v637_v14  ;;  %v9406_v44 = vcombine.high %v497_v29, %v501_v24  ;;  %v493_v51 = vld [vmem:[%s11119_s17 + $0x70] sm:$0xff] }
 0x27f   : > { %7437 = vmatprep.subr.bf16.mxu0 %v9430_v5  ;;  %v489_v5 = vld [vmem:[%s11119_s17 + $0x50] sm:$0xff]  ;;  %v9533_v0 = vcombine.low %v625_v40, %v629_v41 }
 0x280   : > { %7479 = vmatpush1.bf16.msra.mxu1 %v9565_v55  ;;  %v8478_v15 = vmax.f32 %v8462_v10, 0.0  ;;  %v8470_v38 = vmax.f32 %v8454_v53, 0.0  ;;  %v9534_v55 = vcombine.high %v625_v40, %v629_v41  ;;  %v621_v52 = vld [vmem:[%s11119_s17 + $0x470] sm:$0xff]  ;;  %v9398_v34 = vcombine.high %v489_v5, %v493_v51 }
 0x281   : > { %7480 = vmatprep.subr.bf16.mxu1 %v9558_v61  ;;  %v617_v61 = vld [vmem:[%s11119_s17 + $0x450] sm:$0xff] }
 0x282   : > { %7438 = vmatpush1.bf16.msra.mxu0 %v9429_v1  ;;  %v11933_v43 = vpack.c.bf16 %v8478_v15, %v8470_v38  ;;  %v9526_v30 = vcombine.high %v617_v61, %v621_v52  ;;  %v481_v10 = vld [vmem:[%s11119_s17 + $0x10] sm:$0xff]  ;;  %v9525_v7 = vcombine.low %v617_v61, %v621_v52 }
 0x283   : > { %7439 = vmatprep.subr.bf16.mxu0 %v9422_v46  ;;  %v485_v1 = vld [vmem:[%s11119_s17 + $0x30] sm:$0xff] }
 0x284   : > { %7481 = vmatpush1.bf16.msra.mxu1 %v9557_v2  ;;  %12935 = vst [vmem:[#allocation22_spill] sm:$0xff] %v11933_v43  ;;  %v609_v2 = vld [vmem:[%s11119_s17 + $0x410] sm:$0xff]  ;;  %v9390_v11 = vcombine.high %v481_v10, %v485_v1  ;;  %v958_v43 = vld [vmem:[%s11119_s17 + $0xef8] sm:$0xff] }
 0x285   : > { %7482 = vmatprep.subr.bf16.mxu1 %v9550_v4  ;;  %v613_v46 = vld [vmem:[%s11119_s17 + $0x430] sm:$0xff]  ;;  %v9397_v4 = vcombine.low %v489_v5, %v493_v51 }
 0x286   : > { %7440 = vmatpush1.bf16.msra.mxu0 %v9421_v17  ;;  %v9518_v13 = vcombine.high %v609_v2, %v613_v46  ;;  %v601_v14 = vld [vmem:[%s11119_s17 + $0x3d0] sm:$0xff] }
 0x287   : > { %7441 = vmatprep.subr.bf16.mxu0 %v9414_v20  ;;  %v605_v15 = vld [vmem:[%s11119_s17 + $0x3f0] sm:$0xff]  ;;  %v9517_v20 = vcombine.low %v609_v2, %v613_v46 }
 0x288   : > { %7483 = vmatpush1.bf16.msra.mxu1 %v9549_v18  ;;  %v729_v17 = vld [vmem:[%s11119_s17 + $0x7d0] sm:$0xff]  ;;  %v9389_v18 = vcombine.low %v481_v10, %v485_v1 }
 0x289   : > { %7484 = vmatprep.subr.bf16.mxu1 %v9542_v47  ;;  %v733_v53 = vld [vmem:[%s11119_s17 + $0x7f0] sm:$0xff]  ;;  %v9510_v47 = vcombine.high %v601_v14, %v605_v15 }
 0x28a   : > { %7442 = vmatpush1.bf16.msra.mxu0 %v9413_v42  ;;  %v9638_v29 = vcombine.high %v729_v17, %v733_v53  ;;  %v593_v24 = vld [vmem:[%s11119_s17 + $0x390] sm:$0xff]  ;;  %v9509_v42 = vcombine.low %v601_v14, %v605_v15 }
 0x28b   : > { %7443 = vmatprep.subr.bf16.mxu0 %v9406_v44  ;;  %v597_v38 = vld [vmem:[%s11119_s17 + $0x3b0] sm:$0xff] }
 0x28c   : > { %7485 = vmatpush1.bf16.msra.mxu1 %v9541_v39  ;;  %v721_v40 = vld [vmem:[%s11119_s17 + $0x790] sm:$0xff]  ;;  %v9637_v39 = vcombine.low %v729_v17, %v733_v53  ;;  %v9502_v44 = vcombine.high %v593_v24, %v597_v38 }
 0x28d   : > { %7486 = vmatprep.subr.bf16.mxu1 %v9534_v55  ;;  %v725_v41 = vld [vmem:[%s11119_s17 + $0x7b0] sm:$0xff] }
 0x28e   : > { %7444 = vmatpush1.bf16.msra.mxu0 %v9405_v36  ;;  %v9630_v55 = vcombine.high %v721_v40, %v725_v41  ;;  %v585_v5 = vld [vmem:[%s11119_s17 + $0x350] sm:$0xff]  ;;  %v9501_v36 = vcombine.low %v593_v24, %v597_v38 }
 0x28f   : > { %7445 = vmatprep.subr.bf16.mxu0 %v9398_v34  ;;  %v589_v51 = vld [vmem:[%s11119_s17 + $0x370] sm:$0xff] }
 0x290   : > { %7487 = vmatpush1.bf16.msra.mxu1 %v9533_v0  ;;  %v713_v61 = vld [vmem:[%s11119_s17 + $0x750] sm:$0xff]  ;;  %v9629_v0 = vcombine.low %v721_v40, %v725_v41  ;;  %v9494_v34 = vcombine.high %v585_v5, %v589_v51 }
 0x291   : > { %7488 = vmatprep.subr.bf16.mxu1 %v9526_v30  ;;  %v717_v52 = vld [vmem:[%s11119_s17 + $0x770] sm:$0xff] }
 0x292   : > { %7446 = vmatpush1.bf16.msra.mxu0 %v9397_v4  ;;  %v9622_v30 = vcombine.high %v713_v61, %v717_v52  ;;  %v577_v10 = vld [vmem:[%s11119_s17 + $0x310] sm:$0xff]  ;;  %v9493_v4 = vcombine.low %v585_v5, %v589_v51 }
 0x293   : > { %7447 = vmatprep.subr.bf16.mxu0 %v9390_v11  ;;  %v581_v1 = vld [vmem:[%s11119_s17 + $0x330] sm:$0xff] }
 0x294   : > { %7489 = vmatpush1.bf16.msra.mxu1 %v9525_v7  ;;  %v705_v2 = vld [vmem:[%s11119_s17 + $0x710] sm:$0xff]  ;;  %v9621_v7 = vcombine.low %v713_v61, %v717_v52  ;;  %v9486_v11 = vcombine.high %v577_v10, %v581_v1 }
 0x295   : > { %7490 = vmatprep.subr.bf16.mxu1 %v9518_v13  ;;  %v709_v46 = vld [vmem:[%s11119_s17 + $0x730] sm:$0xff] }
 0x296   : > { %7448 = vmatpush1.bf16.msra.mxu0 %v9389_v18  ;;  %v9614_v13 = vcombine.high %v705_v2, %v709_v46  ;;  %v569_v14 = vld [vmem:[%s11119_s17 + $0x2d0] sm:$0xff]  ;;  %v9485_v18 = vcombine.low %v577_v10, %v581_v1 }
 0x297   : > { %7449 = vmatprep.subr.bf16.mxu0 %v9510_v47  ;;  %v573_v15 = vld [vmem:[%s11119_s17 + $0x2f0] sm:$0xff] }
 0x298   : > { %7491 = vmatpush1.bf16.msra.mxu1 %v9517_v20  ;;  %v697_v17 = vld [vmem:[%s11119_s17 + $0x6d0] sm:$0xff]  ;;  %v9613_v20 = vcombine.low %v705_v2, %v709_v46  ;;  %v9478_v47 = vcombine.high %v569_v14, %v573_v15 }
 0x299   : > { %7492 = vmatprep.subr.bf16.mxu1 %v9638_v29  ;;  %v701_v53 = vld [vmem:[%s11119_s17 + $0x6f0] sm:$0xff] }
 0x29a   : > { %7450 = vmatpush2.bf16.msra.mxu0 %v9509_v42  ;;  %v9606_v29 = vcombine.high %v697_v17, %v701_v53  ;;  %v561_v24 = vld [vmem:[%s11119_s17 + $0x290] sm:$0xff]  ;;  %v9477_v42 = vcombine.low %v569_v14, %v573_v15 }
 0x29b   : > { %7451 = vmatprep.subr.bf16.mxu0 %v9502_v44  ;;  %v565_v38 = vld [vmem:[%s11119_s17 + $0x2b0] sm:$0xff] }
 0x29c   : > { %7493 = vmatpush2.bf16.msra.mxu1 %v9637_v39  ;;  %v689_v40 = vld [vmem:[%s11119_s17 + $0x690] sm:$0xff]  ;;  %v9605_v39 = vcombine.low %v697_v17, %v701_v53  ;;  %v9470_v44 = vcombine.high %v561_v24, %v565_v38 }
 0x29d   : > { %7494 = vmatprep.subr.bf16.mxu1 %v9630_v55  ;;  %v693_v41 = vld [vmem:[%s11119_s17 + $0x6b0] sm:$0xff] }
 0x29e   : > { %7452 = vmatpush2.bf16.msra.mxu0 %v9501_v36  ;;  %v9598_v55 = vcombine.high %v689_v40, %v693_v41  ;;  %v553_v5 = vld [vmem:[%s11119_s17 + $0x250] sm:$0xff]  ;;  %v9469_v36 = vcombine.low %v561_v24, %v565_v38 }
 0x29f   : > { %7453 = vmatprep.subr.bf16.mxu0 %v9494_v34  ;;  %v557_v51 = vld [vmem:[%s11119_s17 + $0x270] sm:$0xff] }
 0x2a0   : > { %7495 = vmatpush2.bf16.msra.mxu1 %v9629_v0  ;;  %v681_v61 = vld [vmem:[%s11119_s17 + $0x650] sm:$0xff]  ;;  %v9597_v0 = vcombine.low %v689_v40, %v693_v41  ;;  %v9462_v34 = vcombine.high %v553_v5, %v557_v51 }
 0x2a1   : > { %7496 = vmatprep.subr.bf16.mxu1 %v9622_v30  ;;  %v685_v52 = vld [vmem:[%s11119_s17 + $0x670] sm:$0xff] }
 0x2a2   : > { %7454 = vmatpush2.bf16.msra.mxu0 %v9493_v4  ;;  %v9590_v30 = vcombine.high %v681_v61, %v685_v52  ;;  %v545_v10 = vld [vmem:[%s11119_s17 + $0x210] sm:$0xff]  ;;  %v9461_v4 = vcombine.low %v553_v5, %v557_v51 }
 0x2a3   : > { %7455 = vmatprep.subr.bf16.mxu0 %v9486_v11  ;;  %v549_v1 = vld [vmem:[%s11119_s17 + $0x230] sm:$0xff] }
 0x2a4   : > { %7497 = vmatpush2.bf16.msra.mxu1 %v9621_v7  ;;  %v673_v2 = vld [vmem:[%s11119_s17 + $0x610] sm:$0xff]  ;;  %v9589_v7 = vcombine.low %v681_v61, %v685_v52  ;;  %v9454_v11 = vcombine.high %v545_v10, %v549_v1 }
 0x2a5   : > { %7498 = vmatprep.subr.bf16.mxu1 %v9614_v13  ;;  %v677_v46 = vld [vmem:[%s11119_s17 + $0x630] sm:$0xff] }
 0x2a6   : > { %7456 = vmatpush2.bf16.msra.mxu0 %v9485_v18  ;;  %v9582_v13 = vcombine.high %v673_v2, %v677_v46  ;;  %v793_v14 = vld [vmem:[%s11119_s17 + $0x9d0] sm:$0xff]  ;;  %v9453_v18 = vcombine.low %v545_v10, %v549_v1 }
 0x2a7   : > { %7457 = vmatprep.subr.bf16.mxu0 %v9478_v47  ;;  %v797_v15 = vld [vmem:[%s11119_s17 + $0x9f0] sm:$0xff] }
 0x2a8   : > { %7499 = vmatpush2.bf16.msra.mxu1 %v9613_v20  ;;  %v921_v17 = vld [vmem:[%s11119_s17 + $0xdd0] sm:$0xff]  ;;  %v9581_v20 = vcombine.low %v673_v2, %v677_v46  ;;  %v9702_v47 = vcombine.high %v793_v14, %v797_v15 }
 0x2a9   : > { %7500 = vmatprep.subr.bf16.mxu1 %v9606_v29  ;;  %v925_v53 = vld [vmem:[%s11119_s17 + $0xdf0] sm:$0xff] }
 0x2aa   : > { %7458 = vmatpush2.bf16.msra.mxu0 %v9477_v42  ;;  %v9830_v29 = vcombine.high %v921_v17, %v925_v53  ;;  %v785_v24 = vld [vmem:[%s11119_s17 + $0x990] sm:$0xff]  ;;  %v9701_v42 = vcombine.low %v793_v14, %v797_v15 }
 0x2ab   : > { %7459 = vmatprep.subr.bf16.mxu0 %v9470_v44  ;;  %v789_v38 = vld [vmem:[%s11119_s17 + $0x9b0] sm:$0xff] }
 0x2ac   : > { %7501 = vmatpush2.bf16.msra.mxu1 %v9605_v39  ;;  %v913_v40 = vld [vmem:[%s11119_s17 + $0xd90] sm:$0xff]  ;;  %v9829_v39 = vcombine.low %v921_v17, %v925_v53  ;;  %v9694_v44 = vcombine.high %v785_v24, %v789_v38 }
 0x2ad   : > { %7502 = vmatprep.subr.bf16.mxu1 %v9598_v55  ;;  %v917_v41 = vld [vmem:[%s11119_s17 + $0xdb0] sm:$0xff] }
 0x2ae   : > { %7460 = vmatpush2.bf16.msra.mxu0 %v9469_v36  ;;  %v9822_v55 = vcombine.high %v913_v40, %v917_v41  ;;  %v777_v5 = vld [vmem:[%s11119_s17 + $0x950] sm:$0xff]  ;;  %v9693_v36 = vcombine.low %v785_v24, %v789_v38 }
 0x2af   : > { %7461 = vmatprep.subr.bf16.mxu0 %v9462_v34  ;;  %v781_v51 = vld [vmem:[%s11119_s17 + $0x970] sm:$0xff] }
 0x2b0   : > { %7503 = vmatpush2.bf16.msra.mxu1 %v9597_v0  ;;  %v905_v61 = vld [vmem:[%s11119_s17 + $0xd50] sm:$0xff]  ;;  %v9821_v0 = vcombine.low %v913_v40, %v917_v41  ;;  %v9686_v34 = vcombine.high %v777_v5, %v781_v51 }
 0x2b1   : > { %7504 = vmatprep.subr.bf16.mxu1 %v9590_v30  ;;  %v909_v52 = vld [vmem:[%s11119_s17 + $0xd70] sm:$0xff] }
 0x2b2   : > { %7462 = vmatpush2.bf16.msra.mxu0 %v9461_v4  ;;  %v9814_v30 = vcombine.high %v905_v61, %v909_v52  ;;  %v769_v10 = vld [vmem:[%s11119_s17 + $0x910] sm:$0xff]  ;;  %v9685_v4 = vcombine.low %v777_v5, %v781_v51 }
 0x2b3   : > { %7463 = vmatprep.subr.bf16.mxu0 %v9454_v11  ;;  %v773_v1 = vld [vmem:[%s11119_s17 + $0x930] sm:$0xff] }
 0x2b4   : > { %7505 = vmatpush2.bf16.msra.mxu1 %v9589_v7  ;;  %v897_v2 = vld [vmem:[%s11119_s17 + $0xd10] sm:$0xff]  ;;  %v9813_v7 = vcombine.low %v905_v61, %v909_v52  ;;  %v9678_v11 = vcombine.high %v769_v10, %v773_v1 }
 0x2b5   : > { %7506 = vmatprep.subr.bf16.mxu1 %v9582_v13  ;;  %v901_v46 = vld [vmem:[%s11119_s17 + $0xd30] sm:$0xff] }
 0x2b6   : > { %7464 = vmatpush2.bf16.msra.mxu0 %v9453_v18  ;;  %v9806_v13 = vcombine.high %v897_v2, %v901_v46  ;;  %v761_v14 = vld [vmem:[%s11119_s17 + $0x8d0] sm:$0xff]  ;;  %v9677_v18 = vcombine.low %v769_v10, %v773_v1 }
 0x2b7   : > { %7519 = vmatprep.subr.bf16.mxu0 %v9702_v47  ;;  %v765_v15 = vld [vmem:[%s11119_s17 + $0x8f0] sm:$0xff] }
 0x2b8   : > { %7507 = vmatpush2.bf16.msra.mxu1 %v9581_v20  ;;  %v889_v17 = vld [vmem:[%s11119_s17 + $0xcd0] sm:$0xff]  ;;  %v9805_v20 = vcombine.low %v897_v2, %v901_v46  ;;  %v9670_v47 = vcombine.high %v761_v14, %v765_v15 }
 0x2b9   : > { %7562 = vmatprep.subr.bf16.mxu1 %v9830_v29  ;;  %7466 = vmatmul.mubr.bf16.vlgmr.msra.gmra.mxu0 %v11246_v21  ;;  %v893_v53 = vld [vmem:[%s11119_s17 + $0xcf0] sm:$0xff] }
 0x2ba   : > { %7520 = vmatpush1.bf16.msra.mxu0 %v9701_v42  ;;  %7551 = vmatprep.mubr.bf16.mxu0 %v11277_v60  ;;  %v9798_v29 = vcombine.high %v889_v17, %v893_v53  ;;  %v753_v24 = vld [vmem:[%s11119_s17 + $0x890] sm:$0xff]  ;;  %v9669_v42 = vcombine.low %v761_v14, %v765_v15 }
 0x2bb   : > { %7509 = vmatmul.mubr.bf16.vlgmr.msra.gmra.mxu1 %v11261_v25  ;;  %7521 = vmatprep.subr.bf16.mxu0 %v9694_v44  ;;  %v757_v38 = vld [vmem:[%s11119_s17 + $0x8b0] sm:$0xff] }
 0x2bc   : > { %7563 = vmatpush1.bf16.msra.mxu1 %v9829_v39  ;;  %7594 = vmatprep.mubr.bf16.mxu1 %v11284_v33  ;;  %v881_v40 = vld [vmem:[%s11119_s17 + $0xc90] sm:$0xff]  ;;  %v9797_v39 = vcombine.low %v889_v17, %v893_v53  ;;  %v9662_v44 = vcombine.high %v753_v24, %v757_v38 }
 0x2bd   : > { %7564 = vmatprep.subr.bf16.mxu1 %v9822_v55  ;;  %v885_v41 = vld [vmem:[%s11119_s17 + $0xcb0] sm:$0xff] }
 0x2be   : > { %7522 = vmatpush1.bf16.msra.mxu0 %v9693_v36  ;;  %v9790_v55 = vcombine.high %v881_v40, %v885_v41  ;;  %v745_v5 = vld [vmem:[%s11119_s17 + $0x850] sm:$0xff]  ;;  %v9661_v36 = vcombine.low %v753_v24, %v757_v38 }
 0x2bf   : > { %7523 = vmatprep.subr.bf16.mxu0 %v9686_v34  ;;  %v749_v51 = vld [vmem:[%s11119_s17 + $0x870] sm:$0xff] }
 0x2c0   : > { %7565 = vmatpush1.bf16.msra.mxu1 %v9821_v0  ;;  %v873_v61 = vld [vmem:[%s11119_s17 + $0xc50] sm:$0xff]  ;;  %v9789_v0 = vcombine.low %v881_v40, %v885_v41  ;;  %v9654_v34 = vcombine.high %v745_v5, %v749_v51 }
 0x2c1   : > { %7566 = vmatprep.subr.bf16.mxu1 %v9814_v30  ;;  %v877_v52 = vld [vmem:[%s11119_s17 + $0xc70] sm:$0xff] }
 0x2c2   : > { %7524 = vmatpush1.bf16.msra.mxu0 %v9685_v4  ;;  %v9782_v30 = vcombine.high %v873_v61, %v877_v52  ;;  %v737_v10 = vld [vmem:[%s11119_s17 + $0x810] sm:$0xff]  ;;  %v9653_v4 = vcombine.low %v745_v5, %v749_v51 }
 0x2c3   : > { %7525 = vmatprep.subr.bf16.mxu0 %v9678_v11  ;;  %v741_v1 = vld [vmem:[%s11119_s17 + $0x830] sm:$0xff] }
 0x2c4   : > { %7567 = vmatpush1.bf16.msra.mxu1 %v9813_v7  ;;  %v865_v2 = vld [vmem:[%s11119_s17 + $0xc10] sm:$0xff]  ;;  %v9781_v7 = vcombine.low %v873_v61, %v877_v52  ;;  %v9646_v11 = vcombine.high %v737_v10, %v741_v1 }
 0x2c5   : > { %7568 = vmatprep.subr.bf16.mxu1 %v9806_v13  ;;  %v869_v46 = vld [vmem:[%s11119_s17 + $0xc30] sm:$0xff] }
 0x2c6   : > { %7526 = vmatpush1.bf16.msra.mxu0 %v9677_v18  ;;  %v9774_v13 = vcombine.high %v865_v2, %v869_v46  ;;  %v857_v14 = vld [vmem:[%s11119_s17 + $0xbd0] sm:$0xff]  ;;  %v9645_v18 = vcombine.low %v737_v10, %v741_v1 }
 0x2c7   : > { %7527 = vmatprep.subr.bf16.mxu0 %v9670_v47  ;;  %v861_v15 = vld [vmem:[%s11119_s17 + $0xbf0] sm:$0xff] }
 0x2c8   : > { %7569 = vmatpush1.bf16.msra.mxu1 %v9805_v20  ;;  %v985_v17 = vld [vmem:[%s11119_s17 + $0xfd0] sm:$0xff]  ;;  %v9773_v20 = vcombine.low %v865_v2, %v869_v46  ;;  %v9766_v47 = vcombine.high %v857_v14, %v861_v15 }
 0x2c9   : > { %7570 = vmatprep.subr.bf16.mxu1 %v9798_v29  ;;  %v989_v53 = vld [vmem:[%s11119_s17 + $0xff0] sm:$0xff] }
 0x2ca   : > { %7528 = vmatpush1.bf16.msra.mxu0 %v9669_v42  ;;  %v9894_v29 = vcombine.high %v985_v17, %v989_v53  ;;  %v849_v24 = vld [vmem:[%s11119_s17 + $0xb90] sm:$0xff]  ;;  %v9765_v42 = vcombine.low %v857_v14, %v861_v15 }
 0x2cb   : > { %7529 = vmatprep.subr.bf16.mxu0 %v9662_v44  ;;  %v853_v38 = vld [vmem:[%s11119_s17 + $0xbb0] sm:$0xff] }
 0x2cc   : > { %7571 = vmatpush1.bf16.msra.mxu1 %v9797_v39  ;;  %v977_v40 = vld [vmem:[%s11119_s17 + $0xf90] sm:$0xff]  ;;  %v9893_v39 = vcombine.low %v985_v17, %v989_v53  ;;  %v9758_v44 = vcombine.high %v849_v24, %v853_v38 }
 0x2cd   : > { %7572 = vmatprep.subr.bf16.mxu1 %v9790_v55  ;;  %v981_v41 = vld [vmem:[%s11119_s17 + $0xfb0] sm:$0xff] }
 0x2ce   : > { %7530 = vmatpush1.bf16.msra.mxu0 %v9661_v36  ;;  %v9886_v55 = vcombine.high %v977_v40, %v981_v41  ;;  %v841_v5 = vld [vmem:[%s11119_s17 + $0xb50] sm:$0xff]  ;;  %v9757_v36 = vcombine.low %v849_v24, %v853_v38 }
 0x2cf   : > { %7531 = vmatprep.subr.bf16.mxu0 %v9654_v34  ;;  %v845_v51 = vld [vmem:[%s11119_s17 + $0xb70] sm:$0xff] }
 0x2d0   : > { %7573 = vmatpush1.bf16.msra.mxu1 %v9789_v0  ;;  %v969_v61 = vld [vmem:[%s11119_s17 + $0xf50] sm:$0xff]  ;;  %v9885_v0 = vcombine.low %v977_v40, %v981_v41  ;;  %v9750_v34 = vcombine.high %v841_v5, %v845_v51 }
 0x2d1   : > { %7574 = vmatprep.subr.bf16.mxu1 %v9782_v30  ;;  %v973_v52 = vld [vmem:[%s11119_s17 + $0xf70] sm:$0xff] }
 0x2d2   : > { %7532 = vmatpush1.bf16.msra.mxu0 %v9653_v4  ;;  %v9878_v30 = vcombine.high %v969_v61, %v973_v52  ;;  %v833_v10 = vld [vmem:[%s11119_s17 + $0xb10] sm:$0xff]  ;;  %v9749_v4 = vcombine.low %v841_v5, %v845_v51 }
 0x2d3   : > { %7533 = vmatprep.subr.bf16.mxu0 %v9646_v11  ;;  %v837_v1 = vld [vmem:[%s11119_s17 + $0xb30] sm:$0xff] }
 0x2d4   : > { %7575 = vmatpush1.bf16.msra.mxu1 %v9781_v7  ;;  %v961_v2 = vld [vmem:[%s11119_s17 + $0xf10] sm:$0xff]  ;;  %v9877_v7 = vcombine.low %v969_v61, %v973_v52  ;;  %v9742_v11 = vcombine.high %v833_v10, %v837_v1 }
 0x2d5   : > { %7576 = vmatprep.subr.bf16.mxu1 %v9774_v13  ;;  %v965_v46 = vld [vmem:[%s11119_s17 + $0xf30] sm:$0xff] }
 0x2d6   : > { %7534 = vmatpush1.bf16.msra.mxu0 %v9645_v18  ;;  %v9870_v13 = vcombine.high %v961_v2, %v965_v46  ;;  %v825_v14 = vld [vmem:[%s11119_s17 + $0xad0] sm:$0xff]  ;;  %v9741_v18 = vcombine.low %v833_v10, %v837_v1 }
 0x2d7   : > { %7535 = vmatprep.subr.bf16.mxu0 %v9766_v47  ;;  %v829_v15 = vld [vmem:[%s11119_s17 + $0xaf0] sm:$0xff] }
 0x2d8   : > { %7577 = vmatpush1.bf16.msra.mxu1 %v9773_v20  ;;  %v953_v17 = vld [vmem:[%s11119_s17 + $0xed0] sm:$0xff]  ;;  %v9869_v20 = vcombine.low %v961_v2, %v965_v46  ;;  %v9734_v47 = vcombine.high %v825_v14, %v829_v15 }
 0x2d9   : > { %7578 = vmatprep.subr.bf16.mxu1 %v9894_v29  ;;  %v957_v53 = vld [vmem:[%s11119_s17 + $0xef0] sm:$0xff] }
 0x2da   : > { %7536 = vmatpush2.bf16.msra.mxu0 %v9765_v42  ;;  %v9862_v29 = vcombine.high %v953_v17, %v957_v53  ;;  %v817_v24 = vld [vmem:[%s11119_s17 + $0xa90] sm:$0xff]  ;;  %v9733_v42 = vcombine.low %v825_v14, %v829_v15 }
 0x2db   : > { %7537 = vmatprep.subr.bf16.mxu0 %v9758_v44  ;;  %v821_v38 = vld [vmem:[%s11119_s17 + $0xab0] sm:$0xff] }
 0x2dc   : > { %7579 = vmatpush2.bf16.msra.mxu1 %v9893_v39  ;;  %v945_v40 = vld [vmem:[%s11119_s17 + $0xe90] sm:$0xff]  ;;  %v9861_v39 = vcombine.low %v953_v17, %v957_v53  ;;  %v9726_v44 = vcombine.high %v817_v24, %v821_v38 }
 0x2dd   : > { %7580 = vmatprep.subr.bf16.mxu1 %v9886_v55  ;;  %v949_v41 = vld [vmem:[%s11119_s17 + $0xeb0] sm:$0xff] }
 0x2de   : > { %7538 = vmatpush2.bf16.msra.mxu0 %v9757_v36  ;;  %v9854_v55 = vcombine.high %v945_v40, %v949_v41  ;;  %v809_v5 = vld [vmem:[%s11119_s17 + $0xa50] sm:$0xff]  ;;  %v9725_v36 = vcombine.low %v817_v24, %v821_v38 }
 0x2df   : > { %7539 = vmatprep.subr.bf16.mxu0 %v9750_v34  ;;  %v813_v51 = vld [vmem:[%s11119_s17 + $0xa70] sm:$0xff] }
 0x2e0   : > { %7581 = vmatpush2.bf16.msra.mxu1 %v9885_v0  ;;  %v937_v61 = vld [vmem:[%s11119_s17 + $0xe50] sm:$0xff]  ;;  %v9853_v0 = vcombine.low %v945_v40, %v949_v41  ;;  %v9718_v34 = vcombine.high %v809_v5, %v813_v51 }
 0x2e1   : > { %7582 = vmatprep.subr.bf16.mxu1 %v9878_v30  ;;  %v941_v52 = vld [vmem:[%s11119_s17 + $0xe70] sm:$0xff] }
 0x2e2   : > { %7540 = vmatpush2.bf16.msra.mxu0 %v9749_v4  ;;  %v9846_v30 = vcombine.high %v937_v61, %v941_v52  ;;  %v801_v10 = vld [vmem:[%s11119_s17 + $0xa10] sm:$0xff]  ;;  %v9717_v4 = vcombine.low %v809_v5, %v813_v51 }
 0x2e3   : > { %7541 = vmatprep.subr.bf16.mxu0 %v9742_v11  ;;  %v805_v1 = vld [vmem:[%s11119_s17 + $0xa30] sm:$0xff] }
 0x2e4   : > { %7583 = vmatpush2.bf16.msra.mxu1 %v9877_v7  ;;  %v929_v2 = vld [vmem:[%s11119_s17 + $0xe10] sm:$0xff]  ;;  %v9845_v7 = vcombine.low %v937_v61, %v941_v52  ;;  %v9710_v11 = vcombine.high %v801_v10, %v805_v1 }
 0x2e5   : > { %7584 = vmatprep.subr.bf16.mxu1 %v9870_v13  ;;  %v933_v46 = vld [vmem:[%s11119_s17 + $0xe30] sm:$0xff] }
 0x2e6   : > { %7542 = vmatpush2.bf16.msra.mxu0 %v9741_v18  ;;  %v9838_v13 = vcombine.high %v929_v2, %v933_v46  ;;  %v1049_v14 = vld [vmem:[%s11119_s17 + $0x11d0] sm:$0xff]  ;;  %v9709_v18 = vcombine.low %v801_v10, %v805_v1 }
 0x2e7   : > { %7543 = vmatprep.subr.bf16.mxu0 %v9734_v47  ;;  %v1053_v15 = vld [vmem:[%s11119_s17 + $0x11f0] sm:$0xff] }
 0x2e8   : > { %7585 = vmatpush2.bf16.msra.mxu1 %v9869_v20  ;;  %v1177_v17 = vld [vmem:[%s11119_s17 + $0x15d0] sm:$0xff]  ;;  %v9837_v20 = vcombine.low %v929_v2, %v933_v46  ;;  %v9958_v47 = vcombine.high %v1049_v14, %v1053_v15 }
 0x2e9   : > { %7586 = vmatprep.subr.bf16.mxu1 %v9862_v29  ;;  %v1181_v53 = vld [vmem:[%s11119_s17 + $0x15f0] sm:$0xff] }
 0x2ea   : > { %7544 = vmatpush2.bf16.msra.mxu0 %v9733_v42  ;;  %v10086_v29 = vcombine.high %v1177_v17, %v1181_v53  ;;  %v1041_v24 = vld [vmem:[%s11119_s17 + $0x1190] sm:$0xff]  ;;  %v9957_v42 = vcombine.low %v1049_v14, %v1053_v15 }
 0x2eb   : > { %7545 = vmatprep.subr.bf16.mxu0 %v9726_v44  ;;  %v1045_v38 = vld [vmem:[%s11119_s17 + $0x11b0] sm:$0xff] }
 0x2ec   : > { %7587 = vmatpush2.bf16.msra.mxu1 %v9861_v39  ;;  %v1169_v40 = vld [vmem:[%s11119_s17 + $0x1590] sm:$0xff]  ;;  %v10085_v39 = vcombine.low %v1177_v17, %v1181_v53  ;;  %v9950_v44 = vcombine.high %v1041_v24, %v1045_v38 }
 0x2ed   : > { %7588 = vmatprep.subr.bf16.mxu1 %v9854_v55  ;;  %v1173_v41 = vld [vmem:[%s11119_s17 + $0x15b0] sm:$0xff] }
 0x2ee   : > { %7546 = vmatpush2.bf16.msra.mxu0 %v9725_v36  ;;  %v10078_v55 = vcombine.high %v1169_v40, %v1173_v41  ;;  %v1033_v5 = vld [vmem:[%s11119_s17 + $0x1150] sm:$0xff]  ;;  %v9949_v36 = vcombine.low %v1041_v24, %v1045_v38 }
 0x2ef   : > { %7547 = vmatprep.subr.bf16.mxu0 %v9718_v34  ;;  %v1037_v51 = vld [vmem:[%s11119_s17 + $0x1170] sm:$0xff] }
 0x2f0   : > { %7589 = vmatpush2.bf16.msra.mxu1 %v9853_v0  ;;  %v1161_v61 = vld [vmem:[%s11119_s17 + $0x1550] sm:$0xff]  ;;  %v10077_v0 = vcombine.low %v1169_v40, %v1173_v41  ;;  %v9942_v34 = vcombine.high %v1033_v5, %v1037_v51 }
 0x2f1   : > { %7590 = vmatprep.subr.bf16.mxu1 %v9846_v30  ;;  %v1165_v52 = vld [vmem:[%s11119_s17 + $0x1570] sm:$0xff] }
 0x2f2   : > { %7548 = vmatpush2.bf16.msra.mxu0 %v9717_v4  ;;  %v10070_v30 = vcombine.high %v1161_v61, %v1165_v52  ;;  %v1025_v10 = vld [vmem:[%s11119_s17 + $0x1110] sm:$0xff]  ;;  %v9941_v4 = vcombine.low %v1033_v5, %v1037_v51 }
 0x2f3   : > { %7549 = vmatprep.subr.bf16.mxu0 %v9710_v11  ;;  %v1029_v1 = vld [vmem:[%s11119_s17 + $0x1130] sm:$0xff] }
 0x2f4   : > { %7591 = vmatpush2.bf16.msra.mxu1 %v9845_v7  ;;  %v1153_v2 = vld [vmem:[%s11119_s17 + $0x1510] sm:$0xff]  ;;  %v10069_v7 = vcombine.low %v1161_v61, %v1165_v52  ;;  %v9934_v11 = vcombine.high %v1025_v10, %v1029_v1 }
 0x2f5   : > { %7592 = vmatprep.subr.bf16.mxu1 %v9838_v13  ;;  %v1157_v46 = vld [vmem:[%s11119_s17 + $0x1530] sm:$0xff] }
 0x2f6   : > { %7550 = vmatpush2.bf16.msra.mxu0 %v9709_v18  ;;  %v10062_v13 = vcombine.high %v1153_v2, %v1157_v46  ;;  %v1017_v14 = vld [vmem:[%s11119_s17 + $0x10d0] sm:$0xff]  ;;  %v9933_v18 = vcombine.low %v1025_v10, %v1029_v1 }
 0x2f7   : > { %7605 = vmatprep.subr.bf16.mxu0 %v9958_v47  ;;  %v1021_v15 = vld [vmem:[%s11119_s17 + $0x10f0] sm:$0xff] }
 0x2f8   : > { %7593 = vmatpush2.bf16.msra.mxu1 %v9837_v20  ;;  %v1145_v17 = vld [vmem:[%s11119_s17 + $0x14d0] sm:$0xff]  ;;  %v10061_v20 = vcombine.low %v1153_v2, %v1157_v46  ;;  %v9926_v47 = vcombine.high %v1017_v14, %v1021_v15 }
 0x2f9   : > { %7648 = vmatprep.subr.bf16.mxu1 %v10086_v29  ;;  %7552 = vmatmul.mubr.bf16.vlgmr.msra.gmra.mxu0 %v11350_v45  ;;  %v1149_v53 = vld [vmem:[%s11119_s17 + $0x14f0] sm:$0xff] }
 0x2fa   : > { %7606 = vmatpush1.bf16.msra.mxu0 %v9957_v42  ;;  %7637 = vmatprep.mubr.bf16.mxu0 %v11381_v26  ;;  %v10054_v29 = vcombine.high %v1145_v17, %v1149_v53  ;;  %v1009_v24 = vld [vmem:[%s11119_s17 + $0x1090] sm:$0xff]  ;;  %v9925_v42 = vcombine.low %v1017_v14, %v1021_v15 }
 0x2fb   : > { %7595 = vmatmul.mubr.bf16.vlgmr.msra.gmra.mxu1 %v11365_v49  ;;  %7607 = vmatprep.subr.bf16.mxu0 %v9950_v44  ;;  %v1013_v38 = vld [vmem:[%s11119_s17 + $0x10b0] sm:$0xff] }
 0x2fc   : > { %7649 = vmatpush1.bf16.msra.mxu1 %v10085_v39  ;;  %7680 = vmatprep.mubr.bf16.mxu1 %v11388_v62  ;;  %v1137_v40 = vld [vmem:[%s11119_s17 + $0x1490] sm:$0xff]  ;;  %v10053_v39 = vcombine.low %v1145_v17, %v1149_v53  ;;  %v9918_v44 = vcombine.high %v1009_v24, %v1013_v38 }
 0x2fd   : > { %7650 = vmatprep.subr.bf16.mxu1 %v10078_v55  ;;  %v1141_v41 = vld [vmem:[%s11119_s17 + $0x14b0] sm:$0xff] }
 0x2fe   : > { %7608 = vmatpush1.bf16.msra.mxu0 %v9949_v36  ;;  %v10046_v55 = vcombine.high %v1137_v40, %v1141_v41  ;;  %v1001_v5 = vld [vmem:[%s11119_s17 + $0x1050] sm:$0xff]  ;;  %v9917_v36 = vcombine.low %v1009_v24, %v1013_v38 }
 0x2ff   : > { %7609 = vmatprep.subr.bf16.mxu0 %v9942_v34  ;;  %v1005_v51 = vld [vmem:[%s11119_s17 + $0x1070] sm:$0xff] }
 0x300   : > { %7651 = vmatpush1.bf16.msra.mxu1 %v10077_v0  ;;  %v1129_v61 = vld [vmem:[%s11119_s17 + $0x1450] sm:$0xff]  ;;  %v10045_v0 = vcombine.low %v1137_v40, %v1141_v41  ;;  %v9910_v34 = vcombine.high %v1001_v5, %v1005_v51 }
 0x301   : > { %7652 = vmatprep.subr.bf16.mxu1 %v10070_v30  ;;  %v1133_v52 = vld [vmem:[%s11119_s17 + $0x1470] sm:$0xff] }
 0x302   : > { %7610 = vmatpush1.bf16.msra.mxu0 %v9941_v4  ;;  %v10038_v30 = vcombine.high %v1129_v61, %v1133_v52  ;;  %v993_v10 = vld [vmem:[%s11119_s17 + $0x1010] sm:$0xff]  ;;  %v9909_v4 = vcombine.low %v1001_v5, %v1005_v51 }
 0x303   : > { %7611 = vmatprep.subr.bf16.mxu0 %v9934_v11  ;;  %v997_v1 = vld [vmem:[%s11119_s17 + $0x1030] sm:$0xff] }
 0x304   : > { %7653 = vmatpush1.bf16.msra.mxu1 %v10069_v7  ;;  %v1121_v2 = vld [vmem:[%s11119_s17 + $0x1410] sm:$0xff]  ;;  %v10037_v7 = vcombine.low %v1129_v61, %v1133_v52  ;;  %v9902_v11 = vcombine.high %v993_v10, %v997_v1 }
 0x305   : > { %7654 = vmatprep.subr.bf16.mxu1 %v10062_v13  ;;  %v1125_v46 = vld [vmem:[%s11119_s17 + $0x1430] sm:$0xff] }
 0x306   : > { %7612 = vmatpush1.bf16.msra.mxu0 %v9933_v18  ;;  %v10030_v13 = vcombine.high %v1121_v2, %v1125_v46  ;;  %v1113_v14 = vld [vmem:[%s11119_s17 + $0x13d0] sm:$0xff]  ;;  %v9901_v18 = vcombine.low %v993_v10, %v997_v1 }
 0x307   : > { %7613 = vmatprep.subr.bf16.mxu0 %v9926_v47  ;;  %v1117_v15 = vld [vmem:[%s11119_s17 + $0x13f0] sm:$0xff] }
 0x308   : > { %7655 = vmatpush1.bf16.msra.mxu1 %v10061_v20  ;;  %v1241_v17 = vld [vmem:[%s11119_s17 + $0x17d0] sm:$0xff]  ;;  %v10029_v20 = vcombine.low %v1121_v2, %v1125_v46  ;;  %v10022_v47 = vcombine.high %v1113_v14, %v1117_v15 }
 0x309   : > { %7656 = vmatprep.subr.bf16.mxu1 %v10054_v29  ;;  %v1245_v53 = vld [vmem:[%s11119_s17 + $0x17f0] sm:$0xff] }
 0x30a   : > { %7614 = vmatpush1.bf16.msra.mxu0 %v9925_v42  ;;  %v10150_v29 = vcombine.high %v1241_v17, %v1245_v53  ;;  %v1105_v24 = vld [vmem:[%s11119_s17 + $0x1390] sm:$0xff]  ;;  %v10021_v42 = vcombine.low %v1113_v14, %v1117_v15 }
 0x30b   : > { %7615 = vmatprep.subr.bf16.mxu0 %v9918_v44  ;;  %v1109_v38 = vld [vmem:[%s11119_s17 + $0x13b0] sm:$0xff] }
 0x30c   : > { %7657 = vmatpush1.bf16.msra.mxu1 %v10053_v39  ;;  %v1233_v40 = vld [vmem:[%s11119_s17 + $0x1790] sm:$0xff]  ;;  %v10149_v39 = vcombine.low %v1241_v17, %v1245_v53  ;;  %v10014_v44 = vcombine.high %v1105_v24, %v1109_v38 }
 0x30d   : > { %7658 = vmatprep.subr.bf16.mxu1 %v10046_v55  ;;  %v1237_v41 = vld [vmem:[%s11119_s17 + $0x17b0] sm:$0xff] }
 0x30e   : > { %7616 = vmatpush1.bf16.msra.mxu0 %v9917_v36  ;;  %v10142_v55 = vcombine.high %v1233_v40, %v1237_v41  ;;  %v1097_v5 = vld [vmem:[%s11119_s17 + $0x1350] sm:$0xff]  ;;  %v10013_v36 = vcombine.low %v1105_v24, %v1109_v38 }
 0x30f   : > { %7617 = vmatprep.subr.bf16.mxu0 %v9910_v34  ;;  %v1101_v51 = vld [vmem:[%s11119_s17 + $0x1370] sm:$0xff] }
 0x310   : > { %7659 = vmatpush1.bf16.msra.mxu1 %v10045_v0  ;;  %v1225_v61 = vld [vmem:[%s11119_s17 + $0x1750] sm:$0xff]  ;;  %v10141_v0 = vcombine.low %v1233_v40, %v1237_v41  ;;  %v10006_v34 = vcombine.high %v1097_v5, %v1101_v51 }
 0x311   : > { %7660 = vmatprep.subr.bf16.mxu1 %v10038_v30  ;;  %v1229_v52 = vld [vmem:[%s11119_s17 + $0x1770] sm:$0xff] }
 0x312   : > { %7618 = vmatpush1.bf16.msra.mxu0 %v9909_v4  ;;  %v10134_v30 = vcombine.high %v1225_v61, %v1229_v52  ;;  %v1089_v10 = vld [vmem:[%s11119_s17 + $0x1310] sm:$0xff]  ;;  %v10005_v4 = vcombine.low %v1097_v5, %v1101_v51 }
 0x313   : > { %7619 = vmatprep.subr.bf16.mxu0 %v9902_v11  ;;  %v1093_v1 = vld [vmem:[%s11119_s17 + $0x1330] sm:$0xff] }
 0x314   : > { %7661 = vmatpush1.bf16.msra.mxu1 %v10037_v7  ;;  %v1217_v2 = vld [vmem:[%s11119_s17 + $0x1710] sm:$0xff]  ;;  %v10133_v7 = vcombine.low %v1225_v61, %v1229_v52  ;;  %v9998_v11 = vcombine.high %v1089_v10, %v1093_v1 }
 0x315   : > { %7662 = vmatprep.subr.bf16.mxu1 %v10030_v13  ;;  %v1221_v46 = vld [vmem:[%s11119_s17 + $0x1730] sm:$0xff] }
 0x316   : > { %7620 = vmatpush1.bf16.msra.mxu0 %v9901_v18  ;;  %v10126_v13 = vcombine.high %v1217_v2, %v1221_v46  ;;  %v1081_v14 = vld [vmem:[%s11119_s17 + $0x12d0] sm:$0xff]  ;;  %v9997_v18 = vcombine.low %v1089_v10, %v1093_v1 }
 0x317   : > { %7621 = vmatprep.subr.bf16.mxu0 %v10022_v47  ;;  %v1085_v15 = vld [vmem:[%s11119_s17 + $0x12f0] sm:$0xff] }
 0x318   : > { %7663 = vmatpush1.bf16.msra.mxu1 %v10029_v20  ;;  %v1209_v17 = vld [vmem:[%s11119_s17 + $0x16d0] sm:$0xff]  ;;  %v10125_v20 = vcombine.low %v1217_v2, %v1221_v46  ;;  %v9990_v47 = vcombine.high %v1081_v14, %v1085_v15 }
 0x319   : > { %7664 = vmatprep.subr.bf16.mxu1 %v10150_v29  ;;  %v1213_v53 = vld [vmem:[%s11119_s17 + $0x16f0] sm:$0xff] }
 0x31a   : > { %7622 = vmatpush2.bf16.msra.mxu0 %v10021_v42  ;;  %v10118_v29 = vcombine.high %v1209_v17, %v1213_v53  ;;  %v1073_v24 = vld [vmem:[%s11119_s17 + $0x1290] sm:$0xff]  ;;  %v9989_v42 = vcombine.low %v1081_v14, %v1085_v15 }
 0x31b   : > { %7623 = vmatprep.subr.bf16.mxu0 %v10014_v44  ;;  %v1077_v38 = vld [vmem:[%s11119_s17 + $0x12b0] sm:$0xff] }
 0x31c   : > { %7665 = vmatpush2.bf16.msra.mxu1 %v10149_v39  ;;  %v1201_v40 = vld [vmem:[%s11119_s17 + $0x1690] sm:$0xff]  ;;  %v10117_v39 = vcombine.low %v1209_v17, %v1213_v53  ;;  %v9982_v44 = vcombine.high %v1073_v24, %v1077_v38 }
 0x31d   : > { %7666 = vmatprep.subr.bf16.mxu1 %v10142_v55  ;;  %v1205_v41 = vld [vmem:[%s11119_s17 + $0x16b0] sm:$0xff] }
 0x31e   : > { %7624 = vmatpush2.bf16.msra.mxu0 %v10013_v36  ;;  %v10110_v55 = vcombine.high %v1201_v40, %v1205_v41  ;;  %v1065_v5 = vld [vmem:[%s11119_s17 + $0x1250] sm:$0xff]  ;;  %v9981_v36 = vcombine.low %v1073_v24, %v1077_v38 }
 0x31f   : > { %7625 = vmatprep.subr.bf16.mxu0 %v10006_v34  ;;  %v1069_v51 = vld [vmem:[%s11119_s17 + $0x1270] sm:$0xff] }
 0x320   : > { %7667 = vmatpush2.bf16.msra.mxu1 %v10141_v0  ;;  %v1193_v61 = vld [vmem:[%s11119_s17 + $0x1650] sm:$0xff]  ;;  %v10109_v0 = vcombine.low %v1201_v40, %v1205_v41  ;;  %v9974_v34 = vcombine.high %v1065_v5, %v1069_v51 }
 0x321   : > { %7668 = vmatprep.subr.bf16.mxu1 %v10134_v30  ;;  %v1197_v52 = vld [vmem:[%s11119_s17 + $0x1670] sm:$0xff] }
 0x322   : > { %7626 = vmatpush2.bf16.msra.mxu0 %v10005_v4  ;;  %v10102_v30 = vcombine.high %v1193_v61, %v1197_v52  ;;  %v1057_v10 = vld [vmem:[%s11119_s17 + $0x1210] sm:$0xff]  ;;  %v9973_v4 = vcombine.low %v1065_v5, %v1069_v51 }
 0x323   : > { %7627 = vmatprep.subr.bf16.mxu0 %v9998_v11  ;;  %v1061_v1 = vld [vmem:[%s11119_s17 + $0x1230] sm:$0xff] }
 0x324   : > { %7669 = vmatpush2.bf16.msra.mxu1 %v10133_v7  ;;  %v1185_v2 = vld [vmem:[%s11119_s17 + $0x1610] sm:$0xff]  ;;  %v10101_v7 = vcombine.low %v1193_v61, %v1197_v52  ;;  %v9966_v11 = vcombine.high %v1057_v10, %v1061_v1 }
 0x325   : > { %7670 = vmatprep.subr.bf16.mxu1 %v10126_v13  ;;  %v1189_v46 = vld [vmem:[%s11119_s17 + $0x1630] sm:$0xff] }
 0x326   : > { %7628 = vmatpush2.bf16.msra.mxu0 %v9997_v18  ;;  %v10094_v13 = vcombine.high %v1185_v2, %v1189_v46  ;;  %v1305_v14 = vld [vmem:[%s11119_s17 + $0x19d0] sm:$0xff]  ;;  %v9965_v18 = vcombine.low %v1057_v10, %v1061_v1 }
 0x327   : > { %7629 = vmatprep.subr.bf16.mxu0 %v9990_v47  ;;  %v1309_v15 = vld [vmem:[%s11119_s17 + $0x19f0] sm:$0xff] }
 0x328   : > { %7671 = vmatpush2.bf16.msra.mxu1 %v10125_v20  ;;  %v1433_v17 = vld [vmem:[%s11119_s17 + $0x1dd0] sm:$0xff]  ;;  %v10093_v20 = vcombine.low %v1185_v2, %v1189_v46  ;;  %v10214_v47 = vcombine.high %v1305_v14, %v1309_v15 }
 0x329   : > { %7672 = vmatprep.subr.bf16.mxu1 %v10118_v29  ;;  %v1437_v53 = vld [vmem:[%s11119_s17 + $0x1df0] sm:$0xff] }
 0x32a   : > { %7630 = vmatpush2.bf16.msra.mxu0 %v9989_v42  ;;  %v10342_v29 = vcombine.high %v1433_v17, %v1437_v53  ;;  %v1297_v24 = vld [vmem:[%s11119_s17 + $0x1990] sm:$0xff]  ;;  %v10213_v42 = vcombine.low %v1305_v14, %v1309_v15 }
 0x32b   : > { %7631 = vmatprep.subr.bf16.mxu0 %v9982_v44  ;;  %v1301_v38 = vld [vmem:[%s11119_s17 + $0x19b0] sm:$0xff] }
 0x32c   : > { %7673 = vmatpush2.bf16.msra.mxu1 %v10117_v39  ;;  %v1425_v40 = vld [vmem:[%s11119_s17 + $0x1d90] sm:$0xff]  ;;  %v10341_v39 = vcombine.low %v1433_v17, %v1437_v53  ;;  %v10206_v44 = vcombine.high %v1297_v24, %v1301_v38 }
 0x32d   : > { %7674 = vmatprep.subr.bf16.mxu1 %v10110_v55  ;;  %v1429_v41 = vld [vmem:[%s11119_s17 + $0x1db0] sm:$0xff] }
 0x32e   : > { %7632 = vmatpush2.bf16.msra.mxu0 %v9981_v36  ;;  %v10334_v55 = vcombine.high %v1425_v40, %v1429_v41  ;;  %v1289_v5 = vld [vmem:[%s11119_s17 + $0x1950] sm:$0xff]  ;;  %v10205_v36 = vcombine.low %v1297_v24, %v1301_v38 }
 0x32f   : > { %7633 = vmatprep.subr.bf16.mxu0 %v9974_v34  ;;  %v1293_v51 = vld [vmem:[%s11119_s17 + $0x1970] sm:$0xff] }
 0x330   : > { %7675 = vmatpush2.bf16.msra.mxu1 %v10109_v0  ;;  %v1417_v61 = vld [vmem:[%s11119_s17 + $0x1d50] sm:$0xff]  ;;  %v10333_v0 = vcombine.low %v1425_v40, %v1429_v41  ;;  %v10198_v34 = vcombine.high %v1289_v5, %v1293_v51 }
 0x331   : > { %7676 = vmatprep.subr.bf16.mxu1 %v10102_v30  ;;  %v1421_v52 = vld [vmem:[%s11119_s17 + $0x1d70] sm:$0xff] }
 0x332   : > { %7634 = vmatpush2.bf16.msra.mxu0 %v9973_v4  ;;  %v10326_v30 = vcombine.high %v1417_v61, %v1421_v52  ;;  %v1281_v10 = vld [vmem:[%s11119_s17 + $0x1910] sm:$0xff]  ;;  %v10197_v4 = vcombine.low %v1289_v5, %v1293_v51 }
 0x333   : > { %7635 = vmatprep.subr.bf16.mxu0 %v9966_v11  ;;  %v1285_v1 = vld [vmem:[%s11119_s17 + $0x1930] sm:$0xff] }
 0x334   : > { %7677 = vmatpush2.bf16.msra.mxu1 %v10101_v7  ;;  %v1409_v2 = vld [vmem:[%s11119_s17 + $0x1d10] sm:$0xff]  ;;  %v10325_v7 = vcombine.low %v1417_v61, %v1421_v52  ;;  %v10190_v11 = vcombine.high %v1281_v10, %v1285_v1 }
 0x335   : > { %7678 = vmatprep.subr.bf16.mxu1 %v10094_v13  ;;  %v1413_v46 = vld [vmem:[%s11119_s17 + $0x1d30] sm:$0xff] }
 0x336   : > { %7636 = vmatpush2.bf16.msra.mxu0 %v9965_v18  ;;  %v10318_v13 = vcombine.high %v1409_v2, %v1413_v46  ;;  %v1273_v14 = vld [vmem:[%s11119_s17 + $0x18d0] sm:$0xff]  ;;  %v10189_v18 = vcombine.low %v1281_v10, %v1285_v1 }
 0x337   : > { %7691 = vmatprep.subr.bf16.mxu0 %v10214_v47  ;;  %v1277_v15 = vld [vmem:[%s11119_s17 + $0x18f0] sm:$0xff] }
 0x338   : > { %7679 = vmatpush2.bf16.msra.mxu1 %v10093_v20  ;;  %v1401_v17 = vld [vmem:[%s11119_s17 + $0x1cd0] sm:$0xff]  ;;  %v10317_v20 = vcombine.low %v1409_v2, %v1413_v46  ;;  %v10182_v47 = vcombine.high %v1273_v14, %v1277_v15 }
 0x339   : > { %7734 = vmatprep.subr.bf16.mxu1 %v10342_v29  ;;  %7638 = vmatmul.mubr.bf16.vlgmr.msra.gmra.mxu0 %v11454_v19  ;;  %v1405_v53 = vld [vmem:[%s11119_s17 + $0x1cf0] sm:$0xff] }
 0x33a   : > { %7692 = vmatpush1.bf16.msra.mxu0 %v10213_v42  ;;  %7723 = vmatprep.mubr.bf16.mxu0 %v11485_v50  ;;  %v10310_v29 = vcombine.high %v1401_v17, %v1405_v53  ;;  %v1265_v24 = vld [vmem:[%s11119_s17 + $0x1890] sm:$0xff]  ;;  %v10181_v42 = vcombine.low %v1273_v14, %v1277_v15  ;;  %v822_v50 = vld [vmem:[%s11119_s17 + $0xab8] sm:$0xff] }
 0x33b   : > { %7681 = vmatmul.mubr.bf16.vlgmr.msra.gmra.mxu1 %v11469_v27  ;;  %7693 = vmatprep.subr.bf16.mxu0 %v10206_v44  ;;  %v1269_v38 = vld [vmem:[%s11119_s17 + $0x18b0] sm:$0xff]  ;;  %v946_v27 = vld [vmem:[%s11119_s17 + $0xe98] sm:$0xff] }
 0x33c   : > { %7735 = vmatpush1.bf16.msra.mxu1 %v10341_v39  ;;  %7766 = vmatprep.mubr.bf16.mxu1 %v11492_v35  ;;  %v1393_v40 = vld [vmem:[%s11119_s17 + $0x1c90] sm:$0xff]  ;;  %v10309_v39 = vcombine.low %v1401_v17, %v1405_v53  ;;  %v10174_v44 = vcombine.high %v1265_v24, %v1269_v38  ;;  %v818_v35 = vld [vmem:[%s11119_s17 + $0xa98] sm:$0xff] }
 0x33d   : > { %7736 = vmatprep.subr.bf16.mxu1 %v10334_v55  ;;  %v1397_v41 = vld [vmem:[%s11119_s17 + $0x1cb0] sm:$0xff] }
 0x33e   : > { %7694 = vmatpush1.bf16.msra.mxu0 %v10205_v36  ;;  %v10302_v55 = vcombine.high %v1393_v40, %v1397_v41  ;;  %v1257_v5 = vld [vmem:[%s11119_s17 + $0x1850] sm:$0xff]  ;;  %v10173_v36 = vcombine.low %v1265_v24, %v1269_v38 }
 0x33f   : > { %7695 = vmatprep.subr.bf16.mxu0 %v10198_v34  ;;  %v1261_v51 = vld [vmem:[%s11119_s17 + $0x1870] sm:$0xff] }
 0x340   : > { %7737 = vmatpush1.bf16.msra.mxu1 %v10333_v0  ;;  %v1385_v61 = vld [vmem:[%s11119_s17 + $0x1c50] sm:$0xff]  ;;  %v10301_v0 = vcombine.low %v1393_v40, %v1397_v41  ;;  %v10166_v34 = vcombine.high %v1257_v5, %v1261_v51 }
 0x341   : > { %7738 = vmatprep.subr.bf16.mxu1 %v10326_v30  ;;  %v1389_v52 = vld [vmem:[%s11119_s17 + $0x1c70] sm:$0xff] }
 0x342   : > { %7696 = vmatpush1.bf16.msra.mxu0 %v10197_v4  ;;  %v10294_v30 = vcombine.high %v1385_v61, %v1389_v52  ;;  %v1249_v10 = vld [vmem:[%s11119_s17 + $0x1810] sm:$0xff]  ;;  %v10165_v4 = vcombine.low %v1257_v5, %v1261_v51 }
 0x343   : > { %7697 = vmatprep.subr.bf16.mxu0 %v10190_v11  ;;  %v1253_v1 = vld [vmem:[%s11119_s17 + $0x1830] sm:$0xff] }
 0x344   : > { %7739 = vmatpush1.bf16.msra.mxu1 %v10325_v7  ;;  %v1377_v2 = vld [vmem:[%s11119_s17 + $0x1c10] sm:$0xff]  ;;  %v10293_v7 = vcombine.low %v1385_v61, %v1389_v52  ;;  %v10158_v11 = vcombine.high %v1249_v10, %v1253_v1 }
 0x345   : > { %7740 = vmatprep.subr.bf16.mxu1 %v10318_v13  ;;  %v1381_v46 = vld [vmem:[%s11119_s17 + $0x1c30] sm:$0xff] }
 0x346   : > { %7698 = vmatpush1.bf16.msra.mxu0 %v10189_v18  ;;  %v10286_v13 = vcombine.high %v1377_v2, %v1381_v46  ;;  %v1369_v14 = vld [vmem:[%s11119_s17 + $0x1bd0] sm:$0xff]  ;;  %v10157_v18 = vcombine.low %v1249_v10, %v1253_v1 }
 0x347   : > { %7699 = vmatprep.subr.bf16.mxu0 %v10182_v47  ;;  %v1373_v15 = vld [vmem:[%s11119_s17 + $0x1bf0] sm:$0xff] }
 0x348   : > { %7741 = vmatpush1.bf16.msra.mxu1 %v10317_v20  ;;  %v1497_v17 = vld [vmem:[%s11119_s17 + $0x1fd0] sm:$0xff]  ;;  %v10285_v20 = vcombine.low %v1377_v2, %v1381_v46  ;;  %v10278_v47 = vcombine.high %v1369_v14, %v1373_v15 }
 0x349   : > { %7742 = vmatprep.subr.bf16.mxu1 %v10310_v29  ;;  %v1501_v53 = vld [vmem:[%s11119_s17 + $0x1ff0] sm:$0xff] }
 0x34a   : > { %7700 = vmatpush1.bf16.msra.mxu0 %v10181_v42  ;;  %v10406_v29 = vcombine.high %v1497_v17, %v1501_v53  ;;  %v1361_v24 = vld [vmem:[%s11119_s17 + $0x1b90] sm:$0xff]  ;;  %v10277_v42 = vcombine.low %v1369_v14, %v1373_v15 }
 0x34b   : > { %7701 = vmatprep.subr.bf16.mxu0 %v10174_v44  ;;  %v1365_v38 = vld [vmem:[%s11119_s17 + $0x1bb0] sm:$0xff] }
 0x34c   : > { %7743 = vmatpush1.bf16.msra.mxu1 %v10309_v39  ;;  %v1489_v40 = vld [vmem:[%s11119_s17 + $0x1f90] sm:$0xff]  ;;  %v10405_v39 = vcombine.low %v1497_v17, %v1501_v53  ;;  %v10270_v44 = vcombine.high %v1361_v24, %v1365_v38 }
 0x34d   : > { %7744 = vmatprep.subr.bf16.mxu1 %v10302_v55  ;;  %v1493_v41 = vld [vmem:[%s11119_s17 + $0x1fb0] sm:$0xff] }
 0x34e   : > { %7702 = vmatpush1.bf16.msra.mxu0 %v10173_v36  ;;  %v10398_v55 = vcombine.high %v1489_v40, %v1493_v41  ;;  %v1353_v5 = vld [vmem:[%s11119_s17 + $0x1b50] sm:$0xff]  ;;  %v10269_v36 = vcombine.low %v1361_v24, %v1365_v38 }
 0x34f   : > { %7703 = vmatprep.subr.bf16.mxu0 %v10166_v34  ;;  %v1357_v51 = vld [vmem:[%s11119_s17 + $0x1b70] sm:$0xff] }
 0x350   : > { %7745 = vmatpush1.bf16.msra.mxu1 %v10301_v0  ;;  %v1481_v61 = vld [vmem:[%s11119_s17 + $0x1f50] sm:$0xff]  ;;  %v10397_v0 = vcombine.low %v1489_v40, %v1493_v41  ;;  %v10262_v34 = vcombine.high %v1353_v5, %v1357_v51 }
 0x351   : > { %7746 = vmatprep.subr.bf16.mxu1 %v10294_v30  ;;  %v1485_v52 = vld [vmem:[%s11119_s17 + $0x1f70] sm:$0xff] }
 0x352   : > { %7704 = vmatpush1.bf16.msra.mxu0 %v10165_v4  ;;  %v10390_v30 = vcombine.high %v1481_v61, %v1485_v52  ;;  %v1345_v10 = vld [vmem:[%s11119_s17 + $0x1b10] sm:$0xff]  ;;  %v10261_v4 = vcombine.low %v1353_v5, %v1357_v51 }
 0x353   : > { %7705 = vmatprep.subr.bf16.mxu0 %v10158_v11  ;;  %v1349_v1 = vld [vmem:[%s11119_s17 + $0x1b30] sm:$0xff] }
 0x354   : > { %7747 = vmatpush1.bf16.msra.mxu1 %v10293_v7  ;;  %v1473_v2 = vld [vmem:[%s11119_s17 + $0x1f10] sm:$0xff]  ;;  %v10389_v7 = vcombine.low %v1481_v61, %v1485_v52  ;;  %v10254_v11 = vcombine.high %v1345_v10, %v1349_v1 }
 0x355   : > { %7748 = vmatprep.subr.bf16.mxu1 %v10286_v13  ;;  %v1477_v46 = vld [vmem:[%s11119_s17 + $0x1f30] sm:$0xff] }
 0x356   : > { %7706 = vmatpush1.bf16.msra.mxu0 %v10157_v18  ;;  %v10382_v13 = vcombine.high %v1473_v2, %v1477_v46  ;;  %v1337_v14 = vld [vmem:[%s11119_s17 + $0x1ad0] sm:$0xff]  ;;  %v10253_v18 = vcombine.low %v1345_v10, %v1349_v1 }
 0x357   : > { %7707 = vmatprep.subr.bf16.mxu0 %v10278_v47  ;;  %v1341_v15 = vld [vmem:[%s11119_s17 + $0x1af0] sm:$0xff] }
 0x358   : > { %7749 = vmatpush1.bf16.msra.mxu1 %v10285_v20  ;;  %v1465_v17 = vld [vmem:[%s11119_s17 + $0x1ed0] sm:$0xff]  ;;  %v10381_v20 = vcombine.low %v1473_v2, %v1477_v46  ;;  %v10246_v47 = vcombine.high %v1337_v14, %v1341_v15 }
 0x359   : > { %7750 = vmatprep.subr.bf16.mxu1 %v10406_v29  ;;  %v1469_v53 = vld [vmem:[%s11119_s17 + $0x1ef0] sm:$0xff] }
 0x35a   : > { %7708 = vmatpush2.bf16.msra.mxu0 %v10277_v42  ;;  %v10374_v29 = vcombine.high %v1465_v17, %v1469_v53  ;;  %v1329_v24 = vld [vmem:[%s11119_s17 + $0x1a90] sm:$0xff]  ;;  %v10245_v42 = vcombine.low %v1337_v14, %v1341_v15  ;;  %v538_v14 = vld [vmem:[%s11119_s17 + $0x1d8] sm:$0xff] }
 0x35b   : > { %7709 = vmatprep.subr.bf16.mxu0 %v10270_v44  ;;  %v1333_v38 = vld [vmem:[%s11119_s17 + $0x1ab0] sm:$0xff]  ;;  %v542_v15 = vld [vmem:[%s11119_s17 + $0x1f8] sm:$0xff] }
 0x35c   : > { %7751 = vmatpush2.bf16.msra.mxu1 %v10405_v39  ;;  %v1457_v40 = vld [vmem:[%s11119_s17 + $0x1e90] sm:$0xff]  ;;  %v10373_v39 = vcombine.low %v1465_v17, %v1469_v53  ;;  %v10238_v44 = vcombine.high %v1329_v24, %v1333_v38  ;;  %v666_v17 = vld [vmem:[%s11119_s17 + $0x5d8] sm:$0xff] }
 0x35d   : > { %7752 = vmatprep.subr.bf16.mxu1 %v10398_v55  ;;  %v1461_v41 = vld [vmem:[%s11119_s17 + $0x1eb0] sm:$0xff]  ;;  %v670_v53 = vld [vmem:[%s11119_s17 + $0x5f8] sm:$0xff] }
 0x35e   : > { %7710 = vmatpush2.bf16.msra.mxu0 %v10269_v36  ;;  %v10366_v55 = vcombine.high %v1457_v40, %v1461_v41  ;;  %v1321_v5 = vld [vmem:[%s11119_s17 + $0x1a50] sm:$0xff]  ;;  %v10237_v36 = vcombine.low %v1329_v24, %v1333_v38  ;;  %v530_v24 = vld [vmem:[%s11119_s17 + $0x198] sm:$0xff] }
 0x35f   : > { %7711 = vmatprep.subr.bf16.mxu0 %v10262_v34  ;;  %v1325_v51 = vld [vmem:[%s11119_s17 + $0x1a70] sm:$0xff]  ;;  %v534_v38 = vld [vmem:[%s11119_s17 + $0x1b8] sm:$0xff] }
 0x360   : > { %7753 = vmatpush2.bf16.msra.mxu1 %v10397_v0  ;;  %v1449_v61 = vld [vmem:[%s11119_s17 + $0x1e50] sm:$0xff]  ;;  %v10365_v0 = vcombine.low %v1457_v40, %v1461_v41  ;;  %v10230_v34 = vcombine.high %v1321_v5, %v1325_v51  ;;  %v658_v40 = vld [vmem:[%s11119_s17 + $0x598] sm:$0xff] }
 0x361   : > { %7754 = vmatprep.subr.bf16.mxu1 %v10390_v30  ;;  %v1453_v52 = vld [vmem:[%s11119_s17 + $0x1e70] sm:$0xff]  ;;  %v662_v41 = vld [vmem:[%s11119_s17 + $0x5b8] sm:$0xff] }
 0x362   : > { %7712 = vmatpush2.bf16.msra.mxu0 %v10261_v4  ;;  %v10358_v30 = vcombine.high %v1449_v61, %v1453_v52  ;;  %v1313_v10 = vld [vmem:[%s11119_s17 + $0x1a10] sm:$0xff]  ;;  %v10229_v4 = vcombine.low %v1321_v5, %v1325_v51  ;;  %v522_v5 = vld [vmem:[%s11119_s17 + $0x158] sm:$0xff] }
 0x363   : > { %7713 = vmatprep.subr.bf16.mxu0 %v10254_v11  ;;  %v1317_v1 = vld [vmem:[%s11119_s17 + $0x1a30] sm:$0xff]  ;;  %v526_v51 = vld [vmem:[%s11119_s17 + $0x178] sm:$0xff] }
 0x364   : > { %7755 = vmatpush2.bf16.msra.mxu1 %v10389_v7  ;;  %v1441_v2 = vld [vmem:[%s11119_s17 + $0x1e10] sm:$0xff]  ;;  %v10357_v7 = vcombine.low %v1449_v61, %v1453_v52  ;;  %v10222_v11 = vcombine.high %v1313_v10, %v1317_v1  ;;  %v650_v61 = vld [vmem:[%s11119_s17 + $0x558] sm:$0xff] }
 0x365   : > { %7756 = vmatprep.subr.bf16.mxu1 %v10382_v13  ;;  %v1445_v46 = vld [vmem:[%s11119_s17 + $0x1e30] sm:$0xff]  ;;  %v654_v52 = vld [vmem:[%s11119_s17 + $0x578] sm:$0xff] }
 0x366   : > { %7714 = vmatpush2.bf16.msra.mxu0 %v10253_v18  ;;  %v10350_v13 = vcombine.high %v1441_v2, %v1445_v46  ;;  %v10221_v18 = vcombine.low %v1313_v10, %v1317_v1  ;;  %v514_v10 = vld [vmem:[%s11119_s17 + $0x118] sm:$0xff] }
 0x367   : > { %7715 = vmatprep.subr.bf16.mxu0 %v10246_v47  ;;  %v9448_v47 = vcombine.high %v538_v14, %v542_v15  ;;  %v518_v1 = vld [vmem:[%s11119_s17 + $0x138] sm:$0xff] }
 0x368   : > { %7757 = vmatpush2.bf16.msra.mxu1 %v10381_v20  ;;  %v10349_v20 = vcombine.low %v1441_v2, %v1445_v46  ;;  %v642_v2 = vld [vmem:[%s11119_s17 + $0x518] sm:$0xff] }
 0x369   : > { %7758 = vmatprep.subr.bf16.mxu1 %v10374_v29  ;;  %v9576_v29 = vcombine.high %v666_v17, %v670_v53  ;;  %v646_v46 = vld [vmem:[%s11119_s17 + $0x538] sm:$0xff] }
 0x36a   : > { %7716 = vmatpush2.bf16.msra.mxu0 %v10245_v42  ;;  %v9447_v42 = vcombine.low %v538_v14, %v542_v15  ;;  %v506_v14 = vld [vmem:[%s11119_s17 + $0xd8] sm:$0xff] }
 0x36b   : > { %7717 = vmatprep.subr.bf16.mxu0 %v10238_v44  ;;  %v9440_v44 = vcombine.high %v530_v24, %v534_v38  ;;  %v510_v15 = vld [vmem:[%s11119_s17 + $0xf8] sm:$0xff] }
 0x36c   : > { %7759 = vmatpush2.bf16.msra.mxu1 %v10373_v39  ;;  %v9575_v39 = vcombine.low %v666_v17, %v670_v53  ;;  %v634_v17 = vld [vmem:[%s11119_s17 + $0x4d8] sm:$0xff] }
 0x36d   : > { %7760 = vmatprep.subr.bf16.mxu1 %v10366_v55  ;;  %v9568_v55 = vcombine.high %v658_v40, %v662_v41  ;;  %v638_v53 = vld [vmem:[%s11119_s17 + $0x4f8] sm:$0xff] }
 0x36e   : > { %7718 = vmatpush2.bf16.msra.mxu0 %v10237_v36  ;;  %v9439_v36 = vcombine.low %v530_v24, %v534_v38  ;;  %v626_v24 = vld [vmem:[%s11119_s17 + $0x498] sm:$0xff] }
 0x36f   : > { %7719 = vmatprep.subr.bf16.mxu0 %v10230_v34  ;;  %v9432_v34 = vcombine.high %v522_v5, %v526_v51  ;;  %v630_v38 = vld [vmem:[%s11119_s17 + $0x4b8] sm:$0xff] }
 0x370   : > { %7761 = vmatpush2.bf16.msra.mxu1 %v10365_v0  ;;  %v9567_v0 = vcombine.low %v658_v40, %v662_v41  ;;  %v9415_v40 = vcombine.low %v506_v14, %v510_v15  ;;  %v9543_v41 = vcombine.low %v634_v17, %v638_v53 }
 0x371   : > { %7762 = vmatprep.subr.bf16.mxu1 %v10358_v30  ;;  %v9560_v30 = vcombine.high %v650_v61, %v654_v52 }
 0x372   : > { %7720 = vmatpush2.bf16.msra.mxu0 %v10229_v4  ;;  %v9431_v4 = vcombine.low %v522_v5, %v526_v51  ;;  %v618_v5 = vld [vmem:[%s11119_s17 + $0x458] sm:$0xff] }
 0x373   : > { %7721 = vmatprep.subr.bf16.mxu0 %v10222_v11  ;;  %v9424_v11 = vcombine.high %v514_v10, %v518_v1  ;;  %v622_v51 = vld [vmem:[%s11119_s17 + $0x478] sm:$0xff] }
 0x374   : > { %7763 = vmatpush2.bf16.msra.mxu1 %v10357_v7  ;;  %v9559_v7 = vcombine.low %v650_v61, %v654_v52  ;;  %v9535_v52 = vcombine.low %v626_v24, %v630_v38 }
 0x375   : > { %7764 = vmatprep.subr.bf16.mxu1 %v10350_v13  ;;  %v9552_v13 = vcombine.high %v642_v2, %v646_v46 }
 0x376   : > { %7722 = vmatpush2.bf16.msra.mxu0 %v10221_v18  ;;  %v9416_v18 = vcombine.high %v506_v14, %v510_v15  ;;  %v730_v14 = vld [vmem:[%s11119_s17 + $0x7d8] sm:$0xff] }
 0x377   : > { %7777 = vmatprep.subr.bf16.mxu0 %v9448_v47  ;;  %v498_v47 = vld [vmem:[%s11119_s17 + $0x98] sm:$0xff] }
 0x378   : > { %7765 = vmatpush2.bf16.msra.mxu1 %v10349_v20  ;;  %v9544_v20 = vcombine.high %v634_v17, %v638_v53  ;;  %v734_v15 = vld [vmem:[%s11119_s17 + $0x7f8] sm:$0xff] }
 0x379   : > { %7820 = vmatprep.subr.bf16.mxu1 %v9576_v29  ;;  %7724 = vmatmul.mubr.bf16.vlgmr.msra.gmra.mxu0 %v11563_v12  ;;  %v502_v29 = vld [vmem:[%s11119_s17 + $0xb8] sm:$0xff] }
 0x37a   : > { %7778 = vmatpush1.bf16.msra.mxu0 %v9447_v42  ;;  %7809 = vmatprep.mubr.bf16.mxu0 %v11185_v58  ;;  %v9423_v58 = vcombine.low %v514_v10, %v518_v1  ;;  %v9408_v42 = vcombine.high %v498_v47, %v502_v29  ;;  %v9407_v61 = vcombine.low %v498_v47, %v502_v29  ;;  %v610_v10 = vld [vmem:[%s11119_s17 + $0x418] sm:$0xff] }
 0x37b   : > { %7767 = vmatmul.mubr.bf16.vlgmr.msra.gmra.mxu1 %v11570_v16  ;;  %7779 = vmatprep.subr.bf16.mxu0 %v9440_v44  ;;  %v490_v44 = vld [vmem:[%s11119_s17 + $0x58] sm:$0xff]  ;;  %v12343_v16 = vld [vmem:[%s11131_s6] sm:$0xff] }
 0x37c   : > { %7821 = vmatpush1.bf16.msra.mxu1 %v9575_v39  ;;  %7852 = vmatprep.mubr.bf16.mxu1 %v11201_v63  ;;  %v9551_v63 = vcombine.low %v642_v2, %v646_v46  ;;  %v9536_v39 = vcombine.high %v626_v24, %v630_v38  ;;  %v614_v1 = vld [vmem:[%s11119_s17 + $0x438] sm:$0xff]  ;;  %v9527_v46 = vcombine.low %v618_v5, %v622_v51 }
 0x37d   : > { %7822 = vmatprep.subr.bf16.mxu1 %v9568_v55  ;;  %v494_v55 = vld [vmem:[%s11119_s17 + $0x78] sm:$0xff]  ;;  %v9519_v53 = vcombine.low %v610_v10, %v614_v1  ;;  %v9639_v38 = vcombine.low %v730_v14, %v734_v15 }
 0x37e   : > { %7780 = vmatpush1.bf16.msra.mxu0 %v9439_v36  ;;  %v9400_v36 = vcombine.high %v490_v44, %v494_v55  ;;  %v9399_v2 = vcombine.low %v490_v44, %v494_v55  ;;  %v722_v47 = vld [vmem:[%s11119_s17 + $0x798] sm:$0xff] }
 0x37f   : > { %7781 = vmatprep.subr.bf16.mxu0 %v9432_v34  ;;  %v482_v34 = vld [vmem:[%s11119_s17 + $0x18] sm:$0xff] }
 0x380   : > { %7823 = vmatpush1.bf16.msra.mxu1 %v9567_v0  ;;  %v9528_v0 = vcombine.high %v618_v5, %v622_v51  ;;  %v726_v29 = vld [vmem:[%s11119_s17 + $0x7b8] sm:$0xff] }
 0x381   : > { %7824 = vmatprep.subr.bf16.mxu1 %v9560_v30  ;;  %v486_v30 = vld [vmem:[%s11119_s17 + $0x38] sm:$0xff]  ;;  %v9631_v51 = vcombine.low %v722_v47, %v726_v29 }
 0x382   : > { %7782 = vmatpush1.bf16.msra.mxu0 %v9431_v4  ;;  %v9392_v4 = vcombine.high %v482_v34, %v486_v30  ;;  %v9391_v17 = vcombine.low %v482_v34, %v486_v30  ;;  %v714_v44 = vld [vmem:[%s11119_s17 + $0x758] sm:$0xff] }
 0x383   : > { %7783 = vmatprep.subr.bf16.mxu0 %v9424_v11  ;;  %v602_v11 = vld [vmem:[%s11119_s17 + $0x3d8] sm:$0xff] }
 0x384   : > { %7825 = vmatpush1.bf16.msra.mxu1 %v9559_v7  ;;  %v9520_v7 = vcombine.high %v610_v10, %v614_v1  ;;  %v718_v55 = vld [vmem:[%s11119_s17 + $0x778] sm:$0xff] }
 0x385   : > { %7826 = vmatprep.subr.bf16.mxu1 %v9552_v13  ;;  %v606_v13 = vld [vmem:[%s11119_s17 + $0x3f8] sm:$0xff]  ;;  %v9623_v1 = vcombine.low %v714_v44, %v718_v55 }
 0x386   : > { %7784 = vmatpush1.bf16.msra.mxu0 %v9423_v58  ;;  %v9512_v58 = vcombine.high %v602_v11, %v606_v13  ;;  %v9511_v24 = vcombine.low %v602_v11, %v606_v13  ;;  %v706_v34 = vld [vmem:[%s11119_s17 + $0x718] sm:$0xff] }
 0x387   : > { %7785 = vmatprep.subr.bf16.mxu0 %v9416_v18  ;;  %v594_v18 = vld [vmem:[%s11119_s17 + $0x398] sm:$0xff] }
 0x388   : > { %7827 = vmatpush1.bf16.msra.mxu1 %v9551_v63  ;;  %v9640_v63 = vcombine.high %v730_v14, %v734_v15  ;;  %v710_v30 = vld [vmem:[%s11119_s17 + $0x738] sm:$0xff] }
 0x389   : > { %7828 = vmatprep.subr.bf16.mxu1 %v9544_v20  ;;  %v598_v20 = vld [vmem:[%s11119_s17 + $0x3b8] sm:$0xff]  ;;  %v9615_v15 = vcombine.low %v706_v34, %v710_v30 }
 0x38a   : > { %7786 = vmatpush1.bf16.msra.mxu0 %v9415_v40  ;;  %v9504_v40 = vcombine.high %v594_v18, %v598_v20  ;;  %v9503_v5 = vcombine.low %v594_v18, %v598_v20  ;;  %v698_v11 = vld [vmem:[%s11119_s17 + $0x6d8] sm:$0xff] }
 0x38b   : > { %7787 = vmatprep.subr.bf16.mxu0 %v9408_v42  ;;  %v586_v42 = vld [vmem:[%s11119_s17 + $0x358] sm:$0xff] }
 0x38c   : > { %7829 = vmatpush1.bf16.msra.mxu1 %v9543_v41  ;;  %v9632_v41 = vcombine.high %v722_v47, %v726_v29  ;;  %v702_v13 = vld [vmem:[%s11119_s17 + $0x6f8] sm:$0xff] }
 0x38d   : > { %7830 = vmatprep.subr.bf16.mxu1 %v9536_v39  ;;  %v590_v39 = vld [vmem:[%s11119_s17 + $0x378] sm:$0xff]  ;;  %v9607_v29 = vcombine.low %v698_v11, %v702_v13 }
 0x38e   : > { %7788 = vmatpush1.bf16.msra.mxu0 %v9407_v61  ;;  %v9496_v61 = vcombine.high %v586_v42, %v590_v39  ;;  %v9495_v10 = vcombine.low %v586_v42, %v590_v39  ;;  %v690_v18 = vld [vmem:[%s11119_s17 + $0x698] sm:$0xff] }
 0x38f   : > { %7789 = vmatprep.subr.bf16.mxu0 %v9400_v36  ;;  %v578_v36 = vld [vmem:[%s11119_s17 + $0x318] sm:$0xff] }
 0x390   : > { %7831 = vmatpush1.bf16.msra.mxu1 %v9535_v52  ;;  %v9624_v52 = vcombine.high %v714_v44, %v718_v55  ;;  %v694_v20 = vld [vmem:[%s11119_s17 + $0x6b8] sm:$0xff] }
 0x391   : > { %7832 = vmatprep.subr.bf16.mxu1 %v9528_v0  ;;  %v582_v0 = vld [vmem:[%s11119_s17 + $0x338] sm:$0xff]  ;;  %v9599_v55 = vcombine.low %v690_v18, %v694_v20 }
 0x392   : > { %7790 = vmatpush1.bf16.msra.mxu0 %v9399_v2  ;;  %v9488_v2 = vcombine.high %v578_v36, %v582_v0  ;;  %v9487_v14 = vcombine.low %v578_v36, %v582_v0  ;;  %v682_v42 = vld [vmem:[%s11119_s17 + $0x658] sm:$0xff] }
 0x393   : > { %7791 = vmatprep.subr.bf16.mxu0 %v9392_v4  ;;  %v570_v4 = vld [vmem:[%s11119_s17 + $0x2d8] sm:$0xff] }
 0x394   : > { %7833 = vmatpush1.bf16.msra.mxu1 %v9527_v46  ;;  %v9616_v46 = vcombine.high %v706_v34, %v710_v30  ;;  %v686_v39 = vld [vmem:[%s11119_s17 + $0x678] sm:$0xff] }
 0x395   : > { %7834 = vmatprep.subr.bf16.mxu1 %v9520_v7  ;;  %v574_v7 = vld [vmem:[%s11119_s17 + $0x2f8] sm:$0xff]  ;;  %v9591_v30 = vcombine.low %v682_v42, %v686_v39 }
 0x396   : > { %7792 = vmatpush1.bf16.msra.mxu0 %v9391_v17  ;;  %v9480_v17 = vcombine.high %v570_v4, %v574_v7  ;;  %v9479_v47 = vcombine.low %v570_v4, %v574_v7  ;;  %v674_v36 = vld [vmem:[%s11119_s17 + $0x618] sm:$0xff] }
 0x397   : > { %7793 = vmatprep.subr.bf16.mxu0 %v9512_v58  ;;  %v562_v58 = vld [vmem:[%s11119_s17 + $0x298] sm:$0xff] }
 0x398   : > { %7835 = vmatpush1.bf16.msra.mxu1 %v9519_v53  ;;  %v9608_v53 = vcombine.high %v698_v11, %v702_v13  ;;  %v678_v0 = vld [vmem:[%s11119_s17 + $0x638] sm:$0xff] }
 0x399   : > { %7836 = vmatprep.subr.bf16.mxu1 %v9640_v63  ;;  %v566_v63 = vld [vmem:[%s11119_s17 + $0x2b8] sm:$0xff]  ;;  %v9583_v13 = vcombine.low %v674_v36, %v678_v0 }
 0x39a   : > { %7794 = vmatpush2.bf16.msra.mxu0 %v9511_v24  ;;  %v9472_v24 = vcombine.high %v562_v58, %v566_v63  ;;  %v9471_v44 = vcombine.low %v562_v58, %v566_v63  ;;  %v922_v4 = vld [vmem:[%s11119_s17 + $0xdd8] sm:$0xff] }
 0x39b   : > { %7795 = vmatprep.subr.bf16.mxu0 %v9504_v40  ;;  %v554_v40 = vld [vmem:[%s11119_s17 + $0x258] sm:$0xff] }
 0x39c   : > { %7837 = vmatpush2.bf16.msra.mxu1 %v9639_v38  ;;  %v9600_v38 = vcombine.high %v690_v18, %v694_v20  ;;  %v926_v7 = vld [vmem:[%s11119_s17 + $0xdf8] sm:$0xff] }
 0x39d   : > { %7838 = vmatprep.subr.bf16.mxu1 %v9632_v41  ;;  %v558_v41 = vld [vmem:[%s11119_s17 + $0x278] sm:$0xff]  ;;  %v9831_v20 = vcombine.low %v922_v4, %v926_v7 }
 0x39e   : > { %7796 = vmatpush2.bf16.msra.mxu0 %v9503_v5  ;;  %v9464_v5 = vcombine.high %v554_v40, %v558_v41  ;;  %v9463_v34 = vcombine.low %v554_v40, %v558_v41  ;;  %v914_v58 = vld [vmem:[%s11119_s17 + $0xd98] sm:$0xff] }
 0x39f   : > { %7797 = vmatprep.subr.bf16.mxu0 %v9496_v61  ;;  %v546_v61 = vld [vmem:[%s11119_s17 + $0x218] sm:$0xff] }
 0x3a0   : > { %7839 = vmatpush2.bf16.msra.mxu1 %v9631_v51  ;;  %v9592_v51 = vcombine.high %v682_v42, %v686_v39  ;;  %v918_v63 = vld [vmem:[%s11119_s17 + $0xdb8] sm:$0xff] }
 0x3a1   : > { %7840 = vmatprep.subr.bf16.mxu1 %v9624_v52  ;;  %v550_v52 = vld [vmem:[%s11119_s17 + $0x238] sm:$0xff]  ;;  %v9823_v39 = vcombine.low %v914_v58, %v918_v63 }
 0x3a2   : > { %7798 = vmatpush2.bf16.msra.mxu0 %v9495_v10  ;;  %v9456_v10 = vcombine.high %v546_v61, %v550_v52  ;;  %v9455_v11 = vcombine.low %v546_v61, %v550_v52  ;;  %v906_v40 = vld [vmem:[%s11119_s17 + $0xd58] sm:$0xff] }
 0x3a3   : > { %7799 = vmatprep.subr.bf16.mxu0 %v9488_v2  ;;  %v794_v2 = vld [vmem:[%s11119_s17 + $0x9d8] sm:$0xff] }
 0x3a4   : > { %7841 = vmatpush2.bf16.msra.mxu1 %v9623_v1  ;;  %v9584_v1 = vcombine.high %v674_v36, %v678_v0  ;;  %v910_v41 = vld [vmem:[%s11119_s17 + $0xd78] sm:$0xff]  ;;  %v12267_v0 = vpop.f32.mrf.mxu0 }
 0x3a5   : > { %7842 = vmatprep.subr.bf16.mxu1 %v9616_v46  ;;  %v798_v46 = vld [vmem:[%s11119_s17 + $0x9f8] sm:$0xff]  ;;  %v9815_v52 = vcombine.low %v906_v40, %v910_v41 }
 0x3a6   : > { %7800 = vmatpush2.bf16.msra.mxu0 %v9487_v14  ;;  %v9704_v14 = vcombine.high %v794_v2, %v798_v46  ;;  %v9703_v18 = vcombine.low %v794_v2, %v798_v46  ;;  %v902_v61 = vld [vmem:[%s11119_s17 + $0xd38] sm:$0xff]  ;;  %v12273_v2 = vpop.f32.mrf.mxu0 }
 0x3a7   : > { %7801 = vmatprep.subr.bf16.mxu0 %v9480_v17  ;;  %v786_v17 = vld [vmem:[%s11119_s17 + $0x998] sm:$0xff] }
 0x3a8   : > { %7843 = vmatpush2.bf16.msra.mxu1 %v9615_v15  ;;  %v9832_v15 = vcombine.high %v922_v4, %v926_v7 }
 0x3a9   : > { %7844 = vmatprep.subr.bf16.mxu1 %v9608_v53  ;;  %v790_v53 = vld [vmem:[%s11119_s17 + $0x9b8] sm:$0xff] }
 0x3aa   : > { %7802 = vmatpush2.bf16.msra.mxu0 %v9479_v47  ;;  %v9696_v47 = vcombine.high %v786_v17, %v790_v53  ;;  %v9695_v42 = vcombine.low %v786_v17, %v790_v53  ;;  %v12279_v17 = vpop.f32.mrf.mxu1  ;;  %v12281_v53 = vpop.f32.mrf.mxu0 }
 0x3ab   : > { %7803 = vmatprep.subr.bf16.mxu0 %v9472_v24  ;;  %v778_v24 = vld [vmem:[%s11119_s17 + $0x958] sm:$0xff] }
 0x3ac   : > { %7845 = vmatpush2.bf16.msra.mxu1 %v9607_v29  ;;  %v9824_v29 = vcombine.high %v914_v58, %v918_v63 }
 0x3ad   : > { %7846 = vmatprep.subr.bf16.mxu1 %v9600_v38  ;;  %v782_v38 = vld [vmem:[%s11119_s17 + $0x978] sm:$0xff] }
 0x3ae   : > { %7804 = vmatpush2.bf16.msra.mxu0 %v9471_v44  ;;  %v9688_v44 = vcombine.high %v778_v24, %v782_v38 }
 0x3af   : > { %7805 = vmatprep.subr.bf16.mxu0 %v9464_v5  ;;  %v770_v5 = vld [vmem:[%s11119_s17 + $0x918] sm:$0xff] }
 0x3b0   : > { %7847 = vmatpush2.bf16.msra.mxu1 %v9599_v55  ;;  %v9816_v55 = vcombine.high %v906_v40, %v910_v41  ;;  %v878_v40 = vld [vmem:[%s11119_s17 + $0xc78] sm:$0xff]  ;;  %v12289_v41 = vpop.f32.mrf.mxu0 }
 0x3b1   : > { %7848 = vmatprep.subr.bf16.mxu1 %v9592_v51  ;;  %v774_v51 = vld [vmem:[%s11119_s17 + $0x938] sm:$0xff] }
 0x3b2   : > { %7806 = vmatpush2.bf16.msra.mxu0 %v9463_v34  ;;  %v9680_v36 = vcombine.high %v770_v5, %v774_v51 }
 0x3b3   : > { %7807 = vmatprep.subr.bf16.mxu0 %v9456_v10  ;;  %v890_v10 = vld [vmem:[%s11119_s17 + $0xcd8] sm:$0xff] }
 0x3b4   : > { %7849 = vmatpush2.bf16.msra.mxu1 %v9591_v30  ;;  %v762_v30 = vld [vmem:[%s11119_s17 + $0x8d8] sm:$0xff] }
 0x3b5   : > { %7850 = vmatprep.subr.bf16.mxu1 %v9584_v1  ;;  %v894_v1 = vld [vmem:[%s11119_s17 + $0xcf8] sm:$0xff] }
 0x3b6   : > { %7808 = vmatpush2.bf16.msra.mxu0 %v9455_v11  ;;  %v9800_v7 = vcombine.high %v890_v10, %v894_v1  ;;  %v754_v11 = vld [vmem:[%s11119_s17 + $0x898] sm:$0xff]  ;;  %v9799_v63 = vcombine.low %v890_v10, %v894_v1 }
 0x3b7   : > { %7863 = vmatprep.subr.bf16.mxu0 %v9704_v14  ;;  %v882_v14 = vld [vmem:[%s11119_s17 + $0xc98] sm:$0xff] }
 0x3b8   : > { %7851 = vmatpush2.bf16.msra.mxu1 %v9583_v13  ;;  %v758_v13 = vld [vmem:[%s11119_s17 + $0x8b8] sm:$0xff] }
 0x3b9   : > { %7906 = vmatprep.subr.bf16.mxu1 %v9832_v15  ;;  %7810 = vmatmul.mubr.bf16.vlgmr.msra.gmra.mxu0 %v11246_v21  ;;  %v898_v21 = vld [vmem:[%s11119_s17 + $0xd18] sm:$0xff] }
 0x3ba   : > { %7864 = vmatpush1.bf16.msra.mxu0 %v9703_v18  ;;  %7895 = vmatprep.mubr.bf16.mxu0 %v11277_v60  ;;  %v9808_v34 = vcombine.high %v898_v21, %v902_v61  ;;  %v766_v60 = vld [vmem:[%s11119_s17 + $0x8f8] sm:$0xff]  ;;  %v9807_v46 = vcombine.low %v898_v21, %v902_v61  ;;  %v9664_v18 = vcombine.high %v754_v11, %v758_v13 }
 0x3bb   : > { %7853 = vmatmul.mubr.bf16.vlgmr.msra.gmra.mxu1 %v11261_v25  ;;  %7865 = vmatprep.subr.bf16.mxu0 %v9696_v47  ;;  %v9687_v25 = vcombine.low %v778_v24, %v782_v38  ;;  %v9672_v4 = vcombine.high %v762_v30, %v766_v60  ;;  %v886_v15 = vld [vmem:[%s11119_s17 + $0xcb8] sm:$0xff]  ;;  %v9671_v58 = vcombine.low %v762_v30, %v766_v60 }
 0x3bc   : > { %7907 = vmatpush1.bf16.msra.mxu1 %v9831_v20  ;;  %7938 = vmatprep.mubr.bf16.mxu1 %v11284_v33  ;;  %v9679_v33 = vcombine.low %v770_v5, %v774_v51  ;;  %v12283_v20 = vpop.f32.mrf.mxu1  ;;  %v9792_v47 = vcombine.high %v882_v14, %v886_v15  ;;  %v750_v24 = vld [vmem:[%s11119_s17 + $0x878] sm:$0xff] }
 0x3bd   : > { %7908 = vmatprep.subr.bf16.mxu1 %v9824_v29  ;;  %v746_v29 = vld [vmem:[%s11119_s17 + $0x858] sm:$0xff] }
 0x3be   : > { %7866 = vmatpush1.bf16.msra.mxu0 %v9695_v42  ;;  %v874_v38 = vld [vmem:[%s11119_s17 + $0xc58] sm:$0xff]  ;;  %v9663_v42 = vcombine.low %v754_v11, %v758_v13 }
 0x3bf   : > { %7867 = vmatprep.subr.bf16.mxu0 %v9688_v44  ;;  %v9656_v44 = vcombine.high %v746_v29, %v750_v24  ;;  %v9784_v5 = vcombine.high %v874_v38, %v878_v40  ;;  %v738_v51 = vld [vmem:[%s11119_s17 + $0x818] sm:$0xff] }
 0x3c0   : > { %7909 = vmatpush1.bf16.msra.mxu1 %v9823_v39  ;;  %v9791_v39 = vcombine.low %v882_v14, %v886_v15  ;;  %v742_v21 = vld [vmem:[%s11119_s17 + $0x838] sm:$0xff] }
 0x3c1   : > { %7910 = vmatprep.subr.bf16.mxu1 %v9816_v55  ;;  %v12291_v55 = vpop.f32.mrf.mxu1  ;;  %v866_v61 = vld [vmem:[%s11119_s17 + $0xc18] sm:$0xff]  ;;  %v9648_v30 = vcombine.high %v738_v51, %v742_v21  ;;  %v9647_v11 = vcombine.low %v738_v51, %v742_v21 }
 0x3c2   : > { %7868 = vmatpush1.bf16.msra.mxu0 %v9687_v25  ;;  %v870_v25 = vld [vmem:[%s11119_s17 + $0xc38] sm:$0xff] }
 0x3c3   : > { %7869 = vmatprep.subr.bf16.mxu0 %v9680_v36  ;;  %v9655_v36 = vcombine.low %v746_v29, %v750_v24  ;;  %v12299_v60 = vpop.f32.mrf.mxu1  ;;  %v9776_v1 = vcombine.high %v866_v61, %v870_v25  ;;  %v9775_v13 = vcombine.low %v866_v61, %v870_v25  ;;  %v978_v29 = vld [vmem:[%s11119_s17 + $0xf98] sm:$0xff] }
 0x3c4   : > { %7911 = vmatpush1.bf16.msra.mxu1 %v9815_v52  ;;  %v12297_v52 = vpop.f32.mrf.mxu0  ;;  %v982_v24 = vld [vmem:[%s11119_s17 + $0xfb8] sm:$0xff] }
 0x3c5   : > { %7912 = vmatprep.subr.bf16.mxu1 %v9808_v34  ;;  %v9783_v34 = vcombine.low %v874_v38, %v878_v40  ;;  %v12307_v15 = vpop.f32.mrf.mxu1  ;;  %v842_v51 = vld [vmem:[%s11119_s17 + $0xb58] sm:$0xff] }
 0x3c6   : > { %7870 = vmatpush1.bf16.msra.mxu0 %v9679_v33  ;;  %v12301_v10 = vpop.f32.mrf.mxu0  ;;  %v858_v33 = vld [vmem:[%s11119_s17 + $0xbd8] sm:$0xff] }
 0x3c7   : > { %7871 = vmatprep.subr.bf16.mxu0 %v9672_v4  ;;  %v986_v4 = vld [vmem:[%s11119_s17 + $0xfd8] sm:$0xff]  ;;  %v12315_v38 = vpop.f32.mrf.mxu1 }
 0x3c8   : > { %7913 = vmatpush1.bf16.msra.mxu1 %v9807_v46  ;;  %v862_v46 = vld [vmem:[%s11119_s17 + $0xbf8] sm:$0xff]  ;;  %12936 = vst [vmem:[#allocation23_spill] sm:$0xff] %v12315_v38 }
 0x3c9   : > { %7914 = vmatprep.subr.bf16.mxu1 %v9800_v7  ;;  %v990_v7 = vld [vmem:[%s11119_s17 + $0xff8] sm:$0xff]  ;;  %v9768_v14 = vcombine.high %v858_v33, %v862_v46  ;;  %v9767_v40 = vcombine.low %v858_v33, %v862_v46 }
 0x3ca   : > { %7872 = vmatpush1.bf16.msra.mxu0 %v9671_v58  ;;  %v12309_v58 = vpop.f32.mrf.mxu0  ;;  %v846_v21 = vld [vmem:[%s11119_s17 + $0xb78] sm:$0xff] }
 0x3cb   : > { %7873 = vmatprep.subr.bf16.mxu0 %v9664_v18  ;;  %v850_v18 = vld [vmem:[%s11119_s17 + $0xb98] sm:$0xff] }
 0x3cc   : > { %7915 = vmatpush1.bf16.msra.mxu1 %v9799_v63  ;;  %v9896_v63 = vcombine.high %v986_v4, %v990_v7  ;;  %v970_v61 = vld [vmem:[%s11119_s17 + $0xf58] sm:$0xff] }
 0x3cd   : > { %7916 = vmatprep.subr.bf16.mxu1 %v9792_v47  ;;  %v854_v47 = vld [vmem:[%s11119_s17 + $0xbb8] sm:$0xff] }
 0x3ce   : > { %7874 = vmatpush1.bf16.msra.mxu0 %v9663_v42  ;;  %v9895_v42 = vcombine.low %v986_v4, %v990_v7  ;;  %v974_v25 = vld [vmem:[%s11119_s17 + $0xf78] sm:$0xff] }
 0x3cf   : > { %7875 = vmatprep.subr.bf16.mxu0 %v9656_v44  ;;  %v12317_v44 = vpop.f32.mrf.mxu0  ;;  %v9880_v46 = vcombine.high %v970_v61, %v974_v25  ;;  %v834_v4 = vld [vmem:[%s11119_s17 + $0xb18] sm:$0xff] }
 0x3d0   : > { %7917 = vmatpush1.bf16.msra.mxu1 %v9791_v39  ;;  %v9760_v39 = vcombine.high %v850_v18, %v854_v47  ;;  %v838_v7 = vld [vmem:[%s11119_s17 + $0xb38] sm:$0xff] }
 0x3d1   : > { %7918 = vmatprep.subr.bf16.mxu1 %v9784_v5  ;;  %v9888_v5 = vcombine.high %v978_v29, %v982_v24  ;;  %v12325_v33 = vpop.f32.mrf.mxu0  ;;  %v934_v38 = vld [vmem:[%s11119_s17 + $0xe38] sm:$0xff] }
 0x3d2   : > { %7876 = vmatpush1.bf16.msra.mxu0 %v9655_v36  ;;  %v12323_v36 = vpop.f32.mrf.mxu1 }
 0x3d3   : > { %7877 = vmatprep.subr.bf16.mxu0 %v9648_v30  ;;  %v9887_v30 = vcombine.low %v978_v29, %v982_v24  ;;  %v9879_v29 = vcombine.low %v970_v61, %v974_v25  ;;  %v9744_v24 = vcombine.high %v834_v4, %v838_v7  ;;  %v12352_v61 = vsub.s32 3, %v11549_v56 }
 0x3d4   : > { %7919 = vmatpush1.bf16.msra.mxu1 %v9783_v34  ;;  %v9759_v34 = vcombine.low %v850_v18, %v854_v47  ;;  %v12336_v18 = vpop.f32.mrf.mxu0  ;;  %v9751_v47 = vcombine.low %v842_v51, %v846_v21 }
 0x3d5   : > { %7920 = vmatprep.subr.bf16.mxu1 %v9776_v1  ;;  %v9752_v1 = vcombine.high %v842_v51, %v846_v21  ;;  %12938 = vst [vmem:[#allocation25_spill] sm:$0xff] %v12336_v18  ;;  %v9743_v21 = vcombine.low %v834_v4, %v838_v7  ;;  %12939 = vst [vmem:[#allocation26_spill] sm:$0xff] %v12352_v61  ;;  %v814_v18 = vld [vmem:[%s11119_s17 + $0xa78] sm:$0xff] }
 0x3d6   : > { %7878 = vmatpush1.bf16.msra.mxu0 %v9647_v11  ;;  %v962_v11 = vld [vmem:[%s11119_s17 + $0xf18] sm:$0xff]  ;;  %v12349_v51 = vpop.f32.mrf.mxu0 }
 0x3d7   : > { %7879 = vmatprep.subr.bf16.mxu0 %v9768_v14  ;;  %v12332_v14 = vsub.s32 1, %v11549_v56 }
 0x3d8   : > { %7921 = vmatpush1.bf16.msra.mxu1 %v9775_v13  ;;  %v966_v13 = vld [vmem:[%s11119_s17 + $0xf38] sm:$0xff]  ;;  %v12361_v4 = vpop.f32.mrf.mxu0 }
 0x3d9   : > { %7922 = vmatprep.subr.bf16.mxu1 %v9896_v63  ;;  %12937 = vst [vmem:[#allocation24_spill] sm:$0xff] %v12332_v14  ;;  %v12334_v63 = vpop.f32.mrf.mxu1  ;;  %v1512_v12 = vrot.slane %v12343_v16, %v12332_v14  ;;  %v9871_v25 = vcombine.low %v962_v11, %v966_v13 }
 0x3da   : > { %7880 = vmatpush2.bf16.msra.mxu0 %v9767_v40  ;;  %v9872_v40 = vcombine.high %v962_v11, %v966_v13  ;;  %v1520_v11 = vrot.slane %v12343_v16, %v12352_v61  ;;  %v9728_v13 = vcombine.high %v818_v35, %v822_v50  ;;  %v806_v61 = vld [vmem:[%s11119_s17 + $0xa38] sm:$0xff] }
 0x3db   : > { %7881 = vmatprep.subr.bf16.mxu0 %v9760_v39  ;;  %v830_v39 = vld [vmem:[%s11119_s17 + $0xaf8] sm:$0xff] }
 0x3dc   : > { %7923 = vmatpush2.bf16.msra.mxu1 %v9895_v42  ;;  %v826_v42 = vld [vmem:[%s11119_s17 + $0xad8] sm:$0xff] }
 0x3dd   : > { %7924 = vmatprep.subr.bf16.mxu1 %v9888_v5  ;;  %v954_v5 = vld [vmem:[%s11119_s17 + $0xed8] sm:$0xff]  ;;  %v9735_v7 = vcombine.low %v826_v42, %v830_v39 }
 0x3de   : > { %7882 = vmatpush2.bf16.msra.mxu0 %v9759_v34  ;;  %v12347_v34 = vpop.f32.mrf.mxu1  ;;  %v9864_v14 = vcombine.high %v954_v5, %v958_v43 }
 0x3df   : > { %7883 = vmatprep.subr.bf16.mxu0 %v9752_v1  ;;  %v6786_v1 = vadd.f32 %v11648_v31, %v1512_v12  ;;  %v9863_v31 = vcombine.low %v954_v5, %v958_v43  ;;  %v7301_v43 = vpop.f32.mrf.mxu0 }
 0x3e0   : > { %7925 = vmatpush2.bf16.msra.mxu1 %v9887_v30  ;;  %v9736_v30 = vcombine.high %v826_v42, %v830_v39  ;;  %v938_v42 = vld [vmem:[%s11119_s17 + $0xe58] sm:$0xff] }
 0x3e1   : > { %7926 = vmatprep.subr.bf16.mxu1 %v9880_v46  ;;  %v12355_v46 = vpop.f32.mrf.mxu1  ;;  %v942_v39 = vld [vmem:[%s11119_s17 + $0xe78] sm:$0xff] }
 0x3e2   : > { %7884 = vmatpush2.bf16.msra.mxu0 %v9751_v47  ;;  %12940 = vst [vmem:[#allocation27_spill] sm:$0xff] %v12355_v46  ;;  %v950_v47 = vld [vmem:[%s11119_s17 + $0xeb8] sm:$0xff] }
 0x3e3   : > { %7885 = vmatprep.subr.bf16.mxu0 %v9744_v24  ;;  %v6829_v24 = vadd.f32 %v11650_v32, %v6786_v1  ;;  %v9856_v19 = vcombine.high %v946_v27, %v950_v47  ;;  %v810_v46 = vld [vmem:[%s11119_s17 + $0xa58] sm:$0xff] }
 0x3e4   : > { %7927 = vmatpush2.bf16.msra.mxu1 %v9879_v29  ;;  %v6782_v29 = vadd.f32 %v11578_v28, %v1512_v12  ;;  %v9727_v12 = vcombine.low %v818_v35, %v822_v50  ;;  %v9855_v28 = vcombine.low %v946_v27, %v950_v47  ;;  %v9720_v32 = vcombine.high %v810_v46, %v814_v18  ;;  %v802_v1 = vld [vmem:[%s11119_s17 + $0xa18] sm:$0xff] }
 0x3e5   : > { %7928 = vmatprep.subr.bf16.mxu1 %v9872_v40  ;;  %v12367_v40 = vpop.f32.mrf.mxu1  ;;  %v7126_v35 = vadd.f32 %v12281_v53, %v1520_v11  ;;  %v9847_v47 = vcombine.low %v938_v42, %v942_v39  ;;  %v1182_v53 = vld [vmem:[%s11119_s17 + $0x15f8] sm:$0xff] }
 0x3e6   : > { %7886 = vmatpush2.bf16.msra.mxu0 %v9743_v21  ;;  %v7130_v21 = vadd.f32 %v12297_v52, %v1520_v11  ;;  %v12378_v52 = vpop.f32.mrf.mxu0 }
 0x3e7   : > { %7887 = vmatprep.subr.bf16.mxu0 %v9736_v30  ;;  %v12376_v5 = vpop.f32.mrf.mxu1  ;;  %v9848_v30 = vcombine.high %v938_v42, %v942_v39 }
 0x3e8   : > { %7929 = vmatpush2.bf16.msra.mxu1 %v9871_v25  ;;  %v6872_v25 = vadd.f32 %v11730_v6, %v6829_v24  ;;  %v7173_v6 = vadd.f32 %v12307_v15, %v7130_v21  ;;  %v930_v24 = vld [vmem:[%s11119_s17 + $0xe18] sm:$0xff]  ;;  %v9712_v15 = vcombine.high %v802_v1, %v806_v61 }
 0x3e9   : > { %7930 = vmatprep.subr.bf16.mxu1 %v9864_v14  ;;  %v6825_v14 = vadd.f32 %v11582_v37, %v6782_v29  ;;  %v9719_v37 = vcombine.low %v810_v46, %v814_v18  ;;  %v1054_v29 = vld [vmem:[%s11119_s17 + $0x11f8] sm:$0xff]  ;;  %v9839_v42 = vcombine.low %v930_v24, %v934_v38 }
 0x3ea   : > { %7888 = vmatpush2.bf16.msra.mxu0 %v9735_v7  ;;  %v6915_v27 = vadd.f32 %v11732_v9, %v6872_v25  ;;  %v1050_v9 = vld [vmem:[%s11119_s17 + $0x11d8] sm:$0xff] }
 0x3eb   : > { %7889 = vmatprep.subr.bf16.mxu0 %v9728_v13  ;;  %v6868_v50 = vadd.f32 %v11659_v23, %v6825_v14  ;;  %v12390_v13 = vpop.f32.mrf.mxu0  ;;  %v9840_v23 = vcombine.high %v930_v24, %v934_v38  ;;  %v1178_v21 = vld [vmem:[%s11119_s17 + $0x15d8] sm:$0xff]  ;;  %v9960_v39 = vcombine.high %v1050_v9, %v1054_v29 }
 0x3ec   : > { %7931 = vmatpush2.bf16.msra.mxu1 %v9863_v31  ;;  %v6958_v7 = vadd.f32 %v11812_v3, %v6915_v27  ;;  %v7344_v31 = vpop.f32.mrf.mxu1  ;;  %v9711_v3 = vcombine.low %v802_v1, %v806_v61  ;;  %v1046_v61 = vld [vmem:[%s11119_s17 + $0x11b8] sm:$0xff] }
 0x3ed   : > { %7932 = vmatprep.subr.bf16.mxu1 %v9856_v19  ;;  %v7216_v19 = vadd.f32 %v12325_v33, %v7173_v6  ;;  %v6911_v18 = vadd.f32 %v11663_v57, %v6868_v50  ;;  %v7169_v33 = vadd.f32 %v12291_v55, %v7126_v35  ;;  %v10088_v55 = vcombine.high %v1178_v21, %v1182_v53  ;;  %v1170_v14 = vld [vmem:[%s11119_s17 + $0x1598] sm:$0xff] }
 0x3ee   : > { %7890 = vmatpush2.bf16.msra.mxu0 %v9727_v12  ;;  %v12398_v46 = vpop.f32.mrf.mxu1  ;;  %v7001_v25 = vadd.f32 %v11814_v8, %v6958_v7  ;;  %v12403_v12 = vpop.f32.mrf.mxu0  ;;  %v9959_v8 = vcombine.low %v1050_v9, %v1054_v29  ;;  %v1034_v24 = vld [vmem:[%s11119_s17 + $0x1158] sm:$0xff] }
 0x3ef   : > { %7891 = vmatprep.subr.bf16.mxu0 %v9720_v32  ;;  %v7259_v11 = vadd.f32 %v12347_v34, %v7216_v19  ;;  %v7212_v57 = vadd.f32 %v12309_v58, %v7169_v33  ;;  %v6954_v32 = vadd.f32 %v11741_v22, %v6911_v18  ;;  %v10087_v58 = vcombine.low %v1178_v21, %v1182_v53  ;;  %v1038_v50 = vld [vmem:[%s11119_s17 + $0x1178] sm:$0xff] }
 0x3f0   : > { %7933 = vmatpush2.bf16.msra.mxu1 %v9855_v28  ;;  %v1042_v28 = vld [vmem:[%s11119_s17 + $0x1198] sm:$0xff]  ;;  %v7044_v38 = vadd.f32 %v12267_v0, %v7001_v25  ;;  %v12411_v1 = vpop.f32.mrf.mxu1  ;;  %v12439_v53 = vsub.s32 2, %v11549_v56 }
 0x3f1   : > { %7934 = vmatprep.subr.bf16.mxu1 %v9848_v30  ;;  %v7302_v34 = vadd.f32 %v7301_v43, %v7259_v11  ;;  %v1174_v30 = vld [vmem:[%s11119_s17 + $0x15b8] sm:$0xff]  ;;  %v9952_v6 = vcombine.high %v1042_v28, %v1046_v61  ;;  %v7255_v22 = vadd.f32 %v12323_v36, %v7212_v57  ;;  %v7387_v43 = vpop.f32.mrf.mxu0  ;;  %v6997_v35 = vadd.f32 %v11745_v59, %v6954_v32 }
 0x3f2   : > { %7892 = vmatpush2.bf16.msra.mxu0 %v9719_v37  ;;  %v10080_v27 = vcombine.high %v1170_v14, %v1174_v30  ;;  %v1162_v0 = vld [vmem:[%s11119_s17 + $0x1558] sm:$0xff]  ;;  %v9951_v7 = vcombine.low %v1042_v28, %v1046_v61  ;;  %v1516_v61 = vrot.slane %v12343_v16, %v12439_v53 }
 0x3f3   : > { %7893 = vmatprep.subr.bf16.mxu0 %v9712_v15  ;;  %v7345_v37 = vadd.f32 %v7344_v31, %v7302_v34  ;;  %v1166_v19 = vld [vmem:[%s11119_s17 + $0x1578] sm:$0xff]  ;;  %v7298_v36 = vadd.f32 %v12349_v51, %v7255_v22  ;;  %v12427_v15 = vpop.f32.mrf.mxu1  ;;  %v9944_v31 = vcombine.high %v1034_v24, %v1038_v50  ;;  %v7040_v21 = vadd.f32 %v11823_v54, %v6997_v35 }
 0x3f4   : > { %7935 = vmatpush2.bf16.msra.mxu1 %v9847_v47  ;;  %v12424_v47 = vadd.f32 %v12279_v17, %v7044_v38  ;;  %v1030_v9 = vld [vmem:[%s11119_s17 + $0x1138] sm:$0xff]  ;;  %v10072_v51 = vcombine.high %v1162_v0, %v1166_v19 }
 0x3f5   : > { %7936 = vmatprep.subr.bf16.mxu1 %v9840_v23  ;;  %v1026_v23 = vld [vmem:[%s11119_s17 + $0x1118] sm:$0xff]  ;;  %v7388_v59 = vadd.f32 %v7387_v43, %v7345_v37  ;;  %v7341_v18 = vadd.f32 %v12367_v40, %v7298_v36  ;;  %v7430_v33 = vpop.f32.mrf.mxu1  ;;  %v12449_v57 = vadd.f32 %v11827_v48, %v7040_v21 }
 0x3f6   : > { %7894 = vmatpush2.bf16.msra.mxu0 %v9711_v3  ;;  %v1154_v29 = vld [vmem:[%s11119_s17 + $0x1518] sm:$0xff]  ;;  %v9943_v3 = vcombine.low %v1034_v24, %v1038_v50  ;;  %v9935_v32 = vcombine.low %v1026_v23, %v1030_v9 }
 0x3f7   : > { %7949 = vmatprep.subr.bf16.mxu0 %v9960_v39  ;;  %v1158_v17 = vld [vmem:[%s11119_s17 + $0x1538] sm:$0xff]  ;;  %v9936_v39 = vcombine.high %v1026_v23, %v1030_v9  ;;  %v7124_v23 = vadd.f32 %v12273_v2, %v1516_v61 }
 0x3f8   : > { %7937 = vmatpush2.bf16.msra.mxu1 %v9839_v42  ;;  %v1018_v11 = vld [vmem:[%s11119_s17 + $0x10d8] sm:$0xff]  ;;  %v12444_v42 = vadd.f32 %v7430_v33, %v7388_v59  ;;  %v10064_v40 = vcombine.high %v1154_v29, %v1158_v17  ;;  %v10063_v48 = vcombine.low %v1154_v29, %v1158_v17 }
 0x3f9   : > { %7992 = vmatprep.subr.bf16.mxu1 %v10088_v55  ;;  %7896 = vmatmul.mubr.bf16.vlgmr.msra.gmra.mxu0 %v11350_v45  ;;  %v10079_v45 = vcombine.low %v1170_v14, %v1174_v30  ;;  %v1022_v54 = vld [vmem:[%s11119_s17 + $0x10f8] sm:$0xff]  ;;  %v7384_v55 = vadd.f32 %v12390_v13, %v7341_v18  ;;  %v7128_v13 = vadd.f32 %v12289_v41, %v1516_v61 }
 0x3fa   : > { %7950 = vmatpush1.bf16.msra.mxu0 %v9959_v8  ;;  %7981 = vmatprep.mubr.bf16.mxu0 %v11381_v26  ;;  %v10071_v26 = vcombine.low %v1162_v0, %v1166_v19  ;;  %v1150_v25 = vld [vmem:[%s11119_s17 + $0x14f8] sm:$0xff]  ;;  %v8141_v14 = vmul.f32 0.0, %v12444_v42  ;;  %v9928_v30 = vcombine.high %v1018_v11, %v1022_v54  ;;  %v9927_v22 = vcombine.low %v1018_v11, %v1022_v54  ;;  %v12479_v54 = vpop.f32.mrf.mxu0 }
 0x3fb   : > { %7939 = vmatmul.mubr.bf16.vlgmr.msra.gmra.mxu1 %v11365_v49  ;;  %7951 = vmatprep.subr.bf16.mxu0 %v9952_v6  ;;  %v8139_v49 = vmul.f32 0.0, %v12424_v47  ;;  %v1010_v34 = vld [vmem:[%s11119_s17 + $0x1098] sm:$0xff]  ;;  %v12461_v6 = vadd.f32 %v12411_v1, %v7384_v55  ;;  %v7171_v37 = vadd.f32 %v12299_v60, %v7128_v13  ;;  %v7167_v2 = vadd.f32 %v12283_v20, %v7124_v23 }
 0x3fc   : > { %7993 = vmatpush1.bf16.msra.mxu1 %v10087_v58  ;;  %8024 = vmatprep.mubr.bf16.mxu1 %v11388_v62  ;;  %v1146_v62 = vld [vmem:[%s11119_s17 + $0x14d8] sm:$0xff] }
 0x3fd   : > { %7994 = vmatprep.subr.bf16.mxu1 %v10080_v27  ;;  %v8153_v28 = vadd.f32 %v8139_v49, %v12449_v57  ;;  %v1014_v38 = vld [vmem:[%s11119_s17 + $0x10b8] sm:$0xff]  ;;  %v10056_v8 = vcombine.high %v1146_v62, %v1150_v25  ;;  %v8167_v27 = vadd.f32 %v8141_v14, %v12461_v6  ;;  %v10055_v0 = vcombine.low %v1146_v62, %v1150_v25 }
 0x3fe   : > { %7952 = vmatpush1.bf16.msra.mxu0 %v9951_v7  ;;  %v1138_v58 = vld [vmem:[%s11119_s17 + $0x1498] sm:$0xff]  ;;  %v9920_v41 = vcombine.high %v1010_v34, %v1014_v38  ;;  %v7214_v9 = vadd.f32 %v12317_v44, %v7171_v37  ;;  %v9919_v59 = vcombine.low %v1010_v34, %v1014_v38  ;;  %v7210_v25 = vadd.f32 %v12301_v10, %v7167_v2  ;;  %v12941_v38 = vld [vmem:[#allocation23_spill] sm:$0xff] }
 0x3ff   : > { %7953 = vmatprep.subr.bf16.mxu0 %v9944_v31  ;;  %v1142_v24 = vld [vmem:[%s11119_s17 + $0x14b8] sm:$0xff]  ;;  %v8154_v50 = vrot.slane %v8153_v28, 4  ;;  %v8168_v31 = vrot.slane %v8167_v27, 4 }
 0x400   : > { %7995 = vmatpush1.bf16.msra.mxu1 %v10079_v45  ;;  %v1002_v43 = vld [vmem:[%s11119_s17 + $0x1058] sm:$0xff]  ;;  %v10048_v1 = vcombine.high %v1138_v58, %v1142_v24  ;;  %v10047_v60 = vcombine.low %v1138_v58, %v1142_v24  ;;  %v7257_v44 = vadd.f32 %v12334_v63, %v7214_v9  ;;  %v12484_v63 = vpop.f32.mrf.mxu1  ;;  %v7253_v13 = vadd.f32 %v12941_v38, %v7210_v25 }
 0x401   : > { %7996 = vmatprep.subr.bf16.mxu1 %v10072_v51  ;;  %v1006_v35 = vld [vmem:[%s11119_s17 + $0x1078] sm:$0xff]  ;;  %v8155_v7 = vadd.f32 %v8154_v50, %v8153_v28  ;;  %v8169_v11 = vadd.f32 %v8168_v31, %v8167_v27  ;;  %v12943_v31 = vld [vmem:[#allocation27_spill] sm:$0xff]  ;;  %v12538_v38 = vsub.s32 4, %v11549_v56 }
 0x402   : > { %7954 = vmatpush1.bf16.msra.mxu0 %v9943_v3  ;;  %v1130_v19 = vld [vmem:[%s11119_s17 + $0x1458] sm:$0xff]  ;;  %v9912_v29 = vcombine.high %v1002_v43, %v1006_v35  ;;  %v9911_v33 = vcombine.low %v1002_v43, %v1006_v35  ;;  %v7300_v20 = vadd.f32 %v12361_v4, %v7257_v44  ;;  %v12494_v58 = vpop.f32.mrf.mxu1 }
 0x403   : > { %7955 = vmatprep.subr.bf16.mxu0 %v9936_v39  ;;  %v1134_v36 = vld [vmem:[%s11119_s17 + $0x1478] sm:$0xff]  ;;  %v8156_v18 = vrot.slane %v8155_v7, 2  ;;  %v8170_v14 = vrot.slane %v8169_v11, 2 }
 0x404   : > { %7997 = vmatpush1.bf16.msra.mxu1 %v10071_v26  ;;  %v994_v45 = vld [vmem:[%s11119_s17 + $0x1018] sm:$0xff]  ;;  %v10040_v21 = vcombine.high %v1130_v19, %v1134_v36  ;;  %v10039_v26 = vcombine.low %v1130_v19, %v1134_v36 }
 0x405   : > { %7998 = vmatprep.subr.bf16.mxu1 %v10064_v40  ;;  %v998_v17 = vld [vmem:[%s11119_s17 + $0x1038] sm:$0xff]  ;;  %v8157_v61 = vadd.f32 %v8156_v18, %v8155_v7  ;;  %v8171_v19 = vadd.f32 %v8170_v14, %v8169_v11 }
 0x406   : > { %7956 = vmatpush1.bf16.msra.mxu0 %v9935_v32  ;;  %v1122_v51 = vld [vmem:[%s11119_s17 + $0x1418] sm:$0xff]  ;;  %v9904_v39 = vcombine.high %v994_v45, %v998_v17  ;;  %v9903_v32 = vcombine.low %v994_v45, %v998_v17 }
 0x407   : > { %7957 = vmatprep.subr.bf16.mxu0 %v9928_v30  ;;  %v1126_v49 = vld [vmem:[%s11119_s17 + $0x1438] sm:$0xff]  ;;  %v8158_v43 = vrot.slane %v8157_v61, 1 }
 0x408   : > { %7999 = vmatpush1.bf16.msra.mxu1 %v10063_v48  ;;  %v1114_v3 = vld [vmem:[%s11119_s17 + $0x13d8] sm:$0xff]  ;;  %v10032_v40 = vcombine.high %v1122_v51, %v1126_v49  ;;  %v12489_v48 = vpop.f32.mrf.mxu0  ;;  %v10031_v10 = vcombine.low %v1122_v51, %v1126_v49  ;;  %v8172_v49 = vrot.slane %v8171_v19, 1 }
 0x409   : > { %8000 = vmatprep.subr.bf16.mxu1 %v10056_v8  ;;  %v1118_v62 = vld [vmem:[%s11119_s17 + $0x13f8] sm:$0xff]  ;;  %v7343_v8 = vadd.f32 %v12376_v5, %v7300_v20  ;;  %v8159_v45 = vadd.f32 %v8158_v43, %v8157_v61 }
 0x40a   : > { %7958 = vmatpush1.bf16.msra.mxu0 %v9927_v22  ;;  %v1242_v55 = vld [vmem:[%s11119_s17 + $0x17d8] sm:$0xff]  ;;  %v10024_v4 = vcombine.high %v1114_v3, %v1118_v62  ;;  %v10023_v35 = vcombine.low %v1114_v3, %v1118_v62  ;;  %v12502_v5 = vpop.f32.mrf.mxu0  ;;  %v8173_v61 = vadd.f32 %v8172_v49, %v8171_v19  ;;  %v12554_v19 = vsub.s32 5, %v11549_v56 }
 0x40b   : > { %7959 = vmatprep.subr.bf16.mxu0 %v9920_v41  ;;  %v1246_v28 = vld [vmem:[%s11119_s17 + $0x17f8] sm:$0xff]  ;;  %v7386_v41 = vadd.f32 %v12403_v12, %v7343_v8  ;;  %v12523_v62 = vmul.f32 0.125, %v8159_v45 }
 0x40c   : > { %8001 = vmatpush1.bf16.msra.mxu1 %v10055_v0  ;;  %v1106_v34 = vld [vmem:[%s11119_s17 + $0x1398] sm:$0xff]  ;;  %v10152_v24 = vcombine.high %v1242_v55, %v1246_v28  ;;  %v10151_v36 = vcombine.low %v1242_v55, %v1246_v28  ;;  %v12514_v18 = vpop.f32.mrf.mxu0  ;;  %v8205_v43 = vmul.f32 0.125, %v8173_v61 }
 0x40d   : > { %8002 = vmatprep.subr.bf16.mxu1 %v10048_v1  ;;  %v1110_v30 = vld [vmem:[%s11119_s17 + $0x13b8] sm:$0xff]  ;;  %v12512_v51 = vadd.f32 %v12427_v15, %v7386_v41 }
 0x40e   : > { %7960 = vmatpush1.bf16.msra.mxu0 %v9919_v59  ;;  %v1234_v50 = vld [vmem:[%s11119_s17 + $0x1798] sm:$0xff]  ;;  %v10016_v7 = vcombine.high %v1106_v34, %v1110_v30  ;;  %v12506_v59 = vpop.f32.mrf.mxu1  ;;  %v12561_v45 = vsub.f32 %v12444_v42, %v8205_v43  ;;  %v1528_v42 = vrot.slane %v12343_v16, %v12554_v19 }
 0x40f   : > { %7961 = vmatprep.subr.bf16.mxu0 %v9912_v29  ;;  %v1238_v22 = vld [vmem:[%s11119_s17 + $0x17b8] sm:$0xff]  ;;  %v10015_v29 = vcombine.low %v1106_v34, %v1110_v30  ;;  %v8140_v28 = vmul.f32 0.0, %v12512_v51 }
 0x410   : > { %8003 = vmatpush1.bf16.msra.mxu1 %v10047_v60  ;;  %v12942_v27 = vld [vmem:[#allocation25_spill] sm:$0xff]  ;;  %v10144_v12 = vcombine.high %v1234_v50, %v1238_v22  ;;  %v10143_v2 = vcombine.low %v1234_v50, %v1238_v22  ;;  %v12518_v11 = vpop.f32.mrf.mxu1 }
 0x411   : > { %8004 = vmatprep.subr.bf16.mxu1 %v10040_v21  ;;  %v7296_v0 = vadd.f32 %v12942_v27, %v7253_v13  ;;  %v1098_v37 = vld [vmem:[%s11119_s17 + $0x1358] sm:$0xff] }
 0x412   : > { %7962 = vmatpush1.bf16.msra.mxu0 %v9911_v33  ;;  %v1102_v1 = vld [vmem:[%s11119_s17 + $0x1378] sm:$0xff]  ;;  %v12525_v25 = vpop.f32.mrf.mxu1 }
 0x413   : > { %7963 = vmatprep.subr.bf16.mxu0 %v9904_v39  ;;  %v1226_v23 = vld [vmem:[%s11119_s17 + $0x1758] sm:$0xff]  ;;  %v7339_v60 = vadd.f32 %v12943_v31, %v7296_v0  ;;  %v10008_v44 = vcombine.high %v1098_v37, %v1102_v1  ;;  %v12521_v39 = vpop.f32.mrf.mxu0  ;;  %v10007_v20 = vcombine.low %v1098_v37, %v1102_v1  ;;  %v12551_v1 = vsub.f32 %v12424_v47, %v12523_v62 }
 0x414   : > { %8005 = vmatpush1.bf16.msra.mxu1 %v10039_v26  ;;  %v1230_v9 = vld [vmem:[%s11119_s17 + $0x1778] sm:$0xff]  ;;  %v12540_v13 = vpop.f32.mrf.mxu1 }
 0x415   : > { %8006 = vmatprep.subr.bf16.mxu1 %v10032_v40  ;;  %v1090_v17 = vld [vmem:[%s11119_s17 + $0x1318] sm:$0xff]  ;;  %v10136_v26 = vcombine.high %v1226_v23, %v1230_v9  ;;  %v7382_v15 = vadd.f32 %v12378_v52, %v7339_v60  ;;  %v12535_v30 = vpop.f32.mrf.mxu0  ;;  %v8235_v49 = vmul.f32 0.0, %v12551_v1 }
 0x416   : > { %7964 = vmatpush1.bf16.msra.mxu0 %v9903_v32  ;;  %v1094_v21 = vld [vmem:[%s11119_s17 + $0x1338] sm:$0xff]  ;;  %v10135_v32 = vcombine.low %v1226_v23, %v1230_v9 }
 0x417   : > { %7965 = vmatprep.subr.bf16.mxu0 %v10024_v4  ;;  %v1218_v33 = vld [vmem:[%s11119_s17 + $0x1718] sm:$0xff]  ;;  %v10000_v34 = vcombine.high %v1090_v17, %v1094_v21  ;;  %v12533_v4 = vadd.f32 %v12398_v46, %v7382_v15  ;;  %v9999_v8 = vcombine.low %v1090_v17, %v1094_v21  ;;  %v12547_v37 = vpop.f32.mrf.mxu0 }
 0x418   : > { %8007 = vmatpush1.bf16.msra.mxu1 %v10031_v10  ;;  %v1222_v3 = vld [vmem:[%s11119_s17 + $0x1738] sm:$0xff] }
 0x419   : > { %8008 = vmatprep.subr.bf16.mxu1 %v10152_v24  ;;  %v1082_v40 = vld [vmem:[%s11119_s17 + $0x12d8] sm:$0xff]  ;;  %v10128_v10 = vcombine.high %v1218_v33, %v1222_v3  ;;  %v8160_v22 = vadd.f32 %v8140_v28, %v12533_v4  ;;  %v10127_v46 = vcombine.low %v1218_v33, %v1222_v3  ;;  %v7559_v21 = vpop.f32.mrf.mxu0 }
 0x41a   : > { %7966 = vmatpush2.bf16.msra.mxu0 %v10023_v35  ;;  %v1086_v55 = vld [vmem:[%s11119_s17 + $0x12f8] sm:$0xff] }
 0x41b   : > { %7967 = vmatprep.subr.bf16.mxu0 %v10016_v7  ;;  %v1210_v52 = vld [vmem:[%s11119_s17 + $0x16d8] sm:$0xff]  ;;  %v9992_v27 = vcombine.high %v1082_v40, %v1086_v55  ;;  %v9991_v7 = vcombine.low %v1082_v40, %v1086_v55  ;;  %v12579_v40 = vpop.f32.mrf.mxu0 }
 0x41c   : > { %8009 = vmatpush2.bf16.msra.mxu1 %v10151_v36  ;;  %v1214_v14 = vld [vmem:[%s11119_s17 + $0x16f8] sm:$0xff]  ;;  %v12556_v36 = vpop.f32.mrf.mxu1 }
 0x41d   : > { %8010 = vmatprep.subr.bf16.mxu1 %v10144_v12  ;;  %v1074_v24 = vld [vmem:[%s11119_s17 + $0x1298] sm:$0xff]  ;;  %v10120_v35 = vcombine.high %v1210_v52, %v1214_v14  ;;  %v8161_v12 = vrot.slane %v8160_v22, 4  ;;  %v10119_v31 = vcombine.low %v1210_v52, %v1214_v14  ;;  %v12588_v14 = vsub.f32 %v12449_v57, %v12523_v62 }
 0x41e   : > { %7968 = vmatpush2.bf16.msra.mxu0 %v10015_v29  ;;  %v1078_v50 = vld [vmem:[%s11119_s17 + $0x12b8] sm:$0xff] }
 0x41f   : > { %7969 = vmatprep.subr.bf16.mxu0 %v10008_v44  ;;  %v1202_v0 = vld [vmem:[%s11119_s17 + $0x1698] sm:$0xff]  ;;  %v9984_v47 = vcombine.high %v1074_v24, %v1078_v50  ;;  %v12570_v44 = vpop.f32.mrf.mxu1  ;;  %v9983_v33 = vcombine.low %v1074_v24, %v1078_v50  ;;  %v8162_v15 = vadd.f32 %v8161_v12, %v8160_v22  ;;  %v7474_v24 = vadd.f32 %v12514_v18, %v1528_v42 }
 0x420   : > { %8011 = vmatpush2.bf16.msra.mxu1 %v10143_v2  ;;  %v1206_v41 = vld [vmem:[%s11119_s17 + $0x16b8] sm:$0xff]  ;;  %v1524_v2 = vrot.slane %v12343_v16, %v12538_v38 }
 0x421   : > { %8012 = vmatprep.subr.bf16.mxu1 %v10136_v26  ;;  %v1066_v23 = vld [vmem:[%s11119_s17 + $0x1258] sm:$0xff]  ;;  %v10112_v17 = vcombine.high %v1202_v0, %v1206_v41  ;;  %v10111_v55 = vcombine.low %v1202_v0, %v1206_v41  ;;  %v12602_v0 = vpop.f32.mrf.mxu0  ;;  %v7517_v12 = vadd.f32 %v12518_v11, %v7474_v24 }
 0x422   : > { %7970 = vmatpush2.bf16.msra.mxu0 %v10007_v20  ;;  %v1070_v9 = vld [vmem:[%s11119_s17 + $0x1278] sm:$0xff]  ;;  %v8237_v20 = vmul.f32 0.0, %v12561_v45 }
 0x423   : > { %7971 = vmatprep.subr.bf16.mxu0 %v10000_v34  ;;  %v1194_v60 = vld [vmem:[%s11119_s17 + $0x1658] sm:$0xff]  ;;  %v9976_v28 = vcombine.high %v1066_v23, %v1070_v9  ;;  %v12584_v34 = vpop.f32.mrf.mxu1  ;;  %v9975_v50 = vcombine.low %v1066_v23, %v1070_v9 }
 0x424   : > { %8013 = vmatpush2.bf16.msra.mxu1 %v10135_v32  ;;  %v1198_v29 = vld [vmem:[%s11119_s17 + $0x1678] sm:$0xff]  ;;  %v7472_v32 = vadd.f32 %v12502_v5, %v1524_v2  ;;  %v8253_v23 = vmul.f32 %v8237_v20, %v8237_v20 }
 0x425   : > { %8014 = vmatprep.subr.bf16.mxu1 %v10128_v10  ;;  %v12573_v3 = vld [vmem:[%s11119_s17 + $0x1218] sm:$0xff]  ;;  %v10104_v52 = vcombine.high %v1194_v60, %v1198_v29  ;;  %v12591_v10 = vsub.f32 %v12461_v6, %v8205_v43  ;;  %v10103_v57 = vcombine.low %v1194_v60, %v1198_v29  ;;  %v12613_v43 = vpop.f32.mrf.mxu1  ;;  %v7643_v60 = vpop.f32.mrf.mxu0 }
 0x426   : > { %7972 = vmatpush2.bf16.msra.mxu0 %v9999_v8  ;;  %v12576_v26 = vld [vmem:[%s11119_s17 + $0x1238] sm:$0xff]  ;;  %v7470_v8 = vadd.f32 %v12489_v48, %v1528_v42  ;;  %v7515_v62 = vadd.f32 %v12506_v59, %v7472_v32 }
 0x427   : > { %7973 = vmatprep.subr.bf16.mxu0 %v9992_v27  ;;  %v1186_v16 = vld [vmem:[%s11119_s17 + $0x1618] sm:$0xff]  ;;  %v7468_v27 = vadd.f32 %v12479_v54, %v1524_v2  ;;  %v9968_v6 = vcombine.high %v12573_v3, %v12576_v26  ;;  %v8243_v54 = vmul.f32 %v12588_v14, %v12588_v14 }
 0x428   : > { %8015 = vmatpush2.bf16.msra.mxu1 %v10127_v46  ;;  %v1190_v61 = vld [vmem:[%s11119_s17 + $0x1638] sm:$0xff]  ;;  %v8163_v46 = vrot.slane %v8162_v15, 2  ;;  %v7513_v9 = vadd.f32 %v12494_v58, %v7470_v8  ;;  %v7558_v59 = vadd.f32 %v12547_v37, %v7515_v62 }
 0x429   : > { %8016 = vmatprep.subr.bf16.mxu1 %v10120_v35  ;;  %v12596_v5 = vld [vmem:[%s11119_s17 + $0x19d8] sm:$0xff]  ;;  %v10096_v41 = vcombine.high %v1186_v16, %v1190_v61  ;;  %v8251_v35 = vmul.f32 %v8235_v49, %v8235_v49  ;;  %v10095_v29 = vcombine.low %v1186_v16, %v1190_v61  ;;  %v7686_v49 = vpop.f32.mrf.mxu1 }
 0x42a   : > { %7974 = vmatpush2.bf16.msra.mxu0 %v9991_v7  ;;  %v12599_v22 = vld [vmem:[%s11119_s17 + $0x19f8] sm:$0xff]  ;;  %v8245_v7 = vmul.f32 %v12591_v10, %v12591_v10  ;;  %v7556_v11 = vadd.f32 %v12535_v30, %v7513_v9 }
 0x42b   : > { %7975 = vmatprep.subr.bf16.mxu0 %v9984_v47  ;;  %v12607_v48 = vld [vmem:[%s11119_s17 + $0x1dd8] sm:$0xff]  ;;  %v7511_v47 = vadd.f32 %v12484_v63, %v7468_v27  ;;  %v10216_v58 = vcombine.high %v12596_v5, %v12599_v22  ;;  %v8265_v63 = vadd.f32 %v8251_v35, %v8243_v54  ;;  %v10215_v30 = vcombine.low %v12596_v5, %v12599_v22 }
 0x42c   : > { %8017 = vmatpush2.bf16.msra.mxu1 %v10119_v31  ;;  %v12610_v18 = vld [vmem:[%s11119_s17 + $0x1df8] sm:$0xff]  ;;  %v9967_v31 = vcombine.low %v12573_v3, %v12576_v26  ;;  %v8279_v3 = vadd.f32 %v8253_v23, %v8245_v7 }
 0x42d   : > { %8018 = vmatprep.subr.bf16.mxu1 %v10112_v17  ;;  %v7560_v17 = vadd.f32 %v7559_v21, %v7517_v12  ;;  %v10344_v37 = vcombine.high %v12607_v48, %v12610_v18  ;;  %v1298_v2 = vld [vmem:[%s11119_s17 + $0x1998] sm:$0xff]  ;;  %v7554_v26 = vadd.f32 %v12521_v39, %v7511_v47  ;;  %v7645_v21 = vpop.f32.mrf.mxu0  ;;  %v10343_v16 = vcombine.low %v12607_v48, %v12610_v18 }
 0x42e   : > { %7976 = vmatpush2.bf16.msra.mxu0 %v9983_v33  ;;  %v1302_v42 = vld [vmem:[%s11119_s17 + $0x19b8] sm:$0xff]  ;;  %v8164_v33 = vadd.f32 %v8163_v46, %v8162_v15  ;;  %v7599_v39 = vadd.f32 %v12540_v13, %v7556_v11  ;;  %v8280_v22 = vrot.slane %v8279_v3, 4 }
 0x42f   : > { %7977 = vmatprep.subr.bf16.mxu0 %v9976_v28  ;;  %v1426_v20 = vld [vmem:[%s11119_s17 + $0x1d98] sm:$0xff]  ;;  %v7601_v28 = vadd.f32 %v12556_v36, %v7558_v59  ;;  %v10208_v15 = vcombine.high %v1298_v2, %v1302_v42  ;;  %v7603_v61 = vadd.f32 %v12570_v44, %v7560_v17  ;;  %v7597_v46 = vadd.f32 %v12525_v25, %v7554_v26  ;;  %v12947_v17 = vld [vmem:[#allocation19_spill] sm:$0xff] }
 0x430   : > { %8019 = vmatpush2.bf16.msra.mxu1 %v10111_v55  ;;  %v1430_v55 = vld [vmem:[%s11119_s17 + $0x1db8] sm:$0xff]  ;;  %v8165_v5 = vrot.slane %v8164_v33, 1  ;;  %v7642_v13 = vadd.f32 %v12602_v0, %v7599_v39 }
 0x431   : > { %8020 = vmatprep.subr.bf16.mxu1 %v10104_v52  ;;  %v7644_v32 = vadd.f32 %v7643_v60, %v7601_v28  ;;  %v7688_v52 = vpop.f32.mrf.mxu1  ;;  %v10336_v36 = vcombine.high %v1426_v20, %v1430_v55  ;;  %v1290_v8 = vld [vmem:[%s11119_s17 + $0x1958] sm:$0xff]  ;;  %v7646_v44 = vadd.f32 %v7645_v21, %v7603_v61  ;;  %v7640_v54 = vadd.f32 %v12579_v40, %v7597_v46 }
 0x432   : > { %7978 = vmatpush2.bf16.msra.mxu0 %v9975_v50  ;;  %v1294_v24 = vld [vmem:[%s11119_s17 + $0x1978] sm:$0xff]  ;;  %v8266_v50 = vrot.slane %v8265_v63, 4  ;;  %v10335_v35 = vcombine.low %v1426_v20, %v1430_v55  ;;  %v8166_v60 = vadd.f32 %v8165_v5, %v8164_v33 }
 0x433   : > { %7979 = vmatprep.subr.bf16.mxu0 %v9968_v6  ;;  %v1418_v6 = vld [vmem:[%s11119_s17 + $0x1d58] sm:$0xff]  ;;  %v10200_v7 = vcombine.high %v1290_v8, %v1294_v24  ;;  %v7687_v23 = vadd.f32 %v7686_v49, %v7644_v32  ;;  %v10199_v26 = vcombine.low %v1290_v8, %v1294_v24  ;;  %v7683_v20 = vadd.f32 %v12584_v34, %v7640_v54 }
 0x434   : > { %8021 = vmatpush2.bf16.msra.mxu1 %v10103_v57  ;;  %v12944_v57 = vld [vmem:[#allocation16_spill] sm:$0xff]  ;;  %v1422_v48 = vld [vmem:[%s11119_s17 + $0x1d78] sm:$0xff]  ;;  %v8267_v47 = vadd.f32 %v8266_v50, %v8265_v63 }
 0x435   : > { %8022 = vmatprep.subr.bf16.mxu1 %v10096_v41  ;;  %v12945_v62 = vld [vmem:[#allocation17_spill] sm:$0xff]  ;;  %v10207_v41 = vcombine.low %v1298_v2, %v1302_v42  ;;  %v10328_v9 = vcombine.high %v1418_v6, %v1422_v48  ;;  %v7689_v2 = vadd.f32 %v7688_v52, %v7646_v44  ;;  %v10327_v33 = vcombine.low %v1418_v6, %v1422_v48 }
 0x436   : > { %7980 = vmatpush2.bf16.msra.mxu0 %v9967_v31  ;;  %v1282_v12 = vld [vmem:[%s11119_s17 + $0x1918] sm:$0xff]  ;;  %v12946_v31 = vld [vmem:[#allocation18_spill] sm:$0xff] }
 0x437   : > { %8035 = vmatprep.subr.bf16.mxu0 %v10216_v58  ;;  %v1286_v59 = vld [vmem:[%s11119_s17 + $0x1938] sm:$0xff] }
 0x438   : > { %8023 = vmatpush2.bf16.msra.mxu1 %v10095_v29  ;;  %v8281_v29 = vadd.f32 %v8280_v22, %v8279_v3  ;;  %v1410_v40 = vld [vmem:[%s11119_s17 + $0x1d18] sm:$0xff]  ;;  %v10192_v3 = vcombine.high %v1282_v12, %v1286_v59  ;;  %v10191_v8 = vcombine.low %v1282_v12, %v1286_v59  ;;  %v8204_v22 = vmul.f32 0.125, %v8166_v60 }
 0x439   : > { %8078 = vmatprep.subr.bf16.mxu1 %v10344_v37  ;;  %v7725_v27 = vpop.f32.mrf.mxu0  ;;  %7982 = vmatmul.mubr.bf16.vlgmr.msra.gmra.mxu0 %v12944_v57  ;;  %v1414_v11 = vld [vmem:[%s11119_s17 + $0x1d38] sm:$0xff]  ;;  %v7685_v37 = vadd.f32 %v12613_v43, %v7642_v13 }
 0x43a   : > { %8036 = vmatpush1.bf16.msra.mxu0 %v10215_v30  ;;  %8067 = vmatprep.mubr.bf16.mxu0 %v12946_v31  ;;  %v10320_v30 = vcombine.high %v1410_v40, %v1414_v11  ;;  %v1274_v21 = vld [vmem:[%s11119_s17 + $0x18d8] sm:$0xff]  ;;  %v7726_v39 = vadd.f32 %v7725_v27, %v7683_v20  ;;  %v8282_v52 = vrot.slane %v8281_v29, 2  ;;  %v10319_v50 = vcombine.low %v1410_v40, %v1414_v11 }
 0x43b   : > { %v12649_v18 = vpop.f32.mrf.mxu1  ;;  %8025 = vmatmul.mubr.bf16.vlgmr.msra.gmra.mxu1 %v12945_v62  ;;  %v7727_v25 = vpop.f32.mrf.mxu0  ;;  %8037 = vmatprep.subr.bf16.mxu0 %v10208_v15  ;;  %v8268_v15 = vrot.slane %v8267_v47, 2  ;;  %v1402_v32 = vld [vmem:[%s11119_s17 + $0x1cd8] sm:$0xff] }
 0x43c   : > { %8079 = vmatpush1.bf16.msra.mxu1 %v10343_v16  ;;  %8110 = vmatprep.mubr.bf16.mxu1 %v12947_v17  ;;  %v7728_v55 = vadd.f32 %v7727_v25, %v7685_v37  ;;  %v1278_v16 = vld [vmem:[%s11119_s17 + $0x18f8] sm:$0xff]  ;;  %v12676_v44 = vadd.f32 %v12649_v18, %v7726_v39  ;;  %v8283_v54 = vadd.f32 %v8282_v52, %v8281_v29 }
 0x43d   : > { %v7770_v0 = vpop.f32.mrf.mxu1  ;;  %8080 = vmatprep.subr.bf16.mxu1 %v10336_v36  ;;  %v7729_v58 = vpop.f32.mrf.mxu0  ;;  %v1406_v34 = vld [vmem:[%s11119_s17 + $0x1cf8] sm:$0xff]  ;;  %v10184_v5 = vcombine.high %v1274_v21, %v1278_v16  ;;  %v8269_v13 = vadd.f32 %v8268_v15, %v8267_v47  ;;  %v12683_v18 = vsub.f32 %v12512_v51, %v8204_v22 }
 0x43e   : > { %v7730_v49 = vadd.f32 %v7729_v58, %v7687_v23  ;;  %8038 = vmatpush1.bf16.msra.mxu0 %v10207_v41  ;;  %v12670_v46 = vadd.f32 %v7770_v0, %v7728_v55  ;;  %v10312_v57 = vcombine.high %v1402_v32, %v1406_v34  ;;  %v1266_v6 = vld [vmem:[%s11119_s17 + $0x1898] sm:$0xff]  ;;  %v10311_v23 = vcombine.low %v1402_v32, %v1406_v34 }
 0x43f   : > { %v7772_v42 = vpop.f32.mrf.mxu1  ;;  %v7731_v63 = vpop.f32.mrf.mxu0  ;;  %8039 = vmatprep.subr.bf16.mxu0 %v10200_v7  ;;  %v1270_v48 = vld [vmem:[%s11119_s17 + $0x18b8] sm:$0xff]  ;;  %v8270_v47 = vrot.slane %v8269_v13, 1  ;;  %v8284_v58 = vrot.slane %v8283_v54, 1  ;;  %v12695_v55 = vsub.f32 %v12533_v4, %v8204_v22 }
 0x440   : > { %8081 = vmatpush1.bf16.msra.mxu1 %v10335_v35  ;;  %v12661_v28 = vadd.f32 %v7772_v42, %v7730_v49  ;;  %v7732_v43 = vadd.f32 %v7731_v63, %v7689_v2  ;;  %v1394_v62 = vld [vmem:[%s11119_s17 + $0x1c98] sm:$0xff]  ;;  %v10183_v35 = vcombine.low %v1274_v21, %v1278_v16  ;;  %v10176_v0 = vcombine.high %v1266_v6, %v1270_v48 }
 0x441   : > { %8082 = vmatprep.subr.bf16.mxu1 %v10328_v9  ;;  %v7774_v61 = vpop.f32.mrf.mxu1  ;;  %v1398_v41 = vld [vmem:[%s11119_s17 + $0x1cb8] sm:$0xff]  ;;  %v10175_v11 = vcombine.low %v1266_v6, %v1270_v48  ;;  %v8236_v2 = vmul.f32 0.0, %v12683_v18  ;;  %v8271_v63 = vadd.f32 %v8270_v47, %v8269_v13 }
 0x442   : > { %v12667_v36 = vadd.f32 %v7774_v61, %v7732_v43  ;;  %8040 = vmatpush1.bf16.msra.mxu0 %v10199_v26  ;;  %v8142_v24 = vmul.f32 0.0, %v12661_v28  ;;  %v10304_v12 = vcombine.high %v1394_v62, %v1398_v41  ;;  %v1258_v59 = vld [vmem:[%s11119_s17 + $0x1858] sm:$0xff]  ;;  %v10303_v51 = vcombine.low %v1394_v62, %v1398_v41 }
 0x443   : > { %8041 = vmatprep.subr.bf16.mxu0 %v10192_v3  ;;  %v1262_v31 = vld [vmem:[%s11119_s17 + $0x1878] sm:$0xff]  ;;  %v8285_v43 = vadd.f32 %v8284_v58, %v8283_v54  ;;  %v8252_v61 = vmul.f32 %v8236_v2, %v8236_v2 }
 0x444   : > { %8083 = vmatpush1.bf16.msra.mxu1 %v10327_v33  ;;  %v8143_v27 = vmul.f32 0.0, %v12667_v36  ;;  %v8174_v7 = vadd.f32 %v8142_v24, %v12676_v44  ;;  %v1386_v60 = vld [vmem:[%s11119_s17 + $0x1c58] sm:$0xff]  ;;  %v10168_v37 = vcombine.high %v1258_v59, %v1262_v31  ;;  %v10167_v21 = vcombine.low %v1258_v59, %v1262_v31 }
 0x445   : > { %8084 = vmatprep.subr.bf16.mxu1 %v10320_v30  ;;  %v1390_v29 = vld [vmem:[%s11119_s17 + $0x1c78] sm:$0xff]  ;;  %v8315_v24 = vmul.f32 0.125, %v8271_v63  ;;  %v8317_v22 = vmul.f32 0.125, %v8285_v43 }
 0x446   : > { %v8181_v25 = vadd.f32 %v8143_v27, %v12670_v46  ;;  %8042 = vmatpush1.bf16.msra.mxu0 %v10191_v8  ;;  %v8175_v17 = vrot.slane %v8174_v7, 4  ;;  %v10296_v42 = vcombine.high %v1386_v60, %v1390_v29  ;;  %v1250_v26 = vld [vmem:[%s11119_s17 + $0x1818] sm:$0xff]  ;;  %v10295_v15 = vcombine.low %v1386_v60, %v1390_v29 }
 0x447   : > { %8043 = vmatprep.subr.bf16.mxu0 %v10184_v5  ;;  %v1254_v20 = vld [vmem:[%s11119_s17 + $0x1838] sm:$0xff]  ;;  %v8244_v5 = vmul.f32 %v12695_v55, %v12695_v55 }
 0x448   : > { %8085 = vmatpush1.bf16.msra.mxu1 %v10319_v50  ;;  %v8182_v9 = vrot.slane %v8181_v25, 4  ;;  %v1378_v33 = vld [vmem:[%s11119_s17 + $0x1c18] sm:$0xff]  ;;  %v8176_v16 = vadd.f32 %v8175_v17, %v8174_v7  ;;  %v10160_v39 = vcombine.high %v1250_v26, %v1254_v20  ;;  %v8323_v7 = vadd.f32 1e-05, %v8315_v24 }
 0x449   : > { %8086 = vmatprep.subr.bf16.mxu1 %v10312_v57  ;;  %v1382_v3 = vld [vmem:[%s11119_s17 + $0x1c38] sm:$0xff]  ;;  %v10159_v57 = vcombine.low %v1250_v26, %v1254_v20  ;;  %v8272_v62 = vadd.f32 %v8252_v61, %v8244_v5 }
 0x44a   : > { %v8183_v40 = vadd.f32 %v8182_v9, %v8181_v25  ;;  %8044 = vmatpush1.bf16.msra.mxu0 %v10183_v35  ;;  %v10288_v34 = vcombine.high %v1378_v33, %v1382_v3  ;;  %v1370_v52 = vld [vmem:[%s11119_s17 + $0x1bd8] sm:$0xff]  ;;  %v8177_v6 = vrot.slane %v8176_v16, 2  ;;  %v10287_v48 = vcombine.low %v1378_v33, %v1382_v3 }
 0x44b   : > { %8045 = vmatprep.subr.bf16.mxu0 %v10176_v0  ;;  %v1374_v8 = vld [vmem:[%s11119_s17 + $0x1bf8] sm:$0xff]  ;;  %v8325_v9 = vadd.f32 1e-05, %v8317_v22  ;;  %v8273_v58 = vrot.slane %v8272_v62, 4  ;;  %10715 = vrsqrt.f32 %v8323_v7 }
 0x44c   : > { %8087 = vmatpush1.bf16.msra.mxu1 %v10311_v23  ;;  %v8184_v49 = vrot.slane %v8183_v40, 2  ;;  %v1498_v4 = vld [vmem:[%s11119_s17 + $0x1fd8] sm:$0xff]  ;;  %v10280_v13 = vcombine.high %v1370_v52, %v1374_v8  ;;  %v10279_v31 = vcombine.low %v1370_v52, %v1374_v8  ;;  %v8178_v47 = vadd.f32 %v8177_v6, %v8176_v16 }
 0x44d   : > { %8088 = vmatprep.subr.bf16.mxu1 %v10304_v12  ;;  %v1502_v50 = vld [vmem:[%s11119_s17 + $0x1ff8] sm:$0xff]  ;;  %10717 = vrsqrt.f32 %v8325_v9  ;;  %v8274_v63 = vadd.f32 %v8273_v58, %v8272_v62 }
 0x44e   : > { %v8185_v30 = vadd.f32 %v8184_v49, %v8183_v40  ;;  %8046 = vmatpush1.bf16.msra.mxu0 %v10175_v11  ;;  %v10408_v54 = vcombine.high %v1498_v4, %v1502_v50  ;;  %v1362_v25 = vld [vmem:[%s11119_s17 + $0x1b98] sm:$0xff]  ;;  %v10407_v60 = vcombine.low %v1498_v4, %v1502_v50 }
 0x44f   : > { %8047 = vmatprep.subr.bf16.mxu0 %v10168_v37  ;;  %v1366_v35 = vld [vmem:[%s11119_s17 + $0x1bb8] sm:$0xff]  ;;  %v8275_v52 = vrot.slane %v8274_v63, 2 }
 0x450   : > { %8089 = vmatpush1.bf16.msra.mxu1 %v10303_v51  ;;  %v8186_v32 = vrot.slane %v8185_v30, 1  ;;  %v1490_v23 = vld [vmem:[%s11119_s17 + $0x1f98] sm:$0xff]  ;;  %v10272_v29 = vcombine.high %v1362_v25, %v1366_v35  ;;  %v10271_v49 = vcombine.low %v1362_v25, %v1366_v35 }
 0x451   : > { %8090 = vmatprep.subr.bf16.mxu1 %v10296_v42  ;;  %v1494_v0 = vld [vmem:[%s11119_s17 + $0x1fb8] sm:$0xff]  ;;  %v8179_v42 = vrot.slane %v8178_v47, 1  ;;  %v8276_v62 = vadd.f32 %v8275_v52, %v8274_v63  ;;  %v12949_v63 = vld [vmem:[#allocation26_spill] sm:$0xff] }
 0x452   : > { %v8187_v27 = vadd.f32 %v8186_v32, %v8185_v30  ;;  %8048 = vmatpush1.bf16.msra.mxu0 %v10167_v21  ;;  %v10400_v11 = vcombine.high %v1490_v23, %v1494_v0  ;;  %v1354_v17 = vld [vmem:[%s11119_s17 + $0x1b58] sm:$0xff]  ;;  %v10399_v26 = vcombine.low %v1490_v23, %v1494_v0 }
 0x453   : > { %8049 = vmatprep.subr.bf16.mxu0 %v10160_v39  ;;  %v1482_v51 = vld [vmem:[%s11119_s17 + $0x1f58] sm:$0xff]  ;;  %v8180_v61 = vadd.f32 %v8179_v42, %v8178_v47  ;;  %v8277_v58 = vrot.slane %v8276_v62, 1 }
 0x454   : > { %8091 = vmatpush1.bf16.msra.mxu1 %v10295_v15  ;;  %v8207_v41 = vmul.f32 0.125, %v8187_v27  ;;  %v1346_v43 = vld [vmem:[%s11119_s17 + $0x1b18] sm:$0xff] }
 0x455   : > { %8092 = vmatprep.subr.bf16.mxu1 %v10288_v34  ;;  %v1350_v30 = vld [vmem:[%s11119_s17 + $0x1b38] sm:$0xff]  ;;  %v8206_v6 = vmul.f32 0.125, %v8180_v61 }
 0x456   : > { %v12708_v12 = vsub.f32 %v12670_v46, %v8207_v41  ;;  %v12711_v59 = vsub.f32 %v12667_v36, %v8207_v41  ;;  %8050 = vmatpush1.bf16.msra.mxu0 %v10159_v57  ;;  %v1358_v46 = vld [vmem:[%s11119_s17 + $0x1b78] sm:$0xff]  ;;  %v10256_v34 = vcombine.high %v1346_v43, %v1350_v30  ;;  %v10255_v57 = vcombine.low %v1346_v43, %v1350_v30 }
 0x457   : > { %8051 = vmatprep.subr.bf16.mxu0 %v10280_v13  ;;  %v1486_v36 = vld [vmem:[%s11119_s17 + $0x1f78] sm:$0xff]  ;;  %v10264_v20 = vcombine.high %v1354_v17, %v1358_v46  ;;  %v10263_v39 = vcombine.low %v1354_v17, %v1358_v46  ;;  %v12733_v47 = vsub.f32 %v12661_v28, %v8206_v6  ;;  %v8278_v30 = vadd.f32 %v8277_v58, %v8276_v62 }
 0x458   : > { %8093 = vmatpush1.bf16.msra.mxu1 %v10287_v48  ;;  %v8239_v40 = vmul.f32 0.0, %v12711_v59  ;;  %v8247_v37 = vmul.f32 %v12708_v12, %v12708_v12  ;;  %v10392_v3 = vcombine.high %v1482_v51, %v1486_v36  ;;  %v1474_v21 = vld [vmem:[%s11119_s17 + $0x1f18] sm:$0xff]  ;;  %v10391_v32 = vcombine.low %v1482_v51, %v1486_v36  ;;  %v10716_v0 = vpop.eup %10715 }
 0x459   : > { %8094 = vmatprep.subr.bf16.mxu1 %v10408_v54  ;;  %v1478_v16 = vld [vmem:[%s11119_s17 + $0x1f38] sm:$0xff]  ;;  %v8339_v46 = vmul.f32 %v10716_v0, %v12588_v14  ;;  %v8347_v51 = vmul.f32 %v10716_v0, %v12551_v1  ;;  %v12761_v61 = vsub.f32 %v12676_v44, %v8206_v6  ;;  %v10649_v0 = vld [vmem:[%s12418_s10 + $0x78] sm:$0xff]  }
 0x45a   : > { %v8255_v2 = vmul.f32 %v8239_v40, %v8239_v40  ;;  %8052 = vmatpush2.bf16.msra.mxu0 %v10279_v31  ;;  %v10384_v24 = vcombine.high %v1474_v21, %v1478_v16  ;;  %v1338_v4 = vld [vmem:[%s11119_s17 + $0x1ad8] sm:$0xff]  ;;  %v10383_v48 = vcombine.low %v1474_v21, %v1478_v16  ;;  %v10718_v31 = vpop.eup %10717 }
 0x45b   : > { %8053 = vmatprep.subr.bf16.mxu0 %v10272_v29  ;;  %v1342_v50 = vld [vmem:[%s11119_s17 + $0x1af8] sm:$0xff]  ;;  %v8246_v6 = vmul.f32 %v12761_v61, %v12761_v61 }
 0x45c   : > { %8095 = vmatpush2.bf16.msra.mxu1 %v10407_v60  ;;  %v8293_v33 = vadd.f32 %v8255_v2, %v8247_v37  ;;  %v1466_v5 = vld [vmem:[%s11119_s17 + $0x1ed8] sm:$0xff]  ;;  %v10248_v13 = vcombine.high %v1338_v4, %v1342_v50  ;;  %v10247_v9 = vcombine.low %v1338_v4, %v1342_v50  ;;  %v12948_v37 = vld [vmem:[#allocation24_spill] sm:$0xff] }
 0x45d   : > { %8096 = vmatprep.subr.bf16.mxu1 %v10400_v11  ;;  %v1470_v22 = vld [vmem:[%s11119_s17 + $0x1ef8] sm:$0xff] }
 0x45e   : > { %v8294_v15 = vrot.slane %v8293_v33, 4  ;;  %8054 = vmatpush2.bf16.msra.mxu0 %v10271_v49  ;;  %v10376_v41 = vcombine.high %v1466_v5, %v1470_v22  ;;  %v1330_v54 = vld [vmem:[%s11119_s17 + $0x1a98] sm:$0xff]  ;;  %v10375_v60 = vcombine.low %v1466_v5, %v1470_v22 }
 0x45f   : > { %8055 = vmatprep.subr.bf16.mxu0 %v10264_v20  ;;  %v1334_v25 = vld [vmem:[%s11119_s17 + $0x1ab8] sm:$0xff]  ;;  %v8349_v20 = vmul.f32 %v10718_v31, %v12561_v45  ;;  %v12756_v45 = vld [vmem:[%s384_s9] sm:$0xff] }
 0x460   : > { %8097 = vmatpush2.bf16.msra.mxu1 %v10399_v26  ;;  %v8295_v8 = vadd.f32 %v8294_v15, %v8293_v33  ;;  %v1458_v7 = vld [vmem:[%s11119_s17 + $0x1e98] sm:$0xff]  ;;  %v10240_v29 = vcombine.high %v1330_v54, %v1334_v25  ;;  %v8341_v26 = vmul.f32 %v10718_v31, %v12591_v10  ;;  %v10239_v1 = vcombine.low %v1330_v54, %v1334_v25  ;;  %v10650_v31 = vld [vmem:[%s12418_s10 + $0xf8] sm:$0xff]  }
 0x461   : > { %8098 = vmatprep.subr.bf16.mxu1 %v10392_v3  ;;  %v1462_v23 = vld [vmem:[%s11119_s17 + $0x1eb8] sm:$0xff]  ;;  %v8238_v33 = vmul.f32 0.0, %v12733_v47  ;;  %v8421_v15 = vrot.slane %v12756_v45, %v12948_v37  ;;  %v8429_v5 = vrot.slane %v12756_v45, %v12949_v63 }
 0x462   : > { %v8296_v27 = vrot.slane %v8295_v8, 2  ;;  %8056 = vmatpush2.bf16.msra.mxu0 %v10263_v39  ;;  %v10368_v40 = vcombine.high %v1458_v7, %v1462_v23  ;;  %v1322_v11 = vld [vmem:[%s11119_s17 + $0x1a58] sm:$0xff]  ;;  %v10367_v3 = vcombine.low %v1458_v7, %v1462_v23 }
 0x463   : > { %8057 = vmatprep.subr.bf16.mxu0 %v10256_v34  ;;  %v1326_v17 = vld [vmem:[%s11119_s17 + $0x1a78] sm:$0xff]  ;;  %v8254_v22 = vmul.f32 %v8238_v33, %v8238_v33 }
 0x464   : > { %8099 = vmatpush2.bf16.msra.mxu1 %v10391_v32  ;;  %v8297_v35 = vadd.f32 %v8296_v27, %v8295_v8  ;;  %v12741_v36 = vld [vmem:[%s375_s30] sm:$0xff]  ;;  %v10232_v43 = vcombine.high %v1322_v11, %v1326_v17  ;;  %v10231_v4 = vcombine.low %v1322_v11, %v1326_v17 }
 0x465   : > { %8100 = vmatprep.subr.bf16.mxu1 %v10384_v24  ;;  %v8363_v28 = vrot.slane %v12741_v36, %v12948_v37  ;;  %v1450_v49 = vld [vmem:[%s11119_s17 + $0x1e58] sm:$0xff]  ;;  %v8371_v14 = vrot.slane %v12741_v36, %v12949_v63  ;;  %v8286_v7 = vadd.f32 %v8254_v22, %v8246_v6  ;;  %v12950_v37 = vld [vmem:[#allocation20_spill] sm:$0xff] }
 0x466   : > { %8058 = vmatpush2.bf16.msra.mxu0 %v10255_v57  ;;  %v8298_v2 = vrot.slane %v8297_v35, 1  ;;  %v1454_v42 = vld [vmem:[%s11119_s17 + $0x1e78] sm:$0xff] }
 0x467   : > { %8059 = vmatprep.subr.bf16.mxu0 %v10248_v13  ;;  %v10360_v21 = vcombine.high %v1450_v49, %v1454_v42  ;;  %v1314_v16 = vld [vmem:[%s11119_s17 + $0x1a18] sm:$0xff]  ;;  %v8405_v39 = vmul.f32 %v8363_v28, %v8347_v51  ;;  %v8397_v8 = vmul.f32 %v8363_v28, %v8339_v46  ;;  %v8407_v24 = vmul.f32 %v8371_v14, %v8349_v20  ;;  %v10652_v51 = vld [vmem:[%s12418_s10 + $0xb8] sm:$0xff]   ;;  %v10655_v20 = vld [vmem:[%s12418_s10 + $0x30] sm:$0xff]  }
 0x468   : > { %8101 = vmatpush2.bf16.msra.mxu1 %v10383_v48  ;;  %v1318_v10 = vld [vmem:[%s11119_s17 + $0x1a38] sm:$0xff]  ;;  %v8299_v32 = vadd.f32 %v8298_v2, %v8297_v35  ;;  %v8399_v50 = vmul.f32 %v8371_v14, %v8341_v26  ;;  %v10359_v27 = vcombine.low %v1450_v49, %v1454_v42  ;;  %v8316_v48 = vmul.f32 0.125, %v8278_v30  ;;  %v10653_v2 = vld [vmem:[%s12418_s10 + $0x70] sm:$0xff]  }
 0x469   : > { %8102 = vmatprep.subr.bf16.mxu1 %v10376_v41  ;;  %v1442_v34 = vld [vmem:[%s11119_s17 + $0x1e18] sm:$0xff]  ;;  %v10224_v57 = vcombine.high %v1314_v16, %v1318_v10  ;;  %v8455_v62 = vadd.f32 %v8421_v15, %v8397_v8  ;;  %v8463_v41 = vadd.f32 %v8421_v15, %v8405_v39  ;;  %v10223_v54 = vcombine.low %v1314_v16, %v1318_v10  ;;  %v10654_v49 = vld [vmem:[%s12418_s10 + $0xf0] sm:$0xff]   ;;  %v10662_v16 = vld [vmem:[%s12418_s10 + $0xe0] sm:$0xff]  }
 0x46a   : > { %8060 = vmatpush2.bf16.msra.mxu0 %v10247_v9  ;;  %v1446_v52 = vld [vmem:[%s11119_s17 + $0x1e38] sm:$0xff]  ;;  %v8319_v13 = vmul.f32 0.125, %v8299_v32  ;;  %v8457_v25 = vadd.f32 %v8429_v5, %v8399_v50  ;;  %v8465_v35 = vadd.f32 %v8429_v5, %v8407_v24  ;;  %v8324_v9 = vadd.f32 1e-05, %v8316_v48  ;;  %v10656_v14 = vld [vmem:[%s12418_s10 + $0xb0] sm:$0xff]   ;;  %v10663_v10 = vld [vmem:[%s12418_s10 + $0x20] sm:$0xff]  }
 0x46b   : > { %8061 = vmatprep.subr.bf16.mxu0 %v10240_v29  ;;  %v10352_v44 = vcombine.high %v1442_v34, %v1446_v52  ;;  %v10351_v23 = vcombine.low %v1442_v34, %v1446_v52  ;;  %v8471_v29 = vmax.f32 %v8455_v62, 0.0  ;;  %v8479_v58 = vmax.f32 %v8463_v41, 0.0  ;;  %v12951_v42 = vld [vmem:[#allocation21_spill] sm:$0xff]  ;;  %v10664_v39 = vld [vmem:[%s12418_s10 + $0xa0] sm:$0xff]   ;;  %v10665_v32 = vld [vmem:[%s12418_s10 + $0x58] sm:$0xff]  }
 0x46c   : > { %8103 = vmatpush2.bf16.msra.mxu1 %v10375_v60  ;;  %v8327_v60 = vadd.f32 1e-05, %v8319_v13  ;;  %v8473_v11 = vmax.f32 %v8457_v25, 0.0  ;;  %v8481_v17 = vmax.f32 %v8465_v35, 0.0  ;;  %v8287_v46 = vrot.slane %v8286_v7, 4  ;;  %v10658_v33 = vld [vmem:[%s12418_s10 + $0xe8] sm:$0xff]  }
 0x46d   : > { %8104 = vmatprep.subr.bf16.mxu1 %v10368_v40  ;;  %v10651_v40 = vld [vmem:[%s12418_s10 + $0x38] sm:$0xff]   ;;  %10719 = vrsqrt.f32 %v8324_v9  ;;  %v8489_v28 = vpack.c.bf16 %v8479_v58, %v8471_v29  ;;  %v10660_v30 = vld [vmem:[%s12418_s10 + $0xa8] sm:$0xff]   ;;  %v10669_v5 = vld [vmem:[%s12418_s10 + $0x50] sm:$0xff]   ;;  %v8379_v13 = vrot.slane %v12741_v36, %v12554_v19 }
 0x46e   : > { %8062 = vmatpush2.bf16.msra.mxu0 %v10239_v1  ;;  %10721 = vrsqrt.f32 %v8327_v60  ;;  %v8491_v26 = vpack.c.bf16 %v8481_v17, %v8473_v11  ;;  %v8288_v63 = vadd.f32 %v8287_v46, %v8286_v7  ;;  %v10657_v1 = vld [vmem:[%s12418_s10 + $0x68] sm:$0xff]   ;;  %v10666_v34 = vld [vmem:[%s12418_s10 + $0xd8] sm:$0xff]   ;;  %v10670_v48 = vld [vmem:[%s12418_s10 + $0xd0] sm:$0xff]  }
 0x46f   : > { %8063 = vmatprep.subr.bf16.mxu0 %v10232_v43  ;;  %v10667_v24 = vld [vmem:[%s12418_s10 + $0x18] sm:$0xff]   ;;  %v10671_v62 = vld [vmem:[%s12418_s10 + $0x10] sm:$0xff]   ;;  %v10677_v60 = vld [vmem:[%s12418_s10 + $0x40] sm:$0xff]  }
 0x470   : > { %8105 = vmatpush2.bf16.msra.mxu1 %v10367_v3  ;;  %v10659_v3 = vld [vmem:[%s12418_s10 + $0x28] sm:$0xff]   ;;  %v8289_v43 = vrot.slane %v8288_v63, 2  ;;  %v10668_v50 = vld [vmem:[%s12418_s10 + $0x98] sm:$0xff]   ;;  %v10679_v17 = vld [vmem:[%s12418_s10] sm:$0xff]  }
 0x471   : > { %8106 = vmatprep.subr.bf16.mxu1 %v10360_v21  ;;  %v10661_v21 = vld [vmem:[%s12418_s10 + $0x60] sm:$0xff]  }
 0x472   : > { %8064 = vmatpush2.bf16.msra.mxu0 %v10231_v4  ;;  %v8290_v15 = vadd.f32 %v8289_v43, %v8288_v63  ;;  %v10680_v46 = vld [vmem:[%s12418_s10 + $0x80] sm:$0xff]   ;;  %v12952_v63 = vld [vmem:[#allocation22_spill] sm:$0xff] }
 0x473   : > { %8065 = vmatprep.subr.bf16.mxu0 %v10224_v57  ;;  %v8367_v57 = vrot.slane %v12741_v36, %v12439_v53  ;;  %v10687_v43 = vld [vmem:[%s12418_s10 + $0x160] sm:$0xff]  }
 0x474   : > { %8107 = vmatpush2.bf16.msra.mxu1 %v10359_v27  ;;  %v8291_v4 = vrot.slane %v8290_v15, 1 }
 0x475   : > { %8108 = vmatprep.subr.bf16.mxu1 %v10352_v44 }
 0x476   : > { %8066 = vmatpush2.bf16.msra.mxu0 %v10223_v54  ;;  %v8292_v41 = vadd.f32 %v8291_v4, %v8290_v15  ;;  %v8433_v4 = vrot.slane %v12756_v45, %v12538_v38 }
 0x477   : > { %10481 = vmatprep.subr.bf16.mxu0 %v10649_v0  ;;  %v10675_v0 = vld [vmem:[%s12418_s10 + $0x8] sm:$0xff]  }
 0x478   : > { %8109 = vmatpush2.bf16.msra.mxu1 %v10351_v23  ;;  %v8437_v23 = vrot.slane %v12756_v45, %v12554_v19  ;;  %v8318_v9 = vmul.f32 0.125, %v8292_v41  ;;  %v10701_v41 = vld [vmem:[%s12418_s10 + $0x1e8] sm:$0xff]  }
 0x479   : > { %10503 = vmatprep.subr.bf16.mxu1 %v10650_v31  ;;  %8068 = vmatmul.mubr.bf16.vlgmr.msra.gmra.mxu0 %v12950_v37  ;;  %v10676_v31 = vld [vmem:[%s12418_s10 + $0x88] sm:$0xff]  }
 0x47a   : > { %10482 = vmatpush3.bf16.msra.mxu0 %v10651_v40  ;;  %9040 = vmatprep.mubr.bf16.mxu0 %v8489_v28  ;;  %v10720_v52 = vpop.eup %10719  ;;  %v8326_v19 = vadd.f32 1e-05, %v8318_v9  ;;  %v10712_v9 = vld [vmem:[%s12418_s10 + $0x180] sm:$0xff]  }
 0x47b   : > { %8111 = vmatmul.mubr.bf16.vlgmr.msra.gmra.mxu1 %v12951_v42  ;;  %10483 = vmatprep.subr.bf16.mxu0 %v10653_v2  ;;  %v10722_v8 = vpop.eup %10721  ;;  %v8340_v22 = vmul.f32 %v10720_v52, %v12695_v55  ;;  %v8348_v27 = vmul.f32 %v10720_v52, %v12683_v18  ;;  %v10672_v18 = vld [vmem:[%s12418_s10 + $0x90] sm:$0xff]   ;;  %v10673_v55 = vld [vmem:[%s12418_s10 + $0x48] sm:$0xff]   ;;  %v10682_v42 = vld [vmem:[%s12418_s10 + $0x138] sm:$0xff]  }
 0x47c   : > { %10504 = vmatpush3.bf16.msra.mxu1 %v10652_v51  ;;  %9081 = vmatprep.mubr.bf16.mxu1 %v8491_v26  ;;  %v8343_v44 = vmul.f32 %v10722_v8, %v12708_v12  ;;  %v8351_v6 = vmul.f32 %v10722_v8, %v12711_v59  ;;  %v8425_v12 = vrot.slane %v12756_v45, %v12439_v53  ;;  %v10674_v59 = vld [vmem:[%s12418_s10 + $0xc8] sm:$0xff]   ;;  %v10678_v53 = vld [vmem:[%s12418_s10 + $0xc0] sm:$0xff]   ;;  %v10681_v51 = vld [vmem:[%s12418_s10 + $0x178] sm:$0xff]   ;;  %10723 = vrsqrt.f32 %v8326_v19 }
 0x47d   : > { %10505 = vmatprep.subr.bf16.mxu1 %v10654_v49  ;;  %v8398_v54 = vmul.f32 %v8367_v57, %v8340_v22  ;;  %v8406_v25 = vmul.f32 %v8367_v57, %v8348_v27  ;;  %v10683_v26 = vld [vmem:[%s12418_s10 + $0x170] sm:$0xff]   ;;  %v10696_v27 = vld [vmem:[%s12418_s10 + $0x100] sm:$0xff]  }
 0x47e   : > { %10484 = vmatpush3.bf16.msra.mxu0 %v10655_v20  ;;  %v8409_v35 = vmul.f32 %v8379_v13, %v8351_v6  ;;  %v8401_v7 = vmul.f32 %v8379_v13, %v8343_v44  ;;  %v10692_v52 = vld [vmem:[%s12418_s10 + $0x110] sm:$0xff]   ;;  %v10697_v44 = vld [vmem:[%s12418_s10 + $0x1f8] sm:$0xff]  }
 0x47f   : > { %10485 = vmatprep.subr.bf16.mxu0 %v10657_v1  ;;  %v8464_v29 = vadd.f32 %v8425_v12, %v8406_v25  ;;  %v8456_v58 = vadd.f32 %v8425_v12, %v8398_v54  ;;  %v10684_v1 = vld [vmem:[%s12418_s10 + $0x130] sm:$0xff]   ;;  %v10698_v6 = vld [vmem:[%s12418_s10 + $0x1b8] sm:$0xff]   ;;  %v10704_v54 = vld [vmem:[%s12418_s10 + $0x1a0] sm:$0xff]  }
 0x480   : > { %10506 = vmatpush3.bf16.msra.mxu1 %v10656_v14  ;;  %v8459_v40 = vadd.f32 %v8437_v23, %v8401_v7  ;;  %v8467_v11 = vadd.f32 %v8437_v23, %v8409_v35  ;;  %v10699_v13 = vld [vmem:[%s12418_s10 + $0x1f0] sm:$0xff]   ;;  %v10705_v25 = vld [vmem:[%s12418_s10 + $0x1d8] sm:$0xff]   ;;  %v10709_v7 = vld [vmem:[%s12418_s10 + $0x1c8] sm:$0xff]  }
 0x481   : > { %10507 = vmatprep.subr.bf16.mxu1 %v10658_v33  ;;  %v8480_v37 = vmax.f32 %v8464_v29, 0.0  ;;  %v8472_v28 = vmax.f32 %v8456_v58, 0.0  ;;  %v10685_v33 = vld [vmem:[%s12418_s10 + $0x168] sm:$0xff]   ;;  %v10706_v12 = vld [vmem:[%s12418_s10 + $0x198] sm:$0xff]   ;;  %v10708_v35 = vld [vmem:[%s12418_s10 + $0x190] sm:$0xff]  }
 0x482   : > { %10486 = vmatpush3.bf16.msra.mxu0 %v10659_v3  ;;  %v8475_v2 = vmax.f32 %v8459_v40, 0.0  ;;  %v8483_v49 = vmax.f32 %v8467_v11, 0.0  ;;  %v10686_v3 = vld [vmem:[%s12418_s10 + $0x128] sm:$0xff]  }
 0x483   : > { %10487 = vmatprep.subr.bf16.mxu0 %v10661_v21  ;;  %v8490_v20 = vpack.c.bf16 %v8480_v37, %v8472_v28  ;;  %v10689_v21 = vld [vmem:[%s12418_s10 + $0x158] sm:$0xff]   ;;  %v10710_v23 = vld [vmem:[%s12418_s10 + $0x188] sm:$0xff]   ;;  %v12855_v28 = vsub.s32 6, %v11549_v56 }
 0x484   : > { %10508 = vmatpush3.bf16.msra.mxu1 %v10660_v30  ;;  %v8493_v14 = vpack.c.bf16 %v8483_v49, %v8475_v2  ;;  %v10688_v30 = vld [vmem:[%s12418_s10 + $0x120] sm:$0xff]   ;;  %v12858_v49 = vsub.s32 7, %v11549_v56 }
 0x485   : > { %10509 = vmatprep.subr.bf16.mxu1 %v10662_v16 }
 0x486   : > { %10488 = vmatpush3.bf16.msra.mxu0 %v10663_v10  ;;  %v10690_v10 = vld [vmem:[%s12418_s10 + $0x118] sm:$0xff]  }
 0x487   : > { %10489 = vmatprep.subr.bf16.mxu0 %v10665_v32  ;;  %v8375_v32 = vrot.slane %v12741_v36, %v12538_v38 }
 0x488   : > { %10510 = vmatpush3.bf16.msra.mxu1 %v10664_v39 }
 0x489   : > { %10511 = vmatprep.subr.bf16.mxu1 %v10666_v34  ;;  %v10724_v16 = vpop.eup %10723  ;;  %v10691_v34 = vld [vmem:[%s12418_s10 + $0x150] sm:$0xff]  }
 0x48a   : > { %10490 = vmatpush3.bf16.msra.mxu0 %v10667_v24  ;;  %v8342_v15 = vmul.f32 %v10724_v16, %v12761_v61  ;;  %v8350_v39 = vmul.f32 %v10724_v16, %v12733_v47  ;;  %v10694_v61 = vld [vmem:[%s12418_s10 + $0x108] sm:$0xff]  }
 0x48b   : > { %10491 = vmatprep.subr.bf16.mxu0 %v10669_v5  ;;  %v10695_v5 = vld [vmem:[%s12418_s10 + $0x140] sm:$0xff]  }
 0x48c   : > { %10512 = vmatpush3.bf16.msra.mxu1 %v10668_v50  ;;  %v8400_v8 = vmul.f32 %v8375_v32, %v8342_v15  ;;  %v8408_v24 = vmul.f32 %v8375_v32, %v8350_v39  ;;  %v10693_v50 = vld [vmem:[%s12418_s10 + $0x148] sm:$0xff]  }
 0x48d   : > { %10513 = vmatprep.subr.bf16.mxu1 %v10670_v48 }
 0x48e   : > { %10492 = vmatpush3.bf16.msra.mxu0 %v10671_v62  ;;  %v8466_v47 = vadd.f32 %v8433_v4, %v8408_v24  ;;  %v8458_v22 = vadd.f32 %v8433_v4, %v8400_v8  ;;  %v10700_v62 = vld [vmem:[%s12418_s10 + $0x1b0] sm:$0xff]  }
 0x48f   : > { %10493 = vmatprep.subr.bf16.mxu0 %v10673_v55  ;;  %v10703_v55 = vld [vmem:[%s12418_s10 + $0x1e0] sm:$0xff]  }
 0x490   : > { %10514 = vmatpush3.bf16.msra.mxu1 %v10672_v18  ;;  %v8482_v57 = vmax.f32 %v8466_v47, 0.0  ;;  %v8474_v48 = vmax.f32 %v8458_v22, 0.0  ;;  %v10702_v18 = vld [vmem:[%s12418_s10 + $0x1a8] sm:$0xff]  }
 0x491   : > { %10515 = vmatprep.subr.bf16.mxu1 %v10674_v59  ;;  %v10707_v59 = vld [vmem:[%s12418_s10 + $0x1d0] sm:$0xff]  }
 0x492   : > { %10494 = vmatpush3.bf16.msra.mxu0 %v10675_v0  ;;  %v8492_v38 = vpack.c.bf16 %v8482_v57, %v8474_v48  ;;  %v10711_v0 = vld [vmem:[%s12418_s10 + $0x1c0] sm:$0xff]  }
 0x493   : > { %10495 = vmatprep.subr.bf16.mxu0 %v10677_v60  ;;  %v7854_v60 = vpop.f32.mrf.mxu1 }
 0x494   : > { %10516 = vmatpush3.bf16.msra.mxu1 %v10676_v31  ;;  %v7811_v31 = vpop.f32.mrf.mxu0 }
 0x495   : > { %10517 = vmatprep.subr.bf16.mxu1 %v10678_v53  ;;  %v7856_v53 = vpop.f32.mrf.mxu1 }
 0x496   : > { %10496 = vmatpush3.bf16.msra.mxu0 %v10679_v17  ;;  %v7813_v29 = vpop.f32.mrf.mxu0 }
 0x497   : > { %10525 = vmatprep.subr.bf16.mxu0 %v10681_v51  ;;  %v7858_v40 = vpop.f32.mrf.mxu1 }
 0x498   : > { %10518 = vmatpush3.bf16.msra.mxu1 %v10680_v46  ;;  %v7815_v58 = vpop.f32.mrf.mxu0 }
 0x499   : > { %9041 = vmatmul.mubr.bf16.vlgmr.msra.gmra.mxu0 %v12952_v63  ;;  %10547 = vmatprep.subr.bf16.mxu1 %v10697_v44  ;;  %v7860_v17 = vpop.f32.mrf.mxu1 }
 0x49a   : > { %10526 = vmatpush3.bf16.msra.mxu0 %v10682_v42  ;;  %9122 = vmatprep.mubr.bf16.mxu0 %v8493_v14  ;;  %v7817_v11 = vpop.f32.mrf.mxu0 }
 0x49b   : > { %9082 = vmatmul.mubr.bf16.vlgmr.msra.gmra.mxu1 %v8490_v20  ;;  %10527 = vmatprep.subr.bf16.mxu0 %v10683_v26  ;;  %v10732_v26 = vld [vmem:[%s11131_s6] sm:$0xff]  ;;  %s12953_s6 = sld [smem:[#allocation31_spill]] }
 0x49c   : > { %10548 = vmatpush3.bf16.msra.mxu1 %v10698_v6  ;;  %v1532_v20 = vrot.slane %v10732_v26, %v12855_v28  ;;  %v1536_v14 = vrot.slane %v10732_v26, %v12858_v49 }
 0x49d   : > { %10549 = vmatprep.subr.bf16.mxu1 %v10699_v13 }
 0x49e   : > { %10528 = vmatpush3.bf16.msra.mxu0 %v10684_v1  ;;  %v7818_v16 = vadd.f32 %v7817_v11, %v1536_v14 }
 0x49f   : > { %10529 = vmatprep.subr.bf16.mxu0 %v10685_v33 }
 0x4a0   : > { %10550 = vmatpush3.bf16.msra.mxu1 %v10700_v62 }
 0x4a1   : > { %10551 = vmatprep.subr.bf16.mxu1 %v10701_v41  ;;  %s455_s30 = scalar_lea.vmem %s12953_s6, %s10480_s20 }
 0x4a2   : > { %10530 = vmatpush3.bf16.msra.mxu0 %v10686_v3  ;;  %v7812_v3 = vadd.f32 %v7811_v31, %v1532_v20 }
 0x4a3   : > { %10531 = vmatprep.subr.bf16.mxu0 %v10687_v43  ;;  %v7816_v43 = vadd.f32 %v7815_v58, %v1532_v20 }
 0x4a4   : > { %10552 = vmatpush3.bf16.msra.mxu1 %v10702_v18  ;;  %v7855_v15 = vadd.f32 %v7854_v60, %v7812_v3 }
 0x4a5   : > { %10553 = vmatprep.subr.bf16.mxu1 %v10703_v55  ;;  %v7859_v39 = vadd.f32 %v7858_v40, %v7816_v43 }
 0x4a6   : > { %10532 = vmatpush3.bf16.msra.mxu0 %v10688_v30 }
 0x4a7   : > { %10533 = vmatprep.subr.bf16.mxu0 %v10689_v21  ;;  %v7814_v21 = vadd.f32 %v7813_v29, %v1536_v14 }
 0x4a8   : > { %10554 = vmatpush3.bf16.msra.mxu1 %v10704_v54 }
 0x4a9   : > { %10555 = vmatprep.subr.bf16.mxu1 %v10705_v25  ;;  %v7857_v56 = vadd.f32 %v7856_v53, %v7814_v21 }
 0x4aa   : > { %10534 = vmatpush3.bf16.msra.mxu0 %v10690_v10 }
 0x4ab   : > { %10535 = vmatprep.subr.bf16.mxu0 %v10691_v34  ;;  %v7861_v34 = vadd.f32 %v7860_v17, %v7818_v16 }
 0x4ac   : > { %10556 = vmatpush3.bf16.msra.mxu1 %v10706_v12 }
 0x4ad   : > { %10557 = vmatprep.subr.bf16.mxu1 %v10707_v59 }
 0x4ae   : > { %10536 = vmatpush3.bf16.msra.mxu0 %v10692_v52 }
 0x4af   : > { %10537 = vmatprep.subr.bf16.mxu0 %v10693_v50 }
 0x4b0   : > { %10558 = vmatpush3.bf16.msra.mxu1 %v10708_v35 }
 0x4b1   : > { %10559 = vmatprep.subr.bf16.mxu1 %v10709_v7 }
 0x4b2   : > { %10538 = vmatpush3.bf16.msra.mxu0 %v10694_v61 }
 0x4b3   : > { %10539 = vmatprep.subr.bf16.mxu0 %v10695_v5 }
 0x4b4   : > { %10560 = vmatpush3.bf16.msra.mxu1 %v10710_v23 }
 0x4b5   : > { %10561 = vmatprep.subr.bf16.mxu1 %v10711_v0 }
 0x4b6   : > { %10540 = vmatpush3.bf16.msra.mxu0 %v10696_v27 }
 0x4b8   : > { %10562 = vmatpush3.bf16.msra.mxu1 %v10712_v9 }
 0x4b9   : > { %9123 = vmatmul.mubr.bf16.vlgmr.msra.gmra.mxu0 %v8492_v38  ;;  %v7897_v19 = vpop.f32.mrf.mxu0 }
 0x4ba   : > { %v7898_v52 = vadd.f32 %v7897_v19, %v7855_v15 }
 0x4bb   : > { %v7940_v46 = vpop.f32.mrf.mxu1  ;;  %v7899_v51 = vpop.f32.mrf.mxu0 }
 0x4bc   : > { %v7900_v4 = vadd.f32 %v7899_v51, %v7857_v56  ;;  %v7941_v47 = vadd.f32 %v7940_v46, %v7898_v52 }
 0x4bd   : > { %v7942_v37 = vpop.f32.mrf.mxu1  ;;  %v7901_v2 = vpop.f32.mrf.mxu0 }
 0x4be   : > { %v7902_v8 = vadd.f32 %v7901_v2, %v7859_v39  ;;  %v7943_v27 = vadd.f32 %v7942_v37, %v7900_v4 }
 0x4bf   : > { %v7944_v42 = vpop.f32.mrf.mxu1  ;;  %v7903_v63 = vpop.f32.mrf.mxu0 }
 0x4c0   : > { %v7904_v50 = vadd.f32 %v7903_v63, %v7861_v34  ;;  %v7945_v5 = vadd.f32 %v7944_v42, %v7902_v8 }
 0x4c1   : > { %v7946_v1 = vpop.f32.mrf.mxu1 }
 0x4c2   : > { %v7947_v57 = vadd.f32 %v7946_v1, %v7904_v50 }
 0x4f9   : > { %v7983_v33 = vpop.f32.mrf.mxu0 }
 0x4fa   : > { %v7984_v48 = vadd.f32 %v7983_v33, %v7941_v47 }
 0x4fb   : > { %v8026_v30 = vpop.f32.mrf.mxu1  ;;  %v7985_v10 = vpop.f32.mrf.mxu0 }
 0x4fc   : > { %v7986_v13 = vadd.f32 %v7985_v10, %v7943_v27  ;;  %v8027_v55 = vadd.f32 %v8026_v30, %v7984_v48 }
 0x4fd   : > { %v8028_v32 = vpop.f32.mrf.mxu1  ;;  %v7987_v24 = vpop.f32.mrf.mxu0 }
 0x4fe   : > { %v7988_v38 = vadd.f32 %v7987_v24, %v7945_v5  ;;  %v8029_v59 = vadd.f32 %v8028_v32, %v7986_v13 }
 0x4ff   : > { %v8030_v61 = vpop.f32.mrf.mxu1  ;;  %v7989_v22 = vpop.f32.mrf.mxu0 }
 0x500   : > { %v7990_v62 = vadd.f32 %v7989_v22, %v7947_v57  ;;  %v8031_v54 = vadd.f32 %v8030_v61, %v7988_v38 }
 0x501   : > { %v8032_v44 = vpop.f32.mrf.mxu1 }
 0x502   : > { %v8033_v35 = vadd.f32 %v8032_v44, %v7990_v62 }
 0x539   : > { %v8069_v6 = vpop.f32.mrf.mxu0 }
 0x53a   : > { %v8070_v7 = vadd.f32 %v8069_v6, %v8027_v55 }
 0x53b   : > { %v8112_v41 = vpop.f32.mrf.mxu1  ;;  %v8071_v18 = vpop.f32.mrf.mxu0 }
 0x53c   : > { %v8072_v31 = vadd.f32 %v8071_v18, %v8029_v59  ;;  %v8113_v58 = vadd.f32 %v8112_v41, %v8070_v7 }
 0x53d   : > { %v8114_v25 = vpop.f32.mrf.mxu1  ;;  %v8073_v12 = vpop.f32.mrf.mxu0 }
 0x53e   : > { %v8074_v23 = vadd.f32 %v8073_v12, %v8031_v54  ;;  %v8115_v17 = vadd.f32 %v8114_v25, %v8072_v31  ;;  %v8383_v12 = vrot.slane %v12741_v36, %v12855_v28  ;;  %v8445_v31 = vrot.slane %v12756_v45, %v12858_v49 }
 0x53f   : > { %v8116_v0 = vpop.f32.mrf.mxu1  ;;  %v8075_v9 = vpop.f32.mrf.mxu0 }
 0x540   : > { %v8117_v60 = vadd.f32 %v8116_v0, %v8074_v23  ;;  %v8076_v29 = vadd.f32 %v8075_v9, %v8033_v35  ;;  %v8441_v23 = vrot.slane %v12756_v45, %v12855_v28  ;;  %v8387_v0 = vrot.slane %v12741_v36, %v12858_v49 }
 0x541   : > { %v8118_v53 = vpop.f32.mrf.mxu1 }
 0x542   : > { %v8144_v40 = vmul.f32 0.0, %v8117_v60  ;;  %v8119_v11 = vadd.f32 %v8118_v53, %v8076_v29 }
 0x544   : > { %v8188_v19 = vadd.f32 %v8144_v40, %v8113_v58  ;;  %v8145_v46 = vmul.f32 0.0, %v8119_v11 }
 0x546   : > { %v8189_v51 = vrot.slane %v8188_v19, 4  ;;  %v8195_v37 = vadd.f32 %v8145_v46, %v8115_v17 }
 0x548   : > { %v8190_v2 = vadd.f32 %v8189_v51, %v8188_v19  ;;  %v8196_v42 = vrot.slane %v8195_v37, 4 }
 0x54a   : > { %v8191_v26 = vrot.slane %v8190_v2, 2  ;;  %v8197_v20 = vadd.f32 %v8196_v42, %v8195_v37 }
 0x54c   : > { %v8192_v63 = vadd.f32 %v8191_v26, %v8190_v2  ;;  %v8198_v14 = vrot.slane %v8197_v20, 2 }
 0x54e   : > { %v8193_v1 = vrot.slane %v8192_v63, 1  ;;  %v8199_v33 = vadd.f32 %v8198_v14, %v8197_v20 }
 0x550   : > { %v8194_v3 = vadd.f32 %v8193_v1, %v8192_v63  ;;  %v8200_v43 = vrot.slane %v8199_v33, 1 }
 0x552   : > { %v8208_v30 = vmul.f32 0.125, %v8194_v3  ;;  %v8201_v21 = vadd.f32 %v8200_v43, %v8199_v33 }
 0x554   : > { %v8216_v16 = vsub.f32 %v8113_v58, %v8208_v30  ;;  %v8224_v10 = vsub.f32 %v8117_v60, %v8208_v30  ;;  %v8209_v15 = vmul.f32 0.125, %v8201_v21 }
 0x556   : > { %v8240_v39 = vmul.f32 0.0, %v8224_v10  ;;  %v8217_v32 = vsub.f32 %v8115_v17, %v8209_v15  ;;  %v8225_v56 = vsub.f32 %v8119_v11, %v8209_v15  ;;  %v8248_v34 = vmul.f32 %v8216_v16, %v8216_v16 }
 0x558   : > { %v8256_v52 = vmul.f32 %v8240_v39, %v8240_v39  ;;  %v8241_v8 = vmul.f32 0.0, %v8225_v56  ;;  %v8249_v4 = vmul.f32 %v8217_v32, %v8217_v32 }
 0x559   : > { %v10497_v45 = vpop.f32.mrf.mxu0 }
 0x55a   : > { %v8300_v24 = vadd.f32 %v8256_v52, %v8248_v34  ;;  %v8257_v50 = vmul.f32 %v8241_v8, %v8241_v8 }
 0x55b   : > { %v10498_v49 = vpop.f32.mrf.mxu0  ;;  %v10519_v63 = vpop.f32.mrf.mxu1 }
 0x55c   : > { %v8301_v61 = vrot.slane %v8300_v24, 4  ;;  %v8307_v47 = vadd.f32 %v8257_v50, %v8249_v4  ;;  %v10499_v21 = vadd.f32 %v10498_v49, %v10497_v45 }
 0x55d   : > { %v10500_v20 = vpop.f32.mrf.mxu0  ;;  %v10520_v33 = vpop.f32.mrf.mxu1 }
 0x55e   : > { %v8302_v5 = vadd.f32 %v8301_v61, %v8300_v24  ;;  %v8308_v22 = vrot.slane %v8307_v47, 4 }
 0x55f   : > { %v10501_v14 = vpop.f32.mrf.mxu0  ;;  %v10522_v43 = vpop.f32.mrf.mxu1 }
 0x560   : > { %v8303_v27 = vrot.slane %v8302_v5, 2  ;;  %v8309_v57 = vadd.f32 %v8308_v22, %v8307_v47  ;;  %v10502_v34 = vadd.f32 %v10501_v14, %v10500_v20 }
 0x562   : > { %v8304_v48 = vadd.f32 %v8303_v27, %v8302_v5  ;;  %v8310_v38 = vrot.slane %v8309_v57, 2 }
 0x564   : > { %v8305_v44 = vrot.slane %v8304_v48, 1  ;;  %v8311_v6 = vadd.f32 %v8310_v38, %v8309_v57 }
 0x566   : > { %v8306_v13 = vadd.f32 %v8305_v44, %v8304_v48  ;;  %v8312_v62 = vrot.slane %v8311_v6, 1 }
 0x568   : > { %v8320_v41 = vmul.f32 0.125, %v8306_v13  ;;  %v8313_v18 = vadd.f32 %v8312_v62, %v8311_v6 }
 0x56a   : > { %v8328_v55 = vadd.f32 1e-05, %v8320_v41  ;;  %v8321_v54 = vmul.f32 0.125, %v8313_v18 }
 0x56c   : > { %10725 = vrsqrt.f32 %v8328_v55  ;;  %v8329_v25 = vadd.f32 1e-05, %v8321_v54 }
 0x56e   : > { %10727 = vrsqrt.f32 %v8329_v25 }
 0x579   : > { %v10726_v59 = vpop.eup %10725  ;;  %v10541_v1 = vpop.f32.mrf.mxu0 }
 0x57a   : > { %v8344_v35 = vmul.f32 %v10726_v59, %v8216_v16  ;;  %v8352_v7 = vmul.f32 %v10726_v59, %v8224_v10  ;;  %v10521_v16 = vadd.f32 %v10520_v33, %v10519_v63  ;;  %v10523_v10 = vpop.f32.mrf.mxu1 }
 0x57b   : > { %v10728_v9 = vpop.eup %10727  ;;  %v10542_v3 = vpop.f32.mrf.mxu0  ;;  %v10524_v52 = vadd.f32 %v10523_v10, %v10522_v43 }
 0x57c   : > { %v8402_v60 = vmul.f32 %v8383_v12, %v8344_v35  ;;  %v8410_v29 = vmul.f32 %v8383_v12, %v8352_v7  ;;  %v8345_v53 = vmul.f32 %v10728_v9, %v8217_v32  ;;  %v8353_v58 = vmul.f32 %v10728_v9, %v8225_v56 }
 0x57d   : > { %v10544_v30 = vpop.f32.mrf.mxu0  ;;  %v10543_v15 = vadd.f32 %v10542_v3, %v10541_v1  ;;  %v9084_v56 = vadd.f32 %v10521_v16, %v10499_v21  ;;  %v9087_v47 = vadd.f32 %v10524_v52, %v10502_v34 }
 0x57e   : > { %v8468_v40 = vadd.f32 %v8441_v23, %v8410_v29  ;;  %v8411_v11 = vmul.f32 %v8387_v0, %v8353_v58  ;;  %v8403_v17 = vmul.f32 %v8387_v0, %v8345_v53  ;;  %v8460_v19 = vadd.f32 %v8441_v23, %v8402_v60 }
 0x57f   : > { %v10545_v39 = vpop.f32.mrf.mxu0  ;;  %v9125_v24 = vadd.f32 %v10543_v15, %v9084_v56 }
 0x580   : > { %v8461_v46 = vadd.f32 %v8445_v31, %v8403_v17  ;;  %v8469_v51 = vadd.f32 %v8445_v31, %v8411_v11  ;;  %v8484_v37 = vmax.f32 %v8468_v40, 0.0  ;;  %v8476_v2 = vmax.f32 %v8460_v19, 0.0 }
 0x581   : > { %v10546_v4 = vadd.f32 %v10545_v39, %v10544_v30 }
 0x582   : > { %v8477_v28 = vmax.f32 %v8461_v46, 0.0  ;;  %v8485_v42 = vmax.f32 %v8469_v51, 0.0  ;;  %v8494_v26 = vpack.c.bf16 %v8484_v37, %v8476_v2 }
 0x583   : > { %v9128_v27 = vadd.f32 %v10546_v4, %v9087_v47 }
 0x584   : > { %v8495_v36 = vpack.c.bf16 %v8485_v42, %v8477_v28 }
 0x586   : > { %9163 = vmatprep.mubr.bf16.mxu1 %v8495_v36 }
 0x587   : > { %9164 = vmatmul.mubr.bf16.vlgmr.msra.gmra.mxu1 %v8494_v26 }
 0x647   : > { %v10563_v32 = vpop.f32.mrf.mxu1 }
 0x649   : > { %v10564_v8 = vpop.f32.mrf.mxu1 }
 0x64a   : > { %v10565_v50 = vadd.f32 %v10564_v8, %v10563_v32 }
 0x64b   : > { %v10566_v61 = vpop.f32.mrf.mxu1 }
 0x64c   : > { %v9166_v5 = vadd.f32 %v10565_v50, %v9125_v24 }
 0x64d   : > { %v10567_v22 = vpop.f32.mrf.mxu1 }
 0x64e   : > { %v10568_v57 = vadd.f32 %v10567_v22, %v10566_v61  ;;  %9174 = vst [vmem:[%s455_s30] sm:$0xff] %v9166_v5 }
 0x650   : > { %v9169_v48 = vadd.f32 %v10568_v57, %v9128_v27 }
 0x652   : > { %9175 = vst [vmem:[%s455_s30 + $0x8] sm:$0xff] %v9169_v48 }
 0x653 PF: > { %s25_s26 = sadd.s32 1, %s10931_s26   ;;  %s12954_s24 = sld [smem:[#allocation13_spill]] }
 0x654   : > { %p22_p9 = scmp.ge.s32.totalorder %s25_s26, 4   ;;  %s12955_s23 = sld [smem:[#allocation15_spill]] }
 0x655   : > { %s12956_s9 = sld [smem:[#allocation14_spill]]  ;;  %s12957_s21 = smov %s10915_s22 }
 0x657   :  { %24 = sbr.rel (!%p22_p9) target bundleno = 13 (0xd), region = 136 }
 0x659   : > { %s12958_s22 = smov %s12954_s24  ;;  %s12959_s24 = smov %s10927_s25 }
 0x65b   : > { %s12960_s25 = smov %s12956_s9 }
 0x65c   :  { %9197 = vsyncpa [#allocation3], 1 }
 0x65d   :  { %9199 = vsyncpa [#allocation3 + $0x1], 1 }
 0x65e   :  { %9200 = vsyncpa [#allocation5], 1 }
 0x65f   :  { %9202 = vsyncpa [#allocation5 + $0x1], 1 }
 0x660   :  { %9203 = vsyncpa [#allocation8], 1 }
 0x661   :  { %9205 = vsyncpa [#allocation8 + $0x1], 1 }

</bundles_post_ra>
